<compile_context>
chip_gen: v7x
topology: tpu7x:2x2x1
jax: 0.10.0
libtpu: 0.0.40
codegen_flags: <defaults>
</compile_context>

<pallas_src>
import functools
import numpy as np
import jax
import jax.numpy as jnp
from jax.experimental import pallas as pl
from jax.experimental.pallas import tpu as pltpu

CHAR_CONV_FILTERS = 25
CHAR_CONV_WINDOW_SIZE = 5
CHAR_EMBEDDINGS_SIZE = 50
CONV_PAD = CHAR_CONV_WINDOW_SIZE   # nn.Conv1d(..., padding=5)

LANE = 128                         # TPU lane width
GP = 128                           # per-gate lane block (each gate padded to a vreg)
NBLK = 8                           # i_f, i_b, f_f, f_b, g_f, g_b, o_f, o_b
ZW = NBLK * GP                     # 1024: per-step pre-activation width (both dirs)
HPAD = 2 * GP                      # 256: padded (fwd | bwd) hidden / cell state width


# ----------------------------------------------------------------------------
# Fused kernel: CharCNN (im2col matmul) + batched BiLSTM + Linear + log_softmax
# ----------------------------------------------------------------------------
def fused_tagger_kernel(chars_ref, convw_ref, convb_ref, wemb_ref,
                        win_ref, b_in_ref, whh_ref, wlin_ref, blin_ref,
                        out_ref, hid_ref, *, T, B):
    # chars_ref : (T*B*lout_pad, Kpad)  time-major im2col char-embedding windows
    # convw_ref : (Kpad, cpad)          conv weight, filters zero-padded to 128 lanes
    # convb_ref : (1, cpad)
    # wemb_ref  : (T*B, cpad)           word embeddings placed in lanes [cpad-E, cpad)
    # win_ref   : (cpad, 2*ZW)          fused input projection [fwd half | bwd half]
    # b_in_ref  : (1, 2*ZW)             b_ih + b_hh in the same gate-block layout
    # whh_ref   : (HPAD, ZW)            block-diagonal recurrent weight (both dirs)
    # wlin_ref  : (HPAD, tpad)          final linear (tag dim padded to 128 lanes)
    # blin_ref  : (1, tpad)             -1e30 in padded tag lanes
    # out_ref   : (T*B, tpad)           lane-dense log-softmax tag scores (time-major)
    # hid_ref   : (T*B, HPAD)           scratch: per-token (fwd | bwd) hidden rows
    TB = T * B
    cpad = convw_ref.shape[1]
    lout = chars_ref.shape[0] // TB           # padded conv output length per word

    # --- CharCNN: one contraction/lane-aligned matmul + bias + ReLU + max-pool ---
    conv = jnp.dot(chars_ref[...], convw_ref[...],
                   preferred_element_type=jnp.float32)          # (TB*lout, cpad)
    conv = jnp.maximum(conv + convb_ref[...], 0.0)
    cfeat = jnp.max(conv.reshape(TB, lout, cpad), axis=1)       # (TB, cpad)

    # --- fused input projection for BOTH directions / all gates (off crit. path) ---
    # Word embeddings already sit in the all-zero filter-padding lanes of cfeat, so
    # the [wemb | cfeat] concat is a plain VPU add and the projection is ONE matmul.
    x = cfeat + wemb_ref[...]                                    # (TB, cpad)
    zx = (jnp.dot(x, win_ref[...], preferred_element_type=jnp.float32)
          + b_in_ref[...])                                       # (TB, 2*ZW)
    zx_f = zx[:, :ZW]        # fwd pre-activations, gate-block layout, time-ordered
    zx_b = zx[:, ZW:]        # bwd pre-activations, same layout, read in reverse time

    whh = whh_ref[...]                                           # (HPAD, ZW)

    # stacked padded state: lanes [0, H) = forward dir, lanes [GP, GP+H) = backward;
    # all padded lanes provably stay exactly zero through the recurrence.
    h = jnp.zeros((B, HPAD), jnp.float32)
    c = jnp.zeros((B, HPAD), jnp.float32)

    # statically unrolled over the (short / bucketed) sentence length
    for t in range(T):
        tb = T - 1 - t
        # single per-step MXU op for both directions and the whole batch
        z = (zx_f[t * B:(t + 1) * B, :]
             + zx_b[tb * B:(tb + 1) * B, :]
             + jnp.dot(h, whh, preferred_element_type=jnp.float32))   # (B, ZW)
        # gate blocks are vreg-aligned 256-lane slices (fwd block | bwd block);
        # sigmoid only on i/f/o, tanh only on g.  PyTorch gate order i, f, g, o.
        i = jax.nn.sigmoid(z[:, 0 * GP:2 * GP])
        f = jax.nn.sigmoid(z[:, 2 * GP:4 * GP])
        g = jnp.tanh(z[:, 4 * GP:6 * GP])
        o = jax.nn.sigmoid(z[:, 6 * GP:8 * GP])
        c = f * c + i * g
        h = o * jnp.tanh(c)
        # lane-aligned, unmasked 128-wide stores (no 32-lane vst.msk on the chain)
        hid_ref[t * B:(t + 1) * B, 0:GP] = h[:, 0:GP]             # fwd hidden @ t
        hid_ref[tb * B:(tb + 1) * B, GP:HPAD] = h[:, GP:HPAD]     # bwd hidden @ tb

    # --- single merged Linear + log_softmax (tag lanes padded to 128 -> dense store)
    tag = (jnp.dot(hid_ref[...], wlin_ref[...], preferred_element_type=jnp.float32)
           + blin_ref[...])
    m = jnp.max(tag, axis=1, keepdims=True)
    s = tag - m
    out_ref[...] = s - jnp.log(jnp.sum(jnp.exp(s), axis=1, keepdims=True))


# ----------------------------------------------------------------------------
# Wrapper / glue (embedding gathers, im2col, weight packing)
# ----------------------------------------------------------------------------
def run_bilstm_tagger_batch(params, word_ids, char_ids):
    """Fused forward for a batch of B same-length sentences.

    word_ids : (B, T) int32        char_ids : (B, T, L) int32 (0-padded)
    returns  : (B, T, tag_size) float32 log-softmax tag scores
    """
    B, T = int(word_ids.shape[0]), int(word_ids.shape[1])
    L = int(char_ids.shape[2])
    K = CHAR_CONV_WINDOW_SIZE
    Cin = CHAR_EMBEDDINGS_SIZE
    Cout = CHAR_CONV_FILTERS
    E = params['word_emb'].shape[1]
    H = params['w_hh_f'].shape[1]
    tags = params['lin_w'].shape[0]

    cpad = LANE
    Kpad = ((K * Cin + LANE - 1) // LANE) * LANE                 # 250 -> 256
    tpad = ((tags + LANE - 1) // LANE) * LANE
    assert H <= GP and Cout + E <= cpad and tags <= tpad
    eoff = cpad - E                                              # word-emb lane offset

    # --- glue: embedding gathers + conv im2col, all in TIME-MAJOR layout (t, b) ---
    wemb = params['word_emb'][word_ids]                          # (B, T, E)
    wemb = jnp.transpose(wemb, (1, 0, 2)).reshape(T * B, E)
    wemb_pad = jnp.zeros((T * B, cpad), jnp.float32).at[:, eoff:eoff + E].set(wemb)

    cemb = params['char_emb'][char_ids]                          # (B, T, L, Cin)
    cep = jnp.pad(cemb, ((0, 0), (0, 0), (CONV_PAD, CONV_PAD), (0, 0)))
    lout = L + 2 * CONV_PAD - K + 1
    lout_pad = ((lout + 7) // 8) * 8
    # Extra all-zero windows are max-pool-safe: window 0 is already all padding, so
    # relu(conv_bias) is already included in the pool.
    unf = jnp.stack([cep[:, :, k:k + lout, :] for k in range(K)], axis=3)
    unf = unf.reshape(B, T, lout, K * Cin)
    unf = jnp.pad(unf, ((0, 0), (0, 0), (0, lout_pad - lout), (0, Kpad - K * Cin)))
    chars_unf = jnp.transpose(unf, (1, 0, 2, 3)).reshape(T * B * lout_pad, Kpad)

    # --- pack weights into lane-padded, gate-block kernel layouts ---
    convw = jnp.transpose(params['conv_w'], (2, 1, 0)).reshape(K * Cin, Cout)
    convw_p = jnp.zeros((Kpad, cpad), jnp.float32).at[:K * Cin, :Cout].set(convw)
    convb_p = jnp.zeros((1, cpad), jnp.float32).at[0, :Cout].set(params['conv_b'])

    # gate-block column layout: block (2k + d) <- gate k (i,f,g,o) of direction d
    # (0 = fwd, 1 = bwd), active lanes [0, H) inside each 128-lane block.
    win = jnp.zeros((cpad, 2 * ZW), jnp.float32)
    b_in = jnp.zeros((1, 2 * ZW), jnp.float32)
    whh = jnp.zeros((HPAD, ZW), jnp.float32)
    dirs = [(params['w_ih_f'], params['w_hh_f'], params['b_ih_f'], params['b_hh_f']),
            (params['w_ih_b'], params['w_hh_b'], params['b_ih_b'], params['b_hh_b'])]
    for d, (wih, whh_d, bih, bhh) in enumerate(dirs):
        for k in range(4):                                       # gate order i, f, g, o
            col = d * ZW + (2 * k + d) * GP
            win = win.at[eoff:eoff + E, col:col + H].set(wih[k * H:(k + 1) * H, :E].T)
            win = win.at[:Cout, col:col + H].set(wih[k * H:(k + 1) * H, E:].T)
            b_in = b_in.at[0, col:col + H].set(bih[k * H:(k + 1) * H]
                                               + bhh[k * H:(k + 1) * H])
            rcol = (2 * k + d) * GP
            whh = whh.at[d * GP:d * GP + H, rcol:rcol + H].set(
                whh_d[k * H:(k + 1) * H, :].T)

    wlin = jnp.zeros((HPAD, tpad), jnp.float32)
    wlin = wlin.at[0:H, :tags].set(params['lin_w'][:, :H].T)
    wlin = wlin.at[GP:GP + H, :tags].set(params['lin_w'][:, H:].T)
    blin = jnp.full((1, tpad), -1e30, jnp.float32).at[0, :tags].set(params['lin_b'])

    ins = (chars_unf, convw_p, convb_p, wemb_pad, win, b_in, whh, wlin, blin)

    out = pl.pallas_call(
        functools.partial(fused_tagger_kernel, T=T, B=B),
        grid=(1,),
        out_shape=jax.ShapeDtypeStruct((T * B, tpad), jnp.float32),
        in_specs=[pl.BlockSpec(a.shape, lambda i, nd=a.ndim: (0,) * nd) for a in ins],
        out_specs=pl.BlockSpec((T * B, tpad), lambda i: (0, 0)),
        scratch_shapes=[pltpu.VMEM((T * B, HPAD), jnp.float32)],
        compiler_params=pltpu.CompilerParams(dimension_semantics=("arbitrary",)),
    )(*ins)

    out = out.reshape(T, B, tpad)[:, :, :tags]
    return jnp.transpose(out, (1, 0, 2))                         # (B, T, tags)


def run_bilstm_tagger(params, word_ids, char_ids):
    """Single-sentence forward (matches the torch module's call semantics)."""
    return run_bilstm_tagger_batch(params, word_ids[None], char_ids[None])[0]


# ----------------------------------------------------------------------------
# Pure-JAX reference (same math, per sentence) for a sanity check
# ----------------------------------------------------------------------------
def _lstm_step(x_t, h, c, wih, whh, b, H):
    z = (jnp.dot(x_t, wih, preferred_element_type=jnp.float32)
         + jnp.dot(h, whh, preferred_element_type=jnp.float32) + b)
    i = jax.nn.sigmoid(z[:, 0 * H:1 * H])
    f = jax.nn.sigmoid(z[:, 1 * H:2 * H])
    g = jnp.tanh(z[:, 2 * H:3 * H])
    o = jax.nn.sigmoid(z[:, 3 * H:4 * H])
    c = f * c + i * g
    h = o * jnp.tanh(c)
    return h, c


def reference_forward(params, word_ids, char_ids):
    word_emb = params['word_emb'][word_ids]
    ce = params['char_emb'][char_ids]
    cep = jnp.pad(ce, ((0, 0), (CONV_PAD, CONV_PAD), (0, 0)))
    K = CHAR_CONV_WINDOW_SIZE
    Lout = cep.shape[1] - K + 1
    conv = jnp.zeros((cep.shape[0], Lout, CHAR_CONV_FILTERS), jnp.float32)
    for k in range(K):
        conv = conv + jnp.einsum('tlc,fc->tlf', cep[:, k:k + Lout, :],
                                 params['conv_w'][:, :, k])
    conv = jnp.maximum(conv + params['conv_b'][None, None, :], 0.0)
    char_feat = jnp.max(conv, axis=1)

    x = jnp.concatenate([word_emb, char_feat], axis=1)
    T = x.shape[0]
    H = params['w_hh_f'].shape[1]

    def run_dir(wih, whh, bih, bhh, order):
        h = jnp.zeros((1, H), jnp.float32)
        c = jnp.zeros((1, H), jnp.float32)
        outs = [None] * T
        for t in order:
            h, c = _lstm_step(x[t:t + 1, :], h, c, wih.T, whh.T,
                              (bih + bhh)[None, :], H)
            outs[t] = h
        return jnp.concatenate(outs, axis=0)

    hf = run_dir(params['w_ih_f'], params['w_hh_f'],
                 params['b_ih_f'], params['b_hh_f'], range(T))
    hb = run_dir(params['w_ih_b'], params['w_hh_b'],
                 params['b_ih_b'], params['b_hh_b'], range(T - 1, -1, -1))
    hidden = jnp.concatenate([hf, hb], axis=1)
    tag = hidden @ params['lin_w'].T + params['lin_b'][None, :]
    return jax.nn.log_softmax(tag, axis=1)


# ----------------------------------------------------------------------------
# Deterministic parameter init (shapes from the torch module's __init__)
# ----------------------------------------------------------------------------
def init_params(key, word_embed_size, hidden, vocab, tags):
    ks = jax.random.split(key, 16)

    def u(k, shape, bound):
        return jax.random.uniform(k, shape, jnp.float32, -bound, bound)

    Din = word_embed_size + CHAR_CONV_FILTERS
    s_conv = 1.0 / np.sqrt(CHAR_EMBEDDINGS_SIZE * CHAR_CONV_WINDOW_SIZE)
    s_lstm = 1.0 / np.sqrt(hidden)
    s_lin = 1.0 / np.sqrt(2 * hidden)
    return {
        'word_emb': jax.random.normal(ks[0], (vocab, word_embed_size), jnp.float32),
        'char_emb': jax.random.normal(ks[1], (128, CHAR_EMBEDDINGS_SIZE), jnp.float32),
        'conv_w': u(ks[2], (CHAR_CONV_FILTERS, CHAR_EMBEDDINGS_SIZE,
                            CHAR_CONV_WINDOW_SIZE), s_conv),
        'conv_b': u(ks[3], (CHAR_CONV_FILTERS,), s_conv),
        'w_ih_f': u(ks[4], (4 * hidden, Din), s_lstm),
        'w_hh_f': u(ks[5], (4 * hidden, hidden), s_lstm),
        'b_ih_f': u(ks[6], (4 * hidden,), s_lstm),
        'b_hh_f': u(ks[7], (4 * hidden,), s_lstm),
        'w_ih_b': u(ks[8], (4 * hidden, Din), s_lstm),
        'w_hh_b': u(ks[9], (4 * hidden, hidden), s_lstm),
        'b_ih_b': u(ks[10], (4 * hidden,), s_lstm),
        'b_hh_b': u(ks[11], (4 * hidden,), s_lstm),
        'lin_w': u(ks[12], (tags, 2 * hidden), s_lin),
        'lin_b': u(ks[13], (tags,), s_lin),
    }


if __name__ == "__main__":
    WORD_EMBED = 32
    HIDDEN = 32
    VOCAB = 64
    TAGS = 16
    BATCH = 8

    # Host-side glue replacing the torch module's word_to_ix / word_freq dict
    # lookups and `ord(character)` conversion (pure Python, not kernel work).
    base_words = ["the", "quick", "brown", "fox", "jumps", "over", "a", "dog"]
    T = len(base_words)
    sentences = [base_words[b:] + base_words[:b] for b in range(BATCH)]
    max_len = max(len(w) for w in base_words)
    char_np = np.zeros((BATCH, T, max_len), dtype=np.int32)
    for b, sent in enumerate(sentences):
        for i, w in enumerate(sent):
            for j, ch in enumerate(w):
                char_np[b, i, j] = ord(ch)
    # TODO(synk): ord(ch) > 127 for non-ASCII text would silently clamp in the
    #             128-row char-embedding gather; sanitize host-side in real use.

    key = jax.random.PRNGKey(0)
    params = init_params(key, WORD_EMBED, HIDDEN, VOCAB, TAGS)
    word_ids = jax.random.randint(jax.random.fold_in(key, 123), (BATCH, T), 0, VOCAB)
    char_ids = jnp.asarray(char_np)

    out = run_bilstm_tagger_batch(params, word_ids, char_ids)
    out = jax.block_until_ready(out)
    assert out.shape == (BATCH, T, TAGS)

    ref = jnp.stack([reference_forward(params, word_ids[b], char_ids[b])
                     for b in range(BATCH)])
    np.testing.assert_allclose(np.asarray(out), np.asarray(ref),
                               atol=1e-2, rtol=1e-2)
    print("KERNEL_OK")
</pallas_src>

<mosaic_0001>
module attributes {stable_mosaic.version = 11 : i64} {
  func.func @fused_tagger_kernel(%arg0: i32, %arg1: memref<1024x256xf32, #tpu.memory_space<vmem>>, %arg2: memref<256x128xf32, #tpu.memory_space<vmem>>, %arg3: memref<1x128xf32, #tpu.memory_space<vmem>>, %arg4: memref<64x128xf32, #tpu.memory_space<vmem>>, %arg5: memref<128x2048xf32, #tpu.memory_space<vmem>>, %arg6: memref<1x2048xf32, #tpu.memory_space<vmem>>, %arg7: memref<256x1024xf32, #tpu.memory_space<vmem>>, %arg8: memref<256x128xf32, #tpu.memory_space<vmem>>, %arg9: memref<1x128xf32, #tpu.memory_space<vmem>>, %arg10: memref<64x128xf32, #tpu.memory_space<vmem>>, %arg11: memref<64x256xf32, #tpu.memory_space<vmem>>) attributes {dimension_semantics = [#tpu.dimension_semantics<arbitrary>], iteration_bounds = array<i64: 1>, scalar_prefetch = 0 : i64, scratch_operands = 1 : i64, tpu.core_type = #tpu.core_type<tc>, window_params = [{pipeline_mode = #tpu.pipeline_mode<synchronous>, transform_indices = @transform_0, window_bounds = array<i64: 1024, 256>}, {pipeline_mode = #tpu.pipeline_mode<synchronous>, transform_indices = @transform_1, window_bounds = array<i64: 256, 128>}, {pipeline_mode = #tpu.pipeline_mode<synchronous>, transform_indices = @transform_2, window_bounds = array<i64: 1, 128>}, {pipeline_mode = #tpu.pipeline_mode<synchronous>, transform_indices = @transform_3, window_bounds = array<i64: 64, 128>}, {pipeline_mode = #tpu.pipeline_mode<synchronous>, transform_indices = @transform_4, window_bounds = array<i64: 128, 2048>}, {pipeline_mode = #tpu.pipeline_mode<synchronous>, transform_indices = @transform_5, window_bounds = array<i64: 1, 2048>}, {pipeline_mode = #tpu.pipeline_mode<synchronous>, transform_indices = @transform_6, window_bounds = array<i64: 256, 1024>}, {pipeline_mode = #tpu.pipeline_mode<synchronous>, transform_indices = @transform_7, window_bounds = array<i64: 256, 128>}, {pipeline_mode = #tpu.pipeline_mode<synchronous>, transform_indices = @transform_8, window_bounds = array<i64: 1, 128>}, {pipeline_mode = #tpu.pipeline_mode<synchronous>, transform_indices = @transform_9, window_bounds = array<i64: 64, 128>}]} {
    %c0 = arith.constant 0 : index
    %c0_0 = arith.constant 0 : index
    %0 = vector.load %arg1[%c0, %c0_0] : memref<1024x256xf32, #tpu.memory_space<vmem>>, vector<1024x256xf32>
    %c0_1 = arith.constant 0 : index
    %c0_2 = arith.constant 0 : index
    %1 = vector.load %arg2[%c0_1, %c0_2] : memref<256x128xf32, #tpu.memory_space<vmem>>, vector<256x128xf32>
    %cst = arith.constant dense<0.000000e+00> : vector<1024x128xf32>
    %2 = tpu.matmul %0, %1, %cst {dimension_numbers = #tpu.dot_dimension_numbers<[1], [0], [0], [1], [0, 0, 1, 1], [], []>} : vector<1024x256xf32>, vector<256x128xf32>, vector<1024x128xf32> -> vector<1024x128xf32>
    %c0_3 = arith.constant 0 : index
    %c0_4 = arith.constant 0 : index
    %3 = vector.load %arg3[%c0_3, %c0_4] : memref<1x128xf32, #tpu.memory_space<vmem>>, vector<1x128xf32>
    %4 = vector.broadcast %3 : vector<1x128xf32> to vector<1024x128xf32>
    %5 = arith.addf %2, %4 : vector<1024x128xf32>
    %cst_5 = arith.constant 0.000000e+00 : f32
    %6 = vector.broadcast %cst_5 : f32 to vector<1024x128xf32>
    %7 = arith.maximumf %5, %6 : vector<1024x128xf32>
    %8 = vector.shape_cast %7 : vector<1024x128xf32> to vector<64x16x128xf32>
    %cst_6 = arith.constant dense<0xFF800000> : vector<64x128xf32>
    %9 = vector.multi_reduction <maximumf>, %8, %cst_6 [1] : vector<64x16x128xf32> to vector<64x128xf32>
    %c0_7 = arith.constant 0 : index
    %c0_8 = arith.constant 0 : index
    %10 = vector.load %arg4[%c0_7, %c0_8] : memref<64x128xf32, #tpu.memory_space<vmem>>, vector<64x128xf32>
    %11 = arith.addf %9, %10 : vector<64x128xf32>
    %c0_9 = arith.constant 0 : index
    %c0_10 = arith.constant 0 : index
    %12 = vector.load %arg5[%c0_9, %c0_10] : memref<128x2048xf32, #tpu.memory_space<vmem>>, vector<128x2048xf32>
    %cst_11 = arith.constant dense<0.000000e+00> : vector<64x2048xf32>
    %13 = tpu.matmul %11, %12, %cst_11 {dimension_numbers = #tpu.dot_dimension_numbers<[1], [0], [0], [1], [0, 0, 1, 1], [], []>} : vector<64x128xf32>, vector<128x2048xf32>, vector<64x2048xf32> -> vector<64x2048xf32>
    %c0_12 = arith.constant 0 : index
    %c0_13 = arith.constant 0 : index
    %14 = vector.load %arg6[%c0_12, %c0_13] : memref<1x2048xf32, #tpu.memory_space<vmem>>, vector<1x2048xf32>
    %15 = vector.broadcast %14 : vector<1x2048xf32> to vector<64x2048xf32>
    %16 = arith.addf %13, %15 : vector<64x2048xf32>
    %17 = vector.extract_strided_slice %16 {offsets = [0, 0], sizes = [64, 1024], strides = [1, 1]} : vector<64x2048xf32> to vector<64x1024xf32>
    %18 = vector.extract_strided_slice %16 {offsets = [0, 1024], sizes = [64, 1024], strides = [1, 1]} : vector<64x2048xf32> to vector<64x1024xf32>
    %c0_14 = arith.constant 0 : index
    %c0_15 = arith.constant 0 : index
    %19 = vector.load %arg7[%c0_14, %c0_15] : memref<256x1024xf32, #tpu.memory_space<vmem>>, vector<256x1024xf32>
    %cst_16 = arith.constant 0.000000e+00 : f32
    %20 = vector.broadcast %cst_16 : f32 to vector<8x256xf32>
    %cst_17 = arith.constant 0.000000e+00 : f32
    %21 = vector.broadcast %cst_17 : f32 to vector<8x256xf32>
    %22 = vector.extract_strided_slice %17 {offsets = [0, 0], sizes = [8, 1024], strides = [1, 1]} : vector<64x1024xf32> to vector<8x1024xf32>
    %23 = vector.extract_strided_slice %18 {offsets = [56, 0], sizes = [8, 1024], strides = [1, 1]} : vector<64x1024xf32> to vector<8x1024xf32>
    %24 = arith.addf %22, %23 : vector<8x1024xf32>
    %cst_18 = arith.constant dense<0.000000e+00> : vector<8x1024xf32>
    %25 = tpu.matmul %20, %19, %cst_18 {dimension_numbers = #tpu.dot_dimension_numbers<[1], [0], [0], [1], [0, 0, 1, 1], [], []>} : vector<8x256xf32>, vector<256x1024xf32>, vector<8x1024xf32> -> vector<8x1024xf32>
    %26 = arith.addf %24, %25 : vector<8x1024xf32>
    %27 = vector.extract_strided_slice %26 {offsets = [0, 0], sizes = [8, 256], strides = [1, 1]} : vector<8x1024xf32> to vector<8x256xf32>
    %28 = arith.negf %27 : vector<8x256xf32>
    %29 = math.exp %28 : vector<8x256xf32>
    %cst_19 = arith.constant 1.000000e+00 : f32
    %30 = vector.broadcast %cst_19 : f32 to vector<8x256xf32>
    %31 = arith.addf %30, %29 : vector<8x256xf32>
    %32 = arith.divf %30, %31 : vector<8x256xf32>
    %33 = vector.extract_strided_slice %26 {offsets = [0, 256], sizes = [8, 256], strides = [1, 1]} : vector<8x1024xf32> to vector<8x256xf32>
    %34 = arith.negf %33 : vector<8x256xf32>
    %35 = math.exp %34 : vector<8x256xf32>
    %cst_20 = arith.constant 1.000000e+00 : f32
    %36 = vector.broadcast %cst_20 : f32 to vector<8x256xf32>
    %37 = arith.addf %36, %35 : vector<8x256xf32>
    %38 = arith.divf %36, %37 : vector<8x256xf32>
    %39 = vector.extract_strided_slice %26 {offsets = [0, 512], sizes = [8, 256], strides = [1, 1]} : vector<8x1024xf32> to vector<8x256xf32>
    %40 = math.tanh %39 : vector<8x256xf32>
    %41 = vector.extract_strided_slice %26 {offsets = [0, 768], sizes = [8, 256], strides = [1, 1]} : vector<8x1024xf32> to vector<8x256xf32>
    %42 = arith.negf %41 : vector<8x256xf32>
    %43 = math.exp %42 : vector<8x256xf32>
    %cst_21 = arith.constant 1.000000e+00 : f32
    %44 = vector.broadcast %cst_21 : f32 to vector<8x256xf32>
    %45 = arith.addf %44, %43 : vector<8x256xf32>
    %46 = arith.divf %44, %45 : vector<8x256xf32>
    %47 = arith.mulf %38, %21 : vector<8x256xf32>
    %48 = arith.mulf %32, %40 : vector<8x256xf32>
    %49 = arith.addf %47, %48 : vector<8x256xf32>
    %50 = math.tanh %49 : vector<8x256xf32>
    %51 = arith.mulf %46, %50 : vector<8x256xf32>
    %52 = vector.extract_strided_slice %51 {offsets = [0, 0], sizes = [8, 128], strides = [1, 1]} : vector<8x256xf32> to vector<8x128xf32>
    %c0_22 = arith.constant 0 : index
    %c0_23 = arith.constant 0 : index
    %53 = vector.load %arg11[%c0_22, %c0_23] : memref<64x256xf32, #tpu.memory_space<vmem>>, vector<8x128xf32>
    tpu.vector_store %arg11[%c0_22, %c0_23], %52 {strides = array<i32>} : memref<64x256xf32, #tpu.memory_space<vmem>>, vector<8x128xf32>,
    %54 = vector.extract_strided_slice %51 {offsets = [0, 128], sizes = [8, 128], strides = [1, 1]} : vector<8x256xf32> to vector<8x128xf32>
    %c56 = arith.constant 56 : index
    %c128 = arith.constant 128 : index
    %55 = vector.load %arg11[%c56, %c128] : memref<64x256xf32, #tpu.memory_space<vmem>>, vector<8x128xf32>
    tpu.vector_store %arg11[%c56, %c128], %54 {strides = array<i32>} : memref<64x256xf32, #tpu.memory_space<vmem>>, vector<8x128xf32>,
    %56 = vector.extract_strided_slice %17 {offsets = [8, 0], sizes = [8, 1024], strides = [1, 1]} : vector<64x1024xf32> to vector<8x1024xf32>
    %57 = vector.extract_strided_slice %18 {offsets = [48, 0], sizes = [8, 1024], strides = [1, 1]} : vector<64x1024xf32> to vector<8x1024xf32>
    %58 = arith.addf %56, %57 : vector<8x1024xf32>
    %cst_24 = arith.constant dense<0.000000e+00> : vector<8x1024xf32>
    %59 = tpu.matmul %51, %19, %cst_24 {dimension_numbers = #tpu.dot_dimension_numbers<[1], [0], [0], [1], [0, 0, 1, 1], [], []>} : vector<8x256xf32>, vector<256x1024xf32>, vector<8x1024xf32> -> vector<8x1024xf32>
    %60 = arith.addf %58, %59 : vector<8x1024xf32>
    %61 = vector.extract_strided_slice %60 {offsets = [0, 0], sizes = [8, 256], strides = [1, 1]} : vector<8x1024xf32> to vector<8x256xf32>
    %62 = arith.negf %61 : vector<8x256xf32>
    %63 = math.exp %62 : vector<8x256xf32>
    %cst_25 = arith.constant 1.000000e+00 : f32
    %64 = vector.broadcast %cst_25 : f32 to vector<8x256xf32>
    %65 = arith.addf %64, %63 : vector<8x256xf32>
    %66 = arith.divf %64, %65 : vector<8x256xf32>
    %67 = vector.extract_strided_slice %60 {offsets = [0, 256], sizes = [8, 256], strides = [1, 1]} : vector<8x1024xf32> to vector<8x256xf32>
    %68 = arith.negf %67 : vector<8x256xf32>
    %69 = math.exp %68 : vector<8x256xf32>
    %cst_26 = arith.constant 1.000000e+00 : f32
    %70 = vector.broadcast %cst_26 : f32 to vector<8x256xf32>
    %71 = arith.addf %70, %69 : vector<8x256xf32>
    %72 = arith.divf %70, %71 : vector<8x256xf32>
    %73 = vector.extract_strided_slice %60 {offsets = [0, 512], sizes = [8, 256], strides = [1, 1]} : vector<8x1024xf32> to vector<8x256xf32>
    %74 = math.tanh %73 : vector<8x256xf32>
    %75 = vector.extract_strided_slice %60 {offsets = [0, 768], sizes = [8, 256], strides = [1, 1]} : vector<8x1024xf32> to vector<8x256xf32>
    %76 = arith.negf %75 : vector<8x256xf32>
    %77 = math.exp %76 : vector<8x256xf32>
    %cst_27 = arith.constant 1.000000e+00 : f32
    %78 = vector.broadcast %cst_27 : f32 to vector<8x256xf32>
    %79 = arith.addf %78, %77 : vector<8x256xf32>
    %80 = arith.divf %78, %79 : vector<8x256xf32>
    %81 = arith.mulf %72, %49 : vector<8x256xf32>
    %82 = arith.mulf %66, %74 : vector<8x256xf32>
    %83 = arith.addf %81, %82 : vector<8x256xf32>
    %84 = math.tanh %83 : vector<8x256xf32>
    %85 = arith.mulf %80, %84 : vector<8x256xf32>
    %86 = vector.extract_strided_slice %85 {offsets = [0, 0], sizes = [8, 128], strides = [1, 1]} : vector<8x256xf32> to vector<8x128xf32>
    %c8 = arith.constant 8 : index
    %c0_28 = arith.constant 0 : index
    %87 = vector.load %arg11[%c8, %c0_28] : memref<64x256xf32, #tpu.memory_space<vmem>>, vector<8x128xf32>
    tpu.vector_store %arg11[%c8, %c0_28], %86 {strides = array<i32>} : memref<64x256xf32, #tpu.memory_space<vmem>>, vector<8x128xf32>,
    %88 = vector.extract_strided_slice %85 {offsets = [0, 128], sizes = [8, 128], strides = [1, 1]} : vector<8x256xf32> to vector<8x128xf32>
    %c48 = arith.constant 48 : index
    %c128_29 = arith.constant 128 : index
    %89 = vector.load %arg11[%c48, %c128_29] : memref<64x256xf32, #tpu.memory_space<vmem>>, vector<8x128xf32>
    tpu.vector_store %arg11[%c48, %c128_29], %88 {strides = array<i32>} : memref<64x256xf32, #tpu.memory_space<vmem>>, vector<8x128xf32>,
    %90 = vector.extract_strided_slice %17 {offsets = [16, 0], sizes = [8, 1024], strides = [1, 1]} : vector<64x1024xf32> to vector<8x1024xf32>
    %91 = vector.extract_strided_slice %18 {offsets = [40, 0], sizes = [8, 1024], strides = [1, 1]} : vector<64x1024xf32> to vector<8x1024xf32>
    %92 = arith.addf %90, %91 : vector<8x1024xf32>
    %cst_30 = arith.constant dense<0.000000e+00> : vector<8x1024xf32>
    %93 = tpu.matmul %85, %19, %cst_30 {dimension_numbers = #tpu.dot_dimension_numbers<[1], [0], [0], [1], [0, 0, 1, 1], [], []>} : vector<8x256xf32>, vector<256x1024xf32>, vector<8x1024xf32> -> vector<8x1024xf32>
    %94 = arith.addf %92, %93 : vector<8x1024xf32>
    %95 = vector.extract_strided_slice %94 {offsets = [0, 0], sizes = [8, 256], strides = [1, 1]} : vector<8x1024xf32> to vector<8x256xf32>
    %96 = arith.negf %95 : vector<8x256xf32>
    %97 = math.exp %96 : vector<8x256xf32>
    %cst_31 = arith.constant 1.000000e+00 : f32
    %98 = vector.broadcast %cst_31 : f32 to vector<8x256xf32>
    %99 = arith.addf %98, %97 : vector<8x256xf32>
    %100 = arith.divf %98, %99 : vector<8x256xf32>
    %101 = vector.extract_strided_slice %94 {offsets = [0, 256], sizes = [8, 256], strides = [1, 1]} : vector<8x1024xf32> to vector<8x256xf32>
    %102 = arith.negf %101 : vector<8x256xf32>
    %103 = math.exp %102 : vector<8x256xf32>
    %cst_32 = arith.constant 1.000000e+00 : f32
    %104 = vector.broadcast %cst_32 : f32 to vector<8x256xf32>
    %105 = arith.addf %104, %103 : vector<8x256xf32>
    %106 = arith.divf %104, %105 : vector<8x256xf32>
    %107 = vector.extract_strided_slice %94 {offsets = [0, 512], sizes = [8, 256], strides = [1, 1]} : vector<8x1024xf32> to vector<8x256xf32>
    %108 = math.tanh %107 : vector<8x256xf32>
    %109 = vector.extract_strided_slice %94 {offsets = [0, 768], sizes = [8, 256], strides = [1, 1]} : vector<8x1024xf32> to vector<8x256xf32>
    %110 = arith.negf %109 : vector<8x256xf32>
    %111 = math.exp %110 : vector<8x256xf32>
    %cst_33 = arith.constant 1.000000e+00 : f32
    %112 = vector.broadcast %cst_33 : f32 to vector<8x256xf32>
    %113 = arith.addf %112, %111 : vector<8x256xf32>
    %114 = arith.divf %112, %113 : vector<8x256xf32>
    %115 = arith.mulf %106, %83 : vector<8x256xf32>
    %116 = arith.mulf %100, %108 : vector<8x256xf32>
    %117 = arith.addf %115, %116 : vector<8x256xf32>
    %118 = math.tanh %117 : vector<8x256xf32>
    %119 = arith.mulf %114, %118 : vector<8x256xf32>
    %120 = vector.extract_strided_slice %119 {offsets = [0, 0], sizes = [8, 128], strides = [1, 1]} : vector<8x256xf32> to vector<8x128xf32>
    %c16 = arith.constant 16 : index
    %c0_34 = arith.constant 0 : index
    %121 = vector.load %arg11[%c16, %c0_34] : memref<64x256xf32, #tpu.memory_space<vmem>>, vector<8x128xf32>
    tpu.vector_store %arg11[%c16, %c0_34], %120 {strides = array<i32>} : memref<64x256xf32, #tpu.memory_space<vmem>>, vector<8x128xf32>,
    %122 = vector.extract_strided_slice %119 {offsets = [0, 128], sizes = [8, 128], strides = [1, 1]} : vector<8x256xf32> to vector<8x128xf32>
    %c40 = arith.constant 40 : index
    %c128_35 = arith.constant 128 : index
    %123 = vector.load %arg11[%c40, %c128_35] : memref<64x256xf32, #tpu.memory_space<vmem>>, vector<8x128xf32>
    tpu.vector_store %arg11[%c40, %c128_35], %122 {strides = array<i32>} : memref<64x256xf32, #tpu.memory_space<vmem>>, vector<8x128xf32>,
    %124 = vector.extract_strided_slice %17 {offsets = [24, 0], sizes = [8, 1024], strides = [1, 1]} : vector<64x1024xf32> to vector<8x1024xf32>
    %125 = vector.extract_strided_slice %18 {offsets = [32, 0], sizes = [8, 1024], strides = [1, 1]} : vector<64x1024xf32> to vector<8x1024xf32>
    %126 = arith.addf %124, %125 : vector<8x1024xf32>
    %cst_36 = arith.constant dense<0.000000e+00> : vector<8x1024xf32>
    %127 = tpu.matmul %119, %19, %cst_36 {dimension_numbers = #tpu.dot_dimension_numbers<[1], [0], [0], [1], [0, 0, 1, 1], [], []>} : vector<8x256xf32>, vector<256x1024xf32>, vector<8x1024xf32> -> vector<8x1024xf32>
    %128 = arith.addf %126, %127 : vector<8x1024xf32>
    %129 = vector.extract_strided_slice %128 {offsets = [0, 0], sizes = [8, 256], strides = [1, 1]} : vector<8x1024xf32> to vector<8x256xf32>
    %130 = arith.negf %129 : vector<8x256xf32>
    %131 = math.exp %130 : vector<8x256xf32>
    %cst_37 = arith.constant 1.000000e+00 : f32
    %132 = vector.broadcast %cst_37 : f32 to vector<8x256xf32>
    %133 = arith.addf %132, %131 : vector<8x256xf32>
    %134 = arith.divf %132, %133 : vector<8x256xf32>
    %135 = vector.extract_strided_slice %128 {offsets = [0, 256], sizes = [8, 256], strides = [1, 1]} : vector<8x1024xf32> to vector<8x256xf32>
    %136 = arith.negf %135 : vector<8x256xf32>
    %137 = math.exp %136 : vector<8x256xf32>
    %cst_38 = arith.constant 1.000000e+00 : f32
    %138 = vector.broadcast %cst_38 : f32 to vector<8x256xf32>
    %139 = arith.addf %138, %137 : vector<8x256xf32>
    %140 = arith.divf %138, %139 : vector<8x256xf32>
    %141 = vector.extract_strided_slice %128 {offsets = [0, 512], sizes = [8, 256], strides = [1, 1]} : vector<8x1024xf32> to vector<8x256xf32>
    %142 = math.tanh %141 : vector<8x256xf32>
    %143 = vector.extract_strided_slice %128 {offsets = [0, 768], sizes = [8, 256], strides = [1, 1]} : vector<8x1024xf32> to vector<8x256xf32>
    %144 = arith.negf %143 : vector<8x256xf32>
    %145 = math.exp %144 : vector<8x256xf32>
    %cst_39 = arith.constant 1.000000e+00 : f32
    %146 = vector.broadcast %cst_39 : f32 to vector<8x256xf32>
    %147 = arith.addf %146, %145 : vector<8x256xf32>
    %148 = arith.divf %146, %147 : vector<8x256xf32>
    %149 = arith.mulf %140, %117 : vector<8x256xf32>
    %150 = arith.mulf %134, %142 : vector<8x256xf32>
    %151 = arith.addf %149, %150 : vector<8x256xf32>
    %152 = math.tanh %151 : vector<8x256xf32>
    %153 = arith.mulf %148, %152 : vector<8x256xf32>
    %154 = vector.extract_strided_slice %153 {offsets = [0, 0], sizes = [8, 128], strides = [1, 1]} : vector<8x256xf32> to vector<8x128xf32>
    %c24 = arith.constant 24 : index
    %c0_40 = arith.constant 0 : index
    %155 = vector.load %arg11[%c24, %c0_40] : memref<64x256xf32, #tpu.memory_space<vmem>>, vector<8x128xf32>
    tpu.vector_store %arg11[%c24, %c0_40], %154 {strides = array<i32>} : memref<64x256xf32, #tpu.memory_space<vmem>>, vector<8x128xf32>,
    %156 = vector.extract_strided_slice %153 {offsets = [0, 128], sizes = [8, 128], strides = [1, 1]} : vector<8x256xf32> to vector<8x128xf32>
    %c32 = arith.constant 32 : index
    %c128_41 = arith.constant 128 : index
    %157 = vector.load %arg11[%c32, %c128_41] : memref<64x256xf32, #tpu.memory_space<vmem>>, vector<8x128xf32>
    tpu.vector_store %arg11[%c32, %c128_41], %156 {strides = array<i32>} : memref<64x256xf32, #tpu.memory_space<vmem>>, vector<8x128xf32>,
    %158 = vector.extract_strided_slice %17 {offsets = [32, 0], sizes = [8, 1024], strides = [1, 1]} : vector<64x1024xf32> to vector<8x1024xf32>
    %159 = vector.extract_strided_slice %18 {offsets = [24, 0], sizes = [8, 1024], strides = [1, 1]} : vector<64x1024xf32> to vector<8x1024xf32>
    %160 = arith.addf %158, %159 : vector<8x1024xf32>
    %cst_42 = arith.constant dense<0.000000e+00> : vector<8x1024xf32>
    %161 = tpu.matmul %153, %19, %cst_42 {dimension_numbers = #tpu.dot_dimension_numbers<[1], [0], [0], [1], [0, 0, 1, 1], [], []>} : vector<8x256xf32>, vector<256x1024xf32>, vector<8x1024xf32> -> vector<8x1024xf32>
    %162 = arith.addf %160, %161 : vector<8x1024xf32>
    %163 = vector.extract_strided_slice %162 {offsets = [0, 0], sizes = [8, 256], strides = [1, 1]} : vector<8x1024xf32> to vector<8x256xf32>
    %164 = arith.negf %163 : vector<8x256xf32>
    %165 = math.exp %164 : vector<8x256xf32>
    %cst_43 = arith.constant 1.000000e+00 : f32
    %166 = vector.broadcast %cst_43 : f32 to vector<8x256xf32>
    %167 = arith.addf %166, %165 : vector<8x256xf32>
    %168 = arith.divf %166, %167 : vector<8x256xf32>
    %169 = vector.extract_strided_slice %162 {offsets = [0, 256], sizes = [8, 256], strides = [1, 1]} : vector<8x1024xf32> to vector<8x256xf32>
    %170 = arith.negf %169 : vector<8x256xf32>
    %171 = math.exp %170 : vector<8x256xf32>
    %cst_44 = arith.constant 1.000000e+00 : f32
    %172 = vector.broadcast %cst_44 : f32 to vector<8x256xf32>
    %173 = arith.addf %172, %171 : vector<8x256xf32>
    %174 = arith.divf %172, %173 : vector<8x256xf32>
    %175 = vector.extract_strided_slice %162 {offsets = [0, 512], sizes = [8, 256], strides = [1, 1]} : vector<8x1024xf32> to vector<8x256xf32>
    %176 = math.tanh %175 : vector<8x256xf32>
    %177 = vector.extract_strided_slice %162 {offsets = [0, 768], sizes = [8, 256], strides = [1, 1]} : vector<8x1024xf32> to vector<8x256xf32>
    %178 = arith.negf %177 : vector<8x256xf32>
    %179 = math.exp %178 : vector<8x256xf32>
    %cst_45 = arith.constant 1.000000e+00 : f32
    %180 = vector.broadcast %cst_45 : f32 to vector<8x256xf32>
    %181 = arith.addf %180, %179 : vector<8x256xf32>
    %182 = arith.divf %180, %181 : vector<8x256xf32>
    %183 = arith.mulf %174, %151 : vector<8x256xf32>
    %184 = arith.mulf %168, %176 : vector<8x256xf32>
    %185 = arith.addf %183, %184 : vector<8x256xf32>
    %186 = math.tanh %185 : vector<8x256xf32>
    %187 = arith.mulf %182, %186 : vector<8x256xf32>
    %188 = vector.extract_strided_slice %187 {offsets = [0, 0], sizes = [8, 128], strides = [1, 1]} : vector<8x256xf32> to vector<8x128xf32>
    %c32_46 = arith.constant 32 : index
    %c0_47 = arith.constant 0 : index
    %189 = vector.load %arg11[%c32_46, %c0_47] : memref<64x256xf32, #tpu.memory_space<vmem>>, vector<8x128xf32>
    tpu.vector_store %arg11[%c32_46, %c0_47], %188 {strides = array<i32>} : memref<64x256xf32, #tpu.memory_space<vmem>>, vector<8x128xf32>,
    %190 = vector.extract_strided_slice %187 {offsets = [0, 128], sizes = [8, 128], strides = [1, 1]} : vector<8x256xf32> to vector<8x128xf32>
    %c24_48 = arith.constant 24 : index
    %c128_49 = arith.constant 128 : index
    %191 = vector.load %arg11[%c24_48, %c128_49] : memref<64x256xf32, #tpu.memory_space<vmem>>, vector<8x128xf32>
    tpu.vector_store %arg11[%c24_48, %c128_49], %190 {strides = array<i32>} : memref<64x256xf32, #tpu.memory_space<vmem>>, vector<8x128xf32>,
    %192 = vector.extract_strided_slice %17 {offsets = [40, 0], sizes = [8, 1024], strides = [1, 1]} : vector<64x1024xf32> to vector<8x1024xf32>
    %193 = vector.extract_strided_slice %18 {offsets = [16, 0], sizes = [8, 1024], strides = [1, 1]} : vector<64x1024xf32> to vector<8x1024xf32>
    %194 = arith.addf %192, %193 : vector<8x1024xf32>
    %cst_50 = arith.constant dense<0.000000e+00> : vector<8x1024xf32>
    %195 = tpu.matmul %187, %19, %cst_50 {dimension_numbers = #tpu.dot_dimension_numbers<[1], [0], [0], [1], [0, 0, 1, 1], [], []>} : vector<8x256xf32>, vector<256x1024xf32>, vector<8x1024xf32> -> vector<8x1024xf32>
    %196 = arith.addf %194, %195 : vector<8x1024xf32>
    %197 = vector.extract_strided_slice %196 {offsets = [0, 0], sizes = [8, 256], strides = [1, 1]} : vector<8x1024xf32> to vector<8x256xf32>
    %198 = arith.negf %197 : vector<8x256xf32>
    %199 = math.exp %198 : vector<8x256xf32>
    %cst_51 = arith.constant 1.000000e+00 : f32
    %200 = vector.broadcast %cst_51 : f32 to vector<8x256xf32>
    %201 = arith.addf %200, %199 : vector<8x256xf32>
    %202 = arith.divf %200, %201 : vector<8x256xf32>
    %203 = vector.extract_strided_slice %196 {offsets = [0, 256], sizes = [8, 256], strides = [1, 1]} : vector<8x1024xf32> to vector<8x256xf32>
    %204 = arith.negf %203 : vector<8x256xf32>
    %205 = math.exp %204 : vector<8x256xf32>
    %cst_52 = arith.constant 1.000000e+00 : f32
    %206 = vector.broadcast %cst_52 : f32 to vector<8x256xf32>
    %207 = arith.addf %206, %205 : vector<8x256xf32>
    %208 = arith.divf %206, %207 : vector<8x256xf32>
    %209 = vector.extract_strided_slice %196 {offsets = [0, 512], sizes = [8, 256], strides = [1, 1]} : vector<8x1024xf32> to vector<8x256xf32>
    %210 = math.tanh %209 : vector<8x256xf32>
    %211 = vector.extract_strided_slice %196 {offsets = [0, 768], sizes = [8, 256], strides = [1, 1]} : vector<8x1024xf32> to vector<8x256xf32>
    %212 = arith.negf %211 : vector<8x256xf32>
    %213 = math.exp %212 : vector<8x256xf32>
    %cst_53 = arith.constant 1.000000e+00 : f32
    %214 = vector.broadcast %cst_53 : f32 to vector<8x256xf32>
    %215 = arith.addf %214, %213 : vector<8x256xf32>
    %216 = arith.divf %214, %215 : vector<8x256xf32>
    %217 = arith.mulf %208, %185 : vector<8x256xf32>
    %218 = arith.mulf %202, %210 : vector<8x256xf32>
    %219 = arith.addf %217, %218 : vector<8x256xf32>
    %220 = math.tanh %219 : vector<8x256xf32>
    %221 = arith.mulf %216, %220 : vector<8x256xf32>
    %222 = vector.extract_strided_slice %221 {offsets = [0, 0], sizes = [8, 128], strides = [1, 1]} : vector<8x256xf32> to vector<8x128xf32>
    %c40_54 = arith.constant 40 : index
    %c0_55 = arith.constant 0 : index
    %223 = vector.load %arg11[%c40_54, %c0_55] : memref<64x256xf32, #tpu.memory_space<vmem>>, vector<8x128xf32>
    tpu.vector_store %arg11[%c40_54, %c0_55], %222 {strides = array<i32>} : memref<64x256xf32, #tpu.memory_space<vmem>>, vector<8x128xf32>,
    %224 = vector.extract_strided_slice %221 {offsets = [0, 128], sizes = [8, 128], strides = [1, 1]} : vector<8x256xf32> to vector<8x128xf32>
    %c16_56 = arith.constant 16 : index
    %c128_57 = arith.constant 128 : index
    %225 = vector.load %arg11[%c16_56, %c128_57] : memref<64x256xf32, #tpu.memory_space<vmem>>, vector<8x128xf32>
    tpu.vector_store %arg11[%c16_56, %c128_57], %224 {strides = array<i32>} : memref<64x256xf32, #tpu.memory_space<vmem>>, vector<8x128xf32>,
    %226 = vector.extract_strided_slice %17 {offsets = [48, 0], sizes = [8, 1024], strides = [1, 1]} : vector<64x1024xf32> to vector<8x1024xf32>
    %227 = vector.extract_strided_slice %18 {offsets = [8, 0], sizes = [8, 1024], strides = [1, 1]} : vector<64x1024xf32> to vector<8x1024xf32>
    %228 = arith.addf %226, %227 : vector<8x1024xf32>
    %cst_58 = arith.constant dense<0.000000e+00> : vector<8x1024xf32>
    %229 = tpu.matmul %221, %19, %cst_58 {dimension_numbers = #tpu.dot_dimension_numbers<[1], [0], [0], [1], [0, 0, 1, 1], [], []>} : vector<8x256xf32>, vector<256x1024xf32>, vector<8x1024xf32> -> vector<8x1024xf32>
    %230 = arith.addf %228, %229 : vector<8x1024xf32>
    %231 = vector.extract_strided_slice %230 {offsets = [0, 0], sizes = [8, 256], strides = [1, 1]} : vector<8x1024xf32> to vector<8x256xf32>
    %232 = arith.negf %231 : vector<8x256xf32>
    %233 = math.exp %232 : vector<8x256xf32>
    %cst_59 = arith.constant 1.000000e+00 : f32
    %234 = vector.broadcast %cst_59 : f32 to vector<8x256xf32>
    %235 = arith.addf %234, %233 : vector<8x256xf32>
    %236 = arith.divf %234, %235 : vector<8x256xf32>
    %237 = vector.extract_strided_slice %230 {offsets = [0, 256], sizes = [8, 256], strides = [1, 1]} : vector<8x1024xf32> to vector<8x256xf32>
    %238 = arith.negf %237 : vector<8x256xf32>
    %239 = math.exp %238 : vector<8x256xf32>
    %cst_60 = arith.constant 1.000000e+00 : f32
    %240 = vector.broadcast %cst_60 : f32 to vector<8x256xf32>
    %241 = arith.addf %240, %239 : vector<8x256xf32>
    %242 = arith.divf %240, %241 : vector<8x256xf32>
    %243 = vector.extract_strided_slice %230 {offsets = [0, 512], sizes = [8, 256], strides = [1, 1]} : vector<8x1024xf32> to vector<8x256xf32>
    %244 = math.tanh %243 : vector<8x256xf32>
    %245 = vector.extract_strided_slice %230 {offsets = [0, 768], sizes = [8, 256], strides = [1, 1]} : vector<8x1024xf32> to vector<8x256xf32>
    %246 = arith.negf %245 : vector<8x256xf32>
    %247 = math.exp %246 : vector<8x256xf32>
    %cst_61 = arith.constant 1.000000e+00 : f32
    %248 = vector.broadcast %cst_61 : f32 to vector<8x256xf32>
    %249 = arith.addf %248, %247 : vector<8x256xf32>
    %250 = arith.divf %248, %249 : vector<8x256xf32>
    %251 = arith.mulf %242, %219 : vector<8x256xf32>
    %252 = arith.mulf %236, %244 : vector<8x256xf32>
    %253 = arith.addf %251, %252 : vector<8x256xf32>
    %254 = math.tanh %253 : vector<8x256xf32>
    %255 = arith.mulf %250, %254 : vector<8x256xf32>
    %256 = vector.extract_strided_slice %255 {offsets = [0, 0], sizes = [8, 128], strides = [1, 1]} : vector<8x256xf32> to vector<8x128xf32>
    %c48_62 = arith.constant 48 : index
    %c0_63 = arith.constant 0 : index
    %257 = vector.load %arg11[%c48_62, %c0_63] : memref<64x256xf32, #tpu.memory_space<vmem>>, vector<8x128xf32>
    tpu.vector_store %arg11[%c48_62, %c0_63], %256 {strides = array<i32>} : memref<64x256xf32, #tpu.memory_space<vmem>>, vector<8x128xf32>,
    %258 = vector.extract_strided_slice %255 {offsets = [0, 128], sizes = [8, 128], strides = [1, 1]} : vector<8x256xf32> to vector<8x128xf32>
    %c8_64 = arith.constant 8 : index
    %c128_65 = arith.constant 128 : index
    %259 = vector.load %arg11[%c8_64, %c128_65] : memref<64x256xf32, #tpu.memory_space<vmem>>, vector<8x128xf32>
    tpu.vector_store %arg11[%c8_64, %c128_65], %258 {strides = array<i32>} : memref<64x256xf32, #tpu.memory_space<vmem>>, vector<8x128xf32>,
    %260 = vector.extract_strided_slice %17 {offsets = [56, 0], sizes = [8, 1024], strides = [1, 1]} : vector<64x1024xf32> to vector<8x1024xf32>
    %261 = vector.extract_strided_slice %18 {offsets = [0, 0], sizes = [8, 1024], strides = [1, 1]} : vector<64x1024xf32> to vector<8x1024xf32>
    %262 = arith.addf %260, %261 : vector<8x1024xf32>
    %cst_66 = arith.constant dense<0.000000e+00> : vector<8x1024xf32>
    %263 = tpu.matmul %255, %19, %cst_66 {dimension_numbers = #tpu.dot_dimension_numbers<[1], [0], [0], [1], [0, 0, 1, 1], [], []>} : vector<8x256xf32>, vector<256x1024xf32>, vector<8x1024xf32> -> vector<8x1024xf32>
    %264 = arith.addf %262, %263 : vector<8x1024xf32>
    %265 = vector.extract_strided_slice %264 {offsets = [0, 0], sizes = [8, 256], strides = [1, 1]} : vector<8x1024xf32> to vector<8x256xf32>
    %266 = arith.negf %265 : vector<8x256xf32>
    %267 = math.exp %266 : vector<8x256xf32>
    %cst_67 = arith.constant 1.000000e+00 : f32
    %268 = vector.broadcast %cst_67 : f32 to vector<8x256xf32>
    %269 = arith.addf %268, %267 : vector<8x256xf32>
    %270 = arith.divf %268, %269 : vector<8x256xf32>
    %271 = vector.extract_strided_slice %264 {offsets = [0, 256], sizes = [8, 256], strides = [1, 1]} : vector<8x1024xf32> to vector<8x256xf32>
    %272 = arith.negf %271 : vector<8x256xf32>
    %273 = math.exp %272 : vector<8x256xf32>
    %cst_68 = arith.constant 1.000000e+00 : f32
    %274 = vector.broadcast %cst_68 : f32 to vector<8x256xf32>
    %275 = arith.addf %274, %273 : vector<8x256xf32>
    %276 = arith.divf %274, %275 : vector<8x256xf32>
    %277 = vector.extract_strided_slice %264 {offsets = [0, 512], sizes = [8, 256], strides = [1, 1]} : vector<8x1024xf32> to vector<8x256xf32>
    %278 = math.tanh %277 : vector<8x256xf32>
    %279 = vector.extract_strided_slice %264 {offsets = [0, 768], sizes = [8, 256], strides = [1, 1]} : vector<8x1024xf32> to vector<8x256xf32>
    %280 = arith.negf %279 : vector<8x256xf32>
    %281 = math.exp %280 : vector<8x256xf32>
    %cst_69 = arith.constant 1.000000e+00 : f32
    %282 = vector.broadcast %cst_69 : f32 to vector<8x256xf32>
    %283 = arith.addf %282, %281 : vector<8x256xf32>
    %284 = arith.divf %282, %283 : vector<8x256xf32>
    %285 = arith.mulf %276, %253 : vector<8x256xf32>
    %286 = arith.mulf %270, %278 : vector<8x256xf32>
    %287 = arith.addf %285, %286 : vector<8x256xf32>
    %288 = math.tanh %287 : vector<8x256xf32>
    %289 = arith.mulf %284, %288 : vector<8x256xf32>
    %290 = vector.extract_strided_slice %289 {offsets = [0, 0], sizes = [8, 128], strides = [1, 1]} : vector<8x256xf32> to vector<8x128xf32>
    %c56_70 = arith.constant 56 : index
    %c0_71 = arith.constant 0 : index
    %291 = vector.load %arg11[%c56_70, %c0_71] : memref<64x256xf32, #tpu.memory_space<vmem>>, vector<8x128xf32>
    tpu.vector_store %arg11[%c56_70, %c0_71], %290 {strides = array<i32>} : memref<64x256xf32, #tpu.memory_space<vmem>>, vector<8x128xf32>,
    %292 = vector.extract_strided_slice %289 {offsets = [0, 128], sizes = [8, 128], strides = [1, 1]} : vector<8x256xf32> to vector<8x128xf32>
    %c0_72 = arith.constant 0 : index
    %c128_73 = arith.constant 128 : index
    %293 = vector.load %arg11[%c0_72, %c128_73] : memref<64x256xf32, #tpu.memory_space<vmem>>, vector<8x128xf32>
    tpu.vector_store %arg11[%c0_72, %c128_73], %292 {strides = array<i32>} : memref<64x256xf32, #tpu.memory_space<vmem>>, vector<8x128xf32>,
    %c0_74 = arith.constant 0 : index
    %c0_75 = arith.constant 0 : index
    %294 = vector.load %arg11[%c0_74, %c0_75] : memref<64x256xf32, #tpu.memory_space<vmem>>, vector<64x256xf32>
    %c0_76 = arith.constant 0 : index
    %c0_77 = arith.constant 0 : index
    %295 = vector.load %arg8[%c0_76, %c0_77] : memref<256x128xf32, #tpu.memory_space<vmem>>, vector<256x128xf32>
    %cst_78 = arith.constant dense<0.000000e+00> : vector<64x128xf32>
    %296 = tpu.matmul %294, %295, %cst_78 {dimension_numbers = #tpu.dot_dimension_numbers<[1], [0], [0], [1], [0, 0, 1, 1], [], []>} : vector<64x256xf32>, vector<256x128xf32>, vector<64x128xf32> -> vector<64x128xf32>
    %c0_79 = arith.constant 0 : index
    %c0_80 = arith.constant 0 : index
    %297 = vector.load %arg9[%c0_79, %c0_80] : memref<1x128xf32, #tpu.memory_space<vmem>>, vector<1x128xf32>
    %298 = vector.broadcast %297 : vector<1x128xf32> to vector<64x128xf32>
    %299 = arith.addf %296, %298 : vector<64x128xf32>
    %cst_81 = arith.constant dense<0xFF800000> : vector<64xf32>
    %300 = vector.multi_reduction <maximumf>, %299, %cst_81 [1] : vector<64x128xf32> to vector<64xf32>
    %301 = vector.shape_cast %300 : vector<64xf32> to vector<64x1xf32>
    %302 = vector.broadcast %301 : vector<64x1xf32> to vector<64x128xf32>
    %303 = arith.subf %299, %302 : vector<64x128xf32>
    %304 = math.exp %303 : vector<64x128xf32>
    %cst_82 = arith.constant dense<0.000000e+00> : vector<64xf32>
    %305 = vector.multi_reduction <add>, %304, %cst_82 [1] : vector<64x128xf32> to vector<64xf32>
    %306 = vector.shape_cast %305 : vector<64xf32> to vector<64x1xf32>
    %307 = math.log %306 : vector<64x1xf32>
    %308 = vector.broadcast %307 : vector<64x1xf32> to vector<64x128xf32>
    %309 = arith.subf %303, %308 : vector<64x128xf32>
    %c0_83 = arith.constant 0 : index
    %c0_84 = arith.constant 0 : index
    %310 = vector.load %arg10[%c0_83, %c0_84] : memref<64x128xf32, #tpu.memory_space<vmem>>, vector<64x128xf32>
    tpu.vector_store %arg10[%c0_83, %c0_84], %309 {strides = array<i32>} : memref<64x128xf32, #tpu.memory_space<vmem>>, vector<64x128xf32>,
    return
  }
  func.func @transform_0(%arg0: i32) -> (i32, i32) {
    %c0_i32 = arith.constant 0 : i32
    %c0_i32_0 = arith.constant 0 : i32
    %c0_i32_1 = arith.constant 0 : i32
    return %c0_i32, %c0_i32_0 : i32, i32
  }
  func.func @transform_1(%arg0: i32) -> (i32, i32) {
    %c0_i32 = arith.constant 0 : i32
    %c0_i32_0 = arith.constant 0 : i32
    %c0_i32_1 = arith.constant 0 : i32
    return %c0_i32, %c0_i32_0 : i32, i32
  }
  func.func @transform_2(%arg0: i32) -> (i32, i32) {
    %c0_i32 = arith.constant 0 : i32
    %c0_i32_0 = arith.constant 0 : i32
    %c0_i32_1 = arith.constant 0 : i32
    return %c0_i32, %c0_i32_0 : i32, i32
  }
  func.func @transform_3(%arg0: i32) -> (i32, i32) {
    %c0_i32 = arith.constant 0 : i32
    %c0_i32_0 = arith.constant 0 : i32
    %c0_i32_1 = arith.constant 0 : i32
    return %c0_i32, %c0_i32_0 : i32, i32
  }
  func.func @transform_4(%arg0: i32) -> (i32, i32) {
    %c0_i32 = arith.constant 0 : i32
    %c0_i32_0 = arith.constant 0 : i32
    %c0_i32_1 = arith.constant 0 : i32
    return %c0_i32, %c0_i32_0 : i32, i32
  }
  func.func @transform_5(%arg0: i32) -> (i32, i32) {
    %c0_i32 = arith.constant 0 : i32
    %c0_i32_0 = arith.constant 0 : i32
    %c0_i32_1 = arith.constant 0 : i32
    return %c0_i32, %c0_i32_0 : i32, i32
  }
  func.func @transform_6(%arg0: i32) -> (i32, i32) {
    %c0_i32 = arith.constant 0 : i32
    %c0_i32_0 = arith.constant 0 : i32
    %c0_i32_1 = arith.constant 0 : i32
    return %c0_i32, %c0_i32_0 : i32, i32
  }
  func.func @transform_7(%arg0: i32) -> (i32, i32) {
    %c0_i32 = arith.constant 0 : i32
    %c0_i32_0 = arith.constant 0 : i32
    %c0_i32_1 = arith.constant 0 : i32
    return %c0_i32, %c0_i32_0 : i32, i32
  }
  func.func @transform_8(%arg0: i32) -> (i32, i32) {
    %c0_i32 = arith.constant 0 : i32
    %c0_i32_0 = arith.constant 0 : i32
    %c0_i32_1 = arith.constant 0 : i32
    return %c0_i32, %c0_i32_0 : i32, i32
  }
  func.func @transform_9(%arg0: i32) -> (i32, i32) {
    %c0_i32 = arith.constant 0 : i32
    %c0_i32_0 = arith.constant 0 : i32
    %c0_i32_1 = arith.constant 0 : i32
    return %c0_i32, %c0_i32_0 : i32, i32
  }
}

</mosaic_0001>

<bundles_post_ra>
// kernel: tpu_custom_call.1
= control target key start
LH: loop header
LB: loop body
LE: loop exit
PB: predicated region body
PF: predicated region fallthrough
CT: control target
= control target key end

     0   :  { %14 = vsyncpa [#allocation4], 0  ;;  %s12176_s0 = inlined_call_operand.hbm [shape: f32[1024,256], index: 0, kind: input, shape index: {}]   ;;  %s12177_s1 = inlined_call_operand.hbm [shape: f32[256,128], index: 1, kind: input, shape index: {}]   ;;  %s12178_s2 = inlined_call_operand.vmem [shape: f32[1,128], index: 2, kind: input, shape index: {}]   ;;  %s12179_s3 = inlined_call_operand.hbm [shape: f32[64,128], index: 3, kind: input, shape index: {}]   ;;  %s12180_s4 = inlined_call_operand.hbm [shape: f32[128,2048], index: 4, kind: input, shape index: {}]   ;;  %s12181_s5 = inlined_call_operand.vmem [shape: f32[1,2048], index: 5, kind: input, shape index: {}]   ;;  %s12182_s6 = inlined_call_operand.hbm [shape: f32[256,1024], index: 6, kind: input, shape index: {}]   ;;  %s12183_s7 = inlined_call_operand.hbm [shape: f32[256,128], index: 7, kind: input, shape index: {}]   ;;  %s12184_s8 = inlined_call_operand.vmem [shape: f32[1,128], index: 8, kind: input, shape index: {}]   ;;  %s12185_s9 = inlined_call_operand.hbm [shape: f32[64,128], index: 9, kind: output, shape index: {}]  }
   0x1   :  { %15 = vsyncpa [#allocation7], 0 }
   0x2   :  { %16 = vsyncpa [#allocation10], 0 }
   0x3   :  { %17 = vsyncpa [#allocation13], 0 }
   0x4   :  { %18 = vsyncpa [#allocation5], 0  ;;  %s9867_s30 = smov [#allocation6]   ;;  %s9703_s13 = scalar_lea.hbm %s12177_s1, 4096 }
   0x5   :  { %s36_s10 = sshll.u32 %s9867_s30, 4  ;;  %p9704_p0 = scmp.ne.s32.totalorder %s12177_s1, %s9703_s13  ;;  %s37_s10 = int_to_ptr.vmem [resolvable:$true] %s36_s10 }
   0x6   :  { %p9707_p1 = scmp.lt.u32.totalorder %s9703_s13, %s12177_s1 }
   0x8   :  { %p9709_p2 = pnand %p9707_p1, %p9704_p0 }
   0xa   :  { %9712 = shalt.err (!%p9709_p2)
}
   0xb   :  { %s9713_s18 = scalar_lea.vmem %s37_s10, 4096  ;;  %p9718_p4 = scmp.lt.s32.totalorder %s37_s10, %s37_s10 }
   0xc   :  { %p9714_p3 = scmp.ne.s32.totalorder %s37_s10, %s9713_s18  ;;  %p9719_p5 = scmp.lt.s32.totalorder %s9713_s18, %s9713_s18 }
   0xe   :  { %p9720_p6 = por %p9719_p5, %p9718_p4 }
  0x10   :  { %p9721_p7 = pnand %p9720_p6, %p9714_p3 }
  0x12   :  { %9724 = shalt.err (!%p9721_p7)
}
  0x13   :  { %s9868_s19 = smov 128   ;;  %s9869_s20 = smov 8  }
  0x14   :  { %42 = dma.hbm_to_vmem [thread:$0]  %s12177_s1, 4096, %s37_s10, [#allocation7], %s9868_s19, %s9868_s19, %s9869_s20  }
  0x15   :  { %s9870_s23 = smov [#allocation9]   ;;  %s9725_s27 = scalar_lea.hbm %s12180_s4, 32768 }
  0x16   :  { %s62_s24 = sshll.u32 %s9870_s23, 4  ;;  %p9726_p8 = scmp.ne.s32.totalorder %s12180_s4, %s9725_s27  ;;  %s63_s24 = int_to_ptr.vmem [resolvable:$true] %s62_s24 }
  0x17   :  { %p9729_p9 = scmp.lt.u32.totalorder %s9725_s27, %s12180_s4 }
  0x19   :  { %p9731_p10 = pnand %p9729_p9, %p9726_p8 }
  0x1b   :  { %9734 = shalt.err (!%p9731_p10)
}
  0x1c   :  { %s9735_s12 = scalar_lea.vmem %s63_s24, 32768  ;;  %p9740_p12 = scmp.lt.s32.totalorder %s63_s24, %s63_s24 }
  0x1d   :  { %p9736_p11 = scmp.ne.s32.totalorder %s63_s24, %s9735_s12  ;;  %p9741_p13 = scmp.lt.s32.totalorder %s9735_s12, %s9735_s12 }
  0x1f   :  { %p9742_p0 = por %p9741_p13, %p9740_p12 }
  0x21   :  { %p9743_p1 = pnand %p9742_p0, %p9736_p11 }
  0x23   :  { %9746 = shalt.err (!%p9743_p1)
}
  0x24   :  { %s9871_s1 = smov 2048   ;;  %s9872_s14 = smov [#allocation3]  }
  0x25   :  { %68 = dma.hbm_to_vmem [thread:$0]  %s12180_s4, 32768, %s63_s24, [#allocation10], %s9871_s1, %s9871_s1, %s9868_s19  }
  0x26   :  { %s24_s15 = sshll.u32 %s9872_s14, 4  ;;  %s9747_s18 = scalar_lea.hbm %s12176_s0, 32768  ;;  %s25_s15 = int_to_ptr.vmem [resolvable:$true] %s24_s15 }
  0x27   :  { %p9748_p2 = scmp.ne.s32.totalorder %s12176_s0, %s9747_s18  ;;  %p9751_p3 = scmp.lt.u32.totalorder %s9747_s18, %s12176_s0 }
  0x29   :  { %p9753_p4 = pnand %p9751_p3, %p9748_p2 }
  0x2b   :  { %9756 = shalt.err (!%p9753_p4)
}
  0x2c   :  { %s9757_s26 = scalar_lea.vmem %s25_s15, 32768  ;;  %p9762_p6 = scmp.lt.s32.totalorder %s25_s15, %s25_s15 }
  0x2d   :  { %p9758_p5 = scmp.ne.s32.totalorder %s25_s15, %s9757_s26  ;;  %p9763_p7 = scmp.lt.s32.totalorder %s9757_s26, %s9757_s26 }
  0x2f   :  { %p9764_p8 = por %p9763_p7, %p9762_p6 }
  0x31   :  { %p9765_p9 = pnand %p9764_p8, %p9758_p5 }
  0x33   :  { %9768 = shalt.err (!%p9765_p9)
}
  0x34   :  { %s9873_s4 = smov 256   ;;  %s9874_s24 = smov 16  }
  0x35   :  { %30 = dma.hbm_to_vmem [thread:$0]  %s12176_s0, 32768, %s25_s15, [#allocation4], %s9873_s4, %s9873_s4, %s9874_s24  }
  0x36   :  { %s9875_s29 = smov [#allocation8]   ;;  %s9876_s11 = smov [#allocation11]  }
  0x37   :  { %s50_s30 = sshll.u32 %s9875_s29, 4  ;;  %s76_s12 = sshll.u32 %s9876_s11, 4  ;;  %s51_s30 = int_to_ptr.vmem [resolvable:$true] %s50_s30  ;;  %s9973_s12 = int_to_ptr.vmem [resolvable:$true] %s76_s12 }
  0x38   :  { %s9769_s13 = scalar_lea.hbm %s12179_s3, 1024 }
  0x39   :  { %p9770_p10 = scmp.ne.s32.totalorder %s12179_s3, %s9769_s13  ;;  %p9773_p11 = scmp.lt.u32.totalorder %s9769_s13, %s12179_s3 }
  0x3b   :  { %p9775_p12 = pnand %p9773_p11, %p9770_p10 }
  0x3d   :  { %9778 = shalt.err (!%p9775_p12)
}
  0x3e   :  { %s9779_s0 = scalar_lea.vmem %s51_s30, 1024  ;;  %p9784_p0 = scmp.lt.s32.totalorder %s51_s30, %s51_s30 }
  0x3f   :  { %p9780_p13 = scmp.ne.s32.totalorder %s51_s30, %s9779_s0  ;;  %p9785_p1 = scmp.lt.s32.totalorder %s9779_s0, %s9779_s0 }
  0x41   :  { %p9786_p2 = por %p9785_p1, %p9784_p0 }
  0x43   :  { %p9787_p3 = pnand %p9786_p2, %p9780_p13 }
  0x45   :  { %9790 = shalt.err (!%p9787_p3)
}
  0x46   :  { %56 = dma.hbm_to_vmem [thread:$0]  %s12179_s3, 1024, %s51_s30, [#allocation7], %s9868_s19, %s9868_s19, %s9869_s20  }
  0x47   :  { %s9791_s25 = scalar_lea.hbm %s12182_s6, 32768 }
  0x48   :  { %p9792_p4 = scmp.ne.s32.totalorder %s12182_s6, %s9791_s25  ;;  %p9795_p5 = scmp.lt.u32.totalorder %s9791_s25, %s12182_s6 }
  0x4a   :  { %p9797_p6 = pnand %p9795_p5, %p9792_p4 }
  0x4c   :  { %9800 = shalt.err (!%p9797_p6)
}
  0x4d   :  { %s9801_s28 = scalar_lea.vmem %s9973_s12, 32768  ;;  %p9806_p8 = scmp.lt.s32.totalorder %s9973_s12, %s9973_s12 }
  0x4e   :  { %p9802_p7 = scmp.ne.s32.totalorder %s9973_s12, %s9801_s28  ;;  %p9807_p9 = scmp.lt.s32.totalorder %s9801_s28, %s9801_s28 }
  0x50   :  { %p9808_p10 = por %p9807_p9, %p9806_p8 }
  0x52   :  { %p9809_p11 = pnand %p9808_p10, %p9802_p7 }
  0x54   :  { %9812 = shalt.err (!%p9809_p11)
}
  0x55   :  { %s9877_s3 = smov 1024   ;;  %s9878_s29 = smov 64  }
  0x56   :  { %82 = dma.hbm_to_vmem [thread:$0]  %s12182_s6, 32768, %s9973_s12, [#allocation10], %s9877_s3, %s9877_s3, %s9878_s29  }
  0x57   :  { %s9879_s1 = smov [#allocation12]   ;;  %s9813_s16 = scalar_lea.hbm %s12183_s7, 4096 }
  0x58   :  { %s88_s10 = sshll.u32 %s9879_s1, 4  ;;  %p9814_p12 = scmp.ne.s32.totalorder %s12183_s7, %s9813_s16  ;;  %s89_s10 = int_to_ptr.vmem [resolvable:$true] %s88_s10 }
  0x59   :  { %p9817_p13 = scmp.lt.u32.totalorder %s9813_s16, %s12183_s7 }
  0x5b   :  { %p9819_p0 = pnand %p9817_p13, %p9814_p12 }
  0x5d   :  { %9822 = shalt.err (!%p9819_p0)
}
  0x5e   :  { %s9823_s21 = scalar_lea.vmem %s89_s10, 4096  ;;  %p9828_p2 = scmp.lt.s32.totalorder %s89_s10, %s89_s10 }
  0x5f   :  { %p9824_p1 = scmp.ne.s32.totalorder %s89_s10, %s9823_s21  ;;  %p9829_p3 = scmp.lt.s32.totalorder %s9823_s21, %s9823_s21 }
  0x61   :  { %p9830_p4 = por %p9829_p3, %p9828_p2 }
  0x63   :  { %p9831_p5 = pnand %p9830_p4, %p9824_p1 }
  0x65   :  { %9834 = shalt.err (!%p9831_p5)
}
  0x66   :  { %94 = dma.hbm_to_vmem [thread:$0]  %s12183_s7, 4096, %s89_s10, [#allocation13], %s9868_s19, %s9868_s19, %s9869_s20  }
  0x67   :  { %9857 = dma.done.wait [#allocation4], 32768  }
  0x68   :  { %9858 = vsyncadd [#allocation4], 4294934528 }
  0x69   :  { %9859 = dma.done.wait [#allocation7], 5120  }
  0x6a   :  { %9860 = vsyncadd [#allocation7], 4294962176 }
  0x6b   :  { %9861 = dma.done.wait [#allocation10], 65536  }
  0x6c   :  { %9862 = vsyncadd [#allocation10], 4294901760 }
  0x6d   :  { %9863 = dma.done.wait [#allocation13], 4096  }
  0x6e   :  { %9864 = vsyncadd [#allocation13], 4294963200  ;;  %v9880_v0 = vmov 0.0|0.0   ;;  %v371_v1 = vld [vmem:[#allocation6] sm:$0xff]  ;;  %v372_v2 = vld [vmem:[#allocation6 + $0x8] sm:$0xff]  ;;  %vm2296_vm0 = vcmask 1041409  }
  0x6f   :  { %6756 = vmatprep.subr.bf16.mxu0 %v9880_v0  ;;  %v373_v3 = vld [vmem:[#allocation6 + $0x10] sm:$0xff]  ;;  %v6757_v4 = vpack.c.bf16 %v372_v2, %v371_v1  ;;  %v374_v5 = vld [vmem:[#allocation6 + $0x18] sm:$0xff]  ;;  %v375_v7 = vld [vmem:[#allocation6 + $0x20] sm:$0xff]  ;;  %vm2299_vm1 = vcmask 1042434   ;;  %vm2302_vm2 = vcmask 1043459   ;;  %vm2305_vm3 = vcmask 1044484  }
  0x70   :  { %v6760_v6 = vpack.c.bf16 %v374_v5, %v373_v3  ;;  %v376_v8 = vld [vmem:[#allocation6 + $0x28] sm:$0xff]  ;;  %v377_v10 = vld [vmem:[#allocation6 + $0x30] sm:$0xff]  ;;  %v378_v11 = vld [vmem:[#allocation6 + $0x38] sm:$0xff]  ;;  %vm2308_vm4 = vcmask 1045509   ;;  %vm2311_vm5 = vcmask 1046534   ;;  %vm2314_vm6 = vcmask 1047559  }
  0x71   :  { %6758 = vmatpush1.bf16.msra.mxu0 %v6757_v4  ;;  %v6763_v9 = vpack.c.bf16 %v376_v8, %v375_v7  ;;  %v116_v12 = vld [vmem:[#allocation3 + $0x8] sm:$0xff]  ;;  %v6766_v13 = vpack.c.bf16 %v378_v11, %v377_v10  ;;  %v379_v14 = vld [vmem:[#allocation6 + $0x40] sm:$0xff]  ;;  %v381_v17 = vld [vmem:[#allocation6 + $0x50] sm:$0xff] }
  0x72   :  { %6759 = vmatprep.subr.bf16.mxu0 %v9880_v0  ;;  %474 = vmatprep.mubr.f32.mxu0 %v116_v12  ;;  %v380_v15 = vld [vmem:[#allocation6 + $0x48] sm:$0xff]  ;;  %v382_v18 = vld [vmem:[#allocation6 + $0x58] sm:$0xff]  ;;  %v383_v20 = vld [vmem:[#allocation6 + $0x60] sm:$0xff] }
  0x73   :  { %v6769_v16 = vpack.c.bf16 %v380_v15, %v379_v14  ;;  %v6772_v19 = vpack.c.bf16 %v382_v18, %v381_v17  ;;  %v384_v21 = vld [vmem:[#allocation6 + $0x68] sm:$0xff]  ;;  %v385_v23 = vld [vmem:[#allocation6 + $0x70] sm:$0xff]  ;;  %v386_v24 = vld [vmem:[#allocation6 + $0x78] sm:$0xff] }
  0x74   :  { %v6775_v22 = vpack.c.bf16 %v384_v21, %v383_v20  ;;  %v6778_v25 = vpack.c.bf16 %v386_v24, %v385_v23  ;;  %v387_v26 = vld [vmem:[#allocation6 + $0x80] sm:$0xff]  ;;  %v388_v27 = vld [vmem:[#allocation6 + $0x88] sm:$0xff]  ;;  %v389_v29 = vld [vmem:[#allocation6 + $0x90] sm:$0xff] }
  0x75   :  { %6761 = vmatpush1.bf16.msra.mxu0 %v6760_v6  ;;  %v6781_v28 = vpack.c.bf16 %v388_v27, %v387_v26  ;;  %v390_v30 = vld [vmem:[#allocation6 + $0x98] sm:$0xff]  ;;  %v391_v32 = vld [vmem:[#allocation6 + $0xa0] sm:$0xff]  ;;  %v392_v33 = vld [vmem:[#allocation6 + $0xa8] sm:$0xff] }
  0x76   :  { %6762 = vmatprep.subr.bf16.mxu0 %v9880_v0  ;;  %v6784_v31 = vpack.c.bf16 %v390_v30, %v389_v29  ;;  %v6787_v34 = vpack.c.bf16 %v392_v33, %v391_v32  ;;  %v393_v35 = vld [vmem:[#allocation6 + $0xb0] sm:$0xff]  ;;  %v394_v36 = vld [vmem:[#allocation6 + $0xb8] sm:$0xff]  ;;  %v395_v38 = vld [vmem:[#allocation6 + $0xc0] sm:$0xff] }
  0x77   :  { %v6790_v37 = vpack.c.bf16 %v394_v36, %v393_v35  ;;  %v396_v39 = vld [vmem:[#allocation6 + $0xc8] sm:$0xff]  ;;  %v397_v41 = vld [vmem:[#allocation6 + $0xd0] sm:$0xff]  ;;  %v398_v42 = vld [vmem:[#allocation6 + $0xd8] sm:$0xff] }
  0x78   :  { %v6793_v40 = vpack.c.bf16 %v396_v39, %v395_v38  ;;  %v6796_v43 = vpack.c.bf16 %v398_v42, %v397_v41  ;;  %v399_v44 = vld [vmem:[#allocation6 + $0xe0] sm:$0xff]  ;;  %v400_v45 = vld [vmem:[#allocation6 + $0xe8] sm:$0xff]  ;;  %v401_v47 = vld [vmem:[#allocation6 + $0xf0] sm:$0xff] }
  0x79   :  { %6764 = vmatpush1.bf16.msra.mxu0 %v6763_v9  ;;  %v6799_v46 = vpack.c.bf16 %v400_v45, %v399_v44  ;;  %v402_v48 = vld [vmem:[#allocation6 + $0xf8] sm:$0xff]  ;;  %v115_v50 = vld [vmem:[#allocation3] sm:$0xff]  ;;  %v117_v52 = vld [vmem:[#allocation3 + $0x10] sm:$0xff] }
  0x7a   :  { %6765 = vmatprep.subr.bf16.mxu0 %v9880_v0  ;;  %v6802_v49 = vpack.c.bf16 %v402_v48, %v401_v47  ;;  %v118_v51 = vld [vmem:[#allocation3 + $0x18] sm:$0xff]  ;;  %v120_v53 = vld [vmem:[#allocation3 + $0x28] sm:$0xff]  ;;  %v119_v54 = vld [vmem:[#allocation3 + $0x20] sm:$0xff] }
  0x7b   :  { %v122_v55 = vld [vmem:[#allocation3 + $0x38] sm:$0xff]  ;;  %v121_v56 = vld [vmem:[#allocation3 + $0x30] sm:$0xff]  ;;  %v124_v57 = vld [vmem:[#allocation3 + $0x48] sm:$0xff] }
  0x7c   :  { %v123_v58 = vld [vmem:[#allocation3 + $0x40] sm:$0xff]  ;;  %v126_v59 = vld [vmem:[#allocation3 + $0x58] sm:$0xff]  ;;  %v125_v60 = vld [vmem:[#allocation3 + $0x50] sm:$0xff] }
  0x7d   :  { %6767 = vmatpush1.bf16.msra.mxu0 %v6766_v13  ;;  %v128_v61 = vld [vmem:[#allocation3 + $0x68] sm:$0xff]  ;;  %v127_v62 = vld [vmem:[#allocation3 + $0x60] sm:$0xff]  ;;  %v130_v63 = vld [vmem:[#allocation3 + $0x78] sm:$0xff] }
  0x7e   :  { %6768 = vmatprep.subr.bf16.mxu0 %v9880_v0  ;;  %v132_v1 = vld [vmem:[#allocation3 + $0x88] sm:$0xff]  ;;  %v131_v2 = vld [vmem:[#allocation3 + $0x80] sm:$0xff]  ;;  %v134_v3 = vld [vmem:[#allocation3 + $0x98] sm:$0xff] }
  0x7f   :  { %v133_v4 = vld [vmem:[#allocation3 + $0x90] sm:$0xff]  ;;  %v136_v5 = vld [vmem:[#allocation3 + $0xa8] sm:$0xff]  ;;  %v135_v6 = vld [vmem:[#allocation3 + $0xa0] sm:$0xff] }
  0x80   :  { %v138_v7 = vld [vmem:[#allocation3 + $0xb8] sm:$0xff]  ;;  %v1892_v8 = vld [vmem:[#allocation9 + $0x8] sm:$0xff]  ;;  %v137_v10 = vld [vmem:[#allocation3 + $0xb0] sm:$0xff] }
  0x81   :  { %6770 = vmatpush1.bf16.msra.mxu0 %v6769_v16  ;;  %v1908_v9 = vld [vmem:[#allocation9 + $0x88] sm:$0xff]  ;;  %v1891_v12 = vld [vmem:[#allocation9] sm:$0xff]  ;;  %v142_v17 = vld [vmem:[#allocation3 + $0xd8] sm:$0xff] }
  0x82   :  { %6771 = vmatprep.subr.bf16.mxu0 %v9880_v0  ;;  %v6804_v11 = vpack.c.bf16 %v1908_v9, %v1892_v8  ;;  %v1907_v13 = vld [vmem:[#allocation9 + $0x80] sm:$0xff]  ;;  %v140_v14 = vld [vmem:[#allocation3 + $0xc8] sm:$0xff]  ;;  %v141_v18 = vld [vmem:[#allocation3 + $0xd0] sm:$0xff] }
  0x83   :  { %v6806_v15 = vpack.c.bf16 %v1907_v13, %v1891_v12  ;;  %v139_v16 = vld [vmem:[#allocation3 + $0xc0] sm:$0xff]  ;;  %v146_v21 = vld [vmem:[#allocation3 + $0xf8] sm:$0xff]  ;;  %v148_v23 = vld [vmem:[#allocation3 + $0x108] sm:$0xff] }
  0x84   :  { %v143_v20 = vld [vmem:[#allocation3 + $0xe0] sm:$0xff]  ;;  %v149_v26 = vld [vmem:[#allocation3 + $0x110] sm:$0xff]  ;;  %v152_v27 = vld [vmem:[#allocation3 + $0x128] sm:$0xff] }
  0x85   :  { %6773 = vmatpush1.bf16.msra.mxu0 %v6772_v19  ;;  %v144_v19 = vld [vmem:[#allocation3 + $0xe8] sm:$0xff]  ;;  %v147_v24 = vld [vmem:[#allocation3 + $0x100] sm:$0xff]  ;;  %v154_v29 = vld [vmem:[#allocation3 + $0x138] sm:$0xff] }
  0x86   :  { %6774 = vmatprep.subr.bf16.mxu0 %v9880_v0  ;;  %v153_v30 = vld [vmem:[#allocation3 + $0x130] sm:$0xff]  ;;  %v155_v32 = vld [vmem:[#allocation3 + $0x140] sm:$0xff]  ;;  %v158_v33 = vld [vmem:[#allocation3 + $0x158] sm:$0xff] }
  0x87   :  { %v160_v35 = vld [vmem:[#allocation3 + $0x168] sm:$0xff]  ;;  %v159_v36 = vld [vmem:[#allocation3 + $0x160] sm:$0xff]  ;;  %v161_v38 = vld [vmem:[#allocation3 + $0x170] sm:$0xff] }
  0x88   :  { %v164_v39 = vld [vmem:[#allocation3 + $0x188] sm:$0xff]  ;;  %v166_v41 = vld [vmem:[#allocation3 + $0x198] sm:$0xff]  ;;  %v165_v42 = vld [vmem:[#allocation3 + $0x190] sm:$0xff] }
  0x89   :  { %6776 = vmatpush1.bf16.msra.mxu0 %v6775_v22  ;;  %v145_v22 = vld [vmem:[#allocation3 + $0xf0] sm:$0xff]  ;;  %v167_v44 = vld [vmem:[#allocation3 + $0x1a0] sm:$0xff]  ;;  %v170_v45 = vld [vmem:[#allocation3 + $0x1b8] sm:$0xff] }
  0x8a   :  { %6777 = vmatprep.subr.bf16.mxu0 %v9880_v0  ;;  %v172_v47 = vld [vmem:[#allocation3 + $0x1c8] sm:$0xff]  ;;  %v171_v48 = vld [vmem:[#allocation3 + $0x1c0] sm:$0xff]  ;;  %v186_v8 = vld [vmem:[#allocation3 + $0x238] sm:$0xff] }
  0x8b   :  { %v185_v12 = vld [vmem:[#allocation3 + $0x230] sm:$0xff] }
  0x8d   :  { %6779 = vmatpush1.bf16.msra.mxu0 %v6778_v25  ;;  %v150_v25 = vld [vmem:[#allocation3 + $0x118] sm:$0xff] }
  0x8e   :  { %6780 = vmatprep.subr.bf16.mxu0 %v9880_v0 }
  0x91   :  { %6782 = vmatpush1.bf16.msra.mxu0 %v6781_v28  ;;  %v151_v28 = vld [vmem:[#allocation3 + $0x120] sm:$0xff] }
  0x92   :  { %6783 = vmatprep.subr.bf16.mxu0 %v9880_v0 }
  0x95   :  { %6785 = vmatpush1.bf16.msra.mxu0 %v6784_v31  ;;  %v156_v31 = vld [vmem:[#allocation3 + $0x148] sm:$0xff] }
  0x96   :  { %6786 = vmatprep.subr.bf16.mxu0 %v9880_v0 }
  0x99   :  { %6788 = vmatpush1.bf16.msra.mxu0 %v6787_v34  ;;  %v157_v34 = vld [vmem:[#allocation3 + $0x150] sm:$0xff] }
  0x9a   :  { %6789 = vmatprep.subr.bf16.mxu0 %v9880_v0 }
  0x9d   :  { %6791 = vmatpush1.bf16.msra.mxu0 %v6790_v37  ;;  %v162_v37 = vld [vmem:[#allocation3 + $0x178] sm:$0xff] }
  0x9e   :  { %6792 = vmatprep.subr.bf16.mxu0 %v9880_v0 }
  0xa1   :  { %6794 = vmatpush1.bf16.msra.mxu0 %v6793_v40  ;;  %v163_v40 = vld [vmem:[#allocation3 + $0x180] sm:$0xff] }
  0xa2   :  { %6795 = vmatprep.subr.bf16.mxu0 %v9880_v0 }
  0xa5   :  { %6797 = vmatpush1.bf16.msra.mxu0 %v6796_v43  ;;  %v168_v43 = vld [vmem:[#allocation3 + $0x1a8] sm:$0xff] }
  0xa6   :  { %6798 = vmatprep.subr.bf16.mxu0 %v9880_v0 }
  0xa9   :  { %6800 = vmatpush1.bf16.msra.mxu0 %v6799_v46  ;;  %v169_v46 = vld [vmem:[#allocation3 + $0x1b0] sm:$0xff] }
  0xaa   :  { %6801 = vmatprep.subr.bf16.mxu0 %v9880_v0  ;;  %v129_v0 = vld [vmem:[#allocation3 + $0x70] sm:$0xff] }
  0xad   :  { %6803 = vmatpush1.bf16.msra.mxu0 %v6802_v49  ;;  %v174_v49 = vld [vmem:[#allocation3 + $0x1d8] sm:$0xff] }
  0xae   :  { %6805 = vmatprep.subr.bf16.mxu0 %v6804_v11  ;;  %v1942_v11 = vld [vmem:[#allocation9 + $0x198] sm:$0xff] }
  0xb0   :  { %475 = vmatmul.mubr.f32.vlgmr.msra.gmra.mrb[0].mxu0 %v115_v50  ;;  %v173_v50 = vld [vmem:[#allocation3 + $0x1d0] sm:$0xff] }
  0xb1   :  { %479 = vmatprep.mubr.f32.mxu0 %v118_v51  ;;  %6807 = vmatpush1.bf16.msra.mxu0 %v6806_v15  ;;  %v176_v51 = vld [vmem:[#allocation3 + $0x1e8] sm:$0xff]  ;;  %v1941_v15 = vld [vmem:[#allocation9 + $0x190] sm:$0xff] }
  0xb4   :  { %480 = vmatmul.mubr.f32.gmra.mrb[2].mxu0 %v117_v52  ;;  %v175_v52 = vld [vmem:[#allocation3 + $0x1e0] sm:$0xff] }
  0xb5   :  { %484 = vmatprep.mubr.f32.mxu0 %v120_v53  ;;  %v178_v53 = vld [vmem:[#allocation3 + $0x1f8] sm:$0xff] }
  0xb8   :  { %485 = vmatmul.mubr.f32.gmra.mrb[4].mxu0 %v119_v54  ;;  %v177_v54 = vld [vmem:[#allocation3 + $0x1f0] sm:$0xff] }
  0xb9   :  { %489 = vmatprep.mubr.f32.mxu0 %v122_v55  ;;  %v180_v55 = vld [vmem:[#allocation3 + $0x208] sm:$0xff] }
  0xbc   :  { %490 = vmatmul.mubr.f32.gmra.mrb[6].mxu0 %v121_v56  ;;  %v179_v56 = vld [vmem:[#allocation3 + $0x200] sm:$0xff] }
  0xbd   :  { %494 = vmatprep.mubr.f32.mxu0 %v124_v57  ;;  %v182_v57 = vld [vmem:[#allocation3 + $0x218] sm:$0xff] }
  0xc0   :  { %495 = vmatmul.mubr.f32.gmra.mrb[8].mxu0 %v123_v58  ;;  %v1924_v58 = vld [vmem:[#allocation9 + $0x108] sm:$0xff] }
  0xc1   :  { %499 = vmatprep.mubr.f32.mxu0 %v126_v59  ;;  %v1940_v59 = vld [vmem:[#allocation9 + $0x188] sm:$0xff] }
  0xc4   :  { %500 = vmatmul.mubr.f32.gmra.mrb[10].mxu0 %v125_v60  ;;  %v1923_v60 = vld [vmem:[#allocation9 + $0x100] sm:$0xff] }
  0xc5   :  { %504 = vmatprep.mubr.f32.mxu0 %v128_v61  ;;  %v6808_v61 = vpack.c.bf16 %v1940_v59, %v1924_v58  ;;  %v2118_v58 = vld [vmem:[#allocation9 + $0x718] sm:$0xff] }
  0xc6   :  { %v2134_v59 = vld [vmem:[#allocation9 + $0x798] sm:$0xff] }
  0xc7   :  { %6809 = vmatprep.subr.bf16.mxu0 %v6808_v61  ;;  %v6864_v61 = vpack.c.bf16 %v2134_v59, %v2118_v58 }
  0xc8   :  { %505 = vmatmul.mubr.f32.gmra.mrb[12].mxu0 %v127_v62  ;;  %v1939_v62 = vld [vmem:[#allocation9 + $0x180] sm:$0xff] }
  0xc9   :  { %509 = vmatprep.mubr.f32.mxu0 %v130_v63  ;;  %v6810_v63 = vpack.c.bf16 %v1939_v62, %v1923_v60  ;;  %v197_v60 = vld [vmem:[#allocation3 + $0x290] sm:$0xff] }
  0xca   :  { %v2117_v62 = vld [vmem:[#allocation9 + $0x710] sm:$0xff] }
  0xcb   :  { %6811 = vmatpush1.bf16.msra.mxu0 %v6810_v63  ;;  %v2133_v63 = vld [vmem:[#allocation9 + $0x790] sm:$0xff] }
  0xcc   :  { %510 = vmatmul.mubr.f32.gmra.mrb[14].mxu0 %v129_v0  ;;  %v181_v0 = vld [vmem:[#allocation3 + $0x210] sm:$0xff] }
  0xcd   :  { %514 = vmatprep.mubr.f32.mxu0 %v132_v1  ;;  %v184_v1 = vld [vmem:[#allocation3 + $0x228] sm:$0xff] }
  0xd0   :  { %515 = vmatmul.mubr.f32.gmra.mrb[16].mxu0 %v131_v2  ;;  %v1894_v2 = vld [vmem:[#allocation9 + $0x18] sm:$0xff] }
  0xd1   :  { %519 = vmatprep.mubr.f32.mxu0 %v134_v3  ;;  %v1910_v3 = vld [vmem:[#allocation9 + $0x98] sm:$0xff] }
  0xd4   :  { %520 = vmatmul.mubr.f32.gmra.mrb[18].mxu0 %v133_v4  ;;  %v183_v4 = vld [vmem:[#allocation3 + $0x220] sm:$0xff] }
  0xd5   :  { %524 = vmatprep.mubr.f32.mxu0 %v136_v5  ;;  %v6836_v5 = vpack.c.bf16 %v1910_v3, %v1894_v2  ;;  %v199_v2 = vld [vmem:[#allocation3 + $0x2a0] sm:$0xff]  ;;  %v202_v3 = vld [vmem:[#allocation3 + $0x2b8] sm:$0xff] }
  0xd7   :  { %6837 = vmatprep.subr.bf16.mxu1 %v6836_v5  ;;  %v201_v5 = vld [vmem:[#allocation3 + $0x2b0] sm:$0xff] }
  0xd8   :  { %525 = vmatmul.mubr.f32.gmra.mrb[20].mxu0 %v135_v6  ;;  %v1893_v6 = vld [vmem:[#allocation9 + $0x10] sm:$0xff] }
  0xd9   :  { %529 = vmatprep.mubr.f32.mxu0 %v138_v7  ;;  %v1909_v7 = vld [vmem:[#allocation9 + $0x90] sm:$0xff] }
  0xda   :  { %v6838_v9 = vpack.c.bf16 %v1909_v7, %v1893_v6  ;;  %v204_v6 = vld [vmem:[#allocation3 + $0x2c8] sm:$0xff]  ;;  %v203_v7 = vld [vmem:[#allocation3 + $0x2c0] sm:$0xff] }
  0xdc   :  { %530 = vmatmul.mubr.f32.gmra.mrb[22].mxu0 %v137_v10  ;;  %6839 = vmatpush1.bf16.msra.mxu1 %v6838_v9  ;;  %v1926_v10 = vld [vmem:[#allocation9 + $0x118] sm:$0xff]  ;;  %v205_v9 = vld [vmem:[#allocation3 + $0x2d0] sm:$0xff] }
  0xdd   :  { %534 = vmatprep.mubr.f32.mxu0 %v140_v14  ;;  %v6840_v13 = vpack.c.bf16 %v1942_v11, %v1926_v10  ;;  %v1925_v14 = vld [vmem:[#allocation9 + $0x110] sm:$0xff]  ;;  %v208_v10 = vld [vmem:[#allocation3 + $0x2e8] sm:$0xff]  ;;  %v207_v11 = vld [vmem:[#allocation3 + $0x2e0] sm:$0xff] }
  0xdf   :  { %6841 = vmatprep.subr.bf16.mxu1 %v6840_v13  ;;  %v209_v13 = vld [vmem:[#allocation3 + $0x2f0] sm:$0xff] }
  0xe0   :  { %535 = vmatmul.mubr.f32.gmra.mrb[24].mxu0 %v139_v16  ;;  %v188_v16 = vld [vmem:[#allocation3 + $0x248] sm:$0xff] }
  0xe1   :  { %539 = vmatprep.mubr.f32.mxu0 %v142_v17  ;;  %v6842_v17 = vpack.c.bf16 %v1941_v15, %v1925_v14  ;;  %v212_v14 = vld [vmem:[#allocation3 + $0x308] sm:$0xff]  ;;  %v211_v15 = vld [vmem:[#allocation3 + $0x300] sm:$0xff] }
  0xe3   :  { %6843 = vmatpush1.bf16.msra.mxu1 %v6842_v17  ;;  %v1956_v17 = vld [vmem:[#allocation9 + $0x208] sm:$0xff] }
  0xe4   :  { %540 = vmatmul.mubr.f32.gmra.mrb[26].mxu0 %v141_v18  ;;  %v1958_v18 = vld [vmem:[#allocation9 + $0x218] sm:$0xff] }
  0xe5   :  { %544 = vmatprep.mubr.f32.mxu0 %v144_v19  ;;  %v1974_v19 = vld [vmem:[#allocation9 + $0x298] sm:$0xff] }
  0xe8   :  { %545 = vmatmul.mubr.f32.gmra.mrb[28].mxu0 %v143_v20  ;;  %v187_v20 = vld [vmem:[#allocation3 + $0x240] sm:$0xff] }
  0xe9   :  { %549 = vmatprep.mubr.f32.mxu0 %v146_v21  ;;  %v6844_v21 = vpack.c.bf16 %v1974_v19, %v1958_v18  ;;  %v1972_v18 = vld [vmem:[#allocation9 + $0x288] sm:$0xff]  ;;  %v1955_v19 = vld [vmem:[#allocation9 + $0x200] sm:$0xff] }
  0xeb   :  { %6845 = vmatprep.subr.bf16.mxu1 %v6844_v21  ;;  %v1971_v21 = vld [vmem:[#allocation9 + $0x280] sm:$0xff] }
  0xec   :  { %550 = vmatmul.mubr.f32.gmra.mrb[30].mxu0 %v145_v22  ;;  %v1957_v22 = vld [vmem:[#allocation9 + $0x210] sm:$0xff] }
  0xed   :  { %554 = vmatprep.mubr.f32.mxu0 %v148_v23  ;;  %v1973_v23 = vld [vmem:[#allocation9 + $0x290] sm:$0xff] }
  0xf0   :  { %555 = vmatmul.mubr.f32.gmra.mrb[32].mxu0 %v147_v24  ;;  %v190_v24 = vld [vmem:[#allocation3 + $0x258] sm:$0xff] }
  0xf1   :  { %559 = vmatprep.mubr.f32.mxu0 %v150_v25  ;;  %v6846_v25 = vpack.c.bf16 %v1973_v23, %v1957_v22  ;;  %v6814_v22 = vpack.c.bf16 %v1971_v21, %v1955_v19  ;;  %v213_v23 = vld [vmem:[#allocation3 + $0x310] sm:$0xff]  ;;  %v10050_v21 = vld [vmem:[#allocation8] sm:$0xff] }
  0xf3   :  { %6847 = vmatpush1.bf16.msra.mxu1 %v6846_v25  ;;  %v215_v25 = vld [vmem:[#allocation3 + $0x320] sm:$0xff] }
  0xf4   :  { %560 = vmatmul.mubr.f32.gmra.mrb[34].mxu0 %v149_v26  ;;  %v1990_v26 = vld [vmem:[#allocation9 + $0x318] sm:$0xff] }
  0xf5   :  { %564 = vmatprep.mubr.f32.mxu0 %v152_v27  ;;  %v2006_v27 = vld [vmem:[#allocation9 + $0x398] sm:$0xff] }
  0xf8   :  { %565 = vmatmul.mubr.f32.gmra.mrb[36].mxu0 %v151_v28  ;;  %v189_v28 = vld [vmem:[#allocation3 + $0x250] sm:$0xff] }
  0xf9   :  { %569 = vmatprep.mubr.f32.mxu0 %v154_v29  ;;  %v6848_v29 = vpack.c.bf16 %v2006_v27, %v1990_v26  ;;  %v218_v26 = vld [vmem:[#allocation3 + $0x338] sm:$0xff]  ;;  %v217_v27 = vld [vmem:[#allocation3 + $0x330] sm:$0xff] }
  0xfb   :  { %6849 = vmatprep.subr.bf16.mxu1 %v6848_v29  ;;  %v219_v29 = vld [vmem:[#allocation3 + $0x340] sm:$0xff] }
  0xfc   :  { %570 = vmatmul.mubr.f32.gmra.mrb[38].mxu0 %v153_v30  ;;  %v1989_v30 = vld [vmem:[#allocation9 + $0x310] sm:$0xff] }
  0xfd   :  { %574 = vmatprep.mubr.f32.mxu0 %v156_v31  ;;  %v2005_v31 = vld [vmem:[#allocation9 + $0x390] sm:$0xff] }
 0x100   :  { %575 = vmatmul.mubr.f32.gmra.mrb[40].mxu0 %v155_v32  ;;  %v192_v32 = vld [vmem:[#allocation3 + $0x268] sm:$0xff] }
 0x101   :  { %579 = vmatprep.mubr.f32.mxu0 %v158_v33  ;;  %v6850_v33 = vpack.c.bf16 %v2005_v31, %v1989_v30  ;;  %v222_v30 = vld [vmem:[#allocation3 + $0x358] sm:$0xff]  ;;  %v221_v31 = vld [vmem:[#allocation3 + $0x350] sm:$0xff] }
 0x103   :  { %6851 = vmatpush1.bf16.msra.mxu1 %v6850_v33  ;;  %v10042_v33 = vld [vmem:[%s12178_s2] ss:$0 sm:$0xff] }
 0x104   :  { %580 = vmatmul.mubr.f32.gmra.mrb[42].mxu0 %v157_v34  ;;  %v2022_v34 = vld [vmem:[#allocation9 + $0x418] sm:$0xff] }
 0x105   :  { %584 = vmatprep.mubr.f32.mxu0 %v160_v35  ;;  %v2038_v35 = vld [vmem:[#allocation9 + $0x498] sm:$0xff] }
 0x108   :  { %585 = vmatmul.mubr.f32.gmra.mrb[44].mxu0 %v159_v36  ;;  %v191_v36 = vld [vmem:[#allocation3 + $0x260] sm:$0xff] }
 0x109   :  { %589 = vmatprep.mubr.f32.mxu0 %v162_v37  ;;  %v6852_v37 = vpack.c.bf16 %v2038_v35, %v2022_v34 }
 0x10b   :  { %6853 = vmatprep.subr.bf16.mxu1 %v6852_v37 }
 0x10c   :  { %590 = vmatmul.mubr.f32.gmra.mrb[46].mxu0 %v161_v38  ;;  %v2021_v38 = vld [vmem:[#allocation9 + $0x410] sm:$0xff] }
 0x10d   :  { %594 = vmatprep.mubr.f32.mxu0 %v164_v39  ;;  %v2037_v39 = vld [vmem:[#allocation9 + $0x490] sm:$0xff] }
 0x110   :  { %595 = vmatmul.mubr.f32.gmra.mrb[48].mxu0 %v163_v40  ;;  %v194_v40 = vld [vmem:[#allocation3 + $0x278] sm:$0xff] }
 0x111   :  { %599 = vmatprep.mubr.f32.mxu0 %v166_v41  ;;  %v6854_v41 = vpack.c.bf16 %v2037_v39, %v2021_v38  ;;  %v226_v38 = vld [vmem:[#allocation3 + $0x378] sm:$0xff] }
 0x113   :  { %6855 = vmatpush1.bf16.msra.mxu1 %v6854_v41 }
 0x114   :  { %600 = vmatmul.mubr.f32.gmra.mrb[50].mxu0 %v165_v42  ;;  %v2054_v42 = vld [vmem:[#allocation9 + $0x518] sm:$0xff] }
 0x115   :  { %604 = vmatprep.mubr.f32.mxu0 %v168_v43  ;;  %v2070_v43 = vld [vmem:[#allocation9 + $0x598] sm:$0xff] }
 0x118   :  { %605 = vmatmul.mubr.f32.gmra.mrb[52].mxu0 %v167_v44  ;;  %v193_v44 = vld [vmem:[#allocation3 + $0x270] sm:$0xff] }
 0x119   :  { %609 = vmatprep.mubr.f32.mxu0 %v170_v45  ;;  %v6856_v45 = vpack.c.bf16 %v2070_v43, %v2054_v42  ;;  %v225_v42 = vld [vmem:[#allocation3 + $0x370] sm:$0xff] }
 0x11b   :  { %6857 = vmatprep.subr.bf16.mxu1 %v6856_v45  ;;  %v228_v45 = vld [vmem:[#allocation3 + $0x388] sm:$0xff] }
 0x11c   :  { %610 = vmatmul.mubr.f32.gmra.mrb[54].mxu0 %v169_v46  ;;  %v2053_v46 = vld [vmem:[#allocation9 + $0x510] sm:$0xff] }
 0x11d   :  { %614 = vmatprep.mubr.f32.mxu0 %v172_v47  ;;  %v2069_v47 = vld [vmem:[#allocation9 + $0x590] sm:$0xff] }
 0x120   :  { %615 = vmatmul.mubr.f32.gmra.mrb[56].mxu0 %v171_v48  ;;  %v196_v48 = vld [vmem:[#allocation3 + $0x288] sm:$0xff] }
 0x121   :  { %619 = vmatprep.mubr.f32.mxu0 %v174_v49  ;;  %v6858_v49 = vpack.c.bf16 %v2069_v47, %v2053_v46 }
 0x123   :  { %6859 = vmatpush1.bf16.msra.mxu1 %v6858_v49  ;;  %v227_v49 = vld [vmem:[#allocation3 + $0x380] sm:$0xff] }
 0x124   :  { %620 = vmatmul.mubr.f32.gmra.mrb[58].mxu0 %v173_v50  ;;  %v2086_v50 = vld [vmem:[#allocation9 + $0x618] sm:$0xff] }
 0x125   :  { %624 = vmatprep.mubr.f32.mxu0 %v176_v51  ;;  %v2102_v51 = vld [vmem:[#allocation9 + $0x698] sm:$0xff] }
 0x128   :  { %625 = vmatmul.mubr.f32.gmra.mrb[60].mxu0 %v175_v52  ;;  %v195_v52 = vld [vmem:[#allocation3 + $0x280] sm:$0xff] }
 0x129   :  { %629 = vmatprep.mubr.f32.mxu0 %v178_v53  ;;  %v6860_v53 = vpack.c.bf16 %v2102_v51, %v2086_v50 }
 0x12b   :  { %6861 = vmatprep.subr.bf16.mxu1 %v6860_v53 }
 0x12c   :  { %630 = vmatmul.mubr.f32.gmra.mrb[62].mxu0 %v177_v54  ;;  %v2085_v54 = vld [vmem:[#allocation9 + $0x610] sm:$0xff] }
 0x12d   :  { %634 = vmatprep.mubr.f32.mxu0 %v180_v55  ;;  %v2101_v55 = vld [vmem:[#allocation9 + $0x690] sm:$0xff] }
 0x130   :  { %635 = vmatmul.mubr.f32.gmra.mrb[64].mxu0 %v179_v56  ;;  %v198_v56 = vld [vmem:[#allocation3 + $0x298] sm:$0xff] }
 0x131   :  { %639 = vmatprep.mubr.f32.mxu0 %v182_v57  ;;  %v6862_v57 = vpack.c.bf16 %v2101_v55, %v2085_v54 }
 0x133   :  { %6863 = vmatpush1.bf16.msra.mxu1 %v6862_v57  ;;  %v229_v57 = vld [vmem:[#allocation3 + $0x390] sm:$0xff] }
 0x134   :  { %640 = vmatmul.mubr.f32.gmra.mrb[66].mxu0 %v181_v0  ;;  %v200_v0 = vld [vmem:[#allocation3 + $0x2a8] sm:$0xff]  ;;  %6865 = vmatprep.subr.bf16.mxu1 %v6864_v61 }
 0x135   :  { %644 = vmatprep.mubr.f32.mxu0 %v184_v1  ;;  %v6866_v1 = vpack.c.bf16 %v2133_v63, %v2117_v62 }
 0x137   :  { %6867 = vmatpush1.bf16.msra.mxu1 %v6866_v1  ;;  %v231_v1 = vld [vmem:[#allocation3 + $0x3a0] sm:$0xff] }
 0x138   :  { %645 = vmatmul.mubr.f32.gmra.mrb[68].mxu0 %v183_v4  ;;  %v12186_v4 = vmov 0.0  }
 0x139   :  { %649 = vmatprep.mubr.f32.mxu0 %v186_v8  ;;  %2599 = vmatprep.mubr.f32.mxu1 %v12186_v4  ;;  %v206_v8 = vld [vmem:[#allocation3 + $0x2d8] sm:$0xff] }
 0x13c   :  { %650 = vmatmul.mubr.f32.gmra.mrb[70].mxu0 %v185_v12  ;;  %v210_v12 = vld [vmem:[#allocation3 + $0x2f8] sm:$0xff] }
 0x13d   :  { %654 = vmatprep.mubr.f32.mxu0 %v188_v16  ;;  %v214_v16 = vld [vmem:[#allocation3 + $0x318] sm:$0xff] }
 0x140   :  { %655 = vmatmul.mubr.f32.gmra.mrb[72].mxu0 %v187_v20  ;;  %v6812_v20 = vpack.c.bf16 %v1972_v18, %v1956_v17 }
 0x141   :  { %659 = vmatprep.mubr.f32.mxu0 %v190_v24  ;;  %v216_v24 = vld [vmem:[#allocation3 + $0x328] sm:$0xff] }
 0x142   :  { %6813 = vmatprep.subr.bf16.mxu0 %v6812_v20 }
 0x143   :  { %6815 = vmatpush1.bf16.msra.mxu0 %v6814_v22  ;;  %v235_v22 = vld [vmem:[#allocation3 + $0x3c0] sm:$0xff] }
 0x144   :  { %660 = vmatmul.mubr.f32.gmra.mrb[74].mxu0 %v189_v28  ;;  %v220_v28 = vld [vmem:[#allocation3 + $0x348] sm:$0xff] }
 0x145   :  { %664 = vmatprep.mubr.f32.mxu0 %v192_v32  ;;  %v224_v32 = vld [vmem:[#allocation3 + $0x368] sm:$0xff] }
 0x148   :  { %665 = vmatmul.mubr.f32.gmra.mrb[76].mxu0 %v191_v36  ;;  %v223_v36 = vld [vmem:[#allocation3 + $0x360] sm:$0xff] }
 0x149   :  { %669 = vmatprep.mubr.f32.mxu0 %v194_v40 }
 0x14c   :  { %670 = vmatmul.mubr.f32.gmra.mrb[78].mxu0 %v193_v44 }
 0x14d   :  { %674 = vmatprep.mubr.f32.mxu0 %v196_v48 }
 0x150   :  { %675 = vmatmul.mubr.f32.gmra.mrb[80].mxu0 %v195_v52  ;;  %v230_v52 = vld [vmem:[#allocation3 + $0x398] sm:$0xff] }
 0x151   :  { %679 = vmatprep.mubr.f32.mxu0 %v198_v56 }
 0x154   :  { %680 = vmatmul.mubr.f32.gmra.mrb[82].mxu0 %v197_v60  ;;  %v232_v60 = vld [vmem:[#allocation3 + $0x3a8] sm:$0xff] }
 0x155   :  { %684 = vmatprep.mubr.f32.mxu0 %v200_v0 }
 0x158   :  { %685 = vmatmul.mubr.f32.gmra.mrb[84].mxu0 %v199_v2 }
 0x159   :  { %689 = vmatprep.mubr.f32.mxu0 %v202_v3 }
 0x15c   :  { %690 = vmatmul.mubr.f32.gmra.mrb[86].mxu0 %v201_v5  ;;  %v234_v5 = vld [vmem:[#allocation3 + $0x3b8] sm:$0xff] }
 0x15d   :  { %694 = vmatprep.mubr.f32.mxu0 %v204_v6 }
 0x160   :  { %695 = vmatmul.mubr.f32.gmra.mrb[88].mxu0 %v203_v7 }
 0x161   :  { %699 = vmatprep.mubr.f32.mxu0 %v206_v8 }
 0x164   :  { %700 = vmatmul.mubr.f32.gmra.mrb[90].mxu0 %v205_v9 }
 0x165   :  { %704 = vmatprep.mubr.f32.mxu0 %v208_v10 }
 0x168   :  { %705 = vmatmul.mubr.f32.gmra.mrb[92].mxu0 %v207_v11  ;;  %v233_v11 = vld [vmem:[#allocation3 + $0x3b0] sm:$0xff] }
 0x169   :  { %709 = vmatprep.mubr.f32.mxu0 %v210_v12 }
 0x16c   :  { %710 = vmatmul.mubr.f32.gmra.mrb[94].mxu0 %v209_v13 }
 0x16d   :  { %714 = vmatprep.mubr.f32.mxu0 %v212_v14 }
 0x170   :  { %715 = vmatmul.mubr.f32.gmra.mrb[96].mxu0 %v211_v15  ;;  %v236_v15 = vld [vmem:[#allocation3 + $0x3c8] sm:$0xff] }
 0x171   :  { %719 = vmatprep.mubr.f32.mxu0 %v214_v16 }
 0x174   :  { %720 = vmatmul.mubr.f32.gmra.mrb[98].mxu0 %v213_v23 }
 0x175   :  { %724 = vmatprep.mubr.f32.mxu0 %v216_v24  ;;  %v1707_v24 = vrot.slane %v10050_v21, 1 }
 0x178   :  { %725 = vmatmul.mubr.f32.gmra.mrb[100].mxu0 %v215_v25 }
 0x179   :  { %729 = vmatprep.mubr.f32.mxu0 %v218_v26 }
 0x17c   :  { %730 = vmatmul.mubr.f32.gmra.mrb[102].mxu0 %v217_v27  ;;  %v238_v27 = vld [vmem:[#allocation3 + $0x3d8] sm:$0xff] }
 0x17d   :  { %734 = vmatprep.mubr.f32.mxu0 %v220_v28 }
 0x180   :  { %735 = vmatmul.mubr.f32.gmra.mrb[104].mxu0 %v219_v29 }
 0x181   :  { %739 = vmatprep.mubr.f32.mxu0 %v222_v30 }
 0x183   :  { %v476_v34 = vpop.f32.mrb[0].mxu0 }
 0x184   :  { %v478_v35 = vpop.f32.mrb[1].mxu0  ;;  %740 = vmatmul.mubr.f32.gmra.mrb[106].mxu0 %v221_v31  ;;  %v477_v37 = vadd.f32 %v10042_v33, %v476_v34 }
 0x185   :  { %744 = vmatprep.mubr.f32.mxu0 %v224_v32  ;;  %v237_v35 = vld [vmem:[#allocation3 + $0x3d0] sm:$0xff] }
 0x186   :  { %v1115_v43 = vmax.f32 %v477_v37, 0.0 }
 0x187   :  { %v481_v39 = vpop.f32.mrb[2].mxu0 }
 0x188   :  { %v482_v40 = vadd.f32 %v10042_v33, %v481_v39  ;;  %v483_v41 = vpop.f32.mrb[3].mxu0  ;;  %745 = vmatmul.mubr.f32.gmra.mrb[108].mxu0 %v223_v36 }
 0x189   :  { %749 = vmatprep.mubr.f32.mxu0 %v226_v38 }
 0x18a   :  { %v1116_v44 = vmax.f32 %v482_v40, 0.0  ;;  %v240_v40 = vld [vmem:[#allocation3 + $0x3e8] sm:$0xff] }
 0x18b   :  { %v486_v46 = vpop.f32.mrb[4].mxu0 }
 0x18c   :  { %v1243_v47 = vmax.f32 %v1115_v43, %v1116_v44  ;;  %v488_v48 = vpop.f32.mrb[5].mxu0  ;;  %750 = vmatmul.mubr.f32.gmra.mrb[110].mxu0 %v225_v42  ;;  %v487_v51 = vadd.f32 %v10042_v33, %v486_v46 }
 0x18d   :  { %754 = vmatprep.mubr.f32.mxu0 %v228_v45  ;;  %v239_v48 = vld [vmem:[#allocation3 + $0x3e0] sm:$0xff] }
 0x18e   :  { %v1244_v50 = vrot.slane %v1243_v47, 4  ;;  %v1117_v58 = vmax.f32 %v487_v51, 0.0 }
 0x18f   :  { %v491_v53 = vpop.f32.mrb[6].mxu0 }
 0x190   :  { %v1245_v54 = vmax.f32 %v1243_v47, %v1244_v50  ;;  %v492_v55 = vadd.f32 %v10042_v33, %v491_v53  ;;  %v493_v56 = vpop.f32.mrb[7].mxu0  ;;  %755 = vmatmul.mubr.f32.gmra.mrb[112].mxu0 %v227_v49  ;;  %v1708_v47 = vrot.slane %v10050_v21, 2  ;;  %v242_v53 = vld [vmem:[#allocation3 + $0x3f8] sm:$0xff] }
 0x191   :  { %759 = vmatprep.mubr.f32.mxu0 %v230_v52 }
 0x192   :  { %v1118_v59 = vmax.f32 %v492_v55, 0.0  ;;  %v1246_v62 = vrot.slane %v1245_v54, 2 }
 0x193   :  { %v496_v61 = vpop.f32.mrb[8].mxu0 }
 0x194   :  { %v1250_v63 = vmax.f32 %v1117_v58, %v1118_v59  ;;  %v498_v0 = vpop.f32.mrb[9].mxu0  ;;  %760 = vmatmul.mubr.f32.gmra.mrb[114].mxu0 %v229_v57  ;;  %v497_v3 = vadd.f32 %v10042_v33, %v496_v61  ;;  %v1247_v7 = vmax.f32 %v1245_v54, %v1246_v62  ;;  %v241_v59 = vld [vmem:[#allocation3 + $0x3f0] sm:$0xff] }
 0x195   :  { %764 = vmatprep.mubr.f32.mxu0 %v232_v60  ;;  %v244_v0 = vld [vmem:[#allocation3 + $0x408] sm:$0xff] }
 0x196   :  { %v1251_v2 = vrot.slane %v1250_v63, 4  ;;  %v1119_v13 = vmax.f32 %v497_v3, 0.0  ;;  %v1248_v17 = vrot.slane %v1247_v7, 1 }
 0x197   :  { %v501_v6 = vpop.f32.mrb[10].mxu0 }
 0x198   :  { %v1252_v8 = vmax.f32 %v1250_v63, %v1251_v2  ;;  %v502_v9 = vadd.f32 %v10042_v33, %v501_v6  ;;  %v503_v10 = vpop.f32.mrb[11].mxu0  ;;  %765 = vmatmul.mubr.f32.gmra.mrb[116].mxu0 %v231_v1  ;;  %v1249_v29 = vmax.f32 %v1247_v7, %v1248_v17  ;;  %v1709_v7 = vrot.slane %v10050_v21, 3 }
 0x199   :  { %769 = vmatprep.mubr.f32.mxu0 %v234_v5 }
 0x19a   :  { %v1253_v12 = vrot.slane %v1252_v8, 2  ;;  %v1120_v14 = vmax.f32 %v502_v9, 0.0  ;;  %v1827_v42 = vadd.f32 %v10050_v21, %v1249_v29  ;;  %v246_v9 = vld [vmem:[#allocation3 + $0x418] sm:$0xff] }
 0x19b   :  { %v506_v16 = vpop.f32.mrb[12].mxu0 }
 0x19c   :  { %v1254_v18 = vmax.f32 %v1252_v8, %v1253_v12  ;;  %v1257_v19 = vmax.f32 %v1119_v13, %v1120_v14  ;;  %v508_v20 = vpop.f32.mrb[13].mxu0  ;;  %770 = vmatmul.mubr.f32.gmra.mrb[118].mxu0 %v233_v11  ;;  %v507_v26 = vadd.f32 %v10042_v33, %v506_v16  ;;  %v243_v8 = vld [vmem:[#allocation3 + $0x400] sm:$0xff]  ;;  %v1988_v14 = vld [vmem:[#allocation9 + $0x308] sm:$0xff] }
 0x19d   :  { %774 = vmatprep.mubr.f32.mxu0 %v236_v15  ;;  %v2004_v15 = vld [vmem:[#allocation9 + $0x388] sm:$0xff]  ;;  %v1987_v16 = vld [vmem:[#allocation9 + $0x300] sm:$0xff] }
 0x19e   :  { %v1255_v23 = vrot.slane %v1254_v18, 1  ;;  %v1258_v25 = vrot.slane %v1257_v19, 4  ;;  %v1121_v38 = vmax.f32 %v507_v26, 0.0  ;;  %v245_v26 = vld [vmem:[#allocation3 + $0x410] sm:$0xff] }
 0x19f   :  { %v511_v28 = vpop.f32.mrb[14].mxu0 }
 0x1a0   :  { %v1256_v30 = vmax.f32 %v1254_v18, %v1255_v23  ;;  %v1259_v31 = vmax.f32 %v1257_v19, %v1258_v25  ;;  %v512_v32 = vadd.f32 %v10042_v33, %v511_v28  ;;  %v513_v34 = vpop.f32.mrb[15].mxu0  ;;  %775 = vmatmul.mubr.f32.gmra.mrb[120].mxu0 %v235_v22  ;;  %v6816_v18 = vpack.c.bf16 %v2004_v15, %v1988_v14  ;;  %v2003_v19 = vld [vmem:[#allocation9 + $0x380] sm:$0xff]  ;;  %v256_v15 = vld [vmem:[#allocation3 + $0x468] sm:$0xff] }
 0x1a1   :  { %779 = vmatprep.mubr.f32.mxu0 %v238_v27  ;;  %v6818_v25 = vpack.c.bf16 %v2003_v19, %v1987_v16 }
 0x1a2   :  { %v1828_v36 = vadd.f32 %v1707_v24, %v1256_v30  ;;  %v1260_v37 = vrot.slane %v1259_v31, 2  ;;  %v1122_v39 = vmax.f32 %v512_v32, 0.0  ;;  %6817 = vmatprep.subr.bf16.mxu0 %v6816_v18 }
 0x1a3   :  { %v516_v41 = vpop.f32.mrb[16].mxu0  ;;  %6819 = vmatpush1.bf16.msra.mxu0 %v6818_v25 }
 0x1a4   :  { %v2295_v43 = vrot.slane %v1828_v36, 7  ;;  %v1261_v44 = vmax.f32 %v1259_v31, %v1260_v37  ;;  %v1264_v45 = vmax.f32 %v1121_v38, %v1122_v39  ;;  %v518_v46 = vpop.f32.mrb[17].mxu0  ;;  %780 = vmatmul.mubr.f32.gmra.mrb[122].mxu0 %v237_v35  ;;  %v517_v52 = vadd.f32 %v10042_v33, %v516_v41  ;;  %v248_v31 = vld [vmem:[#allocation3 + $0x428] sm:$0xff]  ;;  %v247_v39 = vld [vmem:[#allocation3 + $0x420] sm:$0xff] }
 0x1a5   :  { %784 = vmatprep.mubr.f32.mxu0 %v240_v40  ;;  %v1710_v38 = vrot.slane %v10050_v21, 4 }
 0x1a6   :  { %v2297_v49 = vsel %vm2296_vm0, %v2295_v43, %v1827_v42  ;;  %v1262_v50 = vrot.slane %v1261_v44, 1  ;;  %v1265_v51 = vrot.slane %v1264_v45, 4  ;;  %v1123_v62 = vmax.f32 %v517_v52, 0.0 }
 0x1a7   :  { %v521_v54 = vpop.f32.mrb[18].mxu0 }
 0x1a8   :  { %v1263_v55 = vmax.f32 %v1261_v44, %v1262_v50  ;;  %v1266_v56 = vmax.f32 %v1264_v45, %v1265_v51  ;;  %v522_v57 = vadd.f32 %v10042_v33, %v521_v54  ;;  %v523_v58 = vpop.f32.mrb[19].mxu0  ;;  %785 = vmatmul.mubr.f32.gmra.mrb[124].mxu0 %v239_v48  ;;  %v250_v44 = vld [vmem:[#allocation3 + $0x438] sm:$0xff]  ;;  %v249_v50 = vld [vmem:[#allocation3 + $0x430] sm:$0xff] }
 0x1a9   :  { %789 = vmatprep.mubr.f32.mxu0 %v242_v53 }
 0x1aa   :  { %v1829_v60 = vadd.f32 %v1708_v47, %v1263_v55  ;;  %v1267_v61 = vrot.slane %v1266_v56, 2  ;;  %v1124_v63 = vmax.f32 %v522_v57, 0.0  ;;  %v252_v55 = vld [vmem:[#allocation3 + $0x448] sm:$0xff] }
 0x1ab   :  { %v526_v1 = vpop.f32.mrb[20].mxu0 }
 0x1ac   :  { %v2298_v2 = vrot.slane %v1829_v60, 6  ;;  %v1268_v3 = vmax.f32 %v1266_v56, %v1267_v61  ;;  %v1271_v5 = vmax.f32 %v1123_v62, %v1124_v63  ;;  %v528_v6 = vpop.f32.mrb[21].mxu0  ;;  %790 = vmatmul.mubr.f32.gmra.mrb[126].mxu0 %v241_v59  ;;  %v527_v13 = vadd.f32 %v10042_v33, %v526_v1  ;;  %v251_v62 = vld [vmem:[#allocation3 + $0x440] sm:$0xff] }
 0x1ad   :  { %794 = vmatprep.mubr.f32.mxu0 %v244_v0  ;;  %v1711_v61 = vrot.slane %v10050_v21, 5 }
 0x1ae   :  { %v2300_v10 = vsel %vm2299_vm1, %v2298_v2, %v2297_v49  ;;  %v1269_v11 = vrot.slane %v1268_v3, 1  ;;  %v1272_v12 = vrot.slane %v1271_v5, 4  ;;  %v1125_v29 = vmax.f32 %v527_v13, 0.0 }
 0x1af   :  { %v531_v17 = vpop.f32.mrb[22].mxu0 }
 0x1b0   :  { %v1270_v20 = vmax.f32 %v1268_v3, %v1269_v11  ;;  %v1273_v22 = vmax.f32 %v1271_v5, %v1272_v12  ;;  %v532_v23 = vadd.f32 %v10042_v33, %v531_v17  ;;  %v533_v24 = vpop.f32.mrb[23].mxu0  ;;  %795 = vmatmul.mubr.f32.gmra.mrb[128].mxu0 %v243_v8  ;;  %v254_v3 = vld [vmem:[#allocation3 + $0x458] sm:$0xff] }
 0x1b1   :  { %799 = vmatprep.mubr.f32.mxu0 %v246_v9 }
 0x1b2   :  { %v1830_v27 = vadd.f32 %v1709_v7, %v1270_v20  ;;  %v1274_v28 = vrot.slane %v1273_v22, 2  ;;  %v1126_v30 = vmax.f32 %v532_v23, 0.0  ;;  %v255_v23 = vld [vmem:[#allocation3 + $0x460] sm:$0xff] }
 0x1b3   :  { %v536_v32 = vpop.f32.mrb[24].mxu0 }
 0x1b4   :  { %v2301_v34 = vrot.slane %v1830_v27, 5  ;;  %v1275_v35 = vmax.f32 %v1273_v22, %v1274_v28  ;;  %v1278_v36 = vmax.f32 %v1125_v29, %v1126_v30  ;;  %v538_v37 = vpop.f32.mrb[25].mxu0  ;;  %800 = vmatmul.mubr.f32.gmra.mrb[130].mxu0 %v245_v26  ;;  %v537_v43 = vadd.f32 %v10042_v33, %v536_v32  ;;  %v258_v28 = vld [vmem:[#allocation3 + $0x478] sm:$0xff] }
 0x1b5   :  { %804 = vmatprep.mubr.f32.mxu0 %v248_v31  ;;  %v1712_v22 = vrot.slane %v10050_v21, 6 }
 0x1b6   :  { %v2303_v40 = vsel %vm2302_vm2, %v2301_v34, %v2300_v10  ;;  %v1276_v41 = vrot.slane %v1275_v35, 1  ;;  %v1279_v42 = vrot.slane %v1278_v36, 4  ;;  %v1127_v53 = vmax.f32 %v537_v43, 0.0  ;;  %v253_v10 = vld [vmem:[#allocation3 + $0x450] sm:$0xff] }
 0x1b7   :  { %v541_v45 = vpop.f32.mrb[26].mxu0 }
 0x1b8   :  { %v1277_v46 = vmax.f32 %v1275_v35, %v1276_v41  ;;  %v1280_v47 = vmax.f32 %v1278_v36, %v1279_v42  ;;  %v542_v48 = vadd.f32 %v10042_v33, %v541_v45  ;;  %v543_v49 = vpop.f32.mrb[27].mxu0  ;;  %805 = vmatmul.mubr.f32.gmra.mrb[132].mxu0 %v247_v39  ;;  %v257_v35 = vld [vmem:[#allocation3 + $0x470] sm:$0xff] }
 0x1b9   :  { %809 = vmatprep.mubr.f32.mxu0 %v250_v44 }
 0x1ba   :  { %v1831_v51 = vadd.f32 %v1710_v38, %v1277_v46  ;;  %v1281_v52 = vrot.slane %v1280_v47, 2  ;;  %v1128_v54 = vmax.f32 %v542_v48, 0.0  ;;  %v1713_v46 = vrot.slane %v10050_v21, 7 }
 0x1bb   :  { %v546_v56 = vpop.f32.mrb[28].mxu0 }
 0x1bc   :  { %v2304_v57 = vrot.slane %v1831_v51, 4  ;;  %v1282_v58 = vmax.f32 %v1280_v47, %v1281_v52  ;;  %v1285_v59 = vmax.f32 %v1127_v53, %v1128_v54  ;;  %v548_v60 = vpop.f32.mrb[29].mxu0  ;;  %810 = vmatmul.mubr.f32.gmra.mrb[134].mxu0 %v249_v50  ;;  %v547_v2 = vadd.f32 %v10042_v33, %v546_v56  ;;  %v259_v47 = vld [vmem:[#allocation3 + $0x480] sm:$0xff]  ;;  %v262_v51 = vld [vmem:[#allocation3 + $0x498] sm:$0xff] }
 0x1bd   :  { %814 = vmatprep.mubr.f32.mxu0 %v252_v55 }
 0x1be   :  { %v2306_v63 = vsel %vm2305_vm3, %v2304_v57, %v2303_v40  ;;  %v1283_v0 = vrot.slane %v1282_v58, 1  ;;  %v1286_v1 = vrot.slane %v1285_v59, 4  ;;  %v1129_v13 = vmax.f32 %v547_v2, 0.0  ;;  %v260_v40 = vld [vmem:[#allocation3 + $0x488] sm:$0xff] }
 0x1bf   :  { %v551_v5 = vpop.f32.mrb[30].mxu0 }
 0x1c0   :  { %v1284_v6 = vmax.f32 %v1282_v58, %v1283_v0  ;;  %v1287_v7 = vmax.f32 %v1285_v59, %v1286_v1  ;;  %v552_v8 = vadd.f32 %v10042_v33, %v551_v5  ;;  %v553_v9 = vpop.f32.mrb[31].mxu0  ;;  %815 = vmatmul.mubr.f32.gmra.mrb[136].mxu0 %v251_v62  ;;  %v261_v58 = vld [vmem:[#allocation3 + $0x490] sm:$0xff] }
 0x1c1   :  { %819 = vmatprep.mubr.f32.mxu0 %v254_v3  ;;  %v263_v3 = vld [vmem:[#allocation3 + $0x4a0] sm:$0xff] }
 0x1c2   :  { %v1832_v11 = vadd.f32 %v1711_v61, %v1284_v6  ;;  %v1288_v12 = vrot.slane %v1287_v7, 2  ;;  %v1130_v14 = vmax.f32 %v552_v8, 0.0  ;;  %v264_v61 = vld [vmem:[#allocation3 + $0x4a8] sm:$0xff]  ;;  %v266_v8 = vld [vmem:[#allocation3 + $0x4b8] sm:$0xff] }
 0x1c3   :  { %v556_v16 = vpop.f32.mrb[32].mxu0 }
 0x1c4   :  { %v2307_v17 = vrot.slane %v1832_v11, 3  ;;  %v1289_v18 = vmax.f32 %v1287_v7, %v1288_v12  ;;  %v1292_v19 = vmax.f32 %v1129_v13, %v1130_v14  ;;  %v558_v20 = vpop.f32.mrb[33].mxu0  ;;  %820 = vmatmul.mubr.f32.gmra.mrb[138].mxu0 %v253_v10  ;;  %v557_v27 = vadd.f32 %v10042_v33, %v556_v16  ;;  %v265_v14 = vld [vmem:[#allocation3 + $0x4b0] sm:$0xff] }
 0x1c5   :  { %824 = vmatprep.mubr.f32.mxu0 %v256_v15 }
 0x1c6   :  { %v2309_v24 = vsel %vm2308_vm4, %v2307_v17, %v2306_v63  ;;  %v1290_v25 = vrot.slane %v1289_v18, 1  ;;  %v1293_v26 = vrot.slane %v1292_v19, 4  ;;  %v1131_v38 = vmax.f32 %v557_v27, 0.0 }
 0x1c7   :  { %v561_v29 = vpop.f32.mrb[34].mxu0 }
 0x1c8   :  { %v1291_v30 = vmax.f32 %v1289_v18, %v1290_v25  ;;  %v1294_v31 = vmax.f32 %v1292_v19, %v1293_v26  ;;  %v562_v32 = vadd.f32 %v10042_v33, %v561_v29  ;;  %v563_v34 = vpop.f32.mrb[35].mxu0  ;;  %825 = vmatmul.mubr.f32.gmra.mrb[140].mxu0 %v255_v23  ;;  %v268_v18 = vld [vmem:[#allocation3 + $0x4c8] sm:$0xff]  ;;  %v267_v26 = vld [vmem:[#allocation3 + $0x4c0] sm:$0xff] }
 0x1c9   :  { %829 = vmatprep.mubr.f32.mxu0 %v258_v28  ;;  %v10087_v25 = vld [vmem:[#allocation8 + $0x8] sm:$0xff] }
 0x1ca   :  { %v1833_v36 = vadd.f32 %v1712_v22, %v1291_v30  ;;  %v1295_v37 = vrot.slane %v1294_v31, 2  ;;  %v1132_v39 = vmax.f32 %v562_v32, 0.0  ;;  %v1714_v28 = vrot.slane %v10087_v25, 1 }
 0x1cb   :  { %v566_v41 = vpop.f32.mrb[36].mxu0 }
 0x1cc   :  { %v2310_v42 = vrot.slane %v1833_v36, 2  ;;  %v1296_v43 = vmax.f32 %v1294_v31, %v1295_v37  ;;  %v1299_v44 = vmax.f32 %v1131_v38, %v1132_v39  ;;  %v568_v45 = vpop.f32.mrb[37].mxu0  ;;  %830 = vmatmul.mubr.f32.gmra.mrb[142].mxu0 %v257_v35  ;;  %v567_v50 = vadd.f32 %v10042_v33, %v566_v41  ;;  %v270_v31 = vld [vmem:[#allocation3 + $0x4d8] sm:$0xff]  ;;  %v269_v39 = vld [vmem:[#allocation3 + $0x4d0] sm:$0xff] }
 0x1cd   :  { %834 = vmatprep.mubr.f32.mxu0 %v260_v40 }
 0x1ce   :  { %v1297_v48 = vrot.slane %v1296_v43, 1  ;;  %v1300_v49 = vrot.slane %v1299_v44, 4  ;;  %v2312_v52 = vsel %vm2311_vm5, %v2310_v42, %v2309_v24  ;;  %v1133_v21 = vmax.f32 %v567_v50, 0.0 }
 0x1cf   :  { %v571_v53 = vpop.f32.mrb[38].mxu0 }
 0x1d0   :  { %v1298_v54 = vmax.f32 %v1296_v43, %v1297_v48  ;;  %v1301_v55 = vmax.f32 %v1299_v44, %v1300_v49  ;;  %v572_v56 = vadd.f32 %v10042_v33, %v571_v53  ;;  %v573_v57 = vpop.f32.mrb[39].mxu0  ;;  %835 = vmatmul.mubr.f32.gmra.mrb[144].mxu0 %v259_v47  ;;  %v272_v44 = vld [vmem:[#allocation3 + $0x4e8] sm:$0xff] }
 0x1d1   :  { %839 = vmatprep.mubr.f32.mxu0 %v262_v51  ;;  %v1715_v51 = vrot.slane %v10087_v25, 2  ;;  %v274_v57 = vld [vmem:[#allocation3 + $0x4f8] sm:$0xff] }
 0x1d2   :  { %v1834_v59 = vadd.f32 %v1713_v46, %v1298_v54  ;;  %v1134_v60 = vmax.f32 %v572_v56, 0.0  ;;  %v1302_v0 = vrot.slane %v1301_v55, 2 }
 0x1d3   :  { %v576_v62 = vpop.f32.mrb[40].mxu0 }
 0x1d4   :  { %v2313_v63 = vrot.slane %v1834_v59, 1  ;;  %v1306_v1 = vmax.f32 %v1133_v21, %v1134_v60  ;;  %v578_v2 = vpop.f32.mrb[41].mxu0  ;;  %840 = vmatmul.mubr.f32.gmra.mrb[146].mxu0 %v261_v58  ;;  %v577_v6 = vadd.f32 %v10042_v33, %v576_v62  ;;  %v1303_v10 = vmax.f32 %v1301_v55, %v1302_v0  ;;  %v273_v62 = vld [vmem:[#allocation3 + $0x4f0] sm:$0xff] }
 0x1d5   :  { %844 = vmatprep.mubr.f32.mxu0 %v264_v61 }
 0x1d6   :  { %v1307_v5 = vrot.slane %v1306_v1, 4  ;;  %v10082_v7 = vsel %vm2314_vm6, %v2313_v63, %v2312_v52  ;;  %v1135_v16 = vmax.f32 %v577_v6, 0.0  ;;  %v1304_v20 = vrot.slane %v1303_v10, 1  ;;  %v271_v52 = vld [vmem:[#allocation3 + $0x4e0] sm:$0xff] }
 0x1d7   :  { %v581_v9 = vpop.f32.mrb[42].mxu0  ;;  %2600 = vmatmul.mubr.f32.vlgmr.msra.gmra.mrb[0].mxu1 %v10082_v7 }
 0x1d8   :  { %v1308_v11 = vmax.f32 %v1306_v1, %v1307_v5  ;;  %v582_v12 = vadd.f32 %v10042_v33, %v581_v9  ;;  %v583_v13 = vpop.f32.mrb[43].mxu0  ;;  %845 = vmatmul.mubr.f32.gmra.mrb[148].mxu0 %v263_v3  ;;  %2605 = vmatprep.mubr.f32.mxu1 %v12186_v4  ;;  %v1305_v34 = vmax.f32 %v1303_v10, %v1304_v20  ;;  %v276_v3 = vld [vmem:[#allocation3 + $0x508] sm:$0xff]  ;;  %v2019_v20 = vld [vmem:[#allocation9 + $0x400] sm:$0xff] }
 0x1d9   :  { %849 = vmatprep.mubr.f32.mxu0 %v266_v8  ;;  %v278_v13 = vld [vmem:[#allocation3 + $0x518] sm:$0xff] }
 0x1da   :  { %v1309_v15 = vrot.slane %v1308_v11, 2  ;;  %v1136_v17 = vmax.f32 %v582_v12, 0.0  ;;  %v1835_v46 = vadd.f32 %v10087_v25, %v1305_v34  ;;  %v275_v12 = vld [vmem:[#allocation3 + $0x500] sm:$0xff] }
 0x1db   :  { %v586_v19 = vpop.f32.mrb[44].mxu0 }
 0x1dc   :  { %v1310_v22 = vmax.f32 %v1308_v11, %v1309_v15  ;;  %v1313_v23 = vmax.f32 %v1135_v16, %v1136_v17  ;;  %v588_v24 = vpop.f32.mrb[45].mxu0  ;;  %850 = vmatmul.mubr.f32.gmra.mrb[150].mxu0 %v265_v14  ;;  %v587_v30 = vadd.f32 %v10042_v33, %v586_v19  ;;  %v1716_v11 = vrot.slane %v10087_v25, 3  ;;  %v2036_v19 = vld [vmem:[#allocation9 + $0x488] sm:$0xff] }
 0x1dd   :  { %854 = vmatprep.mubr.f32.mxu0 %v268_v18  ;;  %v2020_v18 = vld [vmem:[#allocation9 + $0x408] sm:$0xff]  ;;  %v2035_v24 = vld [vmem:[#allocation9 + $0x480] sm:$0xff] }
 0x1de   :  { %v1311_v27 = vrot.slane %v1310_v22, 1  ;;  %v1314_v29 = vrot.slane %v1313_v23, 4  ;;  %v1137_v42 = vmax.f32 %v587_v30, 0.0  ;;  %v6822_v30 = vpack.c.bf16 %v2035_v24, %v2019_v20  ;;  %v288_v20 = vld [vmem:[#allocation3 + $0x568] sm:$0xff] }
 0x1df   :  { %v591_v32 = vpop.f32.mrb[46].mxu0 }
 0x1e0   :  { %v1312_v35 = vmax.f32 %v1310_v22, %v1311_v27  ;;  %v1315_v36 = vmax.f32 %v1313_v23, %v1314_v29  ;;  %v592_v37 = vadd.f32 %v10042_v33, %v591_v32  ;;  %v593_v38 = vpop.f32.mrb[47].mxu0  ;;  %855 = vmatmul.mubr.f32.gmra.mrb[152].mxu0 %v267_v26  ;;  %v6820_v23 = vpack.c.bf16 %v2036_v19, %v2020_v18 }
 0x1e1   :  { %859 = vmatprep.mubr.f32.mxu0 %v270_v31  ;;  %v277_v31 = vld [vmem:[#allocation3 + $0x510] sm:$0xff] }
 0x1e2   :  { %v1836_v40 = vadd.f32 %v1714_v28, %v1312_v35  ;;  %v1316_v41 = vrot.slane %v1315_v36, 2  ;;  %v1138_v43 = vmax.f32 %v592_v37, 0.0  ;;  %6821 = vmatprep.subr.bf16.mxu0 %v6820_v23  ;;  %v280_v37 = vld [vmem:[#allocation3 + $0x528] sm:$0xff] }
 0x1e3   :  { %v596_v45 = vpop.f32.mrb[48].mxu0  ;;  %6823 = vmatpush1.bf16.msra.mxu0 %v6822_v30 }
 0x1e4   :  { %v2316_v47 = vrot.slane %v1836_v40, 7  ;;  %v1317_v48 = vmax.f32 %v1315_v36, %v1316_v41  ;;  %v1320_v49 = vmax.f32 %v1137_v42, %v1138_v43  ;;  %v598_v50 = vpop.f32.mrb[49].mxu0  ;;  %860 = vmatmul.mubr.f32.gmra.mrb[154].mxu0 %v269_v39  ;;  %v597_v56 = vadd.f32 %v10042_v33, %v596_v45 }
 0x1e5   :  { %864 = vmatprep.mubr.f32.mxu0 %v272_v44  ;;  %v1717_v43 = vrot.slane %v10087_v25, 4  ;;  %v279_v44 = vld [vmem:[#allocation3 + $0x520] sm:$0xff] }
 0x1e6   :  { %v2317_v53 = vsel %vm2296_vm0, %v2316_v47, %v1835_v46  ;;  %v1318_v54 = vrot.slane %v1317_v48, 1  ;;  %v1321_v55 = vrot.slane %v1320_v49, 4  ;;  %v1139_v1 = vmax.f32 %v597_v56, 0.0 }
 0x1e7   :  { %v601_v58 = vpop.f32.mrb[50].mxu0 }
 0x1e8   :  { %v1319_v59 = vmax.f32 %v1317_v48, %v1318_v54  ;;  %v1322_v21 = vmax.f32 %v1320_v49, %v1321_v55  ;;  %v602_v60 = vadd.f32 %v10042_v33, %v601_v58  ;;  %v603_v61 = vpop.f32.mrb[51].mxu0  ;;  %865 = vmatmul.mubr.f32.gmra.mrb[156].mxu0 %v271_v52  ;;  %v282_v49 = vld [vmem:[#allocation3 + $0x538] sm:$0xff]  ;;  %v281_v55 = vld [vmem:[#allocation3 + $0x530] sm:$0xff] }
 0x1e9   :  { %869 = vmatprep.mubr.f32.mxu0 %v274_v57 }
 0x1ea   :  { %v1837_v63 = vadd.f32 %v1715_v51, %v1319_v59  ;;  %v1323_v0 = vrot.slane %v1322_v21, 2  ;;  %v1140_v2 = vmax.f32 %v602_v60, 0.0 }
 0x1eb   :  { %v606_v5 = vpop.f32.mrb[52].mxu0 }
 0x1ec   :  { %v2318_v6 = vrot.slane %v1837_v63, 6  ;;  %v1324_v8 = vmax.f32 %v1322_v21, %v1323_v0  ;;  %v1327_v9 = vmax.f32 %v1139_v1, %v1140_v2  ;;  %v608_v10 = vpop.f32.mrb[53].mxu0  ;;  %870 = vmatmul.mubr.f32.gmra.mrb[158].mxu0 %v273_v62  ;;  %v607_v17 = vadd.f32 %v10042_v33, %v606_v5  ;;  %v284_v21 = vld [vmem:[#allocation3 + $0x548] sm:$0xff]  ;;  %v283_v2 = vld [vmem:[#allocation3 + $0x540] sm:$0xff] }
 0x1ed   :  { %874 = vmatprep.mubr.f32.mxu0 %v276_v3  ;;  %v1718_v1 = vrot.slane %v10087_v25, 5 }
 0x1ee   :  { %v2319_v14 = vsel %vm2299_vm1, %v2318_v6, %v2317_v53  ;;  %v1325_v15 = vrot.slane %v1324_v8, 1  ;;  %v1328_v16 = vrot.slane %v1327_v9, 4  ;;  %v1141_v35 = vmax.f32 %v607_v17, 0.0 }
 0x1ef   :  { %v611_v22 = vpop.f32.mrb[54].mxu0 }
 0x1f0   :  { %v1326_v26 = vmax.f32 %v1324_v8, %v1325_v15  ;;  %v1329_v27 = vmax.f32 %v1327_v9, %v1328_v16  ;;  %v612_v28 = vadd.f32 %v10042_v33, %v611_v22  ;;  %v613_v29 = vpop.f32.mrb[55].mxu0  ;;  %875 = vmatmul.mubr.f32.gmra.mrb[160].mxu0 %v275_v12  ;;  %v286_v9 = vld [vmem:[#allocation3 + $0x558] sm:$0xff]  ;;  %v285_v15 = vld [vmem:[#allocation3 + $0x550] sm:$0xff] }
 0x1f1   :  { %879 = vmatprep.mubr.f32.mxu0 %v278_v13  ;;  %v287_v29 = vld [vmem:[#allocation3 + $0x560] sm:$0xff] }
 0x1f2   :  { %v1838_v32 = vadd.f32 %v1716_v11, %v1326_v26  ;;  %v1330_v34 = vrot.slane %v1329_v27, 2  ;;  %v1142_v36 = vmax.f32 %v612_v28, 0.0  ;;  %v1719_v28 = vrot.slane %v10087_v25, 6 }
 0x1f3   :  { %v616_v38 = vpop.f32.mrb[56].mxu0 }
 0x1f4   :  { %v2320_v39 = vrot.slane %v1838_v32, 5  ;;  %v1331_v40 = vmax.f32 %v1329_v27, %v1330_v34  ;;  %v1334_v41 = vmax.f32 %v1141_v35, %v1142_v36  ;;  %v618_v42 = vpop.f32.mrb[57].mxu0  ;;  %880 = vmatmul.mubr.f32.gmra.mrb[162].mxu0 %v277_v31  ;;  %v617_v48 = vadd.f32 %v10042_v33, %v616_v38  ;;  %v290_v35 = vld [vmem:[#allocation3 + $0x578] sm:$0xff] }
 0x1f5   :  { %884 = vmatprep.mubr.f32.mxu0 %v280_v37 }
 0x1f6   :  { %v2321_v45 = vsel %vm2302_vm2, %v2320_v39, %v2319_v14  ;;  %v1332_v46 = vrot.slane %v1331_v40, 1  ;;  %v1335_v47 = vrot.slane %v1334_v41, 4  ;;  %v1143_v58 = vmax.f32 %v617_v48, 0.0 }
 0x1f7   :  { %v621_v50 = vpop.f32.mrb[58].mxu0 }
 0x1f8   :  { %v1333_v51 = vmax.f32 %v1331_v40, %v1332_v46  ;;  %v1336_v52 = vmax.f32 %v1334_v41, %v1335_v47  ;;  %v622_v53 = vadd.f32 %v10042_v33, %v621_v50  ;;  %v623_v54 = vpop.f32.mrb[59].mxu0  ;;  %885 = vmatmul.mubr.f32.gmra.mrb[164].mxu0 %v279_v44  ;;  %v289_v41 = vld [vmem:[#allocation3 + $0x570] sm:$0xff]  ;;  %v292_v46 = vld [vmem:[#allocation3 + $0x588] sm:$0xff] }
 0x1f9   :  { %889 = vmatprep.mubr.f32.mxu0 %v282_v49 }
 0x1fa   :  { %v1839_v56 = vadd.f32 %v1717_v43, %v1333_v51  ;;  %v1337_v57 = vrot.slane %v1336_v52, 2  ;;  %v1144_v59 = vmax.f32 %v622_v53, 0.0  ;;  %v291_v53 = vld [vmem:[#allocation3 + $0x580] sm:$0xff] }
 0x1fb   :  { %v626_v60 = vpop.f32.mrb[60].mxu0 }
 0x1fc   :  { %v2322_v61 = vrot.slane %v1839_v56, 4  ;;  %v1338_v62 = vmax.f32 %v1336_v52, %v1337_v57  ;;  %v1341_v63 = vmax.f32 %v1143_v58, %v1144_v59  ;;  %v628_v0 = vpop.f32.mrb[61].mxu0  ;;  %890 = vmatmul.mubr.f32.gmra.mrb[166].mxu0 %v281_v55  ;;  %v627_v8 = vadd.f32 %v10042_v33, %v626_v60  ;;  %v294_v58 = vld [vmem:[#allocation3 + $0x598] sm:$0xff] }
 0x1fd   :  { %894 = vmatprep.mubr.f32.mxu0 %v284_v21  ;;  %v1720_v52 = vrot.slane %v10087_v25, 7 }
 0x1fe   :  { %v2323_v3 = vsel %vm2305_vm3, %v2322_v61, %v2321_v45  ;;  %v1339_v5 = vrot.slane %v1338_v62, 1  ;;  %v1342_v6 = vrot.slane %v1341_v63, 4  ;;  %v1145_v18 = vmax.f32 %v627_v8, 0.0 }
 0x1ff   :  { %v631_v10 = vpop.f32.mrb[62].mxu0 }
 0x200   :  { %v1340_v11 = vmax.f32 %v1338_v62, %v1339_v5  ;;  %v1343_v12 = vmax.f32 %v1341_v63, %v1342_v6  ;;  %v632_v13 = vadd.f32 %v10042_v33, %v631_v10  ;;  %v633_v14 = vpop.f32.mrb[63].mxu0  ;;  %895 = vmatmul.mubr.f32.gmra.mrb[168].mxu0 %v283_v2  ;;  %v293_v63 = vld [vmem:[#allocation3 + $0x590] sm:$0xff]  ;;  %v296_v2 = vld [vmem:[#allocation3 + $0x5a8] sm:$0xff]  ;;  %v295_v10 = vld [vmem:[#allocation3 + $0x5a0] sm:$0xff] }
 0x201   :  { %899 = vmatprep.mubr.f32.mxu0 %v286_v9  ;;  %v298_v14 = vld [vmem:[#allocation3 + $0x5b8] sm:$0xff] }
 0x202   :  { %v1840_v16 = vadd.f32 %v1718_v1, %v1340_v11  ;;  %v1344_v17 = vrot.slane %v1343_v12, 2  ;;  %v1146_v19 = vmax.f32 %v632_v13, 0.0 }
 0x203   :  { %v636_v22 = vpop.f32.mrb[64].mxu0 }
 0x204   :  { %v2324_v23 = vrot.slane %v1840_v16, 3  ;;  %v1345_v24 = vmax.f32 %v1343_v12, %v1344_v17  ;;  %v1348_v26 = vmax.f32 %v1145_v18, %v1146_v19  ;;  %v638_v27 = vpop.f32.mrb[65].mxu0  ;;  %900 = vmatmul.mubr.f32.gmra.mrb[170].mxu0 %v285_v15  ;;  %v637_v34 = vadd.f32 %v10042_v33, %v636_v22 }
 0x205   :  { %904 = vmatprep.mubr.f32.mxu0 %v288_v20  ;;  %v297_v20 = vld [vmem:[#allocation3 + $0x5b0] sm:$0xff] }
 0x206   :  { %v1346_v30 = vrot.slane %v1345_v24, 1  ;;  %v2325_v31 = vsel %vm2308_vm4, %v2324_v23, %v2323_v3  ;;  %v1349_v32 = vrot.slane %v1348_v26, 4  ;;  %v1147_v44 = vmax.f32 %v637_v34, 0.0 }
 0x207   :  { %v641_v36 = vpop.f32.mrb[66].mxu0 }
 0x208   :  { %v1347_v37 = vmax.f32 %v1345_v24, %v1346_v30  ;;  %v1350_v38 = vmax.f32 %v1348_v26, %v1349_v32  ;;  %v642_v39 = vadd.f32 %v10042_v33, %v641_v36  ;;  %v643_v40 = vpop.f32.mrb[67].mxu0  ;;  %905 = vmatmul.mubr.f32.gmra.mrb[172].mxu0 %v287_v29  ;;  %v300_v26 = vld [vmem:[#allocation3 + $0x5c8] sm:$0xff]  ;;  %v10124_v32 = vld [vmem:[#allocation8 + $0x10] sm:$0xff] }
 0x209   :  { %909 = vmatprep.mubr.f32.mxu0 %v290_v35  ;;  %v299_v35 = vld [vmem:[#allocation3 + $0x5c0] sm:$0xff] }
 0x20a   :  { %v1841_v42 = vadd.f32 %v1719_v28, %v1347_v37  ;;  %v1351_v43 = vrot.slane %v1350_v38, 2  ;;  %v1148_v45 = vmax.f32 %v642_v39, 0.0  ;;  %v1721_v37 = vrot.slane %v10124_v32, 1  ;;  %v302_v39 = vld [vmem:[#allocation3 + $0x5d8] sm:$0xff] }
 0x20b   :  { %v646_v47 = vpop.f32.mrb[68].mxu0 }
 0x20c   :  { %v2326_v48 = vrot.slane %v1841_v42, 2  ;;  %v1352_v49 = vmax.f32 %v1350_v38, %v1351_v43  ;;  %v1355_v50 = vmax.f32 %v1147_v44, %v1148_v45  ;;  %v648_v51 = vpop.f32.mrb[69].mxu0  ;;  %910 = vmatmul.mubr.f32.gmra.mrb[174].mxu0 %v289_v41  ;;  %v647_v57 = vadd.f32 %v10042_v33, %v646_v47  ;;  %v301_v47 = vld [vmem:[#allocation3 + $0x5d0] sm:$0xff] }
 0x20d   :  { %914 = vmatprep.mubr.f32.mxu0 %v292_v46 }
 0x20e   :  { %v2327_v54 = vsel %vm2311_vm5, %v2326_v48, %v2325_v31  ;;  %v1353_v55 = vrot.slane %v1352_v49, 1  ;;  %v1356_v56 = vrot.slane %v1355_v50, 4  ;;  %v1149_v25 = vmax.f32 %v647_v57, 0.0  ;;  %v2052_v48 = vld [vmem:[#allocation9 + $0x508] sm:$0xff] }
 0x20f   :  { %v651_v59 = vpop.f32.mrb[70].mxu0 }
 0x210   :  { %v1354_v21 = vmax.f32 %v1352_v49, %v1353_v55  ;;  %v1357_v60 = vmax.f32 %v1355_v50, %v1356_v56  ;;  %v652_v61 = vadd.f32 %v10042_v33, %v651_v59  ;;  %v653_v62 = vpop.f32.mrb[71].mxu0  ;;  %915 = vmatmul.mubr.f32.gmra.mrb[176].mxu0 %v291_v53  ;;  %v2068_v49 = vld [vmem:[#allocation9 + $0x588] sm:$0xff]  ;;  %v2051_v55 = vld [vmem:[#allocation9 + $0x500] sm:$0xff] }
 0x211   :  { %919 = vmatprep.mubr.f32.mxu0 %v294_v58  ;;  %v304_v53 = vld [vmem:[#allocation3 + $0x5e8] sm:$0xff]  ;;  %v2067_v56 = vld [vmem:[#allocation9 + $0x580] sm:$0xff] }
 0x212   :  { %v1842_v0 = vadd.f32 %v1720_v52, %v1354_v21  ;;  %v1150_v1 = vmax.f32 %v652_v61, 0.0  ;;  %v1358_v6 = vrot.slane %v1357_v60, 2  ;;  %v6826_v58 = vpack.c.bf16 %v2067_v56, %v2051_v55 }
 0x213   :  { %v656_v3 = vpop.f32.mrb[72].mxu0 }
 0x214   :  { %v2328_v5 = vrot.slane %v1842_v0, 1  ;;  %v1362_v8 = vmax.f32 %v1149_v25, %v1150_v1  ;;  %v658_v9 = vpop.f32.mrb[73].mxu0  ;;  %920 = vmatmul.mubr.f32.gmra.mrb[178].mxu0 %v293_v63  ;;  %v657_v12 = vadd.f32 %v10042_v33, %v656_v3  ;;  %v1359_v16 = vmax.f32 %v1357_v60, %v1358_v6  ;;  %v303_v0 = vld [vmem:[#allocation3 + $0x5e0] sm:$0xff]  ;;  %v2084_v25 = vld [vmem:[#allocation9 + $0x608] sm:$0xff] }
 0x215   :  { %924 = vmatprep.mubr.f32.mxu0 %v296_v2  ;;  %v2100_v1 = vld [vmem:[#allocation9 + $0x688] sm:$0xff]  ;;  %v2083_v9 = vld [vmem:[#allocation9 + $0x600] sm:$0xff] }
 0x216   :  { %v1363_v11 = vrot.slane %v1362_v8, 4  ;;  %v10119_v13 = vsel %vm2314_vm6, %v2328_v5, %v2327_v54  ;;  %v1151_v23 = vmax.f32 %v657_v12, 0.0  ;;  %v1360_v28 = vrot.slane %v1359_v16, 1 }
 0x217   :  { %v661_v15 = vpop.f32.mrb[74].mxu0  ;;  %2606 = vmatmul.mubr.f32.gmra.mrb[2].mxu1 %v10119_v13  ;;  %v6824_v54 = vpack.c.bf16 %v2068_v49, %v2052_v48  ;;  %v1722_v5 = vrot.slane %v10124_v32, 2  ;;  %v6828_v12 = vpack.c.bf16 %v2100_v1, %v2084_v25 }
 0x218   :  { %v1364_v17 = vmax.f32 %v1362_v8, %v1363_v11  ;;  %v662_v18 = vadd.f32 %v10042_v33, %v661_v15  ;;  %v663_v19 = vpop.f32.mrb[75].mxu0  ;;  %925 = vmatmul.mubr.f32.gmra.mrb[180].mxu0 %v295_v10  ;;  %2611 = vmatprep.mubr.f32.mxu1 %v12186_v4  ;;  %v10129_v33 = vld [vmem:[%s12178_s2] ss:$0 sm:$0xff]  ;;  %v1361_v41 = vmax.f32 %v1359_v16, %v1360_v28  ;;  %v306_v8 = vld [vmem:[#allocation3 + $0x5f8] sm:$0xff]  ;;  %v308_v28 = vld [vmem:[#allocation3 + $0x608] sm:$0xff] }
 0x219   :  { %929 = vmatprep.mubr.f32.mxu0 %v298_v14  ;;  %6825 = vmatprep.subr.bf16.mxu0 %v6824_v54  ;;  %v2099_v10 = vld [vmem:[#allocation9 + $0x680] sm:$0xff] }
 0x21a   :  { %v1365_v22 = vrot.slane %v1364_v17, 2  ;;  %v1152_v24 = vmax.f32 %v662_v18, 0.0  ;;  %v1843_v59 = vadd.f32 %v10124_v32, %v1361_v41  ;;  %6827 = vmatpush1.bf16.msra.mxu0 %v6826_v58  ;;  %v6830_v14 = vpack.c.bf16 %v2099_v10, %v2083_v9  ;;  %v307_v41 = vld [vmem:[#allocation3 + $0x600] sm:$0xff] }
 0x21b   :  { %v666_v27 = vpop.f32.mrb[76].mxu0  ;;  %6829 = vmatprep.subr.bf16.mxu0 %v6828_v12 }
 0x21c   :  { %v1366_v29 = vmax.f32 %v1364_v17, %v1365_v22  ;;  %v1369_v30 = vmax.f32 %v1151_v23, %v1152_v24  ;;  %v668_v31 = vpop.f32.mrb[77].mxu0  ;;  %930 = vmatmul.mubr.f32.gmra.mrb[182].mxu0 %v297_v20  ;;  %v667_v34 = vadd.f32 %v10129_v33, %v666_v27  ;;  %v305_v20 = vld [vmem:[#allocation3 + $0x5f0] sm:$0xff]  ;;  %v2116_v22 = vld [vmem:[#allocation9 + $0x708] sm:$0xff] }
 0x21d   :  { %934 = vmatprep.mubr.f32.mxu0 %v300_v26  ;;  %v2132_v23 = vld [vmem:[#allocation9 + $0x788] sm:$0xff]  ;;  %v2131_v31 = vld [vmem:[#allocation9 + $0x780] sm:$0xff] }
 0x21e   :  { %v1367_v36 = vrot.slane %v1366_v29, 1  ;;  %v1370_v38 = vrot.slane %v1369_v30, 4  ;;  %v1153_v46 = vmax.f32 %v667_v34, 0.0  ;;  %6831 = vmatpush1.bf16.msra.mxu0 %v6830_v14 }
 0x21f   :  { %v671_v40 = vpop.f32.mrb[78].mxu0 }
 0x220   :  { %v1368_v42 = vmax.f32 %v1366_v29, %v1367_v36  ;;  %v1371_v43 = vmax.f32 %v1369_v30, %v1370_v38  ;;  %v672_v44 = vadd.f32 %v10129_v33, %v671_v40  ;;  %v673_v45 = vpop.f32.mrb[79].mxu0  ;;  %935 = vmatmul.mubr.f32.gmra.mrb[184].mxu0 %v299_v35  ;;  %v6832_v29 = vpack.c.bf16 %v2132_v23, %v2116_v22  ;;  %v2115_v30 = vld [vmem:[#allocation9 + $0x700] sm:$0xff] }
 0x221   :  { %939 = vmatprep.mubr.f32.mxu0 %v302_v39  ;;  %v6834_v35 = vpack.c.bf16 %v2131_v31, %v2115_v30  ;;  %v1723_v40 = vrot.slane %v10124_v32, 3  ;;  %v318_v31 = vld [vmem:[#allocation3 + $0x658] sm:$0xff] }
 0x222   :  { %v1844_v50 = vadd.f32 %v1721_v37, %v1368_v42  ;;  %v1372_v51 = vrot.slane %v1371_v43, 2  ;;  %v1154_v52 = vmax.f32 %v672_v44, 0.0  ;;  %6833 = vmatprep.subr.bf16.mxu0 %v6832_v29 }
 0x223   :  { %v676_v57 = vpop.f32.mrb[80].mxu0  ;;  %6835 = vmatpush1.bf16.msra.mxu0 %v6834_v35 }
 0x224   :  { %v2330_v21 = vrot.slane %v1844_v50, 7  ;;  %v1373_v60 = vmax.f32 %v1371_v43, %v1372_v51  ;;  %v1376_v61 = vmax.f32 %v1153_v46, %v1154_v52  ;;  %v678_v62 = vpop.f32.mrb[81].mxu0  ;;  %940 = vmatmul.mubr.f32.gmra.mrb[186].mxu0 %v301_v47  ;;  %v677_v63 = vadd.f32 %v10129_v33, %v676_v57  ;;  %v310_v46 = vld [vmem:[#allocation3 + $0x618] sm:$0xff]  ;;  %v309_v52 = vld [vmem:[#allocation3 + $0x610] sm:$0xff]  ;;  %v312_v57 = vld [vmem:[#allocation3 + $0x628] sm:$0xff] }
 0x225   :  { %944 = vmatprep.mubr.f32.mxu0 %v304_v53  ;;  %v1724_v62 = vrot.slane %v10124_v32, 4 }
 0x226   :  { %v2331_v2 = vsel %vm2296_vm0, %v2330_v21, %v1843_v59  ;;  %v1374_v3 = vrot.slane %v1373_v60, 1  ;;  %v1377_v6 = vrot.slane %v1376_v61, 4  ;;  %v1155_v19 = vmax.f32 %v677_v63, 0.0  ;;  %v311_v63 = vld [vmem:[#allocation3 + $0x620] sm:$0xff] }
 0x227   :  { %v681_v11 = vpop.f32.mrb[82].mxu0 }
 0x228   :  { %v1375_v15 = vmax.f32 %v1373_v60, %v1374_v3  ;;  %v1378_v16 = vmax.f32 %v1376_v61, %v1377_v6  ;;  %v682_v17 = vadd.f32 %v10129_v33, %v681_v11  ;;  %v683_v18 = vpop.f32.mrb[83].mxu0  ;;  %945 = vmatmul.mubr.f32.gmra.mrb[188].mxu0 %v303_v0  ;;  %v314_v3 = vld [vmem:[#allocation3 + $0x638] sm:$0xff]  ;;  %v313_v11 = vld [vmem:[#allocation3 + $0x630] sm:$0xff] }
 0x229   :  { %949 = vmatprep.mubr.f32.mxu0 %v306_v8 }
 0x22a   :  { %v1845_v24 = vadd.f32 %v1722_v5, %v1375_v15  ;;  %v1379_v26 = vrot.slane %v1378_v16, 2  ;;  %v1156_v27 = vmax.f32 %v682_v17, 0.0  ;;  %v316_v17 = vld [vmem:[#allocation3 + $0x648] sm:$0xff] }
 0x22b   :  { %v686_v34 = vpop.f32.mrb[84].mxu0 }
 0x22c   :  { %v2332_v36 = vrot.slane %v1845_v24, 6  ;;  %v1380_v37 = vmax.f32 %v1378_v16, %v1379_v26  ;;  %v1383_v38 = vmax.f32 %v1155_v19, %v1156_v27  ;;  %v688_v39 = vpop.f32.mrb[85].mxu0  ;;  %950 = vmatmul.mubr.f32.gmra.mrb[190].mxu0 %v305_v20  ;;  %v687_v45 = vadd.f32 %v10129_v33, %v686_v34  ;;  %v315_v26 = vld [vmem:[#allocation3 + $0x640] sm:$0xff] }
 0x22d   :  { %954 = vmatprep.mubr.f32.mxu0 %v308_v28  ;;  %v1725_v24 = vrot.slane %v10124_v32, 5  ;;  %v317_v39 = vld [vmem:[#allocation3 + $0x650] sm:$0xff] }
 0x22e   :  { %v2333_v42 = vsel %vm2299_vm1, %v2332_v36, %v2331_v2  ;;  %v1381_v43 = vrot.slane %v1380_v37, 1  ;;  %v1384_v44 = vrot.slane %v1383_v38, 4  ;;  %v1157_v55 = vmax.f32 %v687_v45, 0.0 }
 0x22f   :  { %v691_v47 = vpop.f32.mrb[86].mxu0 }
 0x230   :  { %v1382_v48 = vmax.f32 %v1380_v37, %v1381_v43  ;;  %v1385_v49 = vmax.f32 %v1383_v38, %v1384_v44  ;;  %v692_v50 = vadd.f32 %v10129_v33, %v691_v47  ;;  %v693_v51 = vpop.f32.mrb[87].mxu0  ;;  %955 = vmatmul.mubr.f32.gmra.mrb[192].mxu0 %v307_v41  ;;  %v320_v44 = vld [vmem:[#allocation3 + $0x668] sm:$0xff] }
 0x231   :  { %959 = vmatprep.mubr.f32.mxu0 %v310_v46  ;;  %v319_v51 = vld [vmem:[#allocation3 + $0x660] sm:$0xff] }
 0x232   :  { %v1846_v53 = vadd.f32 %v1723_v40, %v1382_v48  ;;  %v1386_v54 = vrot.slane %v1385_v49, 2  ;;  %v1158_v56 = vmax.f32 %v692_v50, 0.0  ;;  %v1726_v50 = vrot.slane %v10124_v32, 6 }
 0x233   :  { %v696_v58 = vpop.f32.mrb[88].mxu0 }
 0x234   :  { %v2334_v59 = vrot.slane %v1846_v53, 5  ;;  %v1387_v21 = vmax.f32 %v1385_v49, %v1386_v54  ;;  %v1390_v60 = vmax.f32 %v1157_v55, %v1158_v56  ;;  %v698_v61 = vpop.f32.mrb[89].mxu0  ;;  %960 = vmatmul.mubr.f32.gmra.mrb[194].mxu0 %v309_v52  ;;  %v697_v2 = vadd.f32 %v10129_v33, %v696_v58  ;;  %v322_v56 = vld [vmem:[#allocation3 + $0x678] sm:$0xff] }
 0x235   :  { %964 = vmatprep.mubr.f32.mxu0 %v312_v57  ;;  %v321_v61 = vld [vmem:[#allocation3 + $0x670] sm:$0xff] }
 0x236   :  { %v2335_v0 = vsel %vm2302_vm2, %v2334_v59, %v2333_v42  ;;  %v1388_v25 = vrot.slane %v1387_v21, 1  ;;  %v1391_v1 = vrot.slane %v1390_v60, 4  ;;  %v1159_v15 = vmax.f32 %v697_v2, 0.0 }
 0x237   :  { %v701_v5 = vpop.f32.mrb[90].mxu0 }
 0x238   :  { %v1389_v6 = vmax.f32 %v1387_v21, %v1388_v25  ;;  %v1392_v8 = vmax.f32 %v1390_v60, %v1391_v1  ;;  %v702_v9 = vadd.f32 %v10129_v33, %v701_v5  ;;  %v703_v10 = vpop.f32.mrb[91].mxu0  ;;  %965 = vmatmul.mubr.f32.gmra.mrb[196].mxu0 %v311_v63  ;;  %v324_v1 = vld [vmem:[#allocation3 + $0x688] sm:$0xff] }
 0x239   :  { %969 = vmatprep.mubr.f32.mxu0 %v314_v3  ;;  %v323_v10 = vld [vmem:[#allocation3 + $0x680] sm:$0xff] }
 0x23a   :  { %v1847_v12 = vadd.f32 %v1724_v62, %v1389_v6  ;;  %v1393_v14 = vrot.slane %v1392_v8, 2  ;;  %v1160_v16 = vmax.f32 %v702_v9, 0.0  ;;  %v1727_v9 = vrot.slane %v10124_v32, 7 }
 0x23b   :  { %v706_v18 = vpop.f32.mrb[92].mxu0 }
 0x23c   :  { %v2336_v19 = vrot.slane %v1847_v12, 4  ;;  %v1394_v20 = vmax.f32 %v1392_v8, %v1393_v14  ;;  %v1397_v22 = vmax.f32 %v1159_v15, %v1160_v16  ;;  %v708_v23 = vpop.f32.mrb[93].mxu0  ;;  %970 = vmatmul.mubr.f32.gmra.mrb[198].mxu0 %v313_v11  ;;  %v707_v30 = vadd.f32 %v10129_v33, %v706_v18  ;;  %v326_v16 = vld [vmem:[#allocation3 + $0x698] sm:$0xff] }
 0x23d   :  { %974 = vmatprep.mubr.f32.mxu0 %v316_v17  ;;  %v325_v23 = vld [vmem:[#allocation3 + $0x690] sm:$0xff] }
 0x23e   :  { %v2337_v27 = vsel %vm2305_vm3, %v2336_v19, %v2335_v0  ;;  %v1395_v28 = vrot.slane %v1394_v20, 1  ;;  %v1398_v29 = vrot.slane %v1397_v22, 4  ;;  %v1161_v42 = vmax.f32 %v707_v30, 0.0 }
 0x23f   :  { %v711_v34 = vpop.f32.mrb[94].mxu0 }
 0x240   :  { %v1396_v35 = vmax.f32 %v1394_v20, %v1395_v28  ;;  %v1399_v36 = vmax.f32 %v1397_v22, %v1398_v29  ;;  %v712_v37 = vadd.f32 %v10129_v33, %v711_v34  ;;  %v713_v38 = vpop.f32.mrb[95].mxu0  ;;  %975 = vmatmul.mubr.f32.gmra.mrb[200].mxu0 %v315_v26 }
 0x241   :  { %979 = vmatprep.mubr.f32.mxu0 %v318_v31 }
 0x242   :  { %v1848_v40 = vadd.f32 %v1725_v24, %v1396_v35  ;;  %v1400_v41 = vrot.slane %v1399_v36, 2  ;;  %v1162_v43 = vmax.f32 %v712_v37, 0.0  ;;  %v327_v35 = vld [vmem:[#allocation3 + $0x6a0] sm:$0xff] }
 0x243   :  { %v716_v45 = vpop.f32.mrb[96].mxu0 }
 0x244   :  { %v2338_v46 = vrot.slane %v1848_v40, 3  ;;  %v1401_v47 = vmax.f32 %v1399_v36, %v1400_v41  ;;  %v1404_v48 = vmax.f32 %v1161_v42, %v1162_v43  ;;  %v718_v49 = vpop.f32.mrb[97].mxu0  ;;  %980 = vmatmul.mubr.f32.gmra.mrb[202].mxu0 %v317_v39  ;;  %v717_v55 = vadd.f32 %v10129_v33, %v716_v45  ;;  %v330_v39 = vld [vmem:[#allocation3 + $0x6b8] sm:$0xff]  ;;  %v329_v45 = vld [vmem:[#allocation3 + $0x6b0] sm:$0xff] }
 0x245   :  { %984 = vmatprep.mubr.f32.mxu0 %v320_v44  ;;  %v332_v49 = vld [vmem:[#allocation3 + $0x6c8] sm:$0xff] }
 0x246   :  { %v2339_v52 = vsel %vm2308_vm4, %v2338_v46, %v2337_v27  ;;  %v1402_v53 = vrot.slane %v1401_v47, 1  ;;  %v1405_v54 = vrot.slane %v1404_v48, 4  ;;  %v1163_v0 = vmax.f32 %v717_v55, 0.0  ;;  %v328_v27 = vld [vmem:[#allocation3 + $0x6a8] sm:$0xff]  ;;  %v10166_v55 = vld [vmem:[#allocation8 + $0x18] sm:$0xff] }
 0x247   :  { %v721_v57 = vpop.f32.mrb[98].mxu0 }
 0x248   :  { %v1403_v58 = vmax.f32 %v1401_v47, %v1402_v53  ;;  %v1406_v59 = vmax.f32 %v1404_v48, %v1405_v54  ;;  %v722_v21 = vadd.f32 %v10129_v33, %v721_v57  ;;  %v723_v60 = vpop.f32.mrb[99].mxu0  ;;  %985 = vmatmul.mubr.f32.gmra.mrb[204].mxu0 %v319_v51 }
 0x249   :  { %989 = vmatprep.mubr.f32.mxu0 %v322_v56  ;;  %v331_v56 = vld [vmem:[#allocation3 + $0x6c0] sm:$0xff]  ;;  %v334_v60 = vld [vmem:[#allocation3 + $0x6d8] sm:$0xff] }
 0x24a   :  { %v1849_v62 = vadd.f32 %v1726_v50, %v1403_v58  ;;  %v1407_v63 = vrot.slane %v1406_v59, 2  ;;  %v1164_v25 = vmax.f32 %v722_v21, 0.0  ;;  %v1728_v58 = vrot.slane %v10166_v55, 1 }
 0x24b   :  { %v726_v2 = vpop.f32.mrb[100].mxu0 }
 0x24c   :  { %v2340_v3 = vrot.slane %v1849_v62, 2  ;;  %v1408_v5 = vmax.f32 %v1406_v59, %v1407_v63  ;;  %v1411_v6 = vmax.f32 %v1163_v0, %v1164_v25  ;;  %v728_v8 = vpop.f32.mrb[101].mxu0  ;;  %990 = vmatmul.mubr.f32.gmra.mrb[206].mxu0 %v321_v61  ;;  %v727_v15 = vadd.f32 %v10129_v33, %v726_v2  ;;  %v333_v2 = vld [vmem:[#allocation3 + $0x6d0] sm:$0xff] }
 0x24d   :  { %994 = vmatprep.mubr.f32.mxu0 %v324_v1 }
 0x24e   :  { %v2341_v11 = vsel %vm2311_vm5, %v2340_v3, %v2339_v52  ;;  %v1409_v12 = vrot.slane %v1408_v5, 1  ;;  %v1412_v14 = vrot.slane %v1411_v6, 4  ;;  %v1165_v32 = vmax.f32 %v727_v15, 0.0 }
 0x24f   :  { %v731_v17 = vpop.f32.mrb[102].mxu0 }
 0x250   :  { %v1410_v18 = vmax.f32 %v1408_v5, %v1409_v12  ;;  %v1413_v19 = vmax.f32 %v1411_v6, %v1412_v14  ;;  %v732_v20 = vadd.f32 %v10129_v33, %v731_v17  ;;  %v733_v22 = vpop.f32.mrb[103].mxu0  ;;  %995 = vmatmul.mubr.f32.gmra.mrb[208].mxu0 %v323_v10  ;;  %v1729_v17 = vrot.slane %v10166_v55, 2 }
 0x251   :  { %999 = vmatprep.mubr.f32.mxu0 %v326_v16 }
 0x252   :  { %v1850_v24 = vadd.f32 %v1727_v9, %v1410_v18  ;;  %v1166_v26 = vmax.f32 %v732_v20, 0.0  ;;  %v1414_v30 = vrot.slane %v1413_v19, 2  ;;  %v336_v9 = vld [vmem:[#allocation3 + $0x6e8] sm:$0xff]  ;;  %v335_v18 = vld [vmem:[#allocation3 + $0x6e0] sm:$0xff] }
 0x253   :  { %v736_v28 = vpop.f32.mrb[104].mxu0 }
 0x254   :  { %v2342_v29 = vrot.slane %v1850_v24, 1  ;;  %v1418_v31 = vmax.f32 %v1165_v32, %v1166_v26  ;;  %v738_v34 = vpop.f32.mrb[105].mxu0  ;;  %1000 = vmatmul.mubr.f32.gmra.mrb[210].mxu0 %v325_v23  ;;  %v737_v37 = vadd.f32 %v10129_v33, %v736_v28  ;;  %v1415_v41 = vmax.f32 %v1413_v19, %v1414_v30  ;;  %v338_v24 = vld [vmem:[#allocation3 + $0x6f8] sm:$0xff]  ;;  %v337_v30 = vld [vmem:[#allocation3 + $0x6f0] sm:$0xff] }
 0x255   :  { %1004 = vmatprep.mubr.f32.mxu0 %v328_v27 }
 0x256   :  { %v1419_v36 = vrot.slane %v1418_v31, 4  ;;  %v10161_v38 = vsel %vm2314_vm6, %v2342_v29, %v2341_v11  ;;  %v1167_v47 = vmax.f32 %v737_v37, 0.0  ;;  %v1416_v51 = vrot.slane %v1415_v41, 1  ;;  %v340_v37 = vld [vmem:[#allocation3 + $0x708] sm:$0xff] }
 0x257   :  { %v741_v40 = vpop.f32.mrb[106].mxu0  ;;  %2612 = vmatmul.mubr.f32.gmra.mrb[4].mxu1 %v10161_v38 }
 0x258   :  { %v1420_v42 = vmax.f32 %v1418_v31, %v1419_v36  ;;  %v742_v43 = vadd.f32 %v10129_v33, %v741_v40  ;;  %v743_v44 = vpop.f32.mrb[107].mxu0  ;;  %1005 = vmatmul.mubr.f32.gmra.mrb[212].mxu0 %v327_v35  ;;  %2617 = vmatprep.mubr.f32.mxu1 %v12186_v4  ;;  %v1417_v62 = vmax.f32 %v1415_v41, %v1416_v51 }
 0x259   :  { %1009 = vmatprep.mubr.f32.mxu0 %v330_v39  ;;  %v1730_v44 = vrot.slane %v10166_v55, 3 }
 0x25a   :  { %v1421_v46 = vrot.slane %v1420_v42, 2  ;;  %v1168_v48 = vmax.f32 %v742_v43, 0.0  ;;  %v1851_v11 = vadd.f32 %v10166_v55, %v1417_v62 }
 0x25b   :  { %v746_v50 = vpop.f32.mrb[108].mxu0 }
 0x25c   :  { %v1422_v52 = vmax.f32 %v1420_v42, %v1421_v46  ;;  %v1425_v53 = vmax.f32 %v1167_v47, %v1168_v48  ;;  %v748_v54 = vpop.f32.mrb[109].mxu0  ;;  %1010 = vmatmul.mubr.f32.gmra.mrb[214].mxu0 %v329_v45  ;;  %v747_v21 = vadd.f32 %v10129_v33, %v746_v50  ;;  %v339_v45 = vld [vmem:[#allocation3 + $0x700] sm:$0xff]  ;;  %v342_v50 = vld [vmem:[#allocation3 + $0x718] sm:$0xff] }
 0x25d   :  { %1014 = vmatprep.mubr.f32.mxu0 %v332_v49 }
 0x25e   :  { %v1423_v57 = vrot.slane %v1422_v52, 1  ;;  %v1426_v59 = vrot.slane %v1425_v53, 4  ;;  %v1169_v6 = vmax.f32 %v747_v21, 0.0 }
 0x25f   :  { %v751_v61 = vpop.f32.mrb[110].mxu0 }
 0x260   :  { %v1424_v63 = vmax.f32 %v1422_v52, %v1423_v57  ;;  %v1427_v0 = vmax.f32 %v1425_v53, %v1426_v59  ;;  %v752_v25 = vadd.f32 %v10129_v33, %v751_v61  ;;  %v753_v1 = vpop.f32.mrb[111].mxu0  ;;  %1015 = vmatmul.mubr.f32.gmra.mrb[216].mxu0 %v331_v56  ;;  %v341_v57 = vld [vmem:[#allocation3 + $0x710] sm:$0xff]  ;;  %v344_v61 = vld [vmem:[#allocation3 + $0x728] sm:$0xff] }
 0x261   :  { %1019 = vmatprep.mubr.f32.mxu0 %v334_v60 }
 0x262   :  { %v1852_v3 = vadd.f32 %v1728_v58, %v1424_v63  ;;  %v1428_v5 = vrot.slane %v1427_v0, 2  ;;  %v1170_v8 = vmax.f32 %v752_v25, 0.0 }
 0x263   :  { %v756_v10 = vpop.f32.mrb[112].mxu0 }
 0x264   :  { %v2344_v12 = vrot.slane %v1852_v3, 7  ;;  %v1429_v14 = vmax.f32 %v1427_v0, %v1428_v5  ;;  %v1432_v15 = vmax.f32 %v1169_v6, %v1170_v8  ;;  %v758_v16 = vpop.f32.mrb[113].mxu0  ;;  %1020 = vmatmul.mubr.f32.gmra.mrb[218].mxu0 %v333_v2  ;;  %v757_v23 = vadd.f32 %v10129_v33, %v756_v10  ;;  %v343_v3 = vld [vmem:[#allocation3 + $0x720] sm:$0xff]  ;;  %v346_v10 = vld [vmem:[#allocation3 + $0x738] sm:$0xff] }
 0x265   :  { %1024 = vmatprep.mubr.f32.mxu0 %v336_v9  ;;  %v1731_v2 = vrot.slane %v10166_v55, 4 }
 0x266   :  { %v2345_v19 = vsel %vm2296_vm0, %v2344_v12, %v1851_v11  ;;  %v1430_v20 = vrot.slane %v1429_v14, 1  ;;  %v1433_v22 = vrot.slane %v1432_v15, 4  ;;  %v1171_v35 = vmax.f32 %v757_v23, 0.0  ;;  %v348_v23 = vld [vmem:[#allocation3 + $0x748] sm:$0xff] }
 0x267   :  { %v761_v32 = vpop.f32.mrb[114].mxu0 }
 0x268   :  { %v1431_v26 = vmax.f32 %v1429_v14, %v1430_v20  ;;  %v1434_v27 = vmax.f32 %v1432_v15, %v1433_v22  ;;  %v762_v28 = vadd.f32 %v10129_v33, %v761_v32  ;;  %v763_v29 = vpop.f32.mrb[115].mxu0  ;;  %1025 = vmatmul.mubr.f32.gmra.mrb[220].mxu0 %v335_v18 }
 0x269   :  { %1029 = vmatprep.mubr.f32.mxu0 %v338_v24  ;;  %v1732_v29 = vrot.slane %v10166_v55, 5 }
 0x26a   :  { %v1853_v31 = vadd.f32 %v1729_v17, %v1431_v26  ;;  %v1435_v34 = vrot.slane %v1434_v27, 2  ;;  %v1172_v36 = vmax.f32 %v762_v28, 0.0  ;;  %v345_v17 = vld [vmem:[#allocation3 + $0x730] sm:$0xff] }
 0x26b   :  { %v766_v39 = vpop.f32.mrb[116].mxu0 }
 0x26c   :  { %v2346_v40 = vrot.slane %v1853_v31, 6  ;;  %v1436_v41 = vmax.f32 %v1434_v27, %v1435_v34  ;;  %v1439_v42 = vmax.f32 %v1171_v35, %v1172_v36  ;;  %v768_v43 = vpop.f32.mrb[117].mxu0  ;;  %1030 = vmatmul.mubr.f32.gmra.mrb[222].mxu0 %v337_v30  ;;  %v767_v49 = vadd.f32 %v10129_v33, %v766_v39  ;;  %v347_v30 = vld [vmem:[#allocation3 + $0x740] sm:$0xff] }
 0x26d   :  { %1034 = vmatprep.mubr.f32.mxu0 %v340_v37  ;;  %v350_v37 = vld [vmem:[#allocation3 + $0x758] sm:$0xff] }
 0x26e   :  { %v2347_v46 = vsel %vm2299_vm1, %v2346_v40, %v2345_v19  ;;  %v1437_v47 = vrot.slane %v1436_v41, 1  ;;  %v1440_v48 = vrot.slane %v1439_v42, 4  ;;  %v1173_v21 = vmax.f32 %v767_v49, 0.0  ;;  %v352_v49 = vld [vmem:[#allocation3 + $0x768] sm:$0xff] }
 0x26f   :  { %v771_v51 = vpop.f32.mrb[118].mxu0 }
 0x270   :  { %v1438_v52 = vmax.f32 %v1436_v41, %v1437_v47  ;;  %v1441_v53 = vmax.f32 %v1439_v42, %v1440_v48  ;;  %v772_v54 = vadd.f32 %v10129_v33, %v771_v51  ;;  %v773_v56 = vpop.f32.mrb[119].mxu0  ;;  %1035 = vmatmul.mubr.f32.gmra.mrb[224].mxu0 %v339_v45 }
 0x271   :  { %1039 = vmatprep.mubr.f32.mxu0 %v342_v50  ;;  %v1733_v56 = vrot.slane %v10166_v55, 6 }
 0x272   :  { %v1854_v58 = vadd.f32 %v1730_v44, %v1438_v52  ;;  %v1442_v59 = vrot.slane %v1441_v53, 2  ;;  %v1174_v60 = vmax.f32 %v772_v54, 0.0  ;;  %v349_v44 = vld [vmem:[#allocation3 + $0x750] sm:$0xff] }
 0x273   :  { %v776_v62 = vpop.f32.mrb[120].mxu0 }
 0x274   :  { %v2348_v63 = vrot.slane %v1854_v58, 5  ;;  %v1443_v0 = vmax.f32 %v1441_v53, %v1442_v59  ;;  %v1446_v25 = vmax.f32 %v1173_v21, %v1174_v60  ;;  %v778_v1 = vpop.f32.mrb[121].mxu0  ;;  %1040 = vmatmul.mubr.f32.gmra.mrb[226].mxu0 %v341_v57  ;;  %v777_v9 = vadd.f32 %v10129_v33, %v776_v62  ;;  %v351_v57 = vld [vmem:[#allocation3 + $0x760] sm:$0xff] }
 0x275   :  { %1044 = vmatprep.mubr.f32.mxu0 %v344_v61  ;;  %v354_v61 = vld [vmem:[#allocation3 + $0x778] sm:$0xff] }
 0x276   :  { %v2349_v5 = vsel %vm2302_vm2, %v2348_v63, %v2347_v46  ;;  %v1444_v6 = vrot.slane %v1443_v0, 1  ;;  %v1447_v8 = vrot.slane %v1446_v25, 4  ;;  %v1175_v20 = vmax.f32 %v777_v9, 0.0  ;;  %v356_v9 = vld [vmem:[#allocation3 + $0x788] sm:$0xff] }
 0x277   :  { %v781_v11 = vpop.f32.mrb[122].mxu0 }
 0x278   :  { %v1445_v12 = vmax.f32 %v1443_v0, %v1444_v6  ;;  %v1448_v14 = vmax.f32 %v1446_v25, %v1447_v8  ;;  %v782_v15 = vadd.f32 %v10129_v33, %v781_v11  ;;  %v783_v16 = vpop.f32.mrb[123].mxu0  ;;  %1045 = vmatmul.mubr.f32.gmra.mrb[228].mxu0 %v343_v3 }
 0x279   :  { %1049 = vmatprep.mubr.f32.mxu0 %v346_v10  ;;  %v1734_v16 = vrot.slane %v10166_v55, 7 }
 0x27a   :  { %v1855_v18 = vadd.f32 %v1731_v2, %v1445_v12  ;;  %v1449_v19 = vrot.slane %v1448_v14, 2  ;;  %v1176_v22 = vmax.f32 %v782_v15, 0.0  ;;  %v353_v2 = vld [vmem:[#allocation3 + $0x770] sm:$0xff] }
 0x27b   :  { %v786_v24 = vpop.f32.mrb[124].mxu0 }
 0x27c   :  { %v2350_v32 = vrot.slane %v1855_v18, 4  ;;  %v1450_v26 = vmax.f32 %v1448_v14, %v1449_v19  ;;  %v1453_v27 = vmax.f32 %v1175_v20, %v1176_v22  ;;  %v788_v28 = vpop.f32.mrb[125].mxu0  ;;  %1050 = vmatmul.mubr.f32.gmra.mrb[230].mxu0 %v345_v17  ;;  %v787_v36 = vadd.f32 %v10129_v33, %v786_v24  ;;  %v355_v17 = vld [vmem:[#allocation3 + $0x780] sm:$0xff] }
 0x27d   :  { %1054 = vmatprep.mubr.f32.mxu0 %v348_v23  ;;  %v358_v23 = vld [vmem:[#allocation3 + $0x798] sm:$0xff] }
 0x27e   :  { %v2351_v31 = vsel %vm2305_vm3, %v2350_v32, %v2349_v5  ;;  %v1451_v34 = vrot.slane %v1450_v26, 1  ;;  %v1454_v35 = vrot.slane %v1453_v27, 4  ;;  %v1177_v47 = vmax.f32 %v787_v36, 0.0 }
 0x27f   :  { %v791_v39 = vpop.f32.mrb[126].mxu0 }
 0x280   :  { %v1452_v40 = vmax.f32 %v1450_v26, %v1451_v34  ;;  %v1455_v41 = vmax.f32 %v1453_v27, %v1454_v35  ;;  %v792_v42 = vadd.f32 %v10129_v33, %v791_v39  ;;  %v793_v43 = vpop.f32.mrb[127].mxu0  ;;  %1055 = vmatmul.mubr.f32.gmra.mrb[232].mxu0 %v347_v30  ;;  %v360_v34 = vld [vmem:[#allocation3 + $0x7a8] sm:$0xff] }
 0x281   :  { %1059 = vmatprep.mubr.f32.mxu0 %v350_v37 }
 0x282   :  { %v1856_v45 = vadd.f32 %v1732_v29, %v1452_v40  ;;  %v1456_v46 = vrot.slane %v1455_v41, 2  ;;  %v1178_v48 = vmax.f32 %v792_v42, 0.0  ;;  %v357_v29 = vld [vmem:[#allocation3 + $0x790] sm:$0xff] }
 0x283   :  { %v796_v50 = vpop.f32.mrb[128].mxu0 }
 0x284   :  { %v2352_v51 = vrot.slane %v1856_v45, 3  ;;  %v1457_v52 = vmax.f32 %v1455_v41, %v1456_v46  ;;  %v1460_v53 = vmax.f32 %v1177_v47, %v1178_v48  ;;  %v798_v54 = vpop.f32.mrb[129].mxu0  ;;  %1060 = vmatmul.mubr.f32.gmra.mrb[234].mxu0 %v349_v44  ;;  %v797_v60 = vadd.f32 %v10129_v33, %v796_v50  ;;  %v359_v41 = vld [vmem:[#allocation3 + $0x7a0] sm:$0xff]  ;;  %v362_v45 = vld [vmem:[#allocation3 + $0x7b8] sm:$0xff] }
 0x285   :  { %1064 = vmatprep.mubr.f32.mxu0 %v352_v49 }
 0x286   :  { %v2353_v58 = vsel %vm2308_vm4, %v2352_v51, %v2351_v31  ;;  %v1458_v59 = vrot.slane %v1457_v52, 1  ;;  %v1461_v21 = vrot.slane %v1460_v53, 4  ;;  %v1179_v6 = vmax.f32 %v797_v60, 0.0  ;;  %v361_v51 = vld [vmem:[#allocation3 + $0x7b0] sm:$0xff] }
 0x287   :  { %v801_v62 = vpop.f32.mrb[130].mxu0 }
 0x288   :  { %v1459_v63 = vmax.f32 %v1457_v52, %v1458_v59  ;;  %v1462_v0 = vmax.f32 %v1460_v53, %v1461_v21  ;;  %v802_v25 = vadd.f32 %v10129_v33, %v801_v62  ;;  %v803_v1 = vpop.f32.mrb[131].mxu0  ;;  %1065 = vmatmul.mubr.f32.gmra.mrb[236].mxu0 %v351_v57  ;;  %v363_v62 = vld [vmem:[#allocation3 + $0x7c0] sm:$0xff] }
 0x289   :  { %1069 = vmatprep.mubr.f32.mxu0 %v354_v61  ;;  %v10203_v61 = vld [vmem:[#allocation8 + $0x20] sm:$0xff] }
 0x28a   :  { %v1857_v3 = vadd.f32 %v1733_v56, %v1459_v63  ;;  %v1463_v5 = vrot.slane %v1462_v0, 2  ;;  %v1180_v8 = vmax.f32 %v802_v25, 0.0  ;;  %v364_v56 = vld [vmem:[#allocation3 + $0x7c8] sm:$0xff] }
 0x28b   :  { %v806_v10 = vpop.f32.mrb[132].mxu0 }
 0x28c   :  { %v2354_v11 = vrot.slane %v1857_v3, 2  ;;  %v1464_v12 = vmax.f32 %v1462_v0, %v1463_v5  ;;  %v1467_v14 = vmax.f32 %v1179_v6, %v1180_v8  ;;  %v808_v15 = vpop.f32.mrb[133].mxu0  ;;  %1070 = vmatmul.mubr.f32.gmra.mrb[238].mxu0 %v353_v2  ;;  %v807_v22 = vadd.f32 %v10129_v33, %v806_v10  ;;  %v366_v2 = vld [vmem:[#allocation3 + $0x7d8] sm:$0xff] }
 0x28d   :  { %1074 = vmatprep.mubr.f32.mxu0 %v356_v9  ;;  %v1735_v0 = vrot.slane %v10203_v61, 1 }
 0x28e   :  { %v2355_v18 = vsel %vm2311_vm5, %v2354_v11, %v2353_v58  ;;  %v1465_v19 = vrot.slane %v1464_v12, 1  ;;  %v1468_v20 = vrot.slane %v1467_v14, 4  ;;  %v1181_v55 = vmax.f32 %v807_v22, 0.0  ;;  %v365_v11 = vld [vmem:[#allocation3 + $0x7d0] sm:$0xff] }
 0x28f   :  { %v811_v24 = vpop.f32.mrb[134].mxu0 }
 0x290   :  { %v1466_v32 = vmax.f32 %v1464_v12, %v1465_v19  ;;  %v1469_v26 = vmax.f32 %v1467_v14, %v1468_v20  ;;  %v812_v27 = vadd.f32 %v10129_v33, %v811_v24  ;;  %v813_v28 = vpop.f32.mrb[135].mxu0  ;;  %1075 = vmatmul.mubr.f32.gmra.mrb[240].mxu0 %v355_v17  ;;  %v368_v17 = vld [vmem:[#allocation3 + $0x7e8] sm:$0xff] }
 0x291   :  { %1079 = vmatprep.mubr.f32.mxu0 %v358_v23 }
 0x292   :  { %v1858_v30 = vadd.f32 %v1734_v16, %v1466_v32  ;;  %v1182_v31 = vmax.f32 %v812_v27, 0.0  ;;  %v1470_v37 = vrot.slane %v1469_v26, 2  ;;  %v1736_v32 = vrot.slane %v10203_v61, 2 }
 0x293   :  { %v816_v35 = vpop.f32.mrb[136].mxu0 }
 0x294   :  { %v2356_v36 = vrot.slane %v1858_v30, 1  ;;  %v1474_v39 = vmax.f32 %v1181_v55, %v1182_v31  ;;  %v818_v40 = vpop.f32.mrb[137].mxu0  ;;  %1080 = vmatmul.mubr.f32.gmra.mrb[242].mxu0 %v357_v29  ;;  %v817_v43 = vadd.f32 %v10129_v33, %v816_v35  ;;  %v1471_v47 = vmax.f32 %v1469_v26, %v1470_v37  ;;  %v367_v26 = vld [vmem:[#allocation3 + $0x7e0] sm:$0xff]  ;;  %v370_v55 = vld [vmem:[#allocation3 + $0x7f8] sm:$0xff] }
 0x295   :  { %1084 = vmatprep.mubr.f32.mxu0 %v360_v34 }
 0x296   :  { %v1475_v42 = vrot.slane %v1474_v39, 4  ;;  %v10198_v44 = vsel %vm2314_vm6, %v2356_v36, %v2355_v18  ;;  %v1183_v53 = vmax.f32 %v817_v43, 0.0  ;;  %v1472_v58 = vrot.slane %v1471_v47, 1 }
 0x297   :  { %v821_v46 = vpop.f32.mrb[138].mxu0  ;;  %2618 = vmatmul.mubr.f32.gmra.mrb[6].mxu1 %v10198_v44 }
 0x298   :  { %v1476_v48 = vmax.f32 %v1474_v39, %v1475_v42  ;;  %v822_v49 = vadd.f32 %v10129_v33, %v821_v46  ;;  %v823_v50 = vpop.f32.mrb[139].mxu0  ;;  %1085 = vmatmul.mubr.f32.gmra.mrb[244].mxu0 %v359_v41  ;;  %2623 = vmatprep.mubr.f32.mxu1 %v12186_v4  ;;  %v1473_v5 = vmax.f32 %v1471_v47, %v1472_v58  ;;  %v369_v39 = vld [vmem:[#allocation3 + $0x7f0] sm:$0xff] }
 0x299   :  { %1089 = vmatprep.mubr.f32.mxu0 %v362_v45  ;;  %v1737_v50 = vrot.slane %v10203_v61, 3 }
 0x29a   :  { %v1477_v52 = vrot.slane %v1476_v48, 2  ;;  %v1184_v54 = vmax.f32 %v822_v49, 0.0  ;;  %v1859_v19 = vadd.f32 %v10203_v61, %v1473_v5 }
 0x29b   :  { %v826_v57 = vpop.f32.mrb[140].mxu0 }
 0x29c   :  { %v1478_v59 = vmax.f32 %v1476_v48, %v1477_v52  ;;  %v1481_v21 = vmax.f32 %v1183_v53, %v1184_v54  ;;  %v828_v60 = vpop.f32.mrb[141].mxu0  ;;  %1090 = vmatmul.mubr.f32.gmra.mrb[246].mxu0 %v361_v51  ;;  %v827_v1 = vadd.f32 %v10129_v33, %v826_v57  ;;  %v10219_v53 = vld [vmem:[%s12178_s2] ss:$0 sm:$0xff] }
 0x29d   :  { %1094 = vmatprep.mubr.f32.mxu0 %v364_v56 }
 0x29e   :  { %v1479_v63 = vrot.slane %v1478_v59, 1  ;;  %v1482_v25 = vrot.slane %v1481_v21, 4  ;;  %v1185_v15 = vmax.f32 %v827_v1, 0.0 }
 0x29f   :  { %v831_v3 = vpop.f32.mrb[142].mxu0 }
 0x2a0   :  { %v1480_v6 = vmax.f32 %v1478_v59, %v1479_v63  ;;  %v1483_v8 = vmax.f32 %v1481_v21, %v1482_v25  ;;  %v832_v9 = vadd.f32 %v10129_v33, %v831_v3  ;;  %v833_v10 = vpop.f32.mrb[143].mxu0  ;;  %1095 = vmatmul.mubr.f32.gmra.mrb[248].mxu0 %v363_v62 }
 0x2a1   :  { %1099 = vmatprep.mubr.f32.mxu0 %v366_v2 }
 0x2a2   :  { %v1860_v12 = vadd.f32 %v1735_v0, %v1480_v6  ;;  %v1484_v14 = vrot.slane %v1483_v8, 2  ;;  %v1186_v16 = vmax.f32 %v832_v9, 0.0  ;;  %v1738_v6 = vrot.slane %v10203_v61, 4 }
 0x2a3   :  { %v836_v18 = vpop.f32.mrb[144].mxu0 }
 0x2a4   :  { %v2358_v20 = vrot.slane %v1860_v12, 7  ;;  %v1485_v22 = vmax.f32 %v1483_v8, %v1484_v14  ;;  %v1488_v23 = vmax.f32 %v1185_v15, %v1186_v16  ;;  %v838_v24 = vpop.f32.mrb[145].mxu0  ;;  %1100 = vmatmul.mubr.f32.gmra.mrb[250].mxu0 %v365_v11  ;;  %v837_v30 = vadd.f32 %v10129_v33, %v836_v18 }
 0x2a5   :  { %1104 = vmatprep.mubr.f32.mxu0 %v368_v17 }
 0x2a6   :  { %v2359_v27 = vsel %vm2296_vm0, %v2358_v20, %v1859_v19  ;;  %v1486_v28 = vrot.slane %v1485_v22, 1  ;;  %v1489_v29 = vrot.slane %v1488_v23, 4  ;;  %v1187_v42 = vmax.f32 %v837_v30, 0.0 }
 0x2a7   :  { %v841_v31 = vpop.f32.mrb[146].mxu0 }
 0x2a8   :  { %v1487_v34 = vmax.f32 %v1485_v22, %v1486_v28  ;;  %v1490_v35 = vmax.f32 %v1488_v23, %v1489_v29  ;;  %v842_v36 = vadd.f32 %v10129_v33, %v841_v31  ;;  %v843_v37 = vpop.f32.mrb[147].mxu0  ;;  %1105 = vmatmul.mubr.f32.gmra.mrb[252].mxu0 %v367_v26  ;;  %v1739_v28 = vrot.slane %v10203_v61, 5 }
 0x2a9   :  { %1109 = vmatprep.mubr.f32.mxu0 %v370_v55 }
 0x2aa   :  { %v1861_v40 = vadd.f32 %v1736_v32, %v1487_v34  ;;  %v1491_v41 = vrot.slane %v1490_v35, 2  ;;  %v1188_v43 = vmax.f32 %v842_v36, 0.0 }
 0x2ab   :  { %v846_v45 = vpop.f32.mrb[148].mxu0 }
 0x2ac   :  { %v2360_v46 = vrot.slane %v1861_v40, 6  ;;  %v1492_v47 = vmax.f32 %v1490_v35, %v1491_v41  ;;  %v1495_v48 = vmax.f32 %v1187_v42, %v1188_v43  ;;  %v848_v49 = vpop.f32.mrb[149].mxu0  ;;  %1110 = vmatmul.mubr.f32.gmra.mrb[254].mxu0 %v369_v39  ;;  %v847_v54 = vadd.f32 %v10219_v53, %v846_v45 }
 0x2ad   :  { %2486 = vmatprep.mubr.f32.mxu0 %v12186_v4 }
 0x2ae   :  { %v2361_v33 = vsel %vm2299_vm1, %v2360_v46, %v2359_v27  ;;  %v1493_v51 = vrot.slane %v1492_v47, 1  ;;  %v1496_v52 = vrot.slane %v1495_v48, 4  ;;  %v1189_v63 = vmax.f32 %v847_v54, 0.0 }
 0x2af   :  { %v851_v56 = vpop.f32.mrb[150].mxu0 }
 0x2b0   :  { %v1494_v57 = vmax.f32 %v1492_v47, %v1493_v51  ;;  %v1497_v58 = vmax.f32 %v1495_v48, %v1496_v52  ;;  %v852_v59 = vadd.f32 %v10219_v53, %v851_v56  ;;  %v853_v21 = vpop.f32.mrb[151].mxu0  ;;  %2487 = vmatmul.mubr.f32.vlgmr.msra.gmra.mrb[0].mxu0 %v10082_v7 }
 0x2b1   :  { %2492 = vmatprep.mubr.f32.mxu0 %v12186_v4 }
 0x2b2   :  { %v1862_v60 = vadd.f32 %v1737_v50, %v1494_v57  ;;  %v1498_v62 = vrot.slane %v1497_v58, 2  ;;  %v1190_v0 = vmax.f32 %v852_v59, 0.0  ;;  %v1740_v50 = vrot.slane %v10203_v61, 6 }
 0x2b3   :  { %v856_v25 = vpop.f32.mrb[152].mxu0 }
 0x2b4   :  { %v2362_v1 = vrot.slane %v1862_v60, 5  ;;  %v1499_v2 = vmax.f32 %v1497_v58, %v1498_v62  ;;  %v1502_v3 = vmax.f32 %v1189_v63, %v1190_v0  ;;  %v858_v5 = vpop.f32.mrb[153].mxu0  ;;  %2493 = vmatmul.mubr.f32.gmra.mrb[2].mxu0 %v10119_v13  ;;  %v857_v11 = vadd.f32 %v10219_v53, %v856_v25 }
 0x2b5   :  { %2498 = vmatprep.mubr.f32.mxu0 %v12186_v4 }
 0x2b6   :  { %v2363_v8 = vsel %vm2302_vm2, %v2362_v1, %v2361_v33  ;;  %v1500_v9 = vrot.slane %v1499_v2, 1  ;;  %v1503_v10 = vrot.slane %v1502_v3, 4  ;;  %v1191_v20 = vmax.f32 %v857_v11, 0.0 }
 0x2b7   :  { %v861_v12 = vpop.f32.mrb[154].mxu0 }
 0x2b8   :  { %v1501_v14 = vmax.f32 %v1499_v2, %v1500_v9  ;;  %v1504_v15 = vmax.f32 %v1502_v3, %v1503_v10  ;;  %v862_v16 = vadd.f32 %v10219_v53, %v861_v12  ;;  %v863_v17 = vpop.f32.mrb[155].mxu0  ;;  %2499 = vmatmul.mubr.f32.gmra.mrb[4].mxu0 %v10161_v38 }
 0x2b9   :  { %2504 = vmatprep.mubr.f32.mxu0 %v12186_v4 }
 0x2ba   :  { %v1863_v18 = vadd.f32 %v1738_v6, %v1501_v14  ;;  %v1505_v19 = vrot.slane %v1504_v15, 2  ;;  %v1192_v22 = vmax.f32 %v862_v16, 0.0  ;;  %v1741_v6 = vrot.slane %v10203_v61, 7 }
 0x2bb   :  { %v866_v23 = vpop.f32.mrb[156].mxu0 }
 0x2bc   :  { %v2364_v24 = vrot.slane %v1863_v18, 4  ;;  %v1506_v32 = vmax.f32 %v1504_v15, %v1505_v19  ;;  %v1509_v26 = vmax.f32 %v1191_v20, %v1192_v22  ;;  %v868_v27 = vpop.f32.mrb[157].mxu0  ;;  %2505 = vmatmul.mubr.f32.gmra.mrb[6].mxu0 %v10198_v44  ;;  %v867_v31 = vadd.f32 %v10219_v53, %v866_v23 }
 0x2bd   :  { %2510 = vmatprep.mubr.f32.mxu0 %v12186_v4 }
 0x2be   :  { %v2365_v29 = vsel %vm2305_vm3, %v2364_v24, %v2363_v8  ;;  %v1507_v30 = vrot.slane %v1506_v32, 1  ;;  %v1510_v55 = vrot.slane %v1509_v26, 4  ;;  %v1193_v42 = vmax.f32 %v867_v31, 0.0 }
 0x2bf   :  { %v871_v34 = vpop.f32.mrb[158].mxu0 }
 0x2c0   :  { %v1508_v35 = vmax.f32 %v1506_v32, %v1507_v30  ;;  %v1511_v36 = vmax.f32 %v1509_v26, %v1510_v55  ;;  %v872_v37 = vadd.f32 %v10219_v53, %v871_v34  ;;  %v873_v39 = vpop.f32.mrb[159].mxu0  ;;  %v3327_v30 = vld [vmem:[#allocation11 + $0x8] sm:$0xff] }
 0x2c1   :  { %v3335_v55 = vld [vmem:[#allocation11 + $0x48] sm:$0xff]  ;;  %v3334_v39 = vld [vmem:[#allocation11 + $0x40] sm:$0xff] }
 0x2c2   :  { %v1864_v40 = vadd.f32 %v1739_v28, %v1508_v35  ;;  %v1512_v41 = vrot.slane %v1511_v36, 2  ;;  %v1194_v43 = vmax.f32 %v872_v37, 0.0  ;;  %v3326_v37 = vld [vmem:[#allocation11] sm:$0xff] }
 0x2c3   :  { %v876_v45 = vpop.f32.mrb[160].mxu0 }
 0x2c4   :  { %v2366_v46 = vrot.slane %v1864_v40, 3  ;;  %v1513_v47 = vmax.f32 %v1511_v36, %v1512_v41  ;;  %v1516_v48 = vmax.f32 %v1193_v42, %v1194_v43  ;;  %v878_v49 = vpop.f32.mrb[161].mxu0  ;;  %v877_v54 = vadd.f32 %v10219_v53, %v876_v45 }
 0x2c5   :  { %v10256_v40 = vpack.c.bf16 %v3335_v55, %v3327_v30  ;;  %v10258_v41 = vpack.c.bf16 %v3334_v39, %v3326_v37  ;;  %v3391_v37 = vld [vmem:[#allocation11 + $0x208] sm:$0xff] }
 0x2c6   :  { %v2367_v33 = vsel %vm2308_vm4, %v2366_v46, %v2365_v29  ;;  %v1514_v51 = vrot.slane %v1513_v47, 1  ;;  %v1517_v52 = vrot.slane %v1516_v48, 4  ;;  %v1195_v63 = vmax.f32 %v877_v54, 0.0  ;;  %v3342_v54 = vld [vmem:[#allocation11 + $0x80] sm:$0xff]  ;;  %v3399_v39 = vld [vmem:[#allocation11 + $0x248] sm:$0xff] }
 0x2c7   :  { %v881_v56 = vpop.f32.mrb[162].mxu0  ;;  %12509 = vst [vmem:[#allocation20_spill] sm:$0xff] %v10256_v40  ;;  %12510 = vst [vmem:[#allocation21_spill] sm:$0xff] %v10258_v41  ;;  %7061 = vmatprep.subr.bf16.mxu0 %v10256_v40 }
 0x2c8   :  { %v1515_v57 = vmax.f32 %v1513_v47, %v1514_v51  ;;  %v1518_v58 = vmax.f32 %v1516_v48, %v1517_v52  ;;  %v882_v59 = vadd.f32 %v10219_v53, %v881_v56  ;;  %v883_v21 = vpop.f32.mrb[163].mxu0  ;;  %v3343_v47 = vld [vmem:[#allocation11 + $0x88] sm:$0xff]  ;;  %7063 = vmatpush1.bf16.msra.mxu0 %v10258_v41  ;;  %v3350_v56 = vld [vmem:[#allocation11 + $0xc0] sm:$0xff] }
 0x2c9   :  { %v3351_v48 = vld [vmem:[#allocation11 + $0xc8] sm:$0xff] }
 0x2ca   :  { %v1865_v60 = vadd.f32 %v1740_v50, %v1515_v57  ;;  %v1519_v62 = vrot.slane %v1518_v58, 2  ;;  %v1196_v0 = vmax.f32 %v882_v59, 0.0  ;;  %v10262_v52 = vpack.c.bf16 %v3351_v48, %v3343_v47  ;;  %v10264_v57 = vld [vmem:[#allocation8 + $0x28] sm:$0xff]  ;;  %v3390_v47 = vld [vmem:[#allocation11 + $0x200] sm:$0xff] }
 0x2cb   :  { %v886_v25 = vpop.f32.mrb[164].mxu0  ;;  %v1742_v21 = vrot.slane %v10264_v57, 1  ;;  %v3398_v48 = vld [vmem:[#allocation11 + $0x240] sm:$0xff] }
 0x2cc   :  { %v2368_v1 = vrot.slane %v1865_v60, 2  ;;  %v1520_v2 = vmax.f32 %v1518_v58, %v1519_v62  ;;  %v1523_v3 = vmax.f32 %v1195_v63, %v1196_v0  ;;  %v888_v5 = vpop.f32.mrb[165].mxu0  ;;  %v887_v11 = vadd.f32 %v10219_v53, %v886_v25  ;;  %12511 = vst [vmem:[#allocation22_spill] sm:$0xff] %v10262_v52  ;;  %7065 = vmatprep.subr.bf16.mxu0 %v10262_v52  ;;  %v3359_v0 = vld [vmem:[#allocation11 + $0x108] sm:$0xff] }
 0x2cd   :  { %v10266_v58 = vpack.c.bf16 %v3350_v56, %v3342_v54  ;;  %v3367_v25 = vld [vmem:[#allocation11 + $0x148] sm:$0xff] }
 0x2ce   :  { %v2369_v8 = vsel %vm2311_vm5, %v2368_v1, %v2367_v33  ;;  %v1521_v9 = vrot.slane %v1520_v2, 1  ;;  %v1524_v10 = vrot.slane %v1523_v3, 4  ;;  %v1197_v19 = vmax.f32 %v887_v11, 0.0 }
 0x2cf   :  { %v891_v12 = vpop.f32.mrb[166].mxu0  ;;  %12512 = vst [vmem:[#allocation23_spill] sm:$0xff] %v10266_v58  ;;  %7067 = vmatpush1.bf16.msra.mxu0 %v10266_v58 }
 0x2d0   :  { %v1522_v14 = vmax.f32 %v1520_v2, %v1521_v9  ;;  %v1525_v15 = vmax.f32 %v1523_v3, %v1524_v10  ;;  %v892_v16 = vadd.f32 %v10219_v53, %v891_v12  ;;  %v893_v17 = vpop.f32.mrb[167].mxu0  ;;  %v3366_v9 = vld [vmem:[#allocation11 + $0x140] sm:$0xff]  ;;  %v10273_v10 = vpack.c.bf16 %v3367_v25, %v3359_v0 }
 0x2d2   :  { %v1866_v18 = vadd.f32 %v1741_v6, %v1522_v14  ;;  %v1198_v20 = vmax.f32 %v892_v16, 0.0  ;;  %v1526_v24 = vrot.slane %v1525_v15, 2  ;;  %12513 = vst [vmem:[#allocation24_spill] sm:$0xff] %v10273_v10  ;;  %7069 = vmatprep.subr.bf16.mxu0 %v10273_v10 }
 0x2d3   :  { %v896_v22 = vpop.f32.mrb[168].mxu0 }
 0x2d4   :  { %v2370_v23 = vrot.slane %v1866_v18, 1  ;;  %v1530_v32 = vmax.f32 %v1197_v19, %v1198_v20  ;;  %v898_v61 = vpop.f32.mrb[169].mxu0  ;;  %v897_v27 = vadd.f32 %v10219_v53, %v896_v22  ;;  %v1527_v31 = vmax.f32 %v1525_v15, %v1526_v24  ;;  %v3375_v18 = vld [vmem:[#allocation11 + $0x188] sm:$0xff] }
 0x2d5   :  { %v3383_v19 = vld [vmem:[#allocation11 + $0x1c8] sm:$0xff]  ;;  %v3374_v61 = vld [vmem:[#allocation11 + $0x180] sm:$0xff] }
 0x2d6   :  { %v1531_v26 = vrot.slane %v1530_v32, 4  ;;  %v10249_v28 = vsel %vm2314_vm6, %v2370_v23, %v2369_v8  ;;  %v1199_v43 = vmax.f32 %v897_v27, 0.0  ;;  %v1528_v49 = vrot.slane %v1527_v31, 1  ;;  %v3358_v8 = vld [vmem:[#allocation11 + $0x100] sm:$0xff] }
 0x2d7   :  { %v901_v29 = vpop.f32.mrb[170].mxu0  ;;  %2511 = vmatmul.mubr.f32.gmra.mrb[8].mxu0 %v10249_v28  ;;  %2624 = vmatmul.mubr.f32.gmra.mrb[8].mxu1 %v10249_v28  ;;  %v10275_v11 = vpack.c.bf16 %v3366_v9, %v3358_v8  ;;  %v1743_v27 = vrot.slane %v10264_v57, 2 }
 0x2d8   :  { %v1532_v34 = vmax.f32 %v1530_v32, %v1531_v26  ;;  %v902_v35 = vadd.f32 %v10219_v53, %v901_v29  ;;  %v903_v36 = vpop.f32.mrb[171].mxu0  ;;  %2516 = vmatprep.mubr.f32.mxu0 %v12186_v4  ;;  %2629 = vmatprep.mubr.f32.mxu1 %v12186_v4  ;;  %v1529_v1 = vmax.f32 %v1527_v31, %v1528_v49  ;;  %v3382_v26 = vld [vmem:[#allocation11 + $0x1c0] sm:$0xff] }
 0x2d9   :  { %12514 = vst [vmem:[#allocation25_spill] sm:$0xff] %v10275_v11  ;;  %7071 = vmatpush1.bf16.msra.mxu0 %v10275_v11  ;;  %v10281_v29 = vpack.c.bf16 %v3383_v19, %v3375_v18  ;;  %v10283_v30 = vpack.c.bf16 %v3382_v26, %v3374_v61  ;;  %v10290_v49 = vpack.c.bf16 %v3399_v39, %v3391_v37 }
 0x2da   :  { %v1533_v42 = vrot.slane %v1532_v34, 2  ;;  %v1200_v45 = vmax.f32 %v902_v35, 0.0  ;;  %v1867_v20 = vadd.f32 %v10264_v57, %v1529_v1  ;;  %v3406_v1 = vld [vmem:[#allocation11 + $0x280] sm:$0xff] }
 0x2db   :  { %v906_v46 = vpop.f32.mrb[172].mxu0  ;;  %12515 = vst [vmem:[#allocation26_spill] sm:$0xff] %v10281_v29  ;;  %12516 = vst [vmem:[#allocation27_spill] sm:$0xff] %v10283_v30  ;;  %7073 = vmatprep.subr.bf16.mxu0 %v10281_v29 }
 0x2dc   :  { %v1534_v50 = vmax.f32 %v1532_v34, %v1533_v42  ;;  %v1537_v33 = vmax.f32 %v1199_v43, %v1200_v45  ;;  %v908_v51 = vpop.f32.mrb[173].mxu0  ;;  %v907_v62 = vadd.f32 %v10219_v53, %v906_v46  ;;  %12517 = vst [vmem:[#allocation28_spill] sm:$0xff] %v10290_v49 }
 0x2dd   :  { %7075 = vmatpush1.bf16.msra.mxu0 %v10283_v30 }
 0x2de   :  { %v1535_v59 = vrot.slane %v1534_v50, 1  ;;  %v1538_v60 = vrot.slane %v1537_v33, 4  ;;  %v1201_v15 = vmax.f32 %v907_v62, 0.0  ;;  %7077 = vmatprep.subr.bf16.mxu0 %v10290_v49 }
 0x2df   :  { %v911_v63 = vpop.f32.mrb[174].mxu0 }
 0x2e0   :  { %v1536_v2 = vmax.f32 %v1534_v50, %v1535_v59  ;;  %v1539_v3 = vmax.f32 %v1537_v33, %v1538_v60  ;;  %v912_v5 = vadd.f32 %v10219_v53, %v911_v63  ;;  %v913_v6 = vpop.f32.mrb[175].mxu0  ;;  %v10292_v50 = vpack.c.bf16 %v3398_v48, %v3390_v47  ;;  %v3415_v60 = vld [vmem:[#allocation11 + $0x2c8] sm:$0xff] }
 0x2e2   :  { %v1868_v12 = vadd.f32 %v1742_v21, %v1536_v2  ;;  %v1540_v14 = vrot.slane %v1539_v3, 2  ;;  %v1202_v16 = vmax.f32 %v912_v5, 0.0  ;;  %12518 = vst [vmem:[#allocation29_spill] sm:$0xff] %v10292_v50  ;;  %v3407_v21 = vld [vmem:[#allocation11 + $0x288] sm:$0xff]  ;;  %7079 = vmatpush1.bf16.msra.mxu0 %v10292_v50  ;;  %v3414_v2 = vld [vmem:[#allocation11 + $0x2c0] sm:$0xff]  ;;  %v3569_v50 = vld [vmem:[#allocation11 + $0x798] sm:$0xff] }
 0x2e3   :  { %v916_v17 = vpop.f32.mrb[176].mxu0  ;;  %v10297_v5 = vpack.c.bf16 %v3415_v60, %v3407_v21  ;;  %v10299_v6 = vpack.c.bf16 %v3414_v2, %v3406_v1  ;;  %v3455_v60 = vld [vmem:[#allocation11 + $0x408] sm:$0xff] }
 0x2e4   :  { %v2372_v22 = vrot.slane %v1868_v12, 7  ;;  %v1541_v23 = vmax.f32 %v1539_v3, %v1540_v14  ;;  %v1544_v24 = vmax.f32 %v1201_v15, %v1202_v16  ;;  %v918_v32 = vpop.f32.mrb[177].mxu0  ;;  %v917_v35 = vadd.f32 %v10219_v53, %v916_v17  ;;  %v3423_v16 = vld [vmem:[#allocation11 + $0x308] sm:$0xff] }
 0x2e5   :  { %v1744_v3 = vrot.slane %v10264_v57, 3  ;;  %12519 = vst [vmem:[#allocation30_spill] sm:$0xff] %v10297_v5  ;;  %12520 = vst [vmem:[#allocation31_spill] sm:$0xff] %v10299_v6  ;;  %7081 = vmatprep.subr.bf16.mxu0 %v10297_v5  ;;  %v3431_v17 = vld [vmem:[#allocation11 + $0x348] sm:$0xff]  ;;  %v3561_v5 = vld [vmem:[#allocation11 + $0x758] sm:$0xff] }
 0x2e6   :  { %v2373_v55 = vsel %vm2296_vm0, %v2372_v22, %v1867_v20  ;;  %v1542_v31 = vrot.slane %v1541_v23, 1  ;;  %v1545_v34 = vrot.slane %v1544_v24, 4  ;;  %v1203_v54 = vmax.f32 %v917_v35, 0.0  ;;  %7083 = vmatpush1.bf16.msra.mxu0 %v10299_v6  ;;  %v3439_v35 = vld [vmem:[#allocation11 + $0x388] sm:$0xff]  ;;  %v3553_v6 = vld [vmem:[#allocation11 + $0x718] sm:$0xff] }
 0x2e7   :  { %v921_v36 = vpop.f32.mrb[178].mxu0  ;;  %v10306_v32 = vpack.c.bf16 %v3431_v17, %v3423_v16  ;;  %v1896_v2 = vld [vmem:[#allocation9 + $0x28] sm:$0xff]  ;;  %v1895_v16 = vld [vmem:[#allocation9 + $0x20] sm:$0xff] }
 0x2e8   :  { %v1543_v42 = vmax.f32 %v1541_v23, %v1542_v31  ;;  %v1546_v43 = vmax.f32 %v1544_v24, %v1545_v34  ;;  %v922_v45 = vadd.f32 %v10219_v53, %v921_v36  ;;  %v923_v46 = vpop.f32.mrb[179].mxu0  ;;  %v3422_v23 = vld [vmem:[#allocation11 + $0x300] sm:$0xff]  ;;  %v3447_v36 = vld [vmem:[#allocation11 + $0x3c8] sm:$0xff] }
 0x2e9   :  { %v3430_v24 = vld [vmem:[#allocation11 + $0x340] sm:$0xff]  ;;  %12521 = vst [vmem:[#allocation32_spill] sm:$0xff] %v10306_v32  ;;  %7085 = vmatprep.subr.bf16.mxu0 %v10306_v32  ;;  %v10313_v48 = vpack.c.bf16 %v3447_v36, %v3439_v35  ;;  %v1928_v36 = vld [vmem:[#allocation9 + $0x128] sm:$0xff]  ;;  %v3545_v32 = vld [vmem:[#allocation11 + $0x6d8] sm:$0xff] }
 0x2ea   :  { %v1869_v33 = vadd.f32 %v1743_v27, %v1543_v42  ;;  %v1547_v51 = vrot.slane %v1546_v43, 2  ;;  %v1204_v56 = vmax.f32 %v922_v45, 0.0  ;;  %v10308_v61 = vpack.c.bf16 %v3430_v24, %v3422_v23  ;;  %v3438_v45 = vld [vmem:[#allocation11 + $0x380] sm:$0xff] }
 0x2eb   :  { %v926_v59 = vpop.f32.mrb[180].mxu0  ;;  %v3446_v46 = vld [vmem:[#allocation11 + $0x3c0] sm:$0xff]  ;;  %12523 = vst [vmem:[#allocation34_spill] sm:$0xff] %v10313_v48 }
 0x2ec   :  { %v2374_v62 = vrot.slane %v1869_v33, 6  ;;  %v1548_v63 = vmax.f32 %v1546_v43, %v1547_v51  ;;  %v1551_v0 = vmax.f32 %v1203_v54, %v1204_v56  ;;  %v928_v25 = vpop.f32.mrb[181].mxu0  ;;  %v927_v14 = vadd.f32 %v10219_v53, %v926_v59  ;;  %12522 = vst [vmem:[#allocation33_spill] sm:$0xff] %v10308_v61  ;;  %7087 = vmatpush1.bf16.msra.mxu0 %v10308_v61  ;;  %v1911_v17 = vld [vmem:[#allocation9 + $0xa0] sm:$0xff]  ;;  %v3537_v61 = vld [vmem:[#allocation11 + $0x698] sm:$0xff] }
 0x2ed   :  { %v10315_v33 = vpack.c.bf16 %v3446_v46, %v3438_v45  ;;  %v1745_v56 = vrot.slane %v10264_v57, 4  ;;  %7089 = vmatprep.subr.bf16.mxu0 %v10313_v48  ;;  %v6870_v24 = vpack.c.bf16 %v1911_v17, %v1895_v16  ;;  %v3478_v46 = vld [vmem:[#allocation11 + $0x4c0] sm:$0xff]  ;;  %v3529_v48 = vld [vmem:[#allocation11 + $0x658] sm:$0xff] }
 0x2ee   :  { %v2375_v8 = vsel %vm2299_vm1, %v2374_v62, %v2373_v55  ;;  %v1549_v9 = vrot.slane %v1548_v63, 1  ;;  %v1552_v12 = vrot.slane %v1551_v0, 4  ;;  %v1205_v55 = vmax.f32 %v927_v14, 0.0  ;;  %v3463_v62 = vld [vmem:[#allocation11 + $0x448] sm:$0xff]  ;;  %v3486_v17 = vld [vmem:[#allocation11 + $0x500] sm:$0xff] }
 0x2ef   :  { %v931_v15 = vpop.f32.mrb[182].mxu0  ;;  %12524 = vst [vmem:[#allocation35_spill] sm:$0xff] %v10315_v33 }
 0x2f0   :  { %v1550_v18 = vmax.f32 %v1548_v63, %v1549_v9  ;;  %v1553_v19 = vmax.f32 %v1551_v0, %v1552_v12  ;;  %v932_v20 = vadd.f32 %v10219_v53, %v931_v15  ;;  %v933_v22 = vpop.f32.mrb[183].mxu0  ;;  %7091 = vmatpush1.bf16.msra.mxu0 %v10315_v33  ;;  %v3454_v9 = vld [vmem:[#allocation11 + $0x400] sm:$0xff]  ;;  %v10322_v12 = vpack.c.bf16 %v3463_v62, %v3455_v60  ;;  %v3521_v33 = vld [vmem:[#allocation11 + $0x618] sm:$0xff] }
 0x2f1   :  { %v3462_v15 = vld [vmem:[#allocation11 + $0x440] sm:$0xff] }
 0x2f2   :  { %v1870_v26 = vadd.f32 %v1744_v3, %v1550_v18  ;;  %v1554_v27 = vrot.slane %v1553_v19, 2  ;;  %v1206_v31 = vmax.f32 %v932_v20, 0.0  ;;  %v1912_v3 = vld [vmem:[#allocation9 + $0xa8] sm:$0xff]  ;;  %12525 = vst [vmem:[#allocation36_spill] sm:$0xff] %v10322_v12  ;;  %v10324_v22 = vpack.c.bf16 %v3462_v15, %v3454_v9  ;;  %7093 = vmatprep.subr.bf16.mxu0 %v10322_v12  ;;  %v3513_v12 = vld [vmem:[#allocation11 + $0x5d8] sm:$0xff] }
 0x2f3   :  { %v936_v34 = vpop.f32.mrb[184].mxu0  ;;  %v6868_v14 = vpack.c.bf16 %v1912_v3, %v1896_v2 }
 0x2f4   :  { %v2376_v37 = vrot.slane %v1870_v26, 5  ;;  %v1555_v39 = vmax.f32 %v1553_v19, %v1554_v27  ;;  %v1558_v42 = vmax.f32 %v1205_v55, %v1206_v31  ;;  %v938_v43 = vpop.f32.mrb[185].mxu0  ;;  %v937_v47 = vadd.f32 %v10219_v53, %v936_v34  ;;  %12526 = vst [vmem:[#allocation37_spill] sm:$0xff] %v10324_v22  ;;  %v3471_v26 = vld [vmem:[#allocation11 + $0x488] sm:$0xff]  ;;  %7095 = vmatpush1.bf16.msra.mxu0 %v10324_v22  ;;  %v3505_v22 = vld [vmem:[#allocation11 + $0x598] sm:$0xff] }
 0x2f5   :  { %6869 = vmatprep.subr.bf16.mxu1 %v6868_v14  ;;  %v3479_v27 = vld [vmem:[#allocation11 + $0x4c8] sm:$0xff] }
 0x2f6   :  { %v2377_v51 = vsel %vm2302_vm2, %v2376_v37, %v2375_v8  ;;  %v1556_v54 = vrot.slane %v1555_v39, 1  ;;  %v1559_v59 = vrot.slane %v1558_v42, 4  ;;  %v1207_v8 = vmax.f32 %v937_v47, 0.0  ;;  %v1944_v37 = vld [vmem:[#allocation9 + $0x1a8] sm:$0xff]  ;;  %6871 = vmatpush1.bf16.msra.mxu1 %v6870_v24  ;;  %v1927_v47 = vld [vmem:[#allocation9 + $0x120] sm:$0xff] }
 0x2f7   :  { %v941_v21 = vpop.f32.mrb[186].mxu0  ;;  %v10329_v43 = vpack.c.bf16 %v3479_v27, %v3471_v26  ;;  %v6872_v45 = vpack.c.bf16 %v1944_v37, %v1928_v36  ;;  %v1960_v14 = vld [vmem:[#allocation9 + $0x228] sm:$0xff]  ;;  %v1959_v26 = vld [vmem:[#allocation9 + $0x220] sm:$0xff] }
 0x2f8   :  { %v1557_v63 = vmax.f32 %v1555_v39, %v1556_v54  ;;  %v1560_v0 = vmax.f32 %v1558_v42, %v1559_v59  ;;  %v942_v25 = vadd.f32 %v10219_v53, %v941_v21  ;;  %v943_v1 = vpop.f32.mrb[187].mxu0  ;;  %v3470_v39 = vld [vmem:[#allocation11 + $0x480] sm:$0xff]  ;;  %v1746_v21 = vrot.slane %v10264_v57, 5 }
 0x2f9   :  { %12527 = vst [vmem:[#allocation38_spill] sm:$0xff] %v10329_v43  ;;  %v1943_v54 = vld [vmem:[#allocation9 + $0x1a0] sm:$0xff]  ;;  %7097 = vmatprep.subr.bf16.mxu0 %v10329_v43  ;;  %6873 = vmatprep.subr.bf16.mxu1 %v6872_v45  ;;  %v3495_v1 = vld [vmem:[#allocation11 + $0x548] sm:$0xff]  ;;  %v3497_v43 = vld [vmem:[#allocation11 + $0x558] sm:$0xff] }
 0x2fa   :  { %v1871_v18 = vadd.f32 %v1745_v56, %v1557_v63  ;;  %v1561_v19 = vrot.slane %v1560_v0, 2  ;;  %v1208_v20 = vmax.f32 %v942_v25, 0.0  ;;  %v10334_v63 = vpack.c.bf16 %v3478_v46, %v3470_v39  ;;  %v3487_v25 = vld [vmem:[#allocation11 + $0x508] sm:$0xff]  ;;  %v1975_v27 = vld [vmem:[#allocation9 + $0x2a0] sm:$0xff] }
 0x2fb   :  { %v946_v23 = vpop.f32.mrb[188].mxu0  ;;  %v10338_v16 = vpack.c.bf16 %v3495_v1, %v3487_v25  ;;  %v1992_v45 = vld [vmem:[#allocation9 + $0x328] sm:$0xff]  ;;  %v2007_v25 = vld [vmem:[#allocation9 + $0x3a0] sm:$0xff] }
 0x2fc   :  { %v2378_v55 = vrot.slane %v1871_v18, 4  ;;  %v1562_v31 = vmax.f32 %v1560_v0, %v1561_v19  ;;  %v1565_v34 = vmax.f32 %v1207_v8, %v1208_v20  ;;  %v948_v35 = vpop.f32.mrb[189].mxu0  ;;  %v947_v42 = vadd.f32 %v10219_v53, %v946_v23  ;;  %12528 = vst [vmem:[#allocation39_spill] sm:$0xff] %v10334_v63  ;;  %7099 = vmatpush1.bf16.msra.mxu0 %v10334_v63  ;;  %v3494_v18 = vld [vmem:[#allocation11 + $0x540] sm:$0xff]  ;;  %v2008_v46 = vld [vmem:[#allocation9 + $0x3a8] sm:$0xff]  ;;  %v3489_v63 = vld [vmem:[#allocation11 + $0x518] sm:$0xff] }
 0x2fd   :  { %v6874_v0 = vpack.c.bf16 %v1943_v54, %v1927_v47  ;;  %12529 = vst [vmem:[#allocation40_spill] sm:$0xff] %v10338_v16  ;;  %7101 = vmatprep.subr.bf16.mxu0 %v10338_v16  ;;  %v3511_v35 = vld [vmem:[#allocation11 + $0x5c8] sm:$0xff]  ;;  %v3502_v47 = vld [vmem:[#allocation11 + $0x580] sm:$0xff]  ;;  %v3481_v16 = vld [vmem:[#allocation11 + $0x4d8] sm:$0xff] }
 0x2fe   :  { %v2379_v56 = vsel %vm2305_vm3, %v2378_v55, %v2377_v51  ;;  %v1563_v59 = vrot.slane %v1562_v31, 1  ;;  %v1566_v60 = vrot.slane %v1565_v34, 4  ;;  %v1976_v51 = vld [vmem:[#allocation9 + $0x2a8] sm:$0xff]  ;;  %v1209_v15 = vmax.f32 %v947_v42, 0.0 }
 0x2ff   :  { %v951_v62 = vpop.f32.mrb[190].mxu0  ;;  %6875 = vmatpush1.bf16.msra.mxu1 %v6874_v0  ;;  %v6876_v24 = vpack.c.bf16 %v1976_v51, %v1960_v14  ;;  %v1991_v0 = vld [vmem:[#allocation9 + $0x320] sm:$0xff] }
 0x300   :  { %v1564_v2 = vmax.f32 %v1562_v31, %v1563_v59  ;;  %v1567_v3 = vmax.f32 %v1565_v34, %v1566_v60  ;;  %v952_v9 = vadd.f32 %v10219_v53, %v951_v62  ;;  %v953_v8 = vpop.f32.mrb[191].mxu0  ;;  %v10341_v31 = vpack.c.bf16 %v3494_v18, %v3486_v17  ;;  %v3503_v34 = vld [vmem:[#allocation11 + $0x588] sm:$0xff]  ;;  %v3510_v62 = vld [vmem:[#allocation11 + $0x5c0] sm:$0xff] }
 0x301   :  { %6877 = vmatprep.subr.bf16.mxu1 %v6876_v24  ;;  %v6878_v59 = vpack.c.bf16 %v1975_v27, %v1959_v26  ;;  %v6880_v60 = vpack.c.bf16 %v2008_v46, %v1992_v45  ;;  %v10350_v14 = vpack.c.bf16 %v3510_v62, %v3502_v47  ;;  %v6882_v51 = vpack.c.bf16 %v2007_v25, %v1991_v0  ;;  %v3527_v17 = vld [vmem:[#allocation11 + $0x648] sm:$0xff]  ;;  %v3518_v26 = vld [vmem:[#allocation11 + $0x600] sm:$0xff] }
 0x302   :  { %v1872_v19 = vadd.f32 %v1746_v21, %v1564_v2  ;;  %v1568_v20 = vrot.slane %v1567_v3, 2  ;;  %v1210_v23 = vmax.f32 %v952_v9, 0.0  ;;  %12530 = vst [vmem:[#allocation41_spill] sm:$0xff] %v10341_v31  ;;  %7103 = vmatpush1.bf16.msra.mxu0 %v10341_v31  ;;  %v10345_v21 = vpack.c.bf16 %v3511_v35, %v3503_v34  ;;  %v2040_v24 = vld [vmem:[#allocation9 + $0x4a8] sm:$0xff]  ;;  %v3526_v35 = vld [vmem:[#allocation11 + $0x640] sm:$0xff]  ;;  %v3473_v31 = vld [vmem:[#allocation11 + $0x498] sm:$0xff] }
 0x303   :  { %v956_v55 = vpop.f32.mrb[192].mxu0  ;;  %6879 = vmatpush1.bf16.msra.mxu1 %v6878_v59  ;;  %12532 = vst [vmem:[#allocation43_spill] sm:$0xff] %v10350_v14 }
 0x304   :  { %v2380_v36 = vrot.slane %v1872_v19, 3  ;;  %v1569_v37 = vmax.f32 %v1567_v3, %v1568_v20  ;;  %v1572_v39 = vmax.f32 %v1209_v15, %v1210_v23  ;;  %v958_v42 = vpop.f32.mrb[193].mxu0  ;;  %v957_v54 = vadd.f32 %v10219_v53, %v956_v55  ;;  %12531 = vst [vmem:[#allocation42_spill] sm:$0xff] %v10345_v21  ;;  %7105 = vmatprep.subr.bf16.mxu0 %v10345_v21  ;;  %v3519_v15 = vld [vmem:[#allocation11 + $0x608] sm:$0xff]  ;;  %v3465_v21 = vld [vmem:[#allocation11 + $0x458] sm:$0xff] }
 0x305   :  { %v1747_v3 = vrot.slane %v10264_v57, 6  ;;  %6881 = vmatprep.subr.bf16.mxu1 %v6880_v60  ;;  %v10354_v55 = vpack.c.bf16 %v3527_v17, %v3519_v15  ;;  %v2039_v42 = vld [vmem:[#allocation9 + $0x4a0] sm:$0xff]  ;;  %v3535_v60 = vld [vmem:[#allocation11 + $0x688] sm:$0xff] }
 0x306   :  { %v2381_v1 = vsel %vm2308_vm4, %v2380_v36, %v2379_v56  ;;  %v1570_v2 = vrot.slane %v1569_v37, 1  ;;  %v1573_v9 = vrot.slane %v1572_v39, 4  ;;  %v2024_v56 = vld [vmem:[#allocation9 + $0x428] sm:$0xff]  ;;  %v1211_v27 = vmax.f32 %v957_v54, 0.0  ;;  %7107 = vmatpush1.bf16.msra.mxu0 %v10350_v14  ;;  %v2023_v36 = vld [vmem:[#allocation9 + $0x420] sm:$0xff]  ;;  %v3457_v14 = vld [vmem:[#allocation11 + $0x418] sm:$0xff] }
 0x307   :  { %v961_v8 = vpop.f32.mrb[194].mxu0  ;;  %12533 = vst [vmem:[#allocation44_spill] sm:$0xff] %v10354_v55  ;;  %v6884_v34 = vpack.c.bf16 %v2040_v24, %v2024_v56  ;;  %6883 = vmatpush1.bf16.msra.mxu1 %v6882_v51  ;;  %7109 = vmatprep.subr.bf16.mxu0 %v10354_v55  ;;  %v6886_v59 = vpack.c.bf16 %v2039_v42, %v2023_v36  ;;  %v3543_v54 = vld [vmem:[#allocation11 + $0x6c8] sm:$0xff]  ;;  %v3534_v15 = vld [vmem:[#allocation11 + $0x680] sm:$0xff]  ;;  %v3449_v55 = vld [vmem:[#allocation11 + $0x3d8] sm:$0xff] }
 0x308   :  { %v1571_v18 = vmax.f32 %v1569_v37, %v1570_v2  ;;  %v1574_v19 = vmax.f32 %v1572_v39, %v1573_v9  ;;  %v962_v20 = vadd.f32 %v10219_v53, %v961_v8  ;;  %v963_v23 = vpop.f32.mrb[195].mxu0  ;;  %v10356_v39 = vpack.c.bf16 %v3526_v35, %v3518_v26  ;;  %v2056_v9 = vld [vmem:[#allocation9 + $0x528] sm:$0xff] }
 0x309   :  { %6885 = vmatprep.subr.bf16.mxu1 %v6884_v34  ;;  %v2072_v8 = vld [vmem:[#allocation9 + $0x5a8] sm:$0xff]  ;;  %v10361_v17 = vpack.c.bf16 %v3543_v54, %v3535_v60  ;;  %v2071_v23 = vld [vmem:[#allocation9 + $0x5a0] sm:$0xff] }
 0x30a   :  { %v1873_v45 = vadd.f32 %v1747_v3, %v1571_v18  ;;  %v1575_v46 = vrot.slane %v1574_v19, 2  ;;  %v1212_v37 = vmax.f32 %v962_v20, 0.0  ;;  %12534 = vst [vmem:[#allocation45_spill] sm:$0xff] %v10356_v39  ;;  %v1748_v3 = vrot.slane %v10264_v57, 7  ;;  %7111 = vmatpush1.bf16.msra.mxu0 %v10356_v39  ;;  %v3542_v18 = vld [vmem:[#allocation11 + $0x6c0] sm:$0xff]  ;;  %v3551_v35 = vld [vmem:[#allocation11 + $0x708] sm:$0xff] }
 0x30b   :  { %v966_v47 = vpop.f32.mrb[196].mxu0  ;;  %12535 = vst [vmem:[#allocation46_spill] sm:$0xff] %v10361_v17  ;;  %v6888_v51 = vpack.c.bf16 %v2072_v8, %v2056_v9  ;;  %v2055_v20 = vld [vmem:[#allocation9 + $0x520] sm:$0xff]  ;;  %6887 = vmatpush1.bf16.msra.mxu1 %v6886_v59  ;;  %7113 = vmatprep.subr.bf16.mxu0 %v10361_v17  ;;  %v10366_v34 = vpack.c.bf16 %v3542_v18, %v3534_v15  ;;  %v3559_v36 = vld [vmem:[#allocation11 + $0x748] sm:$0xff]  ;;  %v3425_v17 = vld [vmem:[#allocation11 + $0x318] sm:$0xff] }
 0x30c   :  { %v2382_v62 = vrot.slane %v1873_v45, 2  ;;  %v1576_v0 = vmax.f32 %v1574_v19, %v1575_v46  ;;  %v1579_v25 = vmax.f32 %v1211_v27, %v1212_v37  ;;  %v968_v2 = vpop.f32.mrb[197].mxu0  ;;  %v967_v26 = vadd.f32 %v10219_v53, %v966_v47  ;;  %v2104_v60 = vld [vmem:[#allocation9 + $0x6a8] sm:$0xff]  ;;  %v3550_v54 = vld [vmem:[#allocation11 + $0x700] sm:$0xff]  ;;  %v3433_v39 = vld [vmem:[#allocation11 + $0x358] sm:$0xff] }
 0x30d   :  { %12536 = vst [vmem:[#allocation47_spill] sm:$0xff] %v10366_v34  ;;  %v6890_v57 = vpack.c.bf16 %v2071_v23, %v2055_v20  ;;  %6889 = vmatprep.subr.bf16.mxu1 %v6888_v51  ;;  %v10370_v47 = vpack.c.bf16 %v3559_v36, %v3551_v35  ;;  %v3567_v51 = vld [vmem:[#allocation11 + $0x788] sm:$0xff] }
 0x30e   :  { %v2383_v56 = vsel %vm2311_vm5, %v2382_v62, %v2381_v1  ;;  %v1577_v24 = vrot.slane %v1576_v0, 1  ;;  %v1580_v19 = vrot.slane %v1579_v25, 4  ;;  %v2088_v1 = vld [vmem:[#allocation9 + $0x628] sm:$0xff]  ;;  %7115 = vmatpush1.bf16.msra.mxu0 %v10366_v34  ;;  %v3558_v62 = vld [vmem:[#allocation11 + $0x740] sm:$0xff]  ;;  %v1213_v9 = vmax.f32 %v967_v26, 0.0 }
 0x30f   :  { %v971_v27 = vpop.f32.mrb[198].mxu0  ;;  %12537 = vst [vmem:[#allocation48_spill] sm:$0xff] %v10370_v47  ;;  %v6892_v59 = vpack.c.bf16 %v2104_v60, %v2088_v1  ;;  %v10372_v15 = vpack.c.bf16 %v3558_v62, %v3550_v54  ;;  %6891 = vmatpush1.bf16.msra.mxu1 %v6890_v57  ;;  %7117 = vmatprep.subr.bf16.mxu0 %v10370_v47  ;;  %v3575_v20 = vld [vmem:[#allocation11 + $0x7c8] sm:$0xff]  ;;  %v2119_v54 = vld [vmem:[#allocation9 + $0x720] sm:$0xff] }
 0x310   :  { %v1578_v42 = vmax.f32 %v1576_v0, %v1577_v24  ;;  %v1581_v45 = vmax.f32 %v1579_v25, %v1580_v19  ;;  %v972_v46 = vadd.f32 %v10219_v53, %v971_v27  ;;  %v973_v37 = vpop.f32.mrb[199].mxu0  ;;  %v2087_v0 = vld [vmem:[#allocation9 + $0x620] sm:$0xff]  ;;  %v2120_v35 = vld [vmem:[#allocation9 + $0x728] sm:$0xff] }
 0x311   :  { %12538 = vst [vmem:[#allocation49_spill] sm:$0xff] %v10372_v15  ;;  %v2103_v25 = vld [vmem:[#allocation9 + $0x6a0] sm:$0xff]  ;;  %6893 = vmatprep.subr.bf16.mxu1 %v6892_v59  ;;  %v2136_v36 = vld [vmem:[#allocation9 + $0x7a8] sm:$0xff] }
 0x312   :  { %v1874_v2 = vadd.f32 %v1748_v3, %v1578_v42  ;;  %v1214_v8 = vmax.f32 %v972_v46, 0.0  ;;  %v1582_v24 = vrot.slane %v1581_v45, 2  ;;  %v3566_v3 = vld [vmem:[#allocation11 + $0x780] sm:$0xff]  ;;  %7119 = vmatpush1.bf16.msra.mxu0 %v10372_v15  ;;  %v6894_v26 = vpack.c.bf16 %v2103_v25, %v2087_v0 }
 0x313   :  { %v976_v18 = vpop.f32.mrb[200].mxu0  ;;  %v10376_v42 = vpack.c.bf16 %v3575_v20, %v3567_v51  ;;  %v3574_v46 = vld [vmem:[#allocation11 + $0x7c0] sm:$0xff]  ;;  %v6896_v60 = vpack.c.bf16 %v2136_v36, %v2120_v35  ;;  %v1914_v20 = vld [vmem:[#allocation9 + $0xb8] sm:$0xff] }
 0x314   :  { %v2384_v23 = vrot.slane %v1874_v2, 1  ;;  %v1586_v19 = vmax.f32 %v1213_v9, %v1214_v8  ;;  %v978_v27 = vpop.f32.mrb[201].mxu0  ;;  %v977_v57 = vadd.f32 %v10219_v53, %v976_v18  ;;  %v2135_v62 = vld [vmem:[#allocation9 + $0x7a0] sm:$0xff]  ;;  %v10384_v59 = vpack.c.bf16 %v3574_v46, %v3566_v3  ;;  %v3329_v9 = vld [vmem:[#allocation11 + $0x18] sm:$0xff]  ;;  %6895 = vmatpush1.bf16.msra.mxu1 %v6894_v26  ;;  %v10394_v26 = vld [vmem:[#allocation8 + $0x30] sm:$0xff] }
 0x315   :  { %12539 = vst [vmem:[#allocation50_spill] sm:$0xff] %v10376_v42  ;;  %v3337_v8 = vld [vmem:[#allocation11 + $0x58] sm:$0xff]  ;;  %v1583_v0 = vmax.f32 %v1581_v45, %v1582_v24  ;;  %7121 = vmatprep.subr.bf16.mxu0 %v10376_v42  ;;  %6897 = vmatprep.subr.bf16.mxu1 %v6896_v60 }
 0x316   :  { %v1587_v37 = vrot.slane %v1586_v19, 4  ;;  %v10380_v1 = vsel %vm2314_vm6, %v2384_v23, %v2383_v56  ;;  %12540 = vst [vmem:[#allocation51_spill] sm:$0xff] %v10384_v59  ;;  %v1898_v56 = vld [vmem:[#allocation9 + $0x38] sm:$0xff]  ;;  %v6898_v23 = vpack.c.bf16 %v2135_v62, %v2119_v54  ;;  %v10390_v27 = vpack.c.bf16 %v3337_v8, %v3329_v9  ;;  %7123 = vmatpush1.bf16.msra.mxu0 %v10384_v59 }
 0x317   :  { %v981_v2 = vpop.f32.mrb[202].mxu0  ;;  %2517 = vmatmul.mubr.f32.gmra.mrb[10].mxu0 %v10380_v1  ;;  %2630 = vmatmul.mubr.f32.gmra.mrb[10].mxu1 %v10380_v1  ;;  %v1215_v36 = vmax.f32 %v977_v57, 0.0  ;;  %v6900_v45 = vpack.c.bf16 %v1914_v20, %v1898_v56  ;;  %v1749_v62 = vrot.slane %v10394_v26, 1 }
 0x318   :  { %v1588_v25 = vmax.f32 %v1586_v19, %v1587_v37  ;;  %v982_v51 = vadd.f32 %v10219_v53, %v981_v2  ;;  %v983_v18 = vpop.f32.mrb[203].mxu0  ;;  %2522 = vmatprep.mubr.f32.mxu0 %v12186_v4  ;;  %2635 = vmatprep.mubr.f32.mxu1 %v12186_v4  ;;  %12541 = vst [vmem:[#allocation52_spill] sm:$0xff] %v10390_v27  ;;  %v1584_v19 = vrot.slane %v1583_v0, 1 }
 0x319   :  { %7125 = vmatprep.subr.bf16.mxu0 %v10390_v27  ;;  %6899 = vmatpush1.bf16.msra.mxu1 %v6898_v23 }
 0x31a   :  { %v1589_v35 = vrot.slane %v1588_v25, 2  ;;  %v1216_v3 = vmax.f32 %v982_v51, 0.0  ;;  %6901 = vmatprep.subr.bf16.mxu1 %v6900_v45  ;;  %v1585_v8 = vmax.f32 %v1583_v0, %v1584_v19  ;;  %v1750_v45 = vrot.slane %v10394_v26, 2 }
 0x31b   :  { %v986_v24 = vpop.f32.mrb[204].mxu0 }
 0x31c   :  { %v1590_v46 = vmax.f32 %v1588_v25, %v1589_v35  ;;  %v1593_v37 = vmax.f32 %v1215_v36, %v1216_v3  ;;  %v988_v2 = vpop.f32.mrb[205].mxu0  ;;  %v987_v57 = vadd.f32 %v10219_v53, %v986_v24  ;;  %v1875_v23 = vadd.f32 %v10394_v26, %v1585_v8 }
 0x31e   :  { %v1591_v54 = vrot.slane %v1590_v46, 1  ;;  %v1594_v9 = vrot.slane %v1593_v37, 4  ;;  %v1217_v36 = vmax.f32 %v987_v57, 0.0 }
 0x31f   :  { %v991_v60 = vpop.f32.mrb[206].mxu0 }
 0x320   :  { %v1592_v51 = vmax.f32 %v1590_v46, %v1591_v54  ;;  %v1595_v18 = vmax.f32 %v1593_v37, %v1594_v9  ;;  %v992_v56 = vadd.f32 %v10219_v53, %v991_v60  ;;  %v993_v20 = vpop.f32.mrb[207].mxu0 }
 0x322   :  { %v1876_v25 = vadd.f32 %v1749_v62, %v1592_v51  ;;  %v1596_v35 = vrot.slane %v1595_v18, 2  ;;  %v1218_v3 = vmax.f32 %v992_v56, 0.0 }
 0x323   :  { %v996_v2 = vpop.f32.mrb[208].mxu0 }
 0x324   :  { %v2386_v4 = vrot.slane %v1876_v25, 7  ;;  %v1597_v59 = vmax.f32 %v1595_v18, %v1596_v35  ;;  %v1600_v42 = vmax.f32 %v1217_v36, %v1218_v3  ;;  %v998_v15 = vpop.f32.mrb[209].mxu0  ;;  %v997_v46 = vadd.f32 %v10219_v53, %v996_v2 }
 0x326   :  { %v2387_v0 = vsel %vm2296_vm0, %v2386_v4, %v1875_v23  ;;  %v1598_v24 = vrot.slane %v1597_v59, 1  ;;  %v1601_v19 = vrot.slane %v1600_v42, 4  ;;  %v1219_v51 = vmax.f32 %v997_v46, 0.0 }
 0x327   :  { %v1001_v37 = vpop.f32.mrb[210].mxu0  ;;  %v1751_v4 = vrot.slane %v10394_v26, 3 }
 0x328   :  { %v1599_v54 = vmax.f32 %v1597_v59, %v1598_v24  ;;  %v1602_v62 = vmax.f32 %v1600_v42, %v1601_v19  ;;  %v1002_v9 = vadd.f32 %v10219_v53, %v1001_v37  ;;  %v1003_v57 = vpop.f32.mrb[211].mxu0  ;;  %v10409_v53 = vld [vmem:[%s12178_s2] ss:$0 sm:$0xff] }
 0x32a   :  { %v1877_v60 = vadd.f32 %v1750_v45, %v1599_v54  ;;  %v1603_v8 = vrot.slane %v1602_v62, 2  ;;  %v1220_v18 = vmax.f32 %v1002_v9, 0.0 }
 0x32b   :  { %v1006_v56 = vpop.f32.mrb[212].mxu0 }
 0x32c   :  { %v2388_v15 = vrot.slane %v1877_v60, 6  ;;  %v1604_v20 = vmax.f32 %v1602_v62, %v1603_v8  ;;  %v1607_v25 = vmax.f32 %v1219_v51, %v1220_v18  ;;  %v1008_v35 = vpop.f32.mrb[213].mxu0  ;;  %v1007_v42 = vadd.f32 %v10409_v53, %v1006_v56 }
 0x32d   :  { %v1752_v51 = vrot.slane %v10394_v26, 4 }
 0x32e   :  { %v2389_v36 = vsel %vm2299_vm1, %v2388_v15, %v2387_v0  ;;  %v1605_v3 = vrot.slane %v1604_v20, 1  ;;  %v1608_v2 = vrot.slane %v1607_v25, 4  ;;  %v1221_v54 = vmax.f32 %v1007_v42, 0.0 }
 0x32f   :  { %v1011_v59 = vpop.f32.mrb[214].mxu0 }
 0x330   :  { %v1606_v23 = vmax.f32 %v1604_v20, %v1605_v3  ;;  %v1609_v45 = vmax.f32 %v1607_v25, %v1608_v2  ;;  %v1012_v24 = vadd.f32 %v10409_v53, %v1011_v59  ;;  %v1013_v19 = vpop.f32.mrb[215].mxu0 }
 0x332   :  { %v1878_v46 = vadd.f32 %v1751_v4, %v1606_v23  ;;  %v1610_v37 = vrot.slane %v1609_v45, 2  ;;  %v1222_v62 = vmax.f32 %v1012_v24, 0.0 }
 0x333   :  { %v1016_v0 = vpop.f32.mrb[216].mxu0 }
 0x334   :  { %v2390_v9 = vrot.slane %v1878_v46, 5  ;;  %v1611_v57 = vmax.f32 %v1609_v45, %v1610_v37  ;;  %v1614_v60 = vmax.f32 %v1221_v54, %v1222_v62  ;;  %v1018_v8 = vpop.f32.mrb[217].mxu0  ;;  %v1017_v20 = vadd.f32 %v10409_v53, %v1016_v0 }
 0x336   :  { %v2391_v18 = vsel %vm2302_vm2, %v2390_v9, %v2389_v36  ;;  %v1612_v56 = vrot.slane %v1611_v57, 1  ;;  %v1615_v15 = vrot.slane %v1614_v60, 4  ;;  %v1223_v23 = vmax.f32 %v1017_v20, 0.0 }
 0x337   :  { %v1021_v25 = vpop.f32.mrb[218].mxu0  ;;  %v1753_v36 = vrot.slane %v10394_v26, 5 }
 0x338   :  { %v1613_v35 = vmax.f32 %v1611_v57, %v1612_v56  ;;  %v1616_v3 = vmax.f32 %v1614_v60, %v1615_v15  ;;  %v1022_v4 = vadd.f32 %v10409_v53, %v1021_v25  ;;  %v1023_v2 = vpop.f32.mrb[219].mxu0 }
 0x33a   :  { %v1879_v42 = vadd.f32 %v1752_v51, %v1613_v35  ;;  %v1617_v59 = vrot.slane %v1616_v3, 2  ;;  %v1224_v45 = vmax.f32 %v1022_v4, 0.0 }
 0x33b   :  { %v1026_v24 = vpop.f32.mrb[220].mxu0 }
 0x33c   :  { %v2392_v19 = vrot.slane %v1879_v42, 4  ;;  %v1618_v46 = vmax.f32 %v1616_v3, %v1617_v59  ;;  %v1621_v37 = vmax.f32 %v1223_v23, %v1224_v45  ;;  %v1028_v54 = vpop.f32.mrb[221].mxu0  ;;  %v1027_v57 = vadd.f32 %v10409_v53, %v1026_v24 }
 0x33e   :  { %v2393_v62 = vsel %vm2305_vm3, %v2392_v19, %v2391_v18  ;;  %v1619_v0 = vrot.slane %v1618_v46, 1  ;;  %v1622_v9 = vrot.slane %v1621_v37, 4  ;;  %v1225_v35 = vmax.f32 %v1027_v57, 0.0 }
 0x33f   :  { %v1031_v60 = vpop.f32.mrb[222].mxu0  ;;  %v1754_v18 = vrot.slane %v10394_v26, 6 }
 0x340   :  { %v1620_v8 = vmax.f32 %v1618_v46, %v1619_v0  ;;  %v1623_v56 = vmax.f32 %v1621_v37, %v1622_v9  ;;  %v1032_v51 = vadd.f32 %v10409_v53, %v1031_v60  ;;  %v1033_v15 = vpop.f32.mrb[223].mxu0 }
 0x342   :  { %v1880_v20 = vadd.f32 %v1753_v36, %v1620_v8  ;;  %v1624_v25 = vrot.slane %v1623_v56, 2  ;;  %v1226_v3 = vmax.f32 %v1032_v51, 0.0 }
 0x343   :  { %v1036_v4 = vpop.f32.mrb[224].mxu0 }
 0x344   :  { %v2394_v2 = vrot.slane %v1880_v20, 3  ;;  %v1625_v42 = vmax.f32 %v1623_v56, %v1624_v25  ;;  %v1628_v59 = vmax.f32 %v1225_v35, %v1226_v3  ;;  %v1038_v23 = vpop.f32.mrb[225].mxu0  ;;  %v1037_v46 = vadd.f32 %v10409_v53, %v1036_v4 }
 0x346   :  { %v2395_v45 = vsel %vm2308_vm4, %v2394_v2, %v2393_v62  ;;  %v1626_v24 = vrot.slane %v1625_v42, 1  ;;  %v1629_v19 = vrot.slane %v1628_v59, 4  ;;  %v1227_v8 = vmax.f32 %v1037_v46, 0.0 }
 0x347   :  { %v1041_v37 = vpop.f32.mrb[226].mxu0  ;;  %v1755_v62 = vrot.slane %v10394_v26, 7 }
 0x348   :  { %v1627_v54 = vmax.f32 %v1625_v42, %v1626_v24  ;;  %v1630_v0 = vmax.f32 %v1628_v59, %v1629_v19  ;;  %v1042_v36 = vadd.f32 %v10409_v53, %v1041_v37  ;;  %v1043_v9 = vpop.f32.mrb[227].mxu0 }
 0x34a   :  { %v1881_v57 = vadd.f32 %v1754_v18, %v1627_v54  ;;  %v1631_v60 = vrot.slane %v1630_v0, 2  ;;  %v1228_v56 = vmax.f32 %v1042_v36, 0.0 }
 0x34b   :  { %v1046_v51 = vpop.f32.mrb[228].mxu0 }
 0x34c   :  { %v2396_v15 = vrot.slane %v1881_v57, 2  ;;  %v1632_v20 = vmax.f32 %v1630_v0, %v1631_v60  ;;  %v1635_v25 = vmax.f32 %v1227_v8, %v1228_v56  ;;  %v1048_v35 = vpop.f32.mrb[229].mxu0  ;;  %v1047_v42 = vadd.f32 %v10409_v53, %v1046_v51 }
 0x34d   :  { %v12542_v35 = vmov 0.0  }
 0x34e   :  { %v2397_v3 = vsel %vm2311_vm5, %v2396_v15, %v2395_v45  ;;  %v1633_v4 = vrot.slane %v1632_v20, 1  ;;  %v1636_v2 = vrot.slane %v1635_v25, 4  ;;  %v1229_v37 = vmax.f32 %v1047_v42, 0.0 }
 0x34f   :  { %v1051_v59 = vpop.f32.mrb[230].mxu0 }
 0x350   :  { %v1634_v23 = vmax.f32 %v1632_v20, %v1633_v4  ;;  %v1637_v24 = vmax.f32 %v1635_v25, %v1636_v2  ;;  %v1052_v18 = vadd.f32 %v10409_v53, %v1051_v59  ;;  %v1053_v19 = vpop.f32.mrb[231].mxu0 }
 0x351   :  { %v10438_v19 = vld [vmem:[#allocation8 + $0x38] sm:$0xff] }
 0x352   :  { %v1882_v46 = vadd.f32 %v1755_v62, %v1634_v23  ;;  %v1230_v54 = vmax.f32 %v1052_v18, 0.0  ;;  %v1638_v9 = vrot.slane %v1637_v24, 2 }
 0x353   :  { %v1056_v0 = vpop.f32.mrb[232].mxu0 }
 0x354   :  { %v2398_v36 = vrot.slane %v1882_v46, 1  ;;  %v1642_v57 = vmax.f32 %v1229_v37, %v1230_v54  ;;  %v1058_v26 = vpop.f32.mrb[233].mxu0  ;;  %v1057_v45 = vadd.f32 %v10409_v53, %v1056_v0  ;;  %v1639_v51 = vmax.f32 %v1637_v24, %v1638_v9 }
 0x355   :  { %v1756_v24 = vrot.slane %v10438_v19, 1 }
 0x356   :  { %v1643_v60 = vrot.slane %v1642_v57, 4  ;;  %v10431_v8 = vsel %vm2314_vm6, %v2398_v36, %v2397_v3  ;;  %v1231_v4 = vmax.f32 %v1057_v45, 0.0  ;;  %v1640_v3 = vrot.slane %v1639_v51, 1 }
 0x357   :  { %v1061_v56 = vpop.f32.mrb[234].mxu0  ;;  %2523 = vmatmul.mubr.f32.gmra.mrb[12].mxu0 %v10431_v8  ;;  %2636 = vmatmul.mubr.f32.gmra.mrb[12].mxu1 %v10431_v8 }
 0x358   :  { %v1644_v15 = vmax.f32 %v1642_v57, %v1643_v60  ;;  %v1062_v20 = vadd.f32 %v10409_v53, %v1061_v56  ;;  %v1063_v25 = vpop.f32.mrb[235].mxu0  ;;  %2528 = vmatprep.mubr.f32.mxu0 %v12542_v35  ;;  %2641 = vmatprep.mubr.f32.mxu1 %v12542_v35  ;;  %v1641_v36 = vmax.f32 %v1639_v51, %v1640_v3 }
 0x35a   :  { %v1645_v62 = vrot.slane %v1644_v15, 2  ;;  %v1232_v2 = vmax.f32 %v1062_v20, 0.0 }
 0x35b   :  { %v1066_v42 = vpop.f32.mrb[236].mxu0 }
 0x35c   :  { %v1646_v59 = vmax.f32 %v1644_v15, %v1645_v62  ;;  %v1649_v23 = vmax.f32 %v1231_v4, %v1232_v2  ;;  %v1068_v18 = vpop.f32.mrb[237].mxu0  ;;  %v1067_v54 = vadd.f32 %v10409_v53, %v1066_v42  ;;  %v1883_v62 = vadd.f32 %v10438_v19, %v1641_v36 }
 0x35d   :  { %v1757_v42 = vrot.slane %v10438_v19, 2 }
 0x35e   :  { %v1647_v46 = vrot.slane %v1646_v59, 1  ;;  %v1650_v37 = vrot.slane %v1649_v23, 4  ;;  %v1233_v15 = vmax.f32 %v1067_v54, 0.0 }
 0x35f   :  { %v1071_v0 = vpop.f32.mrb[238].mxu0 }
 0x360   :  { %v1648_v9 = vmax.f32 %v1646_v59, %v1647_v46  ;;  %v1651_v57 = vmax.f32 %v1649_v23, %v1650_v37  ;;  %v1072_v26 = vadd.f32 %v10409_v53, %v1071_v0  ;;  %v1073_v60 = vpop.f32.mrb[239].mxu0 }
 0x362   :  { %v1884_v45 = vadd.f32 %v1756_v24, %v1648_v9  ;;  %v1652_v56 = vrot.slane %v1651_v57, 2  ;;  %v1234_v20 = vmax.f32 %v1072_v26, 0.0 }
 0x363   :  { %v1076_v25 = vpop.f32.mrb[240].mxu0 }
 0x364   :  { %v2400_v4 = vrot.slane %v1884_v45, 7  ;;  %v1653_v2 = vmax.f32 %v1651_v57, %v1652_v56  ;;  %v1656_v18 = vmax.f32 %v1233_v15, %v1234_v20  ;;  %v1078_v47 = vpop.f32.mrb[241].mxu0  ;;  %v1077_v23 = vadd.f32 %v10409_v53, %v1076_v25 }
 0x365   :  { %v1758_v20 = vrot.slane %v10438_v19, 3 }
 0x366   :  { %v2401_v51 = vsel %vm2296_vm0, %v2400_v4, %v1883_v62  ;;  %v1654_v3 = vrot.slane %v1653_v2, 1  ;;  %v1657_v59 = vrot.slane %v1656_v18, 4  ;;  %v1235_v26 = vmax.f32 %v1077_v23, 0.0 }
 0x367   :  { %v1081_v46 = vpop.f32.mrb[242].mxu0 }
 0x368   :  { %v1655_v24 = vmax.f32 %v1653_v2, %v1654_v3  ;;  %v1658_v37 = vmax.f32 %v1656_v18, %v1657_v59  ;;  %v1082_v54 = vadd.f32 %v10409_v53, %v1081_v46  ;;  %v1083_v0 = vpop.f32.mrb[243].mxu0 }
 0x36a   :  { %v1885_v9 = vadd.f32 %v1757_v42, %v1655_v24  ;;  %v1659_v36 = vrot.slane %v1658_v37, 2  ;;  %v1236_v57 = vmax.f32 %v1082_v54, 0.0 }
 0x36b   :  { %v1086_v60 = vpop.f32.mrb[244].mxu0 }
 0x36c   :  { %v2402_v47 = vrot.slane %v1885_v9, 6  ;;  %v1660_v45 = vmax.f32 %v1658_v37, %v1659_v36  ;;  %v1663_v56 = vmax.f32 %v1235_v26, %v1236_v57  ;;  %v1088_v15 = vpop.f32.mrb[245].mxu0  ;;  %v1087_v2 = vadd.f32 %v10409_v53, %v1086_v60 }
 0x36e   :  { %v2403_v62 = vsel %vm2299_vm1, %v2402_v47, %v2401_v51  ;;  %v1661_v25 = vrot.slane %v1660_v45, 1  ;;  %v1664_v4 = vrot.slane %v1663_v56, 4  ;;  %v1237_v54 = vmax.f32 %v1087_v2, 0.0 }
 0x36f   :  { %v1091_v18 = vpop.f32.mrb[246].mxu0  ;;  %v1759_v51 = vrot.slane %v10438_v19, 4 }
 0x370   :  { %v1662_v3 = vmax.f32 %v1660_v45, %v1661_v25  ;;  %v1665_v59 = vmax.f32 %v1663_v56, %v1664_v4  ;;  %v1092_v42 = vadd.f32 %v10409_v53, %v1091_v18  ;;  %v1093_v23 = vpop.f32.mrb[247].mxu0 }
 0x372   :  { %v1886_v46 = vadd.f32 %v1758_v20, %v1662_v3  ;;  %v1666_v24 = vrot.slane %v1665_v59, 2  ;;  %v1238_v37 = vmax.f32 %v1092_v42, 0.0 }
 0x373   :  { %v1096_v0 = vpop.f32.mrb[248].mxu0 }
 0x374   :  { %v2404_v9 = vrot.slane %v1886_v46, 5  ;;  %v1667_v36 = vmax.f32 %v1665_v59, %v1666_v24  ;;  %v1670_v26 = vmax.f32 %v1237_v54, %v1238_v37  ;;  %v1098_v57 = vpop.f32.mrb[249].mxu0  ;;  %v1097_v45 = vadd.f32 %v10409_v53, %v1096_v0 }
 0x376   :  { %v2405_v47 = vsel %vm2302_vm2, %v2404_v9, %v2403_v62  ;;  %v1668_v60 = vrot.slane %v1667_v36, 1  ;;  %v1671_v15 = vrot.slane %v1670_v26, 4  ;;  %v1239_v42 = vmax.f32 %v1097_v45, 0.0 }
 0x377   :  { %v1101_v56 = vpop.f32.mrb[250].mxu0  ;;  %v1760_v62 = vrot.slane %v10438_v19, 5 }
 0x378   :  { %v1669_v25 = vmax.f32 %v1667_v36, %v1668_v60  ;;  %v1672_v4 = vmax.f32 %v1670_v26, %v1671_v15  ;;  %v1102_v20 = vadd.f32 %v10409_v53, %v1101_v56  ;;  %v1103_v2 = vpop.f32.mrb[251].mxu0 }
 0x37a   :  { %v1887_v18 = vadd.f32 %v1759_v51, %v1669_v25  ;;  %v1673_v3 = vrot.slane %v1672_v4, 2  ;;  %v1240_v59 = vmax.f32 %v1102_v20, 0.0 }
 0x37b   :  { %v1106_v23 = vpop.f32.mrb[252].mxu0 }
 0x37c   :  { %v2406_v46 = vrot.slane %v1887_v18, 4  ;;  %v1674_v24 = vmax.f32 %v1672_v4, %v1673_v3  ;;  %v1677_v54 = vmax.f32 %v1239_v42, %v1240_v59  ;;  %v1108_v37 = vpop.f32.mrb[253].mxu0  ;;  %v1107_v36 = vadd.f32 %v10409_v53, %v1106_v23 }
 0x37e   :  { %v2407_v9 = vsel %vm2305_vm3, %v2406_v46, %v2405_v47  ;;  %v1675_v0 = vrot.slane %v1674_v24, 1  ;;  %v1678_v57 = vrot.slane %v1677_v54, 4  ;;  %v1241_v20 = vmax.f32 %v1107_v36, 0.0 }
 0x37f   :  { %v1111_v26 = vpop.f32.mrb[254].mxu0  ;;  %v1761_v46 = vrot.slane %v10438_v19, 6 }
 0x380   :  { %v1676_v60 = vmax.f32 %v1674_v24, %v1675_v0  ;;  %v1679_v15 = vmax.f32 %v1677_v54, %v1678_v57  ;;  %v1112_v51 = vadd.f32 %v10409_v53, %v1111_v26  ;;  %v1113_v45 = vpop.f32.mrb[255].mxu0 }
 0x381   :  { %v1762_v45 = vrot.slane %v10438_v19, 7  ;;  %v1930_v19 = vld [vmem:[#allocation9 + $0x138] sm:$0xff] }
 0x382   :  { %v1888_v56 = vadd.f32 %v1760_v62, %v1676_v60  ;;  %v1680_v25 = vrot.slane %v1679_v15, 2  ;;  %v1242_v4 = vmax.f32 %v1112_v51, 0.0 }
 0x383   :  { %v10460_v2 = vpop.f32.mrb[0].mxu0 }
 0x384   :  { %12543 = vst [vmem:[#allocation53_spill] sm:$0xff] %v10460_v2  ;;  %v2408_v18 = vrot.slane %v1888_v56, 3  ;;  %v1681_v3 = vmax.f32 %v1679_v15, %v1680_v25  ;;  %v1684_v42 = vmax.f32 %v1241_v20, %v1242_v4  ;;  %v10462_v47 = vpop.f32.mrb[1].mxu0  ;;  %v1978_v2 = vld [vmem:[#allocation9 + $0x2b8] sm:$0xff] }
 0x385   :  { %12544 = vst [vmem:[#allocation54_spill] sm:$0xff] %v10462_v47  ;;  %v1962_v47 = vld [vmem:[#allocation9 + $0x238] sm:$0xff] }
 0x386   :  { %v2409_v59 = vsel %vm2308_vm4, %v2408_v18, %v2407_v9  ;;  %v1682_v23 = vrot.slane %v1681_v3, 1  ;;  %v1685_v24 = vrot.slane %v1684_v42, 4 }
 0x387   :  { %v10466_v54 = vpop.f32.mrb[2].mxu0 }
 0x388   :  { %12545 = vst [vmem:[#allocation55_spill] sm:$0xff] %v10466_v54  ;;  %v1683_v53 = vmax.f32 %v1681_v3, %v1682_v23  ;;  %v1686_v37 = vmax.f32 %v1684_v42, %v1685_v24  ;;  %v10468_v62 = vpop.f32.mrb[3].mxu0  ;;  %v3328_v3 = vld [vmem:[#allocation11 + $0x10] sm:$0xff]  ;;  %v3385_v54 = vld [vmem:[#allocation11 + $0x1d8] sm:$0xff] }
 0x389   :  { %12546 = vst [vmem:[#allocation56_spill] sm:$0xff] %v10468_v62  ;;  %v3336_v42 = vld [vmem:[#allocation11 + $0x50] sm:$0xff]  ;;  %v3377_v62 = vld [vmem:[#allocation11 + $0x198] sm:$0xff] }
 0x38a   :  { %v1889_v0 = vadd.f32 %v1761_v46, %v1683_v53  ;;  %v1687_v57 = vrot.slane %v1686_v37, 2  ;;  %v1897_v23 = vld [vmem:[#allocation9 + $0x30] sm:$0xff]  ;;  %v3345_v53 = vld [vmem:[#allocation11 + $0x98] sm:$0xff] }
 0x38b   :  { %v10470_v36 = vpop.f32.mrb[4].mxu0  ;;  %v1913_v46 = vld [vmem:[#allocation9 + $0xb0] sm:$0xff] }
 0x38c   :  { %12547 = vst [vmem:[#allocation57_spill] sm:$0xff] %v10470_v36  ;;  %v2410_v26 = vrot.slane %v1889_v0, 2  ;;  %v1688_v60 = vmax.f32 %v1686_v37, %v1687_v57  ;;  %v10472_v15 = vpop.f32.mrb[5].mxu0  ;;  %v3353_v37 = vld [vmem:[#allocation11 + $0xd8] sm:$0xff]  ;;  %v10487_v0 = vpack.c.bf16 %v3336_v42, %v3328_v3  ;;  %v6902_v57 = vpack.c.bf16 %v1913_v46, %v1897_v23  ;;  %v3360_v23 = vld [vmem:[#allocation11 + $0x110] sm:$0xff] }
 0x38d   :  { %12548 = vst [vmem:[#allocation58_spill] sm:$0xff] %v10472_v15  ;;  %v3393_v15 = vld [vmem:[#allocation11 + $0x218] sm:$0xff] }
 0x38e   :  { %v2411_v9 = vsel %vm2311_vm5, %v2410_v26, %v2409_v59  ;;  %v1689_v51 = vrot.slane %v1688_v60, 1  ;;  %v1946_v59 = vld [vmem:[#allocation9 + $0x1b8] sm:$0xff]  ;;  %12551 = vst [vmem:[#allocation61_spill] sm:$0xff] %v10487_v0  ;;  %v3344_v26 = vld [vmem:[#allocation11 + $0x90] sm:$0xff] }
 0x38f   :  { %v10476_v56 = vpop.f32.mrb[6].mxu0  ;;  %v3401_v36 = vld [vmem:[#allocation11 + $0x258] sm:$0xff] }
 0x390   :  { %12549 = vst [vmem:[#allocation59_spill] sm:$0xff] %v10476_v56  ;;  %v1690_v25 = vmax.f32 %v1688_v60, %v1689_v51  ;;  %v10478_v20 = vpop.f32.mrb[7].mxu0  ;;  %v10489_v60 = vpack.c.bf16 %v3353_v37, %v3345_v53  ;;  %v1929_v51 = vld [vmem:[#allocation9 + $0x130] sm:$0xff]  ;;  %v3417_v56 = vld [vmem:[#allocation11 + $0x2d8] sm:$0xff] }
 0x391   :  { %12550 = vst [vmem:[#allocation60_spill] sm:$0xff] %v10478_v20  ;;  %v3368_v53 = vld [vmem:[#allocation11 + $0x150] sm:$0xff]  ;;  %v3409_v20 = vld [vmem:[#allocation11 + $0x298] sm:$0xff] }
 0x392   :  { %v1890_v4 = vadd.f32 %v1762_v45, %v1690_v25  ;;  %12552 = vst [vmem:[#allocation62_spill] sm:$0xff] %v10489_v60  ;;  %v1945_v45 = vld [vmem:[#allocation9 + $0x1b0] sm:$0xff]  ;;  %v6904_v25 = vpack.c.bf16 %v1946_v59, %v1930_v19  ;;  %v6908_v59 = vpack.c.bf16 %v1978_v2, %v1962_v47  ;;  %v10507_v2 = vpack.c.bf16 %v3385_v54, %v3377_v62 }
 0x393   :  { %v6906_v42 = vpack.c.bf16 %v1945_v45, %v1929_v51  ;;  %v1961_v37 = vld [vmem:[#allocation9 + $0x230] sm:$0xff]  ;;  %v10515_v54 = vpack.c.bf16 %v3401_v36, %v3393_v15  ;;  %v10523_v36 = vpack.c.bf16 %v3417_v56, %v3409_v20 }
 0x394   :  { %v2412_v18 = vrot.slane %v1890_v4, 1  ;;  %v3361_v4 = vld [vmem:[#allocation11 + $0x118] sm:$0xff]  ;;  %v1977_v19 = vld [vmem:[#allocation9 + $0x2b0] sm:$0xff]  ;;  %12556 = vst [vmem:[#allocation66_spill] sm:$0xff] %v10507_v2 }
 0x395   :  { %v6910_v51 = vpack.c.bf16 %v1977_v19, %v1961_v37  ;;  %v3376_v45 = vld [vmem:[#allocation11 + $0x190] sm:$0xff]  ;;  %12558 = vst [vmem:[#allocation68_spill] sm:$0xff] %v10515_v54  ;;  %12560 = vst [vmem:[#allocation70_spill] sm:$0xff] %v10523_v36 }
 0x396   :  { %v10481_v24 = vsel %vm2314_vm6, %v2412_v18, %v2411_v9  ;;  %v3352_v9 = vld [vmem:[#allocation11 + $0xd0] sm:$0xff]  ;;  %v3369_v18 = vld [vmem:[#allocation11 + $0x158] sm:$0xff] }
 0x397   :  { %2529 = vmatmul.mubr.f32.gmra.mrb[14].mxu0 %v10481_v24  ;;  %2642 = vmatmul.mubr.f32.gmra.mrb[14].mxu1 %v10481_v24  ;;  %v10494_v3 = vpack.c.bf16 %v3352_v9, %v3344_v26  ;;  %v10498_v46 = vpack.c.bf16 %v3369_v18, %v3361_v4  ;;  %v2010_v26 = vld [vmem:[#allocation9 + $0x3b8] sm:$0xff]  ;;  %v10503_v9 = vpack.c.bf16 %v3368_v53, %v3360_v23  ;;  %v3384_v47 = vld [vmem:[#allocation11 + $0x1d0] sm:$0xff] }
 0x398   :  { %2712 = vmatprep.mubr.f32.mxu1 %v12542_v35  ;;  %3654 = vmatprep.mubr.f32.mxu0 %v12542_v35  ;;  %v2009_v4 = vld [vmem:[#allocation9 + $0x3b0] sm:$0xff]  ;;  %v2042_v23 = vld [vmem:[#allocation9 + $0x4b8] sm:$0xff]  ;;  %v10511_v53 = vpack.c.bf16 %v3384_v47, %v3376_v45 }
 0x399   :  { %12553 = vst [vmem:[#allocation63_spill] sm:$0xff] %v10494_v3  ;;  %12554 = vst [vmem:[#allocation64_spill] sm:$0xff] %v10498_v46  ;;  %v3392_v19 = vld [vmem:[#allocation11 + $0x210] sm:$0xff]  ;;  %v2074_v45 = vld [vmem:[#allocation9 + $0x5b8] sm:$0xff] }
 0x39a   :  { %12555 = vst [vmem:[#allocation65_spill] sm:$0xff] %v10503_v9  ;;  %12557 = vst [vmem:[#allocation67_spill] sm:$0xff] %v10511_v53  ;;  %v3400_v62 = vld [vmem:[#allocation11 + $0x250] sm:$0xff] }
 0x39b   :  { %2713 = vmatmul.mubr.f32.vlgmr.msra.gmra.mrb[16].mxu1 %v10082_v7  ;;  %3655 = vmatmul.mubr.f32.vlgmr.msra.gmra.mrb[16].mxu0 %v12542_v35  ;;  %v10519_v47 = vpack.c.bf16 %v3400_v62, %v3392_v19  ;;  %v3416_v15 = vld [vmem:[#allocation11 + $0x2d0] sm:$0xff]  ;;  %v2090_v19 = vld [vmem:[#allocation9 + $0x638] sm:$0xff] }
 0x39c   :  { %7127 = vmatpush1.bf16.msra.mxu0 %v10487_v0  ;;  %6903 = vmatpush1.bf16.msra.mxu1 %v6902_v57  ;;  %v1994_v57 = vld [vmem:[#allocation9 + $0x338] sm:$0xff] }
 0x39d   :  { %2718 = vmatprep.mubr.f32.mxu1 %v12542_v35  ;;  %7129 = vmatprep.subr.bf16.mxu0 %v10489_v60  ;;  %v6912_v18 = vpack.c.bf16 %v2010_v26, %v1994_v57  ;;  %v2041_v57 = vld [vmem:[#allocation9 + $0x4b0] sm:$0xff]  ;;  %12559 = vst [vmem:[#allocation69_spill] sm:$0xff] %v10519_v47  ;;  %v2106_v62 = vld [vmem:[#allocation9 + $0x6b8] sm:$0xff] }
 0x39e   :  { %6905 = vmatprep.subr.bf16.mxu1 %v6904_v25  ;;  %3725 = vmatprep.mubr.f32.mxu0 %v12542_v35  ;;  %v1993_v25 = vld [vmem:[#allocation9 + $0x330] sm:$0xff] }
 0x39f   :  { %2719 = vmatmul.mubr.f32.gmra.mrb[18].mxu1 %v10119_v13  ;;  %v6914_v37 = vpack.c.bf16 %v2009_v4, %v1993_v25  ;;  %v3408_v4 = vld [vmem:[#allocation11 + $0x290] sm:$0xff] }
 0x3a0   :  { %7131 = vmatpush1.bf16.msra.mxu0 %v10494_v3  ;;  %6907 = vmatpush1.bf16.msra.mxu1 %v6906_v42  ;;  %v2026_v42 = vld [vmem:[#allocation9 + $0x438] sm:$0xff]  ;;  %v10531_v56 = vpack.c.bf16 %v3416_v15, %v3408_v4 }
 0x3a1   :  { %2724 = vmatprep.mubr.f32.mxu1 %v12542_v35  ;;  %7133 = vmatprep.subr.bf16.mxu0 %v10498_v46  ;;  %v6916_v26 = vpack.c.bf16 %v2042_v23, %v2026_v42  ;;  %v2073_v42 = vld [vmem:[#allocation9 + $0x5b0] sm:$0xff]  ;;  %v2138_v4 = vld [vmem:[#allocation9 + $0x7b8] sm:$0xff] }
 0x3a2   :  { %6909 = vmatprep.subr.bf16.mxu1 %v6908_v59  ;;  %v2025_v59 = vld [vmem:[#allocation9 + $0x430] sm:$0xff]  ;;  %12563 = vst [vmem:[#allocation73_spill] sm:$0xff] %v10531_v56 }
 0x3a3   :  { %2725 = vmatmul.mubr.f32.gmra.mrb[20].mxu1 %v10161_v38  ;;  %v6918_v25 = vpack.c.bf16 %v2041_v57, %v2025_v59  ;;  %v3424_v59 = vld [vmem:[#allocation11 + $0x310] sm:$0xff]  ;;  %v10535_v57 = vpack.c.bf16 %v3433_v39, %v3425_v17 }
 0x3a4   :  { %7135 = vmatpush1.bf16.msra.mxu0 %v10503_v9  ;;  %6911 = vmatpush1.bf16.msra.mxu1 %v6910_v51  ;;  %v2058_v51 = vld [vmem:[#allocation9 + $0x538] sm:$0xff]  ;;  %v3448_v17 = vld [vmem:[#allocation11 + $0x3d0] sm:$0xff] }
 0x3a5   :  { %2730 = vmatprep.mubr.f32.mxu1 %v12542_v35  ;;  %7137 = vmatprep.subr.bf16.mxu0 %v10507_v2  ;;  %v6920_v34 = vpack.c.bf16 %v2074_v45, %v2058_v51  ;;  %12564 = vst [vmem:[#allocation74_spill] sm:$0xff] %v10535_v57  ;;  %v2089_v51 = vld [vmem:[#allocation9 + $0x630] sm:$0xff] }
 0x3a6   :  { %6913 = vmatprep.subr.bf16.mxu1 %v6912_v18  ;;  %v2057_v18 = vld [vmem:[#allocation9 + $0x530] sm:$0xff] }
 0x3a7   :  { %2731 = vmatmul.mubr.f32.gmra.mrb[22].mxu1 %v10198_v44  ;;  %v6922_v20 = vpack.c.bf16 %v2073_v42, %v2057_v18  ;;  %v2105_v45 = vld [vmem:[#allocation9 + $0x6b0] sm:$0xff] }
 0x3a8   :  { %7139 = vmatpush1.bf16.msra.mxu0 %v10511_v53  ;;  %6915 = vmatpush1.bf16.msra.mxu1 %v6914_v37  ;;  %v6926_v18 = vpack.c.bf16 %v2105_v45, %v2089_v51  ;;  %v3440_v42 = vld [vmem:[#allocation11 + $0x390] sm:$0xff] }
 0x3a9   :  { %2736 = vmatprep.mubr.f32.mxu1 %v12542_v35  ;;  %7141 = vmatprep.subr.bf16.mxu0 %v10515_v54  ;;  %v3456_v45 = vld [vmem:[#allocation11 + $0x410] sm:$0xff] }
 0x3aa   :  { %v10525_v23 = vpop.f32.mrb[8].mxu0  ;;  %6917 = vmatprep.subr.bf16.mxu1 %v6916_v26  ;;  %v3432_v26 = vld [vmem:[#allocation11 + $0x350] sm:$0xff] }
 0x3ab   :  { %12561 = vst [vmem:[#allocation71_spill] sm:$0xff] %v10525_v23  ;;  %v10527_v37 = vpop.f32.mrb[9].mxu0  ;;  %2737 = vmatmul.mubr.f32.gmra.mrb[24].mxu1 %v10249_v28  ;;  %v3441_v23 = vld [vmem:[#allocation11 + $0x398] sm:$0xff]  ;;  %v10539_v15 = vpack.c.bf16 %v3432_v26, %v3424_v59  ;;  %v1916_v59 = vld [vmem:[#allocation9 + $0xc8] sm:$0xff]  ;;  %v10547_v26 = vpack.c.bf16 %v3448_v17, %v3440_v42 }
 0x3ac   :  { %12562 = vst [vmem:[#allocation72_spill] sm:$0xff] %v10527_v37  ;;  %7143 = vmatpush1.bf16.msra.mxu0 %v10519_v47  ;;  %6919 = vmatpush1.bf16.msra.mxu1 %v6918_v25  ;;  %v6924_v37 = vpack.c.bf16 %v2106_v62, %v2090_v19  ;;  %v2122_v25 = vld [vmem:[#allocation9 + $0x738] sm:$0xff]  ;;  %v10543_v39 = vpack.c.bf16 %v3449_v55, %v3441_v23  ;;  %v2137_v19 = vld [vmem:[#allocation9 + $0x7b0] sm:$0xff]  ;;  %v1948_v42 = vld [vmem:[#allocation9 + $0x1c8] sm:$0xff] }
 0x3ad   :  { %2742 = vmatprep.mubr.f32.mxu1 %v12542_v35  ;;  %7145 = vmatprep.subr.bf16.mxu0 %v10523_v36  ;;  %12565 = vst [vmem:[#allocation75_spill] sm:$0xff] %v10539_v15  ;;  %v6928_v62 = vpack.c.bf16 %v2138_v4, %v2122_v25  ;;  %12567 = vst [vmem:[#allocation77_spill] sm:$0xff] %v10547_v26  ;;  %v10551_v55 = vpack.c.bf16 %v3465_v21, %v3457_v14  ;;  %v3464_v23 = vld [vmem:[#allocation11 + $0x450] sm:$0xff]  ;;  %v1915_v25 = vld [vmem:[#allocation9 + $0xc0] sm:$0xff] }
 0x3ae   :  { %6921 = vmatprep.subr.bf16.mxu1 %v6920_v34  ;;  %12566 = vst [vmem:[#allocation76_spill] sm:$0xff] %v10543_v39  ;;  %v2121_v34 = vld [vmem:[#allocation9 + $0x730] sm:$0xff]  ;;  %v10555_v17 = vpack.c.bf16 %v3464_v23, %v3456_v45  ;;  %v10559_v21 = vpack.c.bf16 %v3481_v16, %v3473_v31  ;;  %v1980_v45 = vld [vmem:[#allocation9 + $0x2c8] sm:$0xff]  ;;  %v10567_v16 = vpack.c.bf16 %v3497_v43, %v3489_v63 }
 0x3af   :  { %2743 = vmatmul.mubr.f32.gmra.mrb[26].mxu1 %v10380_v1  ;;  %v6930_v51 = vpack.c.bf16 %v2137_v19, %v2121_v34  ;;  %12568 = vst [vmem:[#allocation78_spill] sm:$0xff] %v10551_v55  ;;  %v3472_v19 = vld [vmem:[#allocation11 + $0x490] sm:$0xff]  ;;  %v10575_v43 = vpack.c.bf16 %v3513_v12, %v3505_v22  ;;  %v10583_v12 = vpack.c.bf16 %v3529_v48, %v3521_v33 }
 0x3b0   :  { %7147 = vmatpush1.bf16.msra.mxu0 %v10531_v56  ;;  %6923 = vmatpush1.bf16.msra.mxu1 %v6922_v20  ;;  %v1900_v20 = vld [vmem:[#allocation9 + $0x48] sm:$0xff]  ;;  %12569 = vst [vmem:[#allocation79_spill] sm:$0xff] %v10555_v17  ;;  %12570 = vst [vmem:[#allocation80_spill] sm:$0xff] %v10559_v21  ;;  %v3480_v14 = vld [vmem:[#allocation11 + $0x4d0] sm:$0xff]  ;;  %v10591_v48 = vpack.c.bf16 %v3545_v32, %v3537_v61  ;;  %v10599_v32 = vpack.c.bf16 %v3561_v5, %v3553_v6 }
 0x3b1   :  { %2748 = vmatprep.mubr.f32.mxu1 %v12542_v35  ;;  %7149 = vmatprep.subr.bf16.mxu0 %v10535_v57  ;;  %v6932_v4 = vpack.c.bf16 %v1916_v59, %v1900_v20  ;;  %v1947_v20 = vld [vmem:[#allocation9 + $0x1c0] sm:$0xff]  ;;  %v10563_v23 = vpack.c.bf16 %v3480_v14, %v3472_v19  ;;  %12572 = vst [vmem:[#allocation82_spill] sm:$0xff] %v10567_v16  ;;  %v3496_v31 = vld [vmem:[#allocation11 + $0x550] sm:$0xff]  ;;  %v2012_v19 = vld [vmem:[#allocation9 + $0x3c8] sm:$0xff] }
 0x3b2   :  { %6925 = vmatprep.subr.bf16.mxu1 %v6924_v37  ;;  %v1899_v37 = vld [vmem:[#allocation9 + $0x40] sm:$0xff]  ;;  %12574 = vst [vmem:[#allocation84_spill] sm:$0xff] %v10575_v43  ;;  %v3512_v63 = vld [vmem:[#allocation11 + $0x5d0] sm:$0xff]  ;;  %12576 = vst [vmem:[#allocation86_spill] sm:$0xff] %v10583_v12 }
 0x3b3   :  { %2749 = vmatmul.mubr.f32.gmra.mrb[28].mxu1 %v10431_v8  ;;  %v6934_v34 = vpack.c.bf16 %v1915_v25, %v1899_v37  ;;  %12571 = vst [vmem:[#allocation81_spill] sm:$0xff] %v10563_v23  ;;  %v3488_v25 = vld [vmem:[#allocation11 + $0x510] sm:$0xff]  ;;  %12578 = vst [vmem:[#allocation88_spill] sm:$0xff] %v10591_v48 }
 0x3b4   :  { %7151 = vmatpush1.bf16.msra.mxu0 %v10539_v15  ;;  %6927 = vmatpush1.bf16.msra.mxu1 %v6926_v18  ;;  %v1932_v18 = vld [vmem:[#allocation9 + $0x148] sm:$0xff]  ;;  %v10571_v14 = vpack.c.bf16 %v3496_v31, %v3488_v25  ;;  %v3528_v22 = vld [vmem:[#allocation11 + $0x650] sm:$0xff]  ;;  %12580 = vst [vmem:[#allocation90_spill] sm:$0xff] %v10599_v32 }
 0x3b5   :  { %2754 = vmatprep.mubr.f32.mxu1 %v12542_v35  ;;  %7153 = vmatprep.subr.bf16.mxu0 %v10543_v39  ;;  %v6936_v59 = vpack.c.bf16 %v1948_v42, %v1932_v18  ;;  %v1979_v18 = vld [vmem:[#allocation9 + $0x2c0] sm:$0xff]  ;;  %v2044_v25 = vld [vmem:[#allocation9 + $0x4c8] sm:$0xff]  ;;  %v3544_v33 = vld [vmem:[#allocation11 + $0x6d0] sm:$0xff] }
 0x3b6   :  { %6929 = vmatprep.subr.bf16.mxu1 %v6928_v62  ;;  %v1931_v62 = vld [vmem:[#allocation9 + $0x140] sm:$0xff]  ;;  %12573 = vst [vmem:[#allocation83_spill] sm:$0xff] %v10571_v14  ;;  %v3560_v61 = vld [vmem:[#allocation11 + $0x750] sm:$0xff] }
 0x3b7   :  { %2755 = vmatmul.mubr.f32.gmra.mrb[30].mxu1 %v10481_v24  ;;  %v6938_v37 = vpack.c.bf16 %v1947_v20, %v1931_v62  ;;  %v3504_v20 = vld [vmem:[#allocation11 + $0x590] sm:$0xff] }
 0x3b8   :  { %7155 = vmatpush1.bf16.msra.mxu0 %v10547_v26  ;;  %6931 = vmatpush1.bf16.msra.mxu1 %v6930_v51  ;;  %v1964_v51 = vld [vmem:[#allocation9 + $0x248] sm:$0xff]  ;;  %v10579_v31 = vpack.c.bf16 %v3512_v63, %v3504_v20  ;;  %v3576_v6 = vld [vmem:[#allocation11 + $0x7d0] sm:$0xff] }
 0x3b9   :  { %2825 = vmatprep.mubr.f32.mxu1 %v12542_v35  ;;  %7157 = vmatprep.subr.bf16.mxu0 %v10551_v55  ;;  %v6940_v42 = vpack.c.bf16 %v1980_v45, %v1964_v51  ;;  %v2011_v51 = vld [vmem:[#allocation9 + $0x3c0] sm:$0xff]  ;;  %v2076_v20 = vld [vmem:[#allocation9 + $0x5c8] sm:$0xff] }
 0x3ba   :  { %6933 = vmatprep.subr.bf16.mxu1 %v6932_v4  ;;  %v1963_v4 = vld [vmem:[#allocation9 + $0x240] sm:$0xff]  ;;  %12575 = vst [vmem:[#allocation85_spill] sm:$0xff] %v10579_v31 }
 0x3bb   :  { %2826 = vmatmul.mubr.f32.vlgmr.msra.gmra.mrb[32].mxu1 %v10082_v7  ;;  %v6942_v62 = vpack.c.bf16 %v1979_v18, %v1963_v4  ;;  %v3520_v18 = vld [vmem:[#allocation11 + $0x610] sm:$0xff] }
 0x3bc   :  { %7159 = vmatpush1.bf16.msra.mxu0 %v10555_v17  ;;  %6935 = vmatpush1.bf16.msra.mxu1 %v6934_v34  ;;  %v1996_v34 = vld [vmem:[#allocation9 + $0x348] sm:$0xff]  ;;  %v10587_v63 = vpack.c.bf16 %v3528_v22, %v3520_v18 }
 0x3bd   :  { %2831 = vmatprep.mubr.f32.mxu1 %v12542_v35  ;;  %7161 = vmatprep.subr.bf16.mxu0 %v10559_v21  ;;  %v6944_v45 = vpack.c.bf16 %v2012_v19, %v1996_v34  ;;  %v2043_v34 = vld [vmem:[#allocation9 + $0x4c0] sm:$0xff]  ;;  %v2108_v18 = vld [vmem:[#allocation9 + $0x6c8] sm:$0xff] }
 0x3be   :  { %6937 = vmatprep.subr.bf16.mxu1 %v6936_v59  ;;  %v1995_v59 = vld [vmem:[#allocation9 + $0x340] sm:$0xff]  ;;  %12577 = vst [vmem:[#allocation87_spill] sm:$0xff] %v10587_v63 }
 0x3bf   :  { %2832 = vmatmul.mubr.f32.gmra.mrb[34].mxu1 %v10119_v13  ;;  %v6946_v4 = vpack.c.bf16 %v2011_v51, %v1995_v59  ;;  %v3536_v51 = vld [vmem:[#allocation11 + $0x690] sm:$0xff] }
 0x3c0   :  { %7163 = vmatpush1.bf16.msra.mxu0 %v10563_v23  ;;  %6939 = vmatpush1.bf16.msra.mxu1 %v6938_v37  ;;  %v2028_v37 = vld [vmem:[#allocation9 + $0x448] sm:$0xff]  ;;  %v10595_v22 = vpack.c.bf16 %v3544_v33, %v3536_v51 }
 0x3c1   :  { %2837 = vmatprep.mubr.f32.mxu1 %v12542_v35  ;;  %7165 = vmatprep.subr.bf16.mxu0 %v10567_v16  ;;  %v6948_v19 = vpack.c.bf16 %v2044_v25, %v2028_v37  ;;  %v2075_v37 = vld [vmem:[#allocation9 + $0x5c0] sm:$0xff]  ;;  %v2140_v51 = vld [vmem:[#allocation9 + $0x7c8] sm:$0xff] }
 0x3c2   :  { %6941 = vmatprep.subr.bf16.mxu1 %v6940_v42  ;;  %v2027_v42 = vld [vmem:[#allocation9 + $0x440] sm:$0xff]  ;;  %12579 = vst [vmem:[#allocation89_spill] sm:$0xff] %v10595_v22 }
 0x3c3   :  { %2838 = vmatmul.mubr.f32.gmra.mrb[36].mxu1 %v10161_v38  ;;  %v6950_v59 = vpack.c.bf16 %v2043_v34, %v2027_v42  ;;  %v3552_v34 = vld [vmem:[#allocation11 + $0x710] sm:$0xff] }
 0x3c4   :  { %7167 = vmatpush1.bf16.msra.mxu0 %v10571_v14  ;;  %6943 = vmatpush1.bf16.msra.mxu1 %v6942_v62  ;;  %v2060_v62 = vld [vmem:[#allocation9 + $0x548] sm:$0xff]  ;;  %v10603_v33 = vpack.c.bf16 %v3560_v61, %v3552_v34  ;;  %v1918_v34 = vld [vmem:[#allocation9 + $0xd8] sm:$0xff] }
 0x3c5   :  { %2843 = vmatprep.mubr.f32.mxu1 %v12542_v35  ;;  %7169 = vmatprep.subr.bf16.mxu0 %v10575_v43  ;;  %v6952_v25 = vpack.c.bf16 %v2076_v20, %v2060_v62  ;;  %v2107_v62 = vld [vmem:[#allocation9 + $0x6c0] sm:$0xff] }
 0x3c6   :  { %6945 = vmatprep.subr.bf16.mxu1 %v6944_v45  ;;  %v2059_v45 = vld [vmem:[#allocation9 + $0x540] sm:$0xff]  ;;  %12581 = vst [vmem:[#allocation91_spill] sm:$0xff] %v10603_v33 }
 0x3c7   :  { %2844 = vmatmul.mubr.f32.gmra.mrb[38].mxu1 %v10198_v44  ;;  %v6954_v42 = vpack.c.bf16 %v2075_v37, %v2059_v45  ;;  %v3568_v37 = vld [vmem:[#allocation11 + $0x790] sm:$0xff] }
 0x3c8   :  { %7171 = vmatpush1.bf16.msra.mxu0 %v10579_v31  ;;  %6947 = vmatpush1.bf16.msra.mxu1 %v6946_v4  ;;  %v2092_v4 = vld [vmem:[#allocation9 + $0x648] sm:$0xff]  ;;  %v10611_v61 = vpack.c.bf16 %v3576_v6, %v3568_v37  ;;  %v1950_v37 = vld [vmem:[#allocation9 + $0x1d8] sm:$0xff] }
 0x3c9   :  { %2849 = vmatprep.mubr.f32.mxu1 %v12542_v35  ;;  %7173 = vmatprep.subr.bf16.mxu0 %v10583_v12  ;;  %v6956_v20 = vpack.c.bf16 %v2108_v18, %v2092_v4  ;;  %v3577_v12 = vld [vmem:[#allocation11 + $0x7d8] sm:$0xff]  ;;  %v2139_v4 = vld [vmem:[#allocation9 + $0x7c0] sm:$0xff] }
 0x3ca   :  { %6949 = vmatprep.subr.bf16.mxu1 %v6948_v19  ;;  %v2091_v19 = vld [vmem:[#allocation9 + $0x640] sm:$0xff]  ;;  %v10607_v5 = vpack.c.bf16 %v3577_v12, %v3569_v50  ;;  %12583 = vst [vmem:[#allocation93_spill] sm:$0xff] %v10611_v61 }
 0x3cb   :  { %2850 = vmatmul.mubr.f32.gmra.mrb[40].mxu1 %v10249_v28  ;;  %v6958_v45 = vpack.c.bf16 %v2107_v62, %v2091_v19  ;;  %v3330_v62 = vld [vmem:[#allocation11 + $0x20] sm:$0xff] }
 0x3cc   :  { %7175 = vmatpush1.bf16.msra.mxu0 %v10587_v63  ;;  %6951 = vmatpush1.bf16.msra.mxu1 %v6950_v59  ;;  %v2124_v59 = vld [vmem:[#allocation9 + $0x748] sm:$0xff]  ;;  %12582 = vst [vmem:[#allocation92_spill] sm:$0xff] %v10607_v5  ;;  %v3338_v12 = vld [vmem:[#allocation11 + $0x60] sm:$0xff] }
 0x3cd   :  { %2855 = vmatprep.mubr.f32.mxu1 %v12542_v35  ;;  %7177 = vmatprep.subr.bf16.mxu0 %v10591_v48  ;;  %v6960_v18 = vpack.c.bf16 %v2140_v51, %v2124_v59  ;;  %v3331_v48 = vld [vmem:[#allocation11 + $0x28] sm:$0xff]  ;;  %v1917_v59 = vld [vmem:[#allocation9 + $0xd0] sm:$0xff]  ;;  %v10619_v6 = vpack.c.bf16 %v3338_v12, %v3330_v62  ;;  %v1982_v62 = vld [vmem:[#allocation9 + $0x2d8] sm:$0xff] }
 0x3ce   :  { %6953 = vmatprep.subr.bf16.mxu1 %v6952_v25  ;;  %v2123_v25 = vld [vmem:[#allocation9 + $0x740] sm:$0xff]  ;;  %v3339_v63 = vld [vmem:[#allocation11 + $0x68] sm:$0xff] }
 0x3cf   :  { %2856 = vmatmul.mubr.f32.gmra.mrb[42].mxu1 %v10380_v1  ;;  %v6962_v19 = vpack.c.bf16 %v2139_v4, %v2123_v25  ;;  %v10615_v50 = vpack.c.bf16 %v3339_v63, %v3331_v48  ;;  %12585 = vst [vmem:[#allocation95_spill] sm:$0xff] %v10619_v6  ;;  %v3346_v4 = vld [vmem:[#allocation11 + $0xa0] sm:$0xff] }
 0x3d0   :  { %7179 = vmatpush1.bf16.msra.mxu0 %v10595_v22  ;;  %6955 = vmatpush1.bf16.msra.mxu1 %v6954_v42  ;;  %v1902_v42 = vld [vmem:[#allocation9 + $0x58] sm:$0xff]  ;;  %v3355_v22 = vld [vmem:[#allocation11 + $0xe8] sm:$0xff]  ;;  %v3354_v48 = vld [vmem:[#allocation11 + $0xe0] sm:$0xff] }
 0x3d1   :  { %2861 = vmatprep.mubr.f32.mxu1 %v12542_v35  ;;  %7181 = vmatprep.subr.bf16.mxu0 %v10599_v32  ;;  %12584 = vst [vmem:[#allocation94_spill] sm:$0xff] %v10615_v50  ;;  %v6964_v51 = vpack.c.bf16 %v1918_v34, %v1902_v42  ;;  %v3347_v32 = vld [vmem:[#allocation11 + $0xa8] sm:$0xff]  ;;  %v1949_v42 = vld [vmem:[#allocation9 + $0x1d0] sm:$0xff]  ;;  %v10628_v12 = vpack.c.bf16 %v3354_v48, %v3346_v4  ;;  %v2014_v4 = vld [vmem:[#allocation9 + $0x3d8] sm:$0xff] }
 0x3d2   :  { %6957 = vmatprep.subr.bf16.mxu1 %v6956_v20  ;;  %v1901_v20 = vld [vmem:[#allocation9 + $0x50] sm:$0xff]  ;;  %v10623_v63 = vpack.c.bf16 %v3355_v22, %v3347_v32  ;;  %v3362_v32 = vld [vmem:[#allocation11 + $0x120] sm:$0xff] }
 0x3d3   :  { %2862 = vmatmul.mubr.f32.gmra.mrb[44].mxu1 %v10431_v8  ;;  %v6966_v25 = vpack.c.bf16 %v1917_v59, %v1901_v20  ;;  %12587 = vst [vmem:[#allocation97_spill] sm:$0xff] %v10628_v12  ;;  %v3370_v59 = vld [vmem:[#allocation11 + $0x160] sm:$0xff] }
 0x3d4   :  { %7183 = vmatpush1.bf16.msra.mxu0 %v10603_v33  ;;  %6959 = vmatpush1.bf16.msra.mxu1 %v6958_v45  ;;  %v1934_v45 = vld [vmem:[#allocation9 + $0x158] sm:$0xff]  ;;  %12586 = vst [vmem:[#allocation96_spill] sm:$0xff] %v10623_v63  ;;  %v3371_v33 = vld [vmem:[#allocation11 + $0x168] sm:$0xff]  ;;  %v10637_v48 = vpack.c.bf16 %v3370_v59, %v3362_v32 }
 0x3d5   :  { %2867 = vmatprep.mubr.f32.mxu1 %v12542_v35  ;;  %7185 = vmatprep.subr.bf16.mxu0 %v10607_v5  ;;  %v6968_v34 = vpack.c.bf16 %v1950_v37, %v1934_v45  ;;  %v3363_v5 = vld [vmem:[#allocation11 + $0x128] sm:$0xff]  ;;  %v1981_v45 = vld [vmem:[#allocation9 + $0x2d0] sm:$0xff]  ;;  %v2046_v32 = vld [vmem:[#allocation9 + $0x4d8] sm:$0xff] }
 0x3d6   :  { %6961 = vmatprep.subr.bf16.mxu1 %v6960_v18  ;;  %v1933_v18 = vld [vmem:[#allocation9 + $0x150] sm:$0xff]  ;;  %v10632_v20 = vpack.c.bf16 %v3371_v33, %v3363_v5  ;;  %12589 = vst [vmem:[#allocation99_spill] sm:$0xff] %v10637_v48  ;;  %v3378_v5 = vld [vmem:[#allocation11 + $0x1a0] sm:$0xff] }
 0x3d7   :  { %2868 = vmatmul.mubr.f32.gmra.mrb[46].mxu1 %v10481_v24  ;;  %v6970_v22 = vpack.c.bf16 %v1949_v42, %v1933_v18  ;;  %v3386_v42 = vld [vmem:[#allocation11 + $0x1e0] sm:$0xff] }
 0x3d8   :  { %7187 = vmatpush1.bf16.msra.mxu0 %v10611_v61  ;;  %6963 = vmatpush1.bf16.msra.mxu1 %v6962_v19  ;;  %v1966_v19 = vld [vmem:[#allocation9 + $0x258] sm:$0xff]  ;;  %12588 = vst [vmem:[#allocation98_spill] sm:$0xff] %v10632_v20  ;;  %v3387_v61 = vld [vmem:[#allocation11 + $0x1e8] sm:$0xff]  ;;  %v10645_v59 = vpack.c.bf16 %v3386_v42, %v3378_v5 }
 0x3d9   :  { %2938 = vmatprep.mubr.f32.mxu1 %v12542_v35  ;;  %7189 = vmatprep.subr.bf16.mxu0 %v10615_v50  ;;  %v6972_v37 = vpack.c.bf16 %v1982_v62, %v1966_v19  ;;  %v3379_v50 = vld [vmem:[#allocation11 + $0x1a8] sm:$0xff]  ;;  %v2013_v19 = vld [vmem:[#allocation9 + $0x3d0] sm:$0xff]  ;;  %v2078_v5 = vld [vmem:[#allocation9 + $0x5d8] sm:$0xff] }
 0x3da   :  { %6965 = vmatprep.subr.bf16.mxu1 %v6964_v51  ;;  %v1965_v51 = vld [vmem:[#allocation9 + $0x250] sm:$0xff]  ;;  %v10641_v18 = vpack.c.bf16 %v3387_v61, %v3379_v50  ;;  %12591 = vst [vmem:[#allocation101_spill] sm:$0xff] %v10645_v59  ;;  %v3402_v50 = vld [vmem:[#allocation11 + $0x260] sm:$0xff] }
 0x3db   :  { %3726 = vmatmul.mubr.f32.vlgmr.msra.gmra.mrb[18].mxu0 %v12542_v35  ;;  %2939 = vmatmul.mubr.f32.vlgmr.msra.gmra.mrb[48].mxu1 %v10082_v7  ;;  %v6974_v33 = vpack.c.bf16 %v1981_v45, %v1965_v51  ;;  %v3394_v45 = vld [vmem:[#allocation11 + $0x220] sm:$0xff] }
 0x3dc   :  { %7191 = vmatpush1.bf16.msra.mxu0 %v10619_v6  ;;  %6967 = vmatpush1.bf16.msra.mxu1 %v6966_v25  ;;  %v1998_v25 = vld [vmem:[#allocation9 + $0x358] sm:$0xff]  ;;  %12590 = vst [vmem:[#allocation100_spill] sm:$0xff] %v10641_v18  ;;  %v3403_v6 = vld [vmem:[#allocation11 + $0x268] sm:$0xff]  ;;  %v10653_v42 = vpack.c.bf16 %v3402_v50, %v3394_v45 }
 0x3dd   :  { %2944 = vmatprep.mubr.f32.mxu1 %v12542_v35  ;;  %7193 = vmatprep.subr.bf16.mxu0 %v10623_v63  ;;  %v6976_v62 = vpack.c.bf16 %v2014_v4, %v1998_v25  ;;  %v3395_v63 = vld [vmem:[#allocation11 + $0x228] sm:$0xff]  ;;  %v2045_v25 = vld [vmem:[#allocation9 + $0x4d0] sm:$0xff]  ;;  %v2094_v45 = vld [vmem:[#allocation9 + $0x658] sm:$0xff] }
 0x3de   :  { %6969 = vmatprep.subr.bf16.mxu1 %v6968_v34  ;;  %3796 = vmatprep.mubr.f32.mxu0 %v12542_v35  ;;  %v1997_v34 = vld [vmem:[#allocation9 + $0x350] sm:$0xff]  ;;  %v10649_v61 = vpack.c.bf16 %v3403_v6, %v3395_v63  ;;  %12593 = vst [vmem:[#allocation103_spill] sm:$0xff] %v10653_v42  ;;  %v3418_v63 = vld [vmem:[#allocation11 + $0x2e0] sm:$0xff]  ;;  %v2110_v50 = vld [vmem:[#allocation9 + $0x6d8] sm:$0xff] }
 0x3df   :  { %2945 = vmatmul.mubr.f32.gmra.mrb[50].mxu1 %v10119_v13  ;;  %v6978_v51 = vpack.c.bf16 %v2013_v19, %v1997_v34  ;;  %v3410_v19 = vld [vmem:[#allocation11 + $0x2a0] sm:$0xff] }
 0x3e0   :  { %7195 = vmatpush1.bf16.msra.mxu0 %v10628_v12  ;;  %6971 = vmatpush1.bf16.msra.mxu1 %v6970_v22  ;;  %v2030_v22 = vld [vmem:[#allocation9 + $0x458] sm:$0xff]  ;;  %12592 = vst [vmem:[#allocation102_spill] sm:$0xff] %v10649_v61  ;;  %v3419_v12 = vld [vmem:[#allocation11 + $0x2e8] sm:$0xff] }
 0x3e1   :  { %2950 = vmatprep.mubr.f32.mxu1 %v12542_v35  ;;  %7197 = vmatprep.subr.bf16.mxu0 %v10632_v20  ;;  %v6980_v4 = vpack.c.bf16 %v2046_v32, %v2030_v22  ;;  %v3411_v20 = vld [vmem:[#allocation11 + $0x2a8] sm:$0xff]  ;;  %v2077_v22 = vld [vmem:[#allocation9 + $0x5d0] sm:$0xff] }
 0x3e2   :  { %6973 = vmatprep.subr.bf16.mxu1 %v6972_v37  ;;  %v2029_v37 = vld [vmem:[#allocation9 + $0x450] sm:$0xff]  ;;  %v10657_v6 = vpack.c.bf16 %v3419_v12, %v3411_v20  ;;  %v10665_v12 = vpack.c.bf16 %v3418_v63, %v3410_v19  ;;  %v2142_v19 = vld [vmem:[#allocation9 + $0x7d8] sm:$0xff] }
 0x3e3   :  { %2951 = vmatmul.mubr.f32.gmra.mrb[52].mxu1 %v10161_v38  ;;  %v6982_v34 = vpack.c.bf16 %v2045_v25, %v2029_v37  ;;  %v3426_v37 = vld [vmem:[#allocation11 + $0x320] sm:$0xff] }
 0x3e4   :  { %7199 = vmatpush1.bf16.msra.mxu0 %v10637_v48  ;;  %6975 = vmatpush1.bf16.msra.mxu1 %v6974_v33  ;;  %v2062_v33 = vld [vmem:[#allocation9 + $0x558] sm:$0xff]  ;;  %12594 = vst [vmem:[#allocation104_spill] sm:$0xff] %v10657_v6  ;;  %v3427_v48 = vld [vmem:[#allocation11 + $0x328] sm:$0xff]  ;;  %12597 = vst [vmem:[#allocation107_spill] sm:$0xff] %v10665_v12 }
 0x3e5   :  { %2956 = vmatprep.mubr.f32.mxu1 %v12542_v35  ;;  %7201 = vmatprep.subr.bf16.mxu0 %v10641_v18  ;;  %v6984_v18 = vpack.c.bf16 %v2078_v5, %v2062_v33  ;;  %v2093_v33 = vld [vmem:[#allocation9 + $0x650] sm:$0xff] }
 0x3e6   :  { %6977 = vmatprep.subr.bf16.mxu1 %v6976_v62  ;;  %v2061_v62 = vld [vmem:[#allocation9 + $0x550] sm:$0xff] }
 0x3e7   :  { %2957 = vmatmul.mubr.f32.gmra.mrb[54].mxu1 %v10198_v44  ;;  %v6986_v20 = vpack.c.bf16 %v2077_v22, %v2061_v62  ;;  %v2109_v5 = vld [vmem:[#allocation9 + $0x6d0] sm:$0xff]  ;;  %v3442_v22 = vld [vmem:[#allocation11 + $0x3a0] sm:$0xff] }
 0x3e8   :  { %7203 = vmatpush1.bf16.msra.mxu0 %v10645_v59  ;;  %6979 = vmatpush1.bf16.msra.mxu1 %v6978_v51  ;;  %v3435_v59 = vld [vmem:[#allocation11 + $0x368] sm:$0xff]  ;;  %v6990_v62 = vpack.c.bf16 %v2109_v5, %v2093_v33  ;;  %v3458_v5 = vld [vmem:[#allocation11 + $0x420] sm:$0xff] }
 0x3e9   :  { %2962 = vmatprep.mubr.f32.mxu1 %v12542_v35  ;;  %7205 = vmatprep.subr.bf16.mxu0 %v10649_v61  ;;  %v10669_v25 = vpack.c.bf16 %v3435_v59, %v3427_v48  ;;  %v3451_v61 = vld [vmem:[#allocation11 + $0x3e8] sm:$0xff]  ;;  %v2125_v59 = vld [vmem:[#allocation9 + $0x750] sm:$0xff] }
 0x3ea   :  { %v10659_v32 = vpop.f32.mrb[10].mxu0  ;;  %6981 = vmatprep.subr.bf16.mxu1 %v6980_v4  ;;  %v3434_v4 = vld [vmem:[#allocation11 + $0x360] sm:$0xff] }
 0x3eb   :  { %12595 = vst [vmem:[#allocation105_spill] sm:$0xff] %v10659_v32  ;;  %v10661_v51 = vpop.f32.mrb[11].mxu0  ;;  %2963 = vmatmul.mubr.f32.gmra.mrb[56].mxu1 %v10249_v28  ;;  %12598 = vst [vmem:[#allocation108_spill] sm:$0xff] %v10669_v25  ;;  %v3443_v32 = vld [vmem:[#allocation11 + $0x3a8] sm:$0xff]  ;;  %v10673_v63 = vpack.c.bf16 %v3434_v4, %v3426_v37 }
 0x3ec   :  { %12596 = vst [vmem:[#allocation106_spill] sm:$0xff] %v10661_v51  ;;  %7207 = vmatpush1.bf16.msra.mxu0 %v10653_v42  ;;  %6983 = vmatpush1.bf16.msra.mxu1 %v6982_v34  ;;  %v6988_v51 = vpack.c.bf16 %v2110_v50, %v2094_v45  ;;  %v2126_v34 = vld [vmem:[#allocation9 + $0x758] sm:$0xff]  ;;  %v10677_v48 = vpack.c.bf16 %v3451_v61, %v3443_v32  ;;  %v2141_v45 = vld [vmem:[#allocation9 + $0x7d0] sm:$0xff]  ;;  %v3467_v42 = vld [vmem:[#allocation11 + $0x468] sm:$0xff] }
 0x3ed   :  { %2968 = vmatprep.mubr.f32.mxu1 %v12542_v35  ;;  %7209 = vmatprep.subr.bf16.mxu0 %v10657_v6  ;;  %12599 = vst [vmem:[#allocation109_spill] sm:$0xff] %v10673_v63  ;;  %v6992_v50 = vpack.c.bf16 %v2142_v19, %v2126_v34  ;;  %v3459_v6 = vld [vmem:[#allocation11 + $0x428] sm:$0xff]  ;;  %v6994_v33 = vpack.c.bf16 %v2141_v45, %v2125_v59  ;;  %v3466_v32 = vld [vmem:[#allocation11 + $0x460] sm:$0xff] }
 0x3ee   :  { %6985 = vmatprep.subr.bf16.mxu1 %v6984_v18  ;;  %12600 = vst [vmem:[#allocation110_spill] sm:$0xff] %v10677_v48  ;;  %v3450_v18 = vld [vmem:[#allocation11 + $0x3e0] sm:$0xff]  ;;  %v1920_v37 = vld [vmem:[#allocation9 + $0xe8] sm:$0xff]  ;;  %v10685_v61 = vpack.c.bf16 %v3467_v42, %v3459_v6 }
 0x3ef   :  { %2969 = vmatmul.mubr.f32.gmra.mrb[58].mxu1 %v10380_v1  ;;  %v10681_v4 = vpack.c.bf16 %v3450_v18, %v3442_v22  ;;  %v1919_v34 = vld [vmem:[#allocation9 + $0xe0] sm:$0xff]  ;;  %v1952_v22 = vld [vmem:[#allocation9 + $0x1e8] sm:$0xff]  ;;  %v10689_v18 = vpack.c.bf16 %v3466_v32, %v3458_v5 }
 0x3f0   :  { %7211 = vmatpush1.bf16.msra.mxu0 %v10665_v12  ;;  %6987 = vmatpush1.bf16.msra.mxu1 %v6986_v20  ;;  %v1904_v20 = vld [vmem:[#allocation9 + $0x68] sm:$0xff]  ;;  %12602 = vst [vmem:[#allocation112_spill] sm:$0xff] %v10685_v61  ;;  %v3474_v45 = vld [vmem:[#allocation11 + $0x4a0] sm:$0xff] }
 0x3f1   :  { %2974 = vmatprep.mubr.f32.mxu1 %v12542_v35  ;;  %7213 = vmatprep.subr.bf16.mxu0 %v10669_v25  ;;  %12601 = vst [vmem:[#allocation111_spill] sm:$0xff] %v10681_v4  ;;  %v6996_v19 = vpack.c.bf16 %v1920_v37, %v1904_v20  ;;  %v3475_v25 = vld [vmem:[#allocation11 + $0x4a8] sm:$0xff]  ;;  %12603 = vst [vmem:[#allocation113_spill] sm:$0xff] %v10689_v18  ;;  %v3482_v6 = vld [vmem:[#allocation11 + $0x4e0] sm:$0xff] }
 0x3f2   :  { %6989 = vmatprep.subr.bf16.mxu1 %v6988_v51  ;;  %v1903_v51 = vld [vmem:[#allocation9 + $0x60] sm:$0xff]  ;;  %v3483_v12 = vld [vmem:[#allocation11 + $0x4e8] sm:$0xff]  ;;  %v10697_v32 = vpack.c.bf16 %v3482_v6, %v3474_v45 }
 0x3f3   :  { %2975 = vmatmul.mubr.f32.gmra.mrb[60].mxu1 %v10431_v8  ;;  %v6998_v59 = vpack.c.bf16 %v1919_v34, %v1903_v51  ;;  %v10693_v42 = vpack.c.bf16 %v3483_v12, %v3475_v25  ;;  %v1951_v20 = vld [vmem:[#allocation9 + $0x1e0] sm:$0xff]  ;;  %v1984_v5 = vld [vmem:[#allocation9 + $0x2e8] sm:$0xff] }
 0x3f4   :  { %7215 = vmatpush1.bf16.msra.mxu0 %v10673_v63  ;;  %6991 = vmatpush1.bf16.msra.mxu1 %v6990_v62  ;;  %v1936_v62 = vld [vmem:[#allocation9 + $0x168] sm:$0xff]  ;;  %12605 = vst [vmem:[#allocation115_spill] sm:$0xff] %v10697_v32  ;;  %v3490_v34 = vld [vmem:[#allocation11 + $0x520] sm:$0xff] }
 0x3f5   :  { %2980 = vmatprep.mubr.f32.mxu1 %v12542_v35  ;;  %7217 = vmatprep.subr.bf16.mxu0 %v10677_v48  ;;  %12604 = vst [vmem:[#allocation114_spill] sm:$0xff] %v10693_v42  ;;  %v7000_v37 = vpack.c.bf16 %v1952_v22, %v1936_v62  ;;  %v3491_v48 = vld [vmem:[#allocation11 + $0x528] sm:$0xff]  ;;  %v3498_v25 = vld [vmem:[#allocation11 + $0x560] sm:$0xff] }
 0x3f6   :  { %6993 = vmatprep.subr.bf16.mxu1 %v6992_v50  ;;  %v1935_v50 = vld [vmem:[#allocation9 + $0x160] sm:$0xff]  ;;  %v3499_v63 = vld [vmem:[#allocation11 + $0x568] sm:$0xff]  ;;  %v10705_v6 = vpack.c.bf16 %v3498_v25, %v3490_v34 }
 0x3f7   :  { %2981 = vmatmul.mubr.f32.gmra.mrb[62].mxu1 %v10481_v24  ;;  %v7002_v51 = vpack.c.bf16 %v1951_v20, %v1935_v50  ;;  %v10701_v12 = vpack.c.bf16 %v3499_v63, %v3491_v48  ;;  %v1983_v62 = vld [vmem:[#allocation9 + $0x2e0] sm:$0xff]  ;;  %v2016_v45 = vld [vmem:[#allocation9 + $0x3e8] sm:$0xff] }
 0x3f8   :  { %7219 = vmatpush1.bf16.msra.mxu0 %v10681_v4  ;;  %6995 = vmatpush1.bf16.msra.mxu1 %v6994_v33  ;;  %v1968_v33 = vld [vmem:[#allocation9 + $0x268] sm:$0xff]  ;;  %12607 = vst [vmem:[#allocation117_spill] sm:$0xff] %v10705_v6  ;;  %v3506_v20 = vld [vmem:[#allocation11 + $0x5a0] sm:$0xff] }
 0x3f9   :  { %3051 = vmatprep.mubr.f32.mxu1 %v12542_v35  ;;  %7221 = vmatprep.subr.bf16.mxu0 %v10685_v61  ;;  %12606 = vst [vmem:[#allocation116_spill] sm:$0xff] %v10701_v12  ;;  %v7004_v22 = vpack.c.bf16 %v1984_v5, %v1968_v33  ;;  %v3507_v61 = vld [vmem:[#allocation11 + $0x5a8] sm:$0xff]  ;;  %v3514_v48 = vld [vmem:[#allocation11 + $0x5e0] sm:$0xff] }
 0x3fa   :  { %6997 = vmatprep.subr.bf16.mxu1 %v6996_v19  ;;  %v1967_v19 = vld [vmem:[#allocation9 + $0x260] sm:$0xff]  ;;  %v3515_v4 = vld [vmem:[#allocation11 + $0x5e8] sm:$0xff]  ;;  %v10713_v25 = vpack.c.bf16 %v3514_v48, %v3506_v20 }
 0x3fb   :  { %3052 = vmatmul.mubr.f32.vlgmr.msra.gmra.mrb[14].mxu1 %v10082_v7  ;;  %v7006_v50 = vpack.c.bf16 %v1983_v62, %v1967_v19  ;;  %v10709_v63 = vpack.c.bf16 %v3515_v4, %v3507_v61  ;;  %v2015_v33 = vld [vmem:[#allocation9 + $0x3e0] sm:$0xff]  ;;  %v2048_v34 = vld [vmem:[#allocation9 + $0x4e8] sm:$0xff] }
 0x3fc   :  { %7223 = vmatpush1.bf16.msra.mxu0 %v10689_v18  ;;  %6999 = vmatpush1.bf16.msra.mxu1 %v6998_v59  ;;  %v2000_v59 = vld [vmem:[#allocation9 + $0x368] sm:$0xff]  ;;  %12609 = vst [vmem:[#allocation119_spill] sm:$0xff] %v10713_v25  ;;  %v3522_v62 = vld [vmem:[#allocation11 + $0x620] sm:$0xff] }
 0x3fd   :  { %3057 = vmatprep.mubr.f32.mxu1 %v12542_v35  ;;  %7225 = vmatprep.subr.bf16.mxu0 %v10693_v42  ;;  %12608 = vst [vmem:[#allocation118_spill] sm:$0xff] %v10709_v63  ;;  %v7008_v5 = vpack.c.bf16 %v2016_v45, %v2000_v59  ;;  %v3523_v42 = vld [vmem:[#allocation11 + $0x628] sm:$0xff]  ;;  %v3530_v61 = vld [vmem:[#allocation11 + $0x660] sm:$0xff] }
 0x3fe   :  { %7001 = vmatprep.subr.bf16.mxu1 %v7000_v37  ;;  %v1999_v37 = vld [vmem:[#allocation9 + $0x360] sm:$0xff]  ;;  %v3531_v18 = vld [vmem:[#allocation11 + $0x668] sm:$0xff]  ;;  %v10721_v48 = vpack.c.bf16 %v3530_v61, %v3522_v62 }
 0x3ff   :  { %3058 = vmatmul.mubr.f32.gmra.mrb[12].mxu1 %v10119_v13  ;;  %v7010_v19 = vpack.c.bf16 %v2015_v33, %v1999_v37  ;;  %v10717_v4 = vpack.c.bf16 %v3531_v18, %v3523_v42  ;;  %v2047_v59 = vld [vmem:[#allocation9 + $0x4e0] sm:$0xff]  ;;  %v2080_v20 = vld [vmem:[#allocation9 + $0x5e8] sm:$0xff] }
 0x400   :  { %7227 = vmatpush1.bf16.msra.mxu0 %v10697_v32  ;;  %7003 = vmatpush1.bf16.msra.mxu1 %v7002_v51  ;;  %v2032_v51 = vld [vmem:[#allocation9 + $0x468] sm:$0xff]  ;;  %12611 = vst [vmem:[#allocation121_spill] sm:$0xff] %v10721_v48  ;;  %v3538_v33 = vld [vmem:[#allocation11 + $0x6a0] sm:$0xff] }
 0x401   :  { %3063 = vmatprep.mubr.f32.mxu1 %v12542_v35  ;;  %7229 = vmatprep.subr.bf16.mxu0 %v10701_v12  ;;  %12610 = vst [vmem:[#allocation120_spill] sm:$0xff] %v10717_v4  ;;  %v7012_v45 = vpack.c.bf16 %v2048_v34, %v2032_v51  ;;  %v3539_v12 = vld [vmem:[#allocation11 + $0x6a8] sm:$0xff]  ;;  %v3546_v42 = vld [vmem:[#allocation11 + $0x6e0] sm:$0xff] }
 0x402   :  { %7005 = vmatprep.subr.bf16.mxu1 %v7004_v22  ;;  %v2031_v22 = vld [vmem:[#allocation9 + $0x460] sm:$0xff]  ;;  %v3547_v32 = vld [vmem:[#allocation11 + $0x6e8] sm:$0xff]  ;;  %v10729_v61 = vpack.c.bf16 %v3546_v42, %v3538_v33 }
 0x403   :  { %3064 = vmatmul.mubr.f32.gmra.mrb[10].mxu1 %v10161_v38  ;;  %v7014_v37 = vpack.c.bf16 %v2047_v59, %v2031_v22  ;;  %v10725_v18 = vpack.c.bf16 %v3547_v32, %v3539_v12  ;;  %v2079_v51 = vld [vmem:[#allocation9 + $0x5e0] sm:$0xff]  ;;  %v2112_v62 = vld [vmem:[#allocation9 + $0x6e8] sm:$0xff] }
 0x404   :  { %7231 = vmatpush1.bf16.msra.mxu0 %v10705_v6  ;;  %7007 = vmatpush1.bf16.msra.mxu1 %v7006_v50  ;;  %v2064_v50 = vld [vmem:[#allocation9 + $0x568] sm:$0xff]  ;;  %12613 = vst [vmem:[#allocation123_spill] sm:$0xff] %v10729_v61  ;;  %v3554_v59 = vld [vmem:[#allocation11 + $0x720] sm:$0xff] }
 0x405   :  { %3069 = vmatprep.mubr.f32.mxu1 %v12542_v35  ;;  %7233 = vmatprep.subr.bf16.mxu0 %v10709_v63  ;;  %12612 = vst [vmem:[#allocation122_spill] sm:$0xff] %v10725_v18  ;;  %v7016_v34 = vpack.c.bf16 %v2080_v20, %v2064_v50  ;;  %v3555_v63 = vld [vmem:[#allocation11 + $0x728] sm:$0xff]  ;;  %v3562_v12 = vld [vmem:[#allocation11 + $0x760] sm:$0xff] }
 0x406   :  { %7009 = vmatprep.subr.bf16.mxu1 %v7008_v5  ;;  %v2063_v5 = vld [vmem:[#allocation9 + $0x560] sm:$0xff]  ;;  %v3563_v6 = vld [vmem:[#allocation11 + $0x768] sm:$0xff]  ;;  %v10737_v42 = vpack.c.bf16 %v3562_v12, %v3554_v59  ;;  %v1922_v59 = vld [vmem:[#allocation9 + $0xf8] sm:$0xff] }
 0x407   :  { %3070 = vmatmul.mubr.f32.gmra.mrb[8].mxu1 %v10198_v44  ;;  %v7018_v22 = vpack.c.bf16 %v2079_v51, %v2063_v5  ;;  %v10733_v32 = vpack.c.bf16 %v3563_v6, %v3555_v63  ;;  %v2111_v50 = vld [vmem:[#allocation9 + $0x6e0] sm:$0xff]  ;;  %v2144_v33 = vld [vmem:[#allocation9 + $0x7e8] sm:$0xff] }
 0x408   :  { %7235 = vmatpush1.bf16.msra.mxu0 %v10713_v25  ;;  %7011 = vmatpush1.bf16.msra.mxu1 %v7010_v19  ;;  %v2096_v19 = vld [vmem:[#allocation9 + $0x668] sm:$0xff]  ;;  %12615 = vst [vmem:[#allocation125_spill] sm:$0xff] %v10737_v42  ;;  %v3570_v51 = vld [vmem:[#allocation11 + $0x7a0] sm:$0xff] }
 0x409   :  { %3075 = vmatprep.mubr.f32.mxu1 %v12542_v35  ;;  %7237 = vmatprep.subr.bf16.mxu0 %v10717_v4  ;;  %12614 = vst [vmem:[#allocation124_spill] sm:$0xff] %v10733_v32  ;;  %v7020_v20 = vpack.c.bf16 %v2112_v62, %v2096_v19  ;;  %v3571_v4 = vld [vmem:[#allocation11 + $0x7a8] sm:$0xff]  ;;  %v3578_v63 = vld [vmem:[#allocation11 + $0x7e0] sm:$0xff] }
 0x40a   :  { %7013 = vmatprep.subr.bf16.mxu1 %v7012_v45  ;;  %v2095_v45 = vld [vmem:[#allocation9 + $0x660] sm:$0xff]  ;;  %v3579_v25 = vld [vmem:[#allocation11 + $0x7e8] sm:$0xff]  ;;  %v10745_v12 = vpack.c.bf16 %v3578_v63, %v3570_v51  ;;  %v1954_v51 = vld [vmem:[#allocation9 + $0x1f8] sm:$0xff] }
 0x40b   :  { %3076 = vmatmul.mubr.f32.gmra.mrb[6].mxu1 %v10249_v28  ;;  %v7022_v5 = vpack.c.bf16 %v2111_v50, %v2095_v45  ;;  %v10741_v6 = vpack.c.bf16 %v3579_v25, %v3571_v4  ;;  %v2143_v19 = vld [vmem:[#allocation9 + $0x7e0] sm:$0xff]  ;;  %v3332_v50 = vld [vmem:[#allocation11 + $0x30] sm:$0xff] }
 0x40c   :  { %7239 = vmatpush1.bf16.msra.mxu0 %v10721_v48  ;;  %7015 = vmatpush1.bf16.msra.mxu1 %v7014_v37  ;;  %v2128_v37 = vld [vmem:[#allocation9 + $0x768] sm:$0xff]  ;;  %v3341_v48 = vld [vmem:[#allocation11 + $0x78] sm:$0xff]  ;;  %12617 = vst [vmem:[#allocation127_spill] sm:$0xff] %v10745_v12  ;;  %v3340_v4 = vld [vmem:[#allocation11 + $0x70] sm:$0xff] }
 0x40d   :  { %3081 = vmatprep.mubr.f32.mxu1 %v12542_v35  ;;  %7241 = vmatprep.subr.bf16.mxu0 %v10725_v18  ;;  %12616 = vst [vmem:[#allocation126_spill] sm:$0xff] %v10741_v6  ;;  %v7024_v62 = vpack.c.bf16 %v2144_v33, %v2128_v37  ;;  %v3333_v18 = vld [vmem:[#allocation11 + $0x38] sm:$0xff]  ;;  %v1921_v37 = vld [vmem:[#allocation9 + $0xf0] sm:$0xff]  ;;  %v10753_v63 = vpack.c.bf16 %v3340_v4, %v3332_v50 }
 0x40e   :  { %7017 = vmatprep.subr.bf16.mxu1 %v7016_v34  ;;  %v2127_v34 = vld [vmem:[#allocation9 + $0x760] sm:$0xff]  ;;  %v10749_v25 = vpack.c.bf16 %v3341_v48, %v3333_v18  ;;  %v3356_v18 = vld [vmem:[#allocation11 + $0xf0] sm:$0xff]  ;;  %v1986_v50 = vld [vmem:[#allocation9 + $0x2f8] sm:$0xff] }
 0x40f   :  { %3082 = vmatmul.mubr.f32.gmra.mrb[4].mxu1 %v10380_v1  ;;  %v7026_v45 = vpack.c.bf16 %v2143_v19, %v2127_v34  ;;  %12619 = vst [vmem:[#allocation129_spill] sm:$0xff] %v10753_v63  ;;  %v3348_v19 = vld [vmem:[#allocation11 + $0xb0] sm:$0xff] }
 0x410   :  { %7243 = vmatpush1.bf16.msra.mxu0 %v10729_v61  ;;  %7019 = vmatpush1.bf16.msra.mxu1 %v7018_v22  ;;  %v1906_v22 = vld [vmem:[#allocation9 + $0x78] sm:$0xff]  ;;  %12618 = vst [vmem:[#allocation128_spill] sm:$0xff] %v10749_v25  ;;  %v10762_v4 = vpack.c.bf16 %v3356_v18, %v3348_v19 }
 0x411   :  { %3087 = vmatprep.mubr.f32.mxu1 %v12542_v35  ;;  %7245 = vmatprep.subr.bf16.mxu0 %v10733_v32  ;;  %v7028_v33 = vpack.c.bf16 %v1922_v59, %v1906_v22  ;;  %v3349_v32 = vld [vmem:[#allocation11 + $0xb8] sm:$0xff]  ;;  %v1953_v22 = vld [vmem:[#allocation9 + $0x1f0] sm:$0xff] }
 0x412   :  { %7021 = vmatprep.subr.bf16.mxu1 %v7020_v20  ;;  %v1905_v20 = vld [vmem:[#allocation9 + $0x70] sm:$0xff]  ;;  %v3357_v61 = vld [vmem:[#allocation11 + $0xf8] sm:$0xff]  ;;  %12621 = vst [vmem:[#allocation131_spill] sm:$0xff] %v10762_v4 }
 0x413   :  { %3088 = vmatmul.mubr.f32.gmra.mrb[2].mxu1 %v10431_v8  ;;  %v7030_v34 = vpack.c.bf16 %v1921_v37, %v1905_v20  ;;  %v10757_v48 = vpack.c.bf16 %v3357_v61, %v3349_v32  ;;  %v3364_v32 = vld [vmem:[#allocation11 + $0x130] sm:$0xff]  ;;  %v2018_v19 = vld [vmem:[#allocation9 + $0x3f8] sm:$0xff] }
 0x414   :  { %7247 = vmatpush1.bf16.msra.mxu0 %v10737_v42  ;;  %7023 = vmatpush1.bf16.msra.mxu1 %v7022_v5  ;;  %v1938_v5 = vld [vmem:[#allocation9 + $0x178] sm:$0xff]  ;;  %v3372_v37 = vld [vmem:[#allocation11 + $0x170] sm:$0xff] }
 0x415   :  { %3093 = vmatprep.mubr.f32.mxu1 %v12542_v35  ;;  %7249 = vmatprep.subr.bf16.mxu0 %v10741_v6  ;;  %12620 = vst [vmem:[#allocation130_spill] sm:$0xff] %v10757_v48  ;;  %v7032_v59 = vpack.c.bf16 %v1954_v51, %v1938_v5  ;;  %v3365_v6 = vld [vmem:[#allocation11 + $0x138] sm:$0xff]  ;;  %v1985_v5 = vld [vmem:[#allocation9 + $0x2f0] sm:$0xff]  ;;  %v10771_v18 = vpack.c.bf16 %v3372_v37, %v3364_v32 }
 0x416   :  { %7025 = vmatprep.subr.bf16.mxu1 %v7024_v62  ;;  %v1937_v62 = vld [vmem:[#allocation9 + $0x170] sm:$0xff]  ;;  %v3373_v42 = vld [vmem:[#allocation11 + $0x178] sm:$0xff] }
 0x417   :  { %3094 = vmatmul.mubr.f32.gmra.mrb[0].mxu1 %v10481_v24  ;;  %v7034_v61 = vpack.c.bf16 %v1953_v22, %v1937_v62  ;;  %v10766_v20 = vpack.c.bf16 %v3373_v42, %v3365_v6  ;;  %12623 = vst [vmem:[#allocation133_spill] sm:$0xff] %v10771_v18  ;;  %v3380_v6 = vld [vmem:[#allocation11 + $0x1b0] sm:$0xff]  ;;  %v2050_v32 = vld [vmem:[#allocation9 + $0x4f8] sm:$0xff] }
 0x418   :  { %7251 = vmatpush1.bf16.msra.mxu0 %v10745_v12  ;;  %7027 = vmatpush1.bf16.msra.mxu1 %v7026_v45  ;;  %v1970_v45 = vld [vmem:[#allocation9 + $0x278] sm:$0xff]  ;;  %v3388_v22 = vld [vmem:[#allocation11 + $0x1f0] sm:$0xff] }
 0x419   :  { %3164 = vmatprep.mubr.f32.mxu1 %v12542_v35  ;;  %7253 = vmatprep.subr.bf16.mxu0 %v10749_v25  ;;  %12622 = vst [vmem:[#allocation132_spill] sm:$0xff] %v10766_v20  ;;  %v7036_v51 = vpack.c.bf16 %v1986_v50, %v1970_v45  ;;  %v3381_v25 = vld [vmem:[#allocation11 + $0x1b8] sm:$0xff]  ;;  %v2017_v45 = vld [vmem:[#allocation9 + $0x3f0] sm:$0xff]  ;;  %v10779_v37 = vpack.c.bf16 %v3388_v22, %v3380_v6 }
 0x41a   :  { %7029 = vmatprep.subr.bf16.mxu1 %v7028_v33  ;;  %v1969_v33 = vld [vmem:[#allocation9 + $0x270] sm:$0xff]  ;;  %v3389_v12 = vld [vmem:[#allocation11 + $0x1f8] sm:$0xff] }
 0x41b   :  { %3797 = vmatmul.mubr.f32.vlgmr.msra.gmra.mrb[20].mxu0 %v12542_v35  ;;  %3165 = vmatmul.mubr.f32.vlgmr.msra.gmra.mrb[30].mxu1 %v10082_v7  ;;  %v7038_v42 = vpack.c.bf16 %v1985_v5, %v1969_v33  ;;  %v10775_v62 = vpack.c.bf16 %v3389_v12, %v3381_v25  ;;  %12625 = vst [vmem:[#allocation135_spill] sm:$0xff] %v10779_v37  ;;  %v3396_v5 = vld [vmem:[#allocation11 + $0x230] sm:$0xff]  ;;  %v2082_v6 = vld [vmem:[#allocation9 + $0x5f8] sm:$0xff] }
 0x41c   :  { %7255 = vmatpush1.bf16.msra.mxu0 %v10753_v63  ;;  %7031 = vmatpush1.bf16.msra.mxu1 %v7030_v34  ;;  %v2002_v34 = vld [vmem:[#allocation9 + $0x378] sm:$0xff]  ;;  %v3404_v25 = vld [vmem:[#allocation11 + $0x270] sm:$0xff] }
 0x41d   :  { %3170 = vmatprep.mubr.f32.mxu1 %v12542_v35  ;;  %7257 = vmatprep.subr.bf16.mxu0 %v10757_v48  ;;  %12624 = vst [vmem:[#allocation134_spill] sm:$0xff] %v10775_v62  ;;  %v7040_v50 = vpack.c.bf16 %v2018_v19, %v2002_v34  ;;  %v3397_v48 = vld [vmem:[#allocation11 + $0x238] sm:$0xff]  ;;  %v2049_v34 = vld [vmem:[#allocation9 + $0x4f0] sm:$0xff]  ;;  %v10787_v22 = vpack.c.bf16 %v3404_v25, %v3396_v5 }
 0x41e   :  { %7033 = vmatprep.subr.bf16.mxu1 %v7032_v59  ;;  %3867 = vmatprep.mubr.f32.mxu0 %v12542_v35  ;;  %v2001_v59 = vld [vmem:[#allocation9 + $0x370] sm:$0xff]  ;;  %v3405_v63 = vld [vmem:[#allocation11 + $0x278] sm:$0xff] }
 0x41f   :  { %3171 = vmatmul.mubr.f32.gmra.mrb[28].mxu1 %v10119_v13  ;;  %v7042_v33 = vpack.c.bf16 %v2017_v45, %v2001_v59  ;;  %v10783_v12 = vpack.c.bf16 %v3405_v63, %v3397_v48  ;;  %12627 = vst [vmem:[#allocation137_spill] sm:$0xff] %v10787_v22  ;;  %v3412_v45 = vld [vmem:[#allocation11 + $0x2b0] sm:$0xff]  ;;  %v2098_v5 = vld [vmem:[#allocation9 + $0x678] sm:$0xff] }
 0x420   :  { %7259 = vmatpush1.bf16.msra.mxu0 %v10762_v4  ;;  %7035 = vmatpush1.bf16.msra.mxu1 %v7034_v61  ;;  %v2034_v61 = vld [vmem:[#allocation9 + $0x478] sm:$0xff]  ;;  %v3420_v48 = vld [vmem:[#allocation11 + $0x2f0] sm:$0xff] }
 0x421   :  { %3176 = vmatprep.mubr.f32.mxu1 %v12542_v35  ;;  %7261 = vmatprep.subr.bf16.mxu0 %v10766_v20  ;;  %12626 = vst [vmem:[#allocation136_spill] sm:$0xff] %v10783_v12  ;;  %v7044_v19 = vpack.c.bf16 %v2050_v32, %v2034_v61  ;;  %v3413_v20 = vld [vmem:[#allocation11 + $0x2b8] sm:$0xff]  ;;  %v2081_v61 = vld [vmem:[#allocation9 + $0x5f0] sm:$0xff] }
 0x422   :  { %7037 = vmatprep.subr.bf16.mxu1 %v7036_v51  ;;  %v2033_v51 = vld [vmem:[#allocation9 + $0x470] sm:$0xff]  ;;  %v3421_v4 = vld [vmem:[#allocation11 + $0x2f8] sm:$0xff] }
 0x423   :  { %3177 = vmatmul.mubr.f32.gmra.mrb[26].mxu1 %v10161_v38  ;;  %v7046_v59 = vpack.c.bf16 %v2049_v34, %v2033_v51  ;;  %v10791_v63 = vpack.c.bf16 %v3421_v4, %v3413_v20  ;;  %v2114_v25 = vld [vmem:[#allocation9 + $0x6f8] sm:$0xff]  ;;  %v10799_v4 = vpack.c.bf16 %v3420_v48, %v3412_v45  ;;  %v3428_v51 = vld [vmem:[#allocation11 + $0x330] sm:$0xff] }
 0x424   :  { %7263 = vmatpush1.bf16.msra.mxu0 %v10771_v18  ;;  %7039 = vmatpush1.bf16.msra.mxu1 %v7038_v42  ;;  %v2066_v42 = vld [vmem:[#allocation9 + $0x578] sm:$0xff] }
 0x425   :  { %3182 = vmatprep.mubr.f32.mxu1 %v12542_v35  ;;  %7265 = vmatprep.subr.bf16.mxu0 %v10775_v62  ;;  %12628 = vst [vmem:[#allocation138_spill] sm:$0xff] %v10791_v63  ;;  %v7048_v62 = vpack.c.bf16 %v2082_v6, %v2066_v42  ;;  %v3429_v18 = vld [vmem:[#allocation11 + $0x338] sm:$0xff]  ;;  %12631 = vst [vmem:[#allocation141_spill] sm:$0xff] %v10799_v4  ;;  %v2097_v42 = vld [vmem:[#allocation9 + $0x670] sm:$0xff] }
 0x426   :  { %7041 = vmatprep.subr.bf16.mxu1 %v7040_v50  ;;  %v2065_v50 = vld [vmem:[#allocation9 + $0x570] sm:$0xff]  ;;  %v2146_v45 = vld [vmem:[#allocation9 + $0x7f8] sm:$0xff] }
 0x427   :  { %3183 = vmatmul.mubr.f32.gmra.mrb[24].mxu1 %v10198_v44  ;;  %v7050_v20 = vpack.c.bf16 %v2081_v61, %v2065_v50  ;;  %v2113_v6 = vld [vmem:[#allocation9 + $0x6f0] sm:$0xff] }
 0x428   :  { %7267 = vmatpush1.bf16.msra.mxu0 %v10779_v37  ;;  %7043 = vmatpush1.bf16.msra.mxu1 %v7042_v33  ;;  %v3437_v37 = vld [vmem:[#allocation11 + $0x378] sm:$0xff]  ;;  %v7054_v50 = vpack.c.bf16 %v2113_v6, %v2097_v42  ;;  %v3444_v61 = vld [vmem:[#allocation11 + $0x3b0] sm:$0xff] }
 0x429   :  { %3188 = vmatprep.mubr.f32.mxu1 %v12542_v35  ;;  %7269 = vmatprep.subr.bf16.mxu0 %v10783_v12  ;;  %v10803_v34 = vpack.c.bf16 %v3437_v37, %v3429_v18  ;;  %v3453_v12 = vld [vmem:[#allocation11 + $0x3f8] sm:$0xff]  ;;  %v2129_v37 = vld [vmem:[#allocation9 + $0x770] sm:$0xff] }
 0x42a   :  { %v10793_v32 = vpop.f32.mrb[12].mxu0  ;;  %7045 = vmatprep.subr.bf16.mxu1 %v7044_v19  ;;  %v3436_v19 = vld [vmem:[#allocation11 + $0x370] sm:$0xff]  ;;  %v3485_v42 = vld [vmem:[#allocation11 + $0x4f8] sm:$0xff] }
 0x42b   :  { %12629 = vst [vmem:[#allocation139_spill] sm:$0xff] %v10793_v32  ;;  %v10795_v33 = vpop.f32.mrb[13].mxu0  ;;  %3189 = vmatmul.mubr.f32.gmra.mrb[22].mxu1 %v10249_v28  ;;  %12632 = vst [vmem:[#allocation142_spill] sm:$0xff] %v10803_v34  ;;  %v3445_v32 = vld [vmem:[#allocation11 + $0x3b8] sm:$0xff]  ;;  %v10807_v48 = vpack.c.bf16 %v3436_v19, %v3428_v51  ;;  %v3468_v19 = vld [vmem:[#allocation11 + $0x470] sm:$0xff] }
 0x42c   :  { %12630 = vst [vmem:[#allocation140_spill] sm:$0xff] %v10795_v33  ;;  %7271 = vmatpush1.bf16.msra.mxu0 %v10787_v22  ;;  %7047 = vmatpush1.bf16.msra.mxu1 %v7046_v59  ;;  %v7052_v33 = vpack.c.bf16 %v2114_v25, %v2098_v5  ;;  %v2130_v59 = vld [vmem:[#allocation9 + $0x778] sm:$0xff]  ;;  %v10811_v18 = vpack.c.bf16 %v3453_v12, %v3445_v32  ;;  %v2145_v5 = vld [vmem:[#allocation9 + $0x7f0] sm:$0xff] }
 0x42d   :  { %3194 = vmatprep.mubr.f32.mxu1 %v12542_v35  ;;  %7273 = vmatprep.subr.bf16.mxu0 %v10791_v63  ;;  %12633 = vst [vmem:[#allocation143_spill] sm:$0xff] %v10807_v48  ;;  %v7056_v25 = vpack.c.bf16 %v2146_v45, %v2130_v59  ;;  %v3461_v63 = vld [vmem:[#allocation11 + $0x438] sm:$0xff]  ;;  %v7058_v51 = vpack.c.bf16 %v2145_v5, %v2129_v37  ;;  %v3460_v32 = vld [vmem:[#allocation11 + $0x430] sm:$0xff] }
 0x42e   :  { %7049 = vmatprep.subr.bf16.mxu1 %v7048_v62  ;;  %12634 = vst [vmem:[#allocation144_spill] sm:$0xff] %v10811_v18  ;;  %v3452_v62 = vld [vmem:[#allocation11 + $0x3f0] sm:$0xff]  ;;  %v3469_v22 = vld [vmem:[#allocation11 + $0x478] sm:$0xff]  ;;  %v10823_v6 = vpack.c.bf16 %v3468_v19, %v3460_v32 }
 0x42f   :  { %3195 = vmatmul.mubr.f32.gmra.mrb[20].mxu1 %v10380_v1  ;;  %v10819_v12 = vpack.c.bf16 %v3469_v22, %v3461_v63  ;;  %v3476_v22 = vld [vmem:[#allocation11 + $0x4b0] sm:$0xff]  ;;  %v3493_v45 = vld [vmem:[#allocation11 + $0x538] sm:$0xff] }
 0x430   :  { %7275 = vmatpush1.bf16.msra.mxu0 %v10799_v4  ;;  %7051 = vmatpush1.bf16.msra.mxu1 %v7050_v20  ;;  %v10815_v20 = vpack.c.bf16 %v3452_v62, %v3444_v61  ;;  %12637 = vst [vmem:[#allocation147_spill] sm:$0xff] %v10823_v6  ;;  %v3484_v63 = vld [vmem:[#allocation11 + $0x4f0] sm:$0xff] }
 0x431   :  { %3200 = vmatprep.mubr.f32.mxu1 %v12542_v35  ;;  %7277 = vmatprep.subr.bf16.mxu0 %v10803_v34  ;;  %12636 = vst [vmem:[#allocation146_spill] sm:$0xff] %v10819_v12  ;;  %v10833_v61 = vpack.c.bf16 %v3484_v63, %v3476_v22  ;;  %v3492_v37 = vld [vmem:[#allocation11 + $0x530] sm:$0xff]  ;;  %v3533_v22 = vld [vmem:[#allocation11 + $0x678] sm:$0xff] }
 0x432   :  { %7053 = vmatprep.subr.bf16.mxu1 %v7052_v33  ;;  %12635 = vst [vmem:[#allocation145_spill] sm:$0xff] %v10815_v20  ;;  %v3477_v33 = vld [vmem:[#allocation11 + $0x4b8] sm:$0xff]  ;;  %v3500_v5 = vld [vmem:[#allocation11 + $0x570] sm:$0xff] }
 0x433   :  { %3201 = vmatmul.mubr.f32.gmra.mrb[18].mxu1 %v10431_v8  ;;  %v10827_v59 = vpack.c.bf16 %v3485_v42, %v3477_v33  ;;  %12639 = vst [vmem:[#allocation149_spill] sm:$0xff] %v10833_v61  ;;  %v3508_v19 = vld [vmem:[#allocation11 + $0x5b0] sm:$0xff]  ;;  %v3525_v42 = vld [vmem:[#allocation11 + $0x638] sm:$0xff] }
 0x434   :  { %7279 = vmatpush1.bf16.msra.mxu0 %v10807_v48  ;;  %7055 = vmatpush1.bf16.msra.mxu1 %v7054_v50  ;;  %v3501_v50 = vld [vmem:[#allocation11 + $0x578] sm:$0xff]  ;;  %v3516_v33 = vld [vmem:[#allocation11 + $0x5f0] sm:$0xff]  ;;  %v10856_v63 = vpack.c.bf16 %v3533_v22, %v3525_v42 }
 0x435   :  { %3206 = vmatprep.mubr.f32.mxu1 %v12542_v35  ;;  %7281 = vmatprep.subr.bf16.mxu0 %v10811_v18  ;;  %12638 = vst [vmem:[#allocation148_spill] sm:$0xff] %v10827_v59  ;;  %v10836_v62 = vpack.c.bf16 %v3501_v50, %v3493_v45  ;;  %v3524_v45 = vld [vmem:[#allocation11 + $0x630] sm:$0xff]  ;;  %v3565_v42 = vld [vmem:[#allocation11 + $0x778] sm:$0xff] }
 0x436   :  { %7057 = vmatprep.subr.bf16.mxu1 %v7056_v25  ;;  %v3509_v25 = vld [vmem:[#allocation11 + $0x5b8] sm:$0xff]  ;;  %12644 = vst [vmem:[#allocation154_spill] sm:$0xff] %v10856_v63  ;;  %v3532_v50 = vld [vmem:[#allocation11 + $0x670] sm:$0xff] }
 0x437   :  { %3207 = vmatmul.mubr.f32.gmra.mrb[16].mxu1 %v10481_v24  ;;  %12640 = vst [vmem:[#allocation150_spill] sm:$0xff] %v10836_v62 }
 0x438   :  { %7283 = vmatpush1.bf16.msra.mxu0 %v10815_v20  ;;  %7059 = vmatpush1.bf16.msra.mxu1 %v7058_v51  ;;  %v3517_v51 = vld [vmem:[#allocation11 + $0x5f8] sm:$0xff] }
 0x439   :  { %3277 = vmatprep.mubr.f32.mxu1 %v12542_v35  ;;  %7285 = vmatprep.subr.bf16.mxu0 %v10819_v12  ;;  %v10846_v32 = vpack.c.bf16 %v3517_v51, %v3509_v25  ;;  %v3540_v51 = vld [vmem:[#allocation11 + $0x6b0] sm:$0xff] }
 0x43a   :  { %7893 = vmatprep.subr.bf16.mxu1 %v10390_v27 }
 0x43b   :  { %3278 = vmatmul.mubr.f32.vlgmr.msra.gmra.mrb[46].mxu1 %v10082_v7  ;;  %v10843_v7 = vpack.c.bf16 %v3500_v5, %v3492_v37  ;;  %12642 = vst [vmem:[#allocation152_spill] sm:$0xff] %v10846_v32  ;;  %v3541_v37 = vld [vmem:[#allocation11 + $0x6b8] sm:$0xff] }
 0x43c   :  { %7287 = vmatpush1.bf16.msra.mxu0 %v10823_v6  ;;  %3283 = vmatprep.mubr.f32.mxu1 %v12542_v35  ;;  %v3549_v5 = vld [vmem:[#allocation11 + $0x6f8] sm:$0xff] }
 0x43d   :  { %7289 = vmatprep.subr.bf16.mxu0 %v10827_v59  ;;  %7895 = vmatpush1.bf16.msra.mxu1 %v10487_v0  ;;  %12641 = vst [vmem:[#allocation151_spill] sm:$0xff] %v10843_v7  ;;  %v10866_v25 = vpack.c.bf16 %v3549_v5, %v3541_v37  ;;  %v3573_v37 = vld [vmem:[#allocation11 + $0x7b8] sm:$0xff] }
 0x43e   :  { %7897 = vmatprep.subr.bf16.mxu1 %v10489_v60  ;;  %v3581_v5 = vld [vmem:[#allocation11 + $0x7f8] sm:$0xff] }
 0x43f   :  { %3284 = vmatmul.mubr.f32.gmra.mrb[44].mxu1 %v10119_v13  ;;  %v10853_v13 = vpack.c.bf16 %v3516_v33, %v3508_v19  ;;  %12646 = vst [vmem:[#allocation156_spill] sm:$0xff] %v10866_v25  ;;  %v3548_v19 = vld [vmem:[#allocation11 + $0x6f0] sm:$0xff]  ;;  %v3557_v33 = vld [vmem:[#allocation11 + $0x738] sm:$0xff] }
 0x440   :  { %7291 = vmatpush1.bf16.msra.mxu0 %v10833_v61  ;;  %3289 = vmatprep.mubr.f32.mxu1 %v12542_v35  ;;  %v10876_v22 = vpack.c.bf16 %v3565_v42, %v3557_v33  ;;  %v3580_v33 = vld [vmem:[#allocation11 + $0x7f0] sm:$0xff]  ;;  %v12655_v42 = vld [vmem:[#allocation29_spill] sm:$0xff]  ;;  %v12696_v59 = vld [vmem:[#allocation55_spill] sm:$0xff] }
 0x441   :  { %7293 = vmatprep.subr.bf16.mxu0 %v10836_v62  ;;  %7899 = vmatpush1.bf16.msra.mxu1 %v10494_v3  ;;  %12643 = vst [vmem:[#allocation153_spill] sm:$0xff] %v10853_v13 }
 0x442   :  { %7901 = vmatprep.subr.bf16.mxu1 %v10498_v46  ;;  %12648 = vst [vmem:[#allocation158_spill] sm:$0xff] %v10876_v22 }
 0x443   :  { %3290 = vmatmul.mubr.f32.gmra.mrb[42].mxu1 %v10161_v38  ;;  %v10863_v38 = vpack.c.bf16 %v3532_v50, %v3524_v45  ;;  %v3556_v45 = vld [vmem:[#allocation11 + $0x730] sm:$0xff] }
 0x444   :  { %7295 = vmatpush1.bf16.msra.mxu0 %v10843_v7  ;;  %3295 = vmatprep.mubr.f32.mxu1 %v12542_v35  ;;  %v3564_v50 = vld [vmem:[#allocation11 + $0x770] sm:$0xff] }
 0x445   :  { %7297 = vmatprep.subr.bf16.mxu0 %v10846_v32  ;;  %7903 = vmatpush1.bf16.msra.mxu1 %v10503_v9  ;;  %12645 = vst [vmem:[#allocation155_spill] sm:$0xff] %v10863_v38 }
 0x446   :  { %7905 = vmatprep.subr.bf16.mxu1 %v10507_v2 }
 0x447   :  { %3296 = vmatmul.mubr.f32.gmra.mrb[40].mxu1 %v10198_v44  ;;  %v10873_v44 = vpack.c.bf16 %v3548_v19, %v3540_v51  ;;  %v10886_v51 = vpack.c.bf16 %v3581_v5, %v3573_v37  ;;  %v3572_v19 = vld [vmem:[#allocation11 + $0x7b0] sm:$0xff]  ;;  %v12658_v5 = vld [vmem:[#allocation88_spill] sm:$0xff] }
 0x448   :  { %7299 = vmatpush1.bf16.msra.mxu0 %v10853_v13  ;;  %3301 = vmatprep.mubr.f32.mxu1 %v12542_v35 }
 0x449   :  { %7301 = vmatprep.subr.bf16.mxu0 %v10856_v63  ;;  %7907 = vmatpush1.bf16.msra.mxu1 %v10511_v53  ;;  %12647 = vst [vmem:[#allocation157_spill] sm:$0xff] %v10873_v44  ;;  %12650 = vst [vmem:[#allocation160_spill] sm:$0xff] %v10886_v51 }
 0x44a   :  { %7909 = vmatprep.subr.bf16.mxu1 %v10515_v54 }
 0x44b   :  { %3302 = vmatmul.mubr.f32.gmra.mrb[38].mxu1 %v10249_v28  ;;  %v10883_v28 = vpack.c.bf16 %v3564_v50, %v3556_v45  ;;  %v12656_v45 = vld [vmem:[#allocation30_spill] sm:$0xff]  ;;  %v12657_v50 = vld [vmem:[#allocation87_spill] sm:$0xff] }
 0x44c   :  { %7303 = vmatpush1.bf16.msra.mxu0 %v10863_v38  ;;  %3307 = vmatprep.mubr.f32.mxu1 %v12542_v35  ;;  %v12689_v38 = vld [vmem:[#allocation60_spill] sm:$0xff] }
 0x44d   :  { %7305 = vmatprep.subr.bf16.mxu0 %v10866_v25  ;;  %7911 = vmatpush1.bf16.msra.mxu1 %v10519_v47  ;;  %12649 = vst [vmem:[#allocation159_spill] sm:$0xff] %v10883_v28 }
 0x44e   :  { %7913 = vmatprep.subr.bf16.mxu1 %v10523_v36 }
 0x44f   :  { %3308 = vmatmul.mubr.f32.gmra.mrb[36].mxu1 %v10380_v1  ;;  %v10893_v1 = vpack.c.bf16 %v3580_v33, %v3572_v19  ;;  %v12659_v33 = vld [vmem:[#allocation31_spill] sm:$0xff] }
 0x450   :  { %7307 = vmatpush1.bf16.msra.mxu0 %v10873_v44  ;;  %3313 = vmatprep.mubr.f32.mxu1 %v12542_v35  ;;  %v12688_v44 = vld [vmem:[#allocation59_spill] sm:$0xff] }
 0x451   :  { %7309 = vmatprep.subr.bf16.mxu0 %v10876_v22  ;;  %7915 = vmatpush1.bf16.msra.mxu1 %v10531_v56  ;;  %12651 = vst [vmem:[#allocation161_spill] sm:$0xff] %v10893_v1 }
 0x452   :  { %7917 = vmatprep.subr.bf16.mxu1 %v10535_v57 }
 0x453   :  { %3314 = vmatmul.mubr.f32.gmra.mrb[34].mxu1 %v10431_v8 }
 0x454   :  { %7311 = vmatpush1.bf16.msra.mxu0 %v10883_v28  ;;  %3319 = vmatprep.mubr.f32.mxu1 %v12542_v35  ;;  %v12681_v28 = vld [vmem:[#allocation47_spill] sm:$0xff] }
 0x455   :  { %7313 = vmatprep.subr.bf16.mxu0 %v10886_v51  ;;  %7919 = vmatpush1.bf16.msra.mxu1 %v10539_v15  ;;  %v12680_v51 = vld [vmem:[#allocation46_spill] sm:$0xff] }
 0x456   :  { %7921 = vmatprep.subr.bf16.mxu1 %v10543_v39 }
 0x457   :  { %3320 = vmatmul.mubr.f32.gmra.mrb[32].mxu1 %v10481_v24 }
 0x458   :  { %7315 = vmatpush1.bf16.msra.mxu0 %v10893_v1  ;;  %v12677_v1 = vld [vmem:[#allocation43_spill] sm:$0xff] }
 0x459   :  { %7317 = vmatprep.subr.bf16.mxu0 %v10256_v40  ;;  %7923 = vmatpush1.bf16.msra.mxu1 %v10547_v26  ;;  %v12676_v40 = vld [vmem:[#allocation42_spill] sm:$0xff] }
 0x45a   :  { %7925 = vmatprep.subr.bf16.mxu1 %v10551_v55 }
 0x45b   :  { %3868 = vmatmul.mubr.f32.vlgmr.msra.gmra.mrb[22].mxu0 %v12542_v35  ;;  %v12653_v35 = vld [vmem:[#allocation86_spill] sm:$0xff] }
 0x45c   :  { %7319 = vmatpush1.bf16.msra.mxu0 %v10258_v41  ;;  %v12673_v41 = vld [vmem:[#allocation39_spill] sm:$0xff] }
 0x45d   :  { %7321 = vmatprep.subr.bf16.mxu0 %v10262_v52  ;;  %7927 = vmatpush1.bf16.msra.mxu1 %v10555_v17  ;;  %v12672_v52 = vld [vmem:[#allocation38_spill] sm:$0xff] }
 0x45e   :  { %7929 = vmatprep.subr.bf16.mxu1 %v10559_v21 }
 0x460   :  { %7323 = vmatpush1.bf16.msra.mxu0 %v10266_v58  ;;  %v12669_v58 = vld [vmem:[#allocation93_spill] sm:$0xff] }
 0x461   :  { %7325 = vmatprep.subr.bf16.mxu0 %v10273_v10  ;;  %7931 = vmatpush1.bf16.msra.mxu1 %v10563_v23  ;;  %v12668_v10 = vld [vmem:[#allocation36_spill] sm:$0xff] }
 0x462   :  { %7933 = vmatprep.subr.bf16.mxu1 %v10567_v16 }
 0x464   :  { %7327 = vmatpush1.bf16.msra.mxu0 %v10275_v11  ;;  %v12667_v11 = vld [vmem:[#allocation35_spill] sm:$0xff] }
 0x465   :  { %7329 = vmatprep.subr.bf16.mxu0 %v10281_v29  ;;  %7935 = vmatpush1.bf16.msra.mxu1 %v10571_v14  ;;  %v12666_v29 = vld [vmem:[#allocation92_spill] sm:$0xff] }
 0x466   :  { %7937 = vmatprep.subr.bf16.mxu1 %v10575_v43 }
 0x468   :  { %7331 = vmatpush1.bf16.msra.mxu0 %v10283_v30  ;;  %v12662_v30 = vld [vmem:[#allocation90_spill] sm:$0xff] }
 0x469   :  { %7333 = vmatprep.subr.bf16.mxu0 %v10290_v49  ;;  %7939 = vmatpush1.bf16.msra.mxu1 %v10579_v31  ;;  %v12660_v49 = vld [vmem:[#allocation32_spill] sm:$0xff] }
 0x46a   :  { %v10919_v8 = vpop.f32.mrb[14].mxu0  ;;  %7941 = vmatprep.subr.bf16.mxu1 %v12653_v35 }
 0x46b   :  { %12652 = vst [vmem:[#allocation162_spill] sm:$0xff] %v10919_v8  ;;  %v10922_v24 = vpop.f32.mrb[15].mxu0  ;;  %v12661_v8 = vld [vmem:[#allocation89_spill] sm:$0xff] }
 0x46c   :  { %12654 = vst [vmem:[#allocation163_spill] sm:$0xff] %v10922_v24  ;;  %7335 = vmatpush1.bf16.msra.mxu0 %v12655_v42  ;;  %v12663_v24 = vld [vmem:[#allocation33_spill] sm:$0xff]  ;;  %v12664_v42 = vld [vmem:[#allocation34_spill] sm:$0xff] }
 0x46d   :  { %7337 = vmatprep.subr.bf16.mxu0 %v12656_v45  ;;  %7943 = vmatpush1.bf16.msra.mxu1 %v12657_v50  ;;  %v12665_v45 = vld [vmem:[#allocation91_spill] sm:$0xff] }
 0x46e   :  { %v10927_v37 = vpop.f32.mrb[16].mxu0  ;;  %7945 = vmatprep.subr.bf16.mxu1 %v12658_v5 }
 0x46f   :  { %v10930_v19 = vpop.f32.mrb[17].mxu0 }
 0x470   :  { %7339 = vmatpush1.bf16.msra.mxu0 %v12659_v33  ;;  %v12670_v33 = vld [vmem:[#allocation94_spill] sm:$0xff] }
 0x471   :  { %7341 = vmatprep.subr.bf16.mxu0 %v12660_v49  ;;  %7947 = vmatpush1.bf16.msra.mxu1 %v12661_v8  ;;  %v12671_v49 = vld [vmem:[#allocation37_spill] sm:$0xff] }
 0x472   :  { %7949 = vmatprep.subr.bf16.mxu1 %v12662_v30 }
 0x474   :  { %7343 = vmatpush1.bf16.msra.mxu0 %v12663_v24  ;;  %v12674_v24 = vld [vmem:[#allocation40_spill] sm:$0xff] }
 0x475   :  { %7345 = vmatprep.subr.bf16.mxu0 %v12664_v42  ;;  %7951 = vmatpush1.bf16.msra.mxu1 %v12665_v45  ;;  %v12675_v42 = vld [vmem:[#allocation41_spill] sm:$0xff] }
 0x476   :  { %7953 = vmatprep.subr.bf16.mxu1 %v12666_v29 }
 0x478   :  { %7347 = vmatpush1.bf16.msra.mxu0 %v12667_v11  ;;  %v12678_v11 = vld [vmem:[#allocation44_spill] sm:$0xff] }
 0x479   :  { %7349 = vmatprep.subr.bf16.mxu0 %v12668_v10  ;;  %7955 = vmatpush1.bf16.msra.mxu1 %v12669_v58  ;;  %v12679_v10 = vld [vmem:[#allocation45_spill] sm:$0xff] }
 0x47a   :  { %7957 = vmatprep.subr.bf16.mxu1 %v12670_v33 }
 0x47c   :  { %7351 = vmatpush1.bf16.msra.mxu0 %v12671_v49  ;;  %v12682_v49 = vld [vmem:[#allocation48_spill] sm:$0xff] }
 0x47d   :  { %7353 = vmatprep.subr.bf16.mxu0 %v12672_v52  ;;  %v12683_v52 = vld [vmem:[#allocation49_spill] sm:$0xff] }
 0x480   :  { %7355 = vmatpush1.bf16.msra.mxu0 %v12673_v41  ;;  %v12684_v41 = vld [vmem:[#allocation50_spill] sm:$0xff] }
 0x481   :  { %7357 = vmatprep.subr.bf16.mxu0 %v12674_v24  ;;  %v12685_v24 = vld [vmem:[#allocation51_spill] sm:$0xff] }
 0x484   :  { %7359 = vmatpush1.bf16.msra.mxu0 %v12675_v42 }
 0x485   :  { %7361 = vmatprep.subr.bf16.mxu0 %v12676_v40  ;;  %v2151_v40 = vlaneseq }
 0x487   :  { %v10960_v42 = vshrl.u32 %v2151_v40, 7 }
 0x488   :  { %7363 = vmatpush1.bf16.msra.mxu0 %v12677_v1 }
 0x489   :  { %7365 = vmatprep.subr.bf16.mxu0 %v12678_v11 }
 0x48c   :  { %7367 = vmatpush1.bf16.msra.mxu0 %v12679_v10  ;;  %v2153_v10 = vsub.s32 0, %v10960_v42 }
 0x48d   :  { %7369 = vmatprep.subr.bf16.mxu0 %v12680_v51 }
 0x490   :  { %7371 = vmatpush1.bf16.msra.mxu0 %v12681_v28  ;;  %v10966_v28 = vld [vmem:[%s12181_s5] sm:$0xff] }
 0x491   :  { %7373 = vmatprep.subr.bf16.mxu0 %v12682_v49 }
 0x494   :  { %7375 = vmatpush1.bf16.msra.mxu0 %v12683_v52 }
 0x495   :  { %7377 = vmatprep.subr.bf16.mxu0 %v12684_v41  ;;  %v10971_v41 = vld [vmem:[%s12181_s5 + $0x8] sm:$0xff] }
 0x496   :  { %v2186_v40 = vrot.slane %v10971_v41, %v2153_v10 }
 0x498   :  { %7379 = vmatpush1.bf16.msra.mxu0 %v12685_v24  ;;  %v2157_v24 = vsub.s32 1, %v10960_v42 }
 0x499   :  { %7381 = vmatprep.subr.bf16.mxu0 %v10390_v27  ;;  %v2154_v27 = vrot.slane %v10966_v28, %v2153_v10  ;;  %v12692_v10 = vld [vmem:[#allocation57_spill] sm:$0xff] }
 0x49a   :  { %v2158_v52 = vrot.slane %v10966_v28, %v2157_v24  ;;  %v2190_v49 = vrot.slane %v10971_v41, %v2157_v24  ;;  %v12693_v24 = vld [vmem:[#allocation58_spill] sm:$0xff] }
 0x49b   :  { %v10978_v51 = vadd.f32 %v2186_v40, %v2154_v27 }
 0x49c   :  { %v10980_v22 = vadd.f32 %v2190_v49, %v2158_v52 }
 0x49d   :  { %12686 = vst [vmem:[#allocation164_spill] sm:$0xff] %v10978_v51  ;;  %v9165_v25 = vadd.f32 %v10978_v51, %v12688_v44  ;;  %v9157_v61 = vadd.f32 %v10978_v51, %v12692_v10 }
 0x49e   :  { %12687 = vst [vmem:[#allocation165_spill] sm:$0xff] %v10980_v22  ;;  %v9169_v63 = vadd.f32 %v10980_v22, %v12689_v38  ;;  %v9161_v27 = vadd.f32 %v10980_v22, %v12693_v24  ;;  %v9149_v38 = vadd.f32 %v10978_v51, %v12696_v59 }
 0x4ae   :  { %v3727_v1 = vpop.f32.mrb[18].mxu0 }
 0x4af   :  { %v3729_v11 = vpop.f32.mrb[19].mxu0 }
 0x4be   :  { %v2964_v13 = vpop.f32.mrb[56].mxu1 }
 0x4bf   :  { %v10986_v32 = vadd.f32 %v9165_v25, %v2964_v13  ;;  %v2966_v7 = vpop.f32.mrb[57].mxu1  ;;  %v12697_v13 = vld [vmem:[#allocation56_spill] sm:$0xff] }
 0x4c0   :  { %v10988_v62 = vadd.f32 %v9169_v63, %v2966_v7  ;;  %v9153_v25 = vadd.f32 %v10980_v22, %v12697_v13 }
 0x4c1   :  { %12690 = vst [vmem:[#allocation59_spill] sm:$0xff] %v10986_v32  ;;  %v12700_v32 = vld [vmem:[#allocation53_spill] sm:$0xff] }
 0x4c2   :  { %12691 = vst [vmem:[#allocation60_spill] sm:$0xff] %v10988_v62  ;;  %v2970_v52 = vpop.f32.mrb[58].mxu1  ;;  %v9141_v24 = vadd.f32 %v10978_v51, %v12700_v32 }
 0x4c3   :  { %v10994_v49 = vadd.f32 %v9157_v61, %v2970_v52  ;;  %v2972_v40 = vpop.f32.mrb[59].mxu1  ;;  %v12701_v61 = vld [vmem:[#allocation54_spill] sm:$0xff] }
 0x4c4   :  { %v10996_v44 = vadd.f32 %v9161_v27, %v2972_v40  ;;  %v9145_v52 = vadd.f32 %v10980_v22, %v12701_v61 }
 0x4c5   :  { %12694 = vst [vmem:[#allocation57_spill] sm:$0xff] %v10994_v49 }
 0x4c6   :  { %12695 = vst [vmem:[#allocation58_spill] sm:$0xff] %v10996_v44  ;;  %v2976_v7 = vpop.f32.mrb[60].mxu1 }
 0x4c7   :  { %v11002_v63 = vadd.f32 %v9149_v38, %v2976_v7  ;;  %v2978_v62 = vpop.f32.mrb[61].mxu1  ;;  %v2161_v38 = vsub.s32 2, %v10960_v42 }
 0x4c8   :  { %v11004_v10 = vadd.f32 %v9153_v25, %v2978_v62  ;;  %v2165_v62 = vsub.s32 3, %v10960_v42 }
 0x4c9   :  { %12698 = vst [vmem:[#allocation55_spill] sm:$0xff] %v11002_v63  ;;  %v2162_v32 = vrot.slane %v10966_v28, %v2161_v38  ;;  %v2194_v61 = vrot.slane %v10971_v41, %v2161_v38 }
 0x4ca   :  { %12699 = vst [vmem:[#allocation56_spill] sm:$0xff] %v11004_v10  ;;  %v2982_v27 = vpop.f32.mrb[62].mxu1 }
 0x4cb   :  { %v9142_v40 = vadd.f32 %v9141_v24, %v2982_v27  ;;  %v2984_v44 = vpop.f32.mrb[63].mxu1  ;;  %v2166_v24 = vrot.slane %v10966_v28, %v2165_v62 }
 0x4cc   :  { %v9146_v49 = vadd.f32 %v9145_v52, %v2984_v44  ;;  %v2198_v44 = vrot.slane %v10971_v41, %v2165_v62 }
 0x4cd   :  { %v9143_v59 = vadd.f32 %v9142_v40, %v10927_v37 }
 0x4ce   :  { %v9147_v13 = vadd.f32 %v9146_v49, %v10930_v19  ;;  %v11026_v19 = vadd.f32 %v2194_v61, %v2162_v32  ;;  %v11028_v49 = vadd.f32 %v2198_v44, %v2166_v24  ;;  %v2169_v32 = vsub.s32 4, %v10960_v42 }
 0x4cf   :  { %v6651_v63 = vmul.f32 -1.442695, %v9143_v59  ;;  %v2173_v24 = vsub.s32 5, %v10960_v42 }
 0x4d0   :  { %12706 = vst [vmem:[#allocation168_spill] sm:$0xff] %v11026_v19  ;;  %12707 = vst [vmem:[#allocation169_spill] sm:$0xff] %v11028_v49  ;;  %v6652_v62 = vmul.f32 -1.442695, %v9147_v13 }
 0x4d1   :  { %9412 = vpow2.f32 %v6651_v63  ;;  %v2174_v63 = vrot.slane %v10966_v28, %v2173_v24 }
 0x4d2   :  { %9414 = vpow2.f32 %v6652_v62 }
 0x4e2   :  { %v11013_v7 = vpop.f32.mrb[4].mxu1 }
 0x4e3   :  { %12702 = vst [vmem:[#allocation53_spill] sm:$0xff] %v11013_v7  ;;  %v11016_v25 = vpop.f32.mrb[5].mxu1 }
 0x4e4   :  { %12703 = vst [vmem:[#allocation54_spill] sm:$0xff] %v11016_v25 }
 0x4e6   :  { %v11022_v52 = vpop.f32.mrb[2].mxu1 }
 0x4e7   :  { %12704 = vst [vmem:[#allocation166_spill] sm:$0xff] %v11022_v52  ;;  %v11024_v37 = vpop.f32.mrb[3].mxu1 }
 0x4e8   :  { %12705 = vst [vmem:[#allocation167_spill] sm:$0xff] %v11024_v37 }
 0x4ea   :  { %v3095_v27 = vpop.f32.mrb[0].mxu1 }
 0x4eb   :  { %v9197_v40 = vadd.f32 %v11026_v19, %v3095_v27  ;;  %v3097_v22 = vpop.f32.mrb[1].mxu1 }
 0x4ec   :  { %v9200_v51 = vadd.f32 %v11028_v49, %v3097_v22  ;;  %v9413_v22 = vpop.eup %9412 }
 0x4ed   :  { %v9198_v25 = vadd.f32 %v9197_v40, %v3727_v1  ;;  %v2202_v1 = vrot.slane %v10971_v41, %v2169_v32 }
 0x4ee   :  { %v9201_v38 = vadd.f32 %v9200_v51, %v3729_v11  ;;  %v3798_v7 = vpop.f32.mrb[20].mxu0  ;;  %v9415_v11 = vpop.eup %9414  ;;  %v2170_v51 = vrot.slane %v10966_v28, %v2169_v32 }
 0x4ef   :  { %v3800_v10 = vpop.f32.mrb[21].mxu0  ;;  %v6653_v6 = vmul.f32 -1.442695, %v9198_v25  ;;  %v3889_v40 = vadd.f32 1.0, %v9415_v11 }
 0x4f0   :  { %v6654_v52 = vmul.f32 -1.442695, %v9201_v38  ;;  %v11046_v62 = vadd.f32 %v2202_v1, %v2170_v51 }
 0x4f1   :  { %9416 = vpow2.f32 %v6653_v6  ;;  %v2206_v6 = vrot.slane %v10971_v41, %v2173_v24 }
 0x4f2   :  { %9418 = vpow2.f32 %v6654_v52  ;;  %v3888_v52 = vadd.f32 1.0, %v9413_v22  ;;  %12712 = vst [vmem:[#allocation174_spill] sm:$0xff] %v11046_v62 }
 0x4f4   :  { %9420 = vrcp.f32 %v3888_v52 }
 0x4f5   :  { %9422 = vrcp.f32 %v3889_v40 }
 0x4fb   :  { %v9417_v59 = vpop.eup %9416 }
 0x4fc   :  { %v9419_v25 = vpop.eup %9418  ;;  %v3900_v38 = vadd.f32 1.0, %v9417_v59 }
 0x4fe   :  { %9424 = vrcp.f32 %v3900_v38  ;;  %v9421_v11 = vpop.eup %9420 }
 0x4ff   :  { %v9423_v51 = vpop.eup %9422 }
 0x502   :  { %v11033_v61 = vpop.f32.mrb[20].mxu1 }
 0x503   :  { %12708 = vst [vmem:[#allocation170_spill] sm:$0xff] %v11033_v61  ;;  %v11036_v44 = vpop.f32.mrb[21].mxu1  ;;  %v11048_v61 = vadd.f32 %v2206_v6, %v2174_v63 }
 0x504   :  { %12709 = vst [vmem:[#allocation171_spill] sm:$0xff] %v11036_v44  ;;  %v3901_v44 = vadd.f32 1.0, %v9419_v25 }
 0x505   :  { %12713 = vst [vmem:[#allocation175_spill] sm:$0xff] %v11048_v61 }
 0x506   :  { %v11042_v13 = vpop.f32.mrb[18].mxu1  ;;  %9426 = vrcp.f32 %v3901_v44 }
 0x507   :  { %12710 = vst [vmem:[#allocation172_spill] sm:$0xff] %v11042_v13  ;;  %v11044_v27 = vpop.f32.mrb[19].mxu1 }
 0x508   :  { %12711 = vst [vmem:[#allocation173_spill] sm:$0xff] %v11044_v27  ;;  %v9425_v1 = vpop.eup %9424 }
 0x509   :  { %v3920_v25 = vmul.f32 0.0, %v9425_v1 }
 0x50a   :  { %v3208_v49 = vpop.f32.mrb[16].mxu1 }
 0x50b   :  { %v9235_v32 = vadd.f32 %v11046_v62, %v3208_v49  ;;  %v3210_v37 = vpop.f32.mrb[17].mxu1 }
 0x50c   :  { %v9238_v24 = vadd.f32 %v11048_v61, %v3210_v37 }
 0x50d   :  { %v9236_v13 = vadd.f32 %v9235_v32, %v3798_v7  ;;  %v2177_v7 = vsub.s32 6, %v10960_v42 }
 0x50e   :  { %v9239_v22 = vadd.f32 %v9238_v24, %v3800_v10  ;;  %v2181_v10 = vsub.s32 7, %v10960_v42 }
 0x50f   :  { %9428 = vtanh.f32 %v9236_v13  ;;  %v2178_v13 = vrot.slane %v10966_v28, %v2177_v7  ;;  %v2210_v38 = vrot.slane %v10971_v41, %v2177_v7 }
 0x510   :  { %9430 = vtanh.f32 %v9239_v22  ;;  %v9427_v59 = vpop.eup %9426  ;;  %v2182_v32 = vrot.slane %v10966_v28, %v2181_v10  ;;  %v2214_v24 = vrot.slane %v10971_v41, %v2181_v10 }
 0x511   :  { %v3921_v27 = vmul.f32 0.0, %v9427_v59 }
 0x519   :  { %v9429_v63 = vpop.eup %9428 }
 0x51a   :  { %v9431_v6 = vpop.eup %9430  ;;  %v3922_v52 = vmul.f32 %v9429_v63, %v9421_v11  ;;  %v11070_v11 = vadd.f32 %v2210_v38, %v2178_v13 }
 0x51b   :  { %v3923_v49 = vmul.f32 %v9431_v6, %v9423_v51  ;;  %v11072_v51 = vadd.f32 %v2214_v24, %v2182_v32 }
 0x51c   :  { %v11052_v62 = vadd.f32 %v3922_v52, %v3920_v25 }
 0x51d   :  { %v11054_v40 = vadd.f32 %v3923_v49, %v3921_v27 }
 0x522   :  { %v11057_v37 = vpop.f32.mrb[36].mxu1 }
 0x523   :  { %12714 = vst [vmem:[#allocation176_spill] sm:$0xff] %v11057_v37  ;;  %v11060_v44 = vpop.f32.mrb[37].mxu1  ;;  %v12733_v37 = vld [vmem:[#allocation112_spill] sm:$0xff] }
 0x524   :  { %12715 = vst [vmem:[#allocation177_spill] sm:$0xff] %v11060_v44  ;;  %v12732_v44 = vld [vmem:[#allocation111_spill] sm:$0xff] }
 0x526   :  { %v11066_v22 = vpop.f32.mrb[34].mxu1 }
 0x527   :  { %v11068_v27 = vpop.f32.mrb[35].mxu1 }
 0x52a   :  { %v3321_v1 = vpop.f32.mrb[32].mxu1 }
 0x52b   :  { %v9273_v42 = vadd.f32 %v11070_v11, %v3321_v1  ;;  %v3323_v59 = vpop.f32.mrb[33].mxu1 }
 0x52c   :  { %v9276_v63 = vadd.f32 %v11072_v51, %v3323_v59 }
 0x52e   :  { %v3869_v6 = vpop.f32.mrb[22].mxu0 }
 0x52f   :  { %v9274_v25 = vadd.f32 %v9273_v42, %v3869_v6  ;;  %v3871_v52 = vpop.f32.mrb[23].mxu0  ;;  %v12718_v6 = vld [vmem:[#allocation95_spill] sm:$0xff] }
 0x530   :  { %v9277_v28 = vadd.f32 %v9276_v63, %v3871_v52  ;;  %v12720_v52 = vld [vmem:[#allocation97_spill] sm:$0xff] }
 0x531   :  { %v6655_v49 = vmul.f32 -1.442695, %v9274_v25  ;;  %v12719_v25 = vld [vmem:[#allocation96_spill] sm:$0xff] }
 0x532   :  { %v6656_v41 = vmul.f32 -1.442695, %v9277_v28  ;;  %v12721_v28 = vld [vmem:[#allocation98_spill] sm:$0xff] }
 0x533   :  { %9432 = vpow2.f32 %v6655_v49  ;;  %v12722_v49 = vld [vmem:[#allocation99_spill] sm:$0xff] }
 0x534   :  { %9434 = vpow2.f32 %v6656_v41  ;;  %v12723_v41 = vld [vmem:[#allocation100_spill] sm:$0xff] }
 0x535   :  { %9436 = vtanh.f32 %v11054_v40 }
 0x53d   :  { %v9433_v7 = vpop.eup %9432 }
 0x53e   :  { %v9435_v10 = vpop.eup %9434  ;;  %v3914_v13 = vadd.f32 1.0, %v9433_v7  ;;  %v12724_v7 = vld [vmem:[#allocation101_spill] sm:$0xff] }
 0x53f   :  { %v3915_v38 = vadd.f32 1.0, %v9435_v10  ;;  %v9437_v32 = vpop.eup %9436  ;;  %v12725_v10 = vld [vmem:[#allocation102_spill] sm:$0xff] }
 0x540   :  { %9438 = vrcp.f32 %v3914_v13  ;;  %v12726_v13 = vld [vmem:[#allocation103_spill] sm:$0xff] }
 0x541   :  { %9440 = vrcp.f32 %v3915_v38  ;;  %v12727_v38 = vld [vmem:[#allocation104_spill] sm:$0xff] }
 0x542   :  { %9442 = vtanh.f32 %v11052_v62 }
 0x54a   :  { %v9439_v24 = vpop.eup %9438 }
 0x54b   :  { %v9441_v1 = vpop.eup %9440 }
 0x54c   :  { %v9443_v42 = vpop.eup %9442  ;;  %v11078_v59 = vmul.f32 %v9441_v1, %v9437_v32  ;;  %v12728_v32 = vld [vmem:[#allocation107_spill] sm:$0xff]  ;;  %v12730_v1 = vld [vmem:[#allocation109_spill] sm:$0xff] }
 0x54d   :  { %v11080_v63 = vmul.f32 %v9443_v42, %v9439_v24  ;;  %v12729_v24 = vld [vmem:[#allocation108_spill] sm:$0xff]  ;;  %v12731_v42 = vld [vmem:[#allocation110_spill] sm:$0xff] }
 0x54e   :  { %12716 = vst [vmem:[#allocation178_spill] sm:$0xff] %v11078_v59  ;;  %4004 = vmatprep.mubr.f32.mxu0 %v11078_v59 }
 0x54f   :  { %12717 = vst [vmem:[#allocation179_spill] sm:$0xff] %v11080_v63  ;;  %4005 = vmatmul.mubr.f32.vlgmr.msra.gmra.mrb[24].mxu0 %v11080_v63 }
 0x550   :  { %7383 = vmatpush1.bf16.msra.mxu0 %v10487_v0  ;;  %4075 = vmatprep.mubr.f32.mxu0 %v11078_v59 }
 0x551   :  { %7385 = vmatprep.subr.bf16.mxu0 %v10489_v60 }
 0x554   :  { %7387 = vmatpush1.bf16.msra.mxu0 %v10494_v3 }
 0x555   :  { %7389 = vmatprep.subr.bf16.mxu0 %v10498_v46 }
 0x558   :  { %7391 = vmatpush1.bf16.msra.mxu0 %v10503_v9 }
 0x559   :  { %7393 = vmatprep.subr.bf16.mxu0 %v10507_v2 }
 0x55c   :  { %7395 = vmatpush1.bf16.msra.mxu0 %v10511_v53 }
 0x55d   :  { %7397 = vmatprep.subr.bf16.mxu0 %v10515_v54 }
 0x560   :  { %7399 = vmatpush1.bf16.msra.mxu0 %v10519_v47 }
 0x561   :  { %7401 = vmatprep.subr.bf16.mxu0 %v10523_v36 }
 0x564   :  { %7403 = vmatpush1.bf16.msra.mxu0 %v10531_v56 }
 0x565   :  { %7405 = vmatprep.subr.bf16.mxu0 %v10535_v57 }
 0x568   :  { %7407 = vmatpush1.bf16.msra.mxu0 %v10539_v15 }
 0x569   :  { %7409 = vmatprep.subr.bf16.mxu0 %v10543_v39 }
 0x56c   :  { %7411 = vmatpush1.bf16.msra.mxu0 %v10547_v26 }
 0x56d   :  { %7413 = vmatprep.subr.bf16.mxu0 %v10551_v55 }
 0x570   :  { %7415 = vmatpush1.bf16.msra.mxu0 %v10555_v17 }
 0x571   :  { %7417 = vmatprep.subr.bf16.mxu0 %v10559_v21 }
 0x574   :  { %7419 = vmatpush1.bf16.msra.mxu0 %v10563_v23 }
 0x575   :  { %7421 = vmatprep.subr.bf16.mxu0 %v10567_v16 }
 0x578   :  { %7423 = vmatpush1.bf16.msra.mxu0 %v10571_v14 }
 0x579   :  { %7425 = vmatprep.subr.bf16.mxu0 %v10575_v43 }
 0x57c   :  { %7427 = vmatpush1.bf16.msra.mxu0 %v10579_v31 }
 0x57d   :  { %7429 = vmatprep.subr.bf16.mxu0 %v12653_v35 }
 0x580   :  { %7431 = vmatpush1.bf16.msra.mxu0 %v12657_v50 }
 0x581   :  { %7433 = vmatprep.subr.bf16.mxu0 %v12658_v5 }
 0x584   :  { %7435 = vmatpush1.bf16.msra.mxu0 %v12661_v8 }
 0x585   :  { %7437 = vmatprep.subr.bf16.mxu0 %v12662_v30 }
 0x588   :  { %7439 = vmatpush1.bf16.msra.mxu0 %v12665_v45 }
 0x589   :  { %7441 = vmatprep.subr.bf16.mxu0 %v12666_v29 }
 0x58c   :  { %7443 = vmatpush1.bf16.msra.mxu0 %v12669_v58 }
 0x58d   :  { %7445 = vmatprep.subr.bf16.mxu0 %v12670_v33 }
 0x58f   :  { %4076 = vmatmul.mubr.f32.vlgmr.msra.gmra.mrb[26].mxu0 %v11080_v63 }
 0x590   :  { %7447 = vmatpush1.bf16.msra.mxu0 %v12718_v6  ;;  %4146 = vmatprep.mubr.f32.mxu0 %v11078_v59 }
 0x591   :  { %7449 = vmatprep.subr.bf16.mxu0 %v12719_v25 }
 0x594   :  { %7451 = vmatpush1.bf16.msra.mxu0 %v12720_v52 }
 0x595   :  { %7453 = vmatprep.subr.bf16.mxu0 %v12721_v28 }
 0x598   :  { %7455 = vmatpush1.bf16.msra.mxu0 %v12722_v49 }
 0x599   :  { %7457 = vmatprep.subr.bf16.mxu0 %v12723_v41  ;;  %v12734_v41 = vld [vmem:[#allocation113_spill] sm:$0xff] }
 0x59c   :  { %7459 = vmatpush1.bf16.msra.mxu0 %v12724_v7  ;;  %v12735_v7 = vld [vmem:[#allocation114_spill] sm:$0xff] }
 0x59d   :  { %7461 = vmatprep.subr.bf16.mxu0 %v12725_v10  ;;  %v12736_v10 = vld [vmem:[#allocation115_spill] sm:$0xff] }
 0x5a0   :  { %7463 = vmatpush1.bf16.msra.mxu0 %v12726_v13  ;;  %v12737_v13 = vld [vmem:[#allocation116_spill] sm:$0xff] }
 0x5a1   :  { %7465 = vmatprep.subr.bf16.mxu0 %v12727_v38  ;;  %v12738_v38 = vld [vmem:[#allocation117_spill] sm:$0xff] }
 0x5a4   :  { %7467 = vmatpush1.bf16.msra.mxu0 %v12728_v32  ;;  %v12739_v32 = vld [vmem:[#allocation118_spill] sm:$0xff] }
 0x5a5   :  { %7469 = vmatprep.subr.bf16.mxu0 %v12729_v24  ;;  %v12740_v24 = vld [vmem:[#allocation119_spill] sm:$0xff] }
 0x5a8   :  { %7471 = vmatpush1.bf16.msra.mxu0 %v12730_v1  ;;  %v12741_v1 = vld [vmem:[#allocation120_spill] sm:$0xff] }
 0x5a9   :  { %7473 = vmatprep.subr.bf16.mxu0 %v12731_v42  ;;  %v12742_v42 = vld [vmem:[#allocation121_spill] sm:$0xff] }
 0x5ac   :  { %7475 = vmatpush1.bf16.msra.mxu0 %v12732_v44  ;;  %v12743_v44 = vld [vmem:[#allocation122_spill] sm:$0xff] }
 0x5ad   :  { %7477 = vmatprep.subr.bf16.mxu0 %v12733_v37  ;;  %v12744_v37 = vld [vmem:[#allocation123_spill] sm:$0xff] }
 0x5b0   :  { %7479 = vmatpush1.bf16.msra.mxu0 %v12734_v41  ;;  %v12745_v41 = vld [vmem:[#allocation124_spill] sm:$0xff] }
 0x5b1   :  { %7481 = vmatprep.subr.bf16.mxu0 %v12735_v7  ;;  %v12746_v7 = vld [vmem:[#allocation125_spill] sm:$0xff] }
 0x5b4   :  { %7483 = vmatpush1.bf16.msra.mxu0 %v12736_v10  ;;  %v12747_v10 = vld [vmem:[#allocation126_spill] sm:$0xff] }
 0x5b5   :  { %7485 = vmatprep.subr.bf16.mxu0 %v12737_v13  ;;  %v12748_v13 = vld [vmem:[#allocation127_spill] sm:$0xff] }
 0x5b8   :  { %7487 = vmatpush1.bf16.msra.mxu0 %v12738_v38  ;;  %v12749_v38 = vld [vmem:[#allocation128_spill] sm:$0xff] }
 0x5b9   :  { %7489 = vmatprep.subr.bf16.mxu0 %v12739_v32 }
 0x5bc   :  { %7491 = vmatpush1.bf16.msra.mxu0 %v12740_v24  ;;  %v12750_v24 = vld [vmem:[#allocation129_spill] sm:$0xff] }
 0x5bd   :  { %7493 = vmatprep.subr.bf16.mxu0 %v12741_v1  ;;  %v12759_v1 = vld [vmem:[#allocation138_spill] sm:$0xff] }
 0x5c0   :  { %7495 = vmatpush1.bf16.msra.mxu0 %v12742_v42  ;;  %v12751_v42 = vld [vmem:[#allocation130_spill] sm:$0xff] }
 0x5c1   :  { %7497 = vmatprep.subr.bf16.mxu0 %v12743_v44  ;;  %v12752_v44 = vld [vmem:[#allocation131_spill] sm:$0xff] }
 0x5c4   :  { %7499 = vmatpush1.bf16.msra.mxu0 %v12744_v37  ;;  %v12753_v37 = vld [vmem:[#allocation132_spill] sm:$0xff] }
 0x5c5   :  { %7501 = vmatprep.subr.bf16.mxu0 %v12745_v41  ;;  %v12754_v41 = vld [vmem:[#allocation133_spill] sm:$0xff] }
 0x5c8   :  { %7503 = vmatpush1.bf16.msra.mxu0 %v12746_v7  ;;  %v12755_v7 = vld [vmem:[#allocation134_spill] sm:$0xff] }
 0x5c9   :  { %7505 = vmatprep.subr.bf16.mxu0 %v12747_v10  ;;  %v12756_v10 = vld [vmem:[#allocation135_spill] sm:$0xff] }
 0x5cc   :  { %7507 = vmatpush1.bf16.msra.mxu0 %v12748_v13  ;;  %v12757_v13 = vld [vmem:[#allocation136_spill] sm:$0xff] }
 0x5cd   :  { %7509 = vmatprep.subr.bf16.mxu0 %v12749_v38  ;;  %v12758_v38 = vld [vmem:[#allocation137_spill] sm:$0xff] }
 0x5cf   :  { %4147 = vmatmul.mubr.f32.vlgmr.msra.gmra.mrb[28].mxu0 %v11080_v63 }
 0x5d0   :  { %7511 = vmatpush1.bf16.msra.mxu0 %v12750_v24  ;;  %4217 = vmatprep.mubr.f32.mxu0 %v11078_v59  ;;  %v12760_v59 = vld [vmem:[#allocation147_spill] sm:$0xff] }
 0x5d1   :  { %7513 = vmatprep.subr.bf16.mxu0 %v12751_v42 }
 0x5d4   :  { %7515 = vmatpush1.bf16.msra.mxu0 %v12752_v44 }
 0x5d5   :  { %7517 = vmatprep.subr.bf16.mxu0 %v12753_v37 }
 0x5d8   :  { %7519 = vmatpush1.bf16.msra.mxu0 %v12754_v41  ;;  %v12788_v41 = vld [vmem:[#allocation31_spill] sm:$0xff] }
 0x5d9   :  { %7521 = vmatprep.subr.bf16.mxu0 %v12755_v7  ;;  %v12787_v7 = vld [vmem:[#allocation56_spill] sm:$0xff] }
 0x5dc   :  { %7523 = vmatpush1.bf16.msra.mxu0 %v12756_v10  ;;  %v12761_v10 = vld [vmem:[#allocation148_spill] sm:$0xff] }
 0x5dd   :  { %7525 = vmatprep.subr.bf16.mxu0 %v12757_v13  ;;  %v12762_v13 = vld [vmem:[#allocation149_spill] sm:$0xff] }
 0x5e0   :  { %7527 = vmatpush1.bf16.msra.mxu0 %v12758_v38  ;;  %v12763_v38 = vld [vmem:[#allocation150_spill] sm:$0xff] }
 0x5e1   :  { %7529 = vmatprep.subr.bf16.mxu0 %v12759_v1  ;;  %v12764_v1 = vld [vmem:[#allocation151_spill] sm:$0xff] }
 0x5e4   :  { %7531 = vmatpush1.bf16.msra.mxu0 %v10799_v4  ;;  %v12765_v4 = vld [vmem:[#allocation152_spill] sm:$0xff] }
 0x5e5   :  { %7533 = vmatprep.subr.bf16.mxu0 %v10803_v34  ;;  %v12766_v34 = vld [vmem:[#allocation153_spill] sm:$0xff] }
 0x5e8   :  { %7535 = vmatpush1.bf16.msra.mxu0 %v10807_v48  ;;  %v12767_v48 = vld [vmem:[#allocation154_spill] sm:$0xff] }
 0x5e9   :  { %7537 = vmatprep.subr.bf16.mxu0 %v10811_v18  ;;  %v12768_v18 = vld [vmem:[#allocation155_spill] sm:$0xff] }
 0x5ec   :  { %7539 = vmatpush1.bf16.msra.mxu0 %v10815_v20  ;;  %v12769_v20 = vld [vmem:[#allocation156_spill] sm:$0xff] }
 0x5ed   :  { %7541 = vmatprep.subr.bf16.mxu0 %v10819_v12  ;;  %v12770_v12 = vld [vmem:[#allocation157_spill] sm:$0xff] }
 0x5f0   :  { %7543 = vmatpush1.bf16.msra.mxu0 %v12760_v59  ;;  %v12771_v59 = vld [vmem:[#allocation158_spill] sm:$0xff] }
 0x5f1   :  { %7545 = vmatprep.subr.bf16.mxu0 %v12761_v10  ;;  %v12772_v10 = vld [vmem:[#allocation159_spill] sm:$0xff] }
 0x5f4   :  { %7547 = vmatpush1.bf16.msra.mxu0 %v12762_v13  ;;  %v12773_v13 = vld [vmem:[#allocation160_spill] sm:$0xff] }
 0x5f5   :  { %7549 = vmatprep.subr.bf16.mxu0 %v12763_v38  ;;  %v12774_v38 = vld [vmem:[#allocation161_spill] sm:$0xff] }
 0x5f8   :  { %7551 = vmatpush1.bf16.msra.mxu0 %v12764_v1  ;;  %v12775_v1 = vld [vmem:[#allocation20_spill] sm:$0xff] }
 0x5f9   :  { %7553 = vmatprep.subr.bf16.mxu0 %v12765_v4 }
 0x5fc   :  { %7555 = vmatpush1.bf16.msra.mxu0 %v12766_v34  ;;  %v12776_v34 = vld [vmem:[#allocation21_spill] sm:$0xff] }
 0x5fd   :  { %7557 = vmatprep.subr.bf16.mxu0 %v12767_v48  ;;  %v12777_v48 = vld [vmem:[#allocation22_spill] sm:$0xff] }
 0x600   :  { %7559 = vmatpush1.bf16.msra.mxu0 %v12768_v18  ;;  %v12778_v18 = vld [vmem:[#allocation23_spill] sm:$0xff] }
 0x601   :  { %7561 = vmatprep.subr.bf16.mxu0 %v12769_v20  ;;  %v12779_v20 = vld [vmem:[#allocation24_spill] sm:$0xff] }
 0x604   :  { %7563 = vmatpush1.bf16.msra.mxu0 %v12770_v12  ;;  %v12780_v12 = vld [vmem:[#allocation25_spill] sm:$0xff] }
 0x605   :  { %7565 = vmatprep.subr.bf16.mxu0 %v12771_v59  ;;  %v12781_v59 = vld [vmem:[#allocation26_spill] sm:$0xff] }
 0x608   :  { %7567 = vmatpush1.bf16.msra.mxu0 %v12772_v10  ;;  %v12782_v10 = vld [vmem:[#allocation27_spill] sm:$0xff] }
 0x609   :  { %7569 = vmatprep.subr.bf16.mxu0 %v12773_v13  ;;  %v12783_v13 = vld [vmem:[#allocation28_spill] sm:$0xff] }
 0x60c   :  { %7571 = vmatpush1.bf16.msra.mxu0 %v12774_v38  ;;  %v12784_v38 = vld [vmem:[#allocation29_spill] sm:$0xff] }
 0x60d   :  { %7573 = vmatprep.subr.bf16.mxu0 %v12775_v1  ;;  %v12785_v1 = vld [vmem:[#allocation30_spill] sm:$0xff] }
 0x60f   :  { %4218 = vmatmul.mubr.f32.vlgmr.msra.gmra.mrb[30].mxu0 %v11080_v63 }
 0x610   :  { %7575 = vmatpush1.bf16.msra.mxu0 %v12776_v34  ;;  %v12786_v34 = vld [vmem:[#allocation55_spill] sm:$0xff] }
 0x611   :  { %7577 = vmatprep.subr.bf16.mxu0 %v12777_v48 }
 0x614   :  { %7579 = vmatpush1.bf16.msra.mxu0 %v12778_v18 }
 0x615   :  { %7581 = vmatprep.subr.bf16.mxu0 %v12779_v20  ;;  %v12789_v20 = vld [vmem:[#allocation32_spill] sm:$0xff] }
 0x618   :  { %7583 = vmatpush1.bf16.msra.mxu0 %v12780_v12  ;;  %v12790_v12 = vld [vmem:[#allocation33_spill] sm:$0xff] }
 0x619   :  { %7585 = vmatprep.subr.bf16.mxu0 %v12781_v59  ;;  %v12791_v59 = vld [vmem:[#allocation34_spill] sm:$0xff] }
 0x61c   :  { %7587 = vmatpush1.bf16.msra.mxu0 %v12782_v10  ;;  %v12792_v10 = vld [vmem:[#allocation35_spill] sm:$0xff] }
 0x61d   :  { %7589 = vmatprep.subr.bf16.mxu0 %v12783_v13  ;;  %v12793_v13 = vld [vmem:[#allocation36_spill] sm:$0xff] }
 0x620   :  { %7591 = vmatpush1.bf16.msra.mxu0 %v12784_v38  ;;  %v12794_v38 = vld [vmem:[#allocation37_spill] sm:$0xff] }
 0x621   :  { %7593 = vmatprep.subr.bf16.mxu0 %v12785_v1  ;;  %v12795_v1 = vld [vmem:[#allocation38_spill] sm:$0xff] }
 0x622   :  { %v4006_v63 = vpop.f32.mrb[24].mxu0 }
 0x623   :  { %v9151_v4 = vadd.f32 %v12786_v34, %v4006_v63  ;;  %v4008_v48 = vpop.f32.mrb[25].mxu0  ;;  %v12796_v34 = vld [vmem:[#allocation39_spill] sm:$0xff]  ;;  %v12797_v63 = vld [vmem:[#allocation40_spill] sm:$0xff] }
 0x624   :  { %v9155_v18 = vadd.f32 %v12787_v7, %v4008_v48  ;;  %7595 = vmatpush1.bf16.msra.mxu0 %v12788_v41  ;;  %v12798_v48 = vld [vmem:[#allocation41_spill] sm:$0xff]  ;;  %v12799_v7 = vld [vmem:[#allocation42_spill] sm:$0xff] }
 0x625   :  { %7597 = vmatprep.subr.bf16.mxu0 %v12789_v20  ;;  %v12800_v20 = vld [vmem:[#allocation43_spill] sm:$0xff]  ;;  %v12812_v41 = vld [vmem:[#allocation169_spill] sm:$0xff]  ;;  %v6657_v42 = vmul.f32 -1.442695, %v9151_v4 }
 0x626   :  { %v12815_v4 = vld [vmem:[#allocation173_spill] sm:$0xff] }
 0x627   :  { %9444 = vpow2.f32 %v6657_v42 }
 0x628   :  { %7599 = vmatpush1.bf16.msra.mxu0 %v12790_v12  ;;  %v12801_v12 = vld [vmem:[#allocation44_spill] sm:$0xff] }
 0x629   :  { %7601 = vmatprep.subr.bf16.mxu0 %v12791_v59  ;;  %v12802_v59 = vld [vmem:[#allocation45_spill] sm:$0xff] }
 0x62c   :  { %7603 = vmatpush1.bf16.msra.mxu0 %v12792_v10  ;;  %v12803_v10 = vld [vmem:[#allocation46_spill] sm:$0xff] }
 0x62d   :  { %7605 = vmatprep.subr.bf16.mxu0 %v12793_v13  ;;  %v12804_v13 = vld [vmem:[#allocation47_spill] sm:$0xff] }
 0x630   :  { %7607 = vmatpush1.bf16.msra.mxu0 %v12794_v38  ;;  %v12805_v38 = vld [vmem:[#allocation48_spill] sm:$0xff] }
 0x631   :  { %7609 = vmatprep.subr.bf16.mxu0 %v12795_v1  ;;  %v12806_v1 = vld [vmem:[#allocation49_spill] sm:$0xff] }
 0x634   :  { %7611 = vmatpush1.bf16.msra.mxu0 %v12796_v34  ;;  %v12807_v34 = vld [vmem:[#allocation50_spill] sm:$0xff] }
 0x635   :  { %7613 = vmatprep.subr.bf16.mxu0 %v12797_v63  ;;  %v12808_v63 = vld [vmem:[#allocation51_spill] sm:$0xff] }
 0x638   :  { %7615 = vmatpush1.bf16.msra.mxu0 %v12798_v48  ;;  %v12809_v48 = vld [vmem:[#allocation52_spill] sm:$0xff] }
 0x639   :  { %7617 = vmatprep.subr.bf16.mxu0 %v12799_v7  ;;  %v12810_v7 = vld [vmem:[#allocation166_spill] sm:$0xff] }
 0x63c   :  { %7619 = vmatpush1.bf16.msra.mxu0 %v12800_v20  ;;  %v9203_v20 = vadd.f32 %v11026_v19, %v12810_v7 }
 0x63d   :  { %7621 = vmatprep.subr.bf16.mxu0 %v12801_v12  ;;  %v12811_v12 = vld [vmem:[#allocation167_spill] sm:$0xff] }
 0x640   :  { %7623 = vmatpush1.bf16.msra.mxu0 %v12802_v59  ;;  %v9206_v59 = vadd.f32 %v12812_v41, %v12811_v12  ;;  %v12813_v41 = vld [vmem:[#allocation172_spill] sm:$0xff] }
 0x641   :  { %7625 = vmatprep.subr.bf16.mxu0 %v12803_v10 }
 0x644   :  { %7627 = vmatpush1.bf16.msra.mxu0 %v12804_v13 }
 0x645   :  { %7629 = vmatprep.subr.bf16.mxu0 %v12805_v38  ;;  %v6658_v38 = vmul.f32 -1.442695, %v9155_v18  ;;  %v9244_v18 = vadd.f32 %v11048_v61, %v12815_v4 }
 0x647   :  { %9446 = vpow2.f32 %v6658_v38 }
 0x648   :  { %7631 = vmatpush1.bf16.msra.mxu0 %v12806_v1 }
 0x649   :  { %7633 = vmatprep.subr.bf16.mxu0 %v12807_v34 }
 0x64c   :  { %7635 = vmatpush1.bf16.msra.mxu0 %v12808_v63  ;;  %v9445_v63 = vpop.eup %9444 }
 0x64d   :  { %7637 = vmatprep.subr.bf16.mxu0 %v12809_v48  ;;  %v4238_v7 = vadd.f32 1.0, %v9445_v63 }
 0x651   :  { %v9447_v48 = vpop.eup %9446 }
 0x652   :  { %v4239_v19 = vadd.f32 1.0, %v9447_v48 }
 0x662   :  { %v4077_v37 = vpop.f32.mrb[26].mxu0 }
 0x663   :  { %v9204_v10 = vadd.f32 %v9203_v20, %v4077_v37  ;;  %v4079_v44 = vpop.f32.mrb[27].mxu0  ;;  %v12814_v20 = vld [vmem:[#allocation174_spill] sm:$0xff] }
 0x664   :  { %v9207_v13 = vadd.f32 %v9206_v59, %v4079_v44  ;;  %v9241_v37 = vadd.f32 %v12814_v20, %v12813_v41 }
 0x665   :  { %v6659_v24 = vmul.f32 -1.442695, %v9204_v10 }
 0x666   :  { %v6660_v1 = vmul.f32 -1.442695, %v9207_v13 }
 0x667   :  { %9448 = vpow2.f32 %v6659_v24 }
 0x668   :  { %9450 = vpow2.f32 %v6660_v1 }
 0x669   :  { %9452 = vrcp.f32 %v4238_v7 }
 0x66a   :  { %9454 = vrcp.f32 %v4239_v19 }
 0x671   :  { %v9449_v34 = vpop.eup %9448 }
 0x672   :  { %v9451_v32 = vpop.eup %9450  ;;  %v4250_v49 = vadd.f32 1.0, %v9449_v34 }
 0x673   :  { %v4251_v12 = vadd.f32 1.0, %v9451_v32  ;;  %v9453_v38 = vpop.eup %9452 }
 0x674   :  { %9456 = vrcp.f32 %v4250_v49  ;;  %v9455_v24 = vpop.eup %9454 }
 0x675   :  { %9458 = vrcp.f32 %v4251_v12  ;;  %v9279_v12 = vadd.f32 %v11070_v11, %v11066_v22 }
 0x67e   :  { %v9457_v1 = vpop.eup %9456 }
 0x67f   :  { %v9459_v32 = vpop.eup %9458  ;;  %v4270_v41 = vmul.f32 %v9457_v1, %v11052_v62 }
 0x680   :  { %v4271_v48 = vmul.f32 %v9459_v32, %v11054_v40 }
 0x6a2   :  { %v4148_v44 = vpop.f32.mrb[28].mxu0 }
 0x6a3   :  { %v9242_v59 = vadd.f32 %v9241_v37, %v4148_v44  ;;  %v4150_v10 = vpop.f32.mrb[29].mxu0  ;;  %v9282_v37 = vadd.f32 %v11072_v51, %v11068_v27 }
 0x6a4   :  { %v9245_v13 = vadd.f32 %v9244_v18, %v4150_v10 }
 0x6a5   :  { %9460 = vtanh.f32 %v9242_v59 }
 0x6a6   :  { %9462 = vtanh.f32 %v9245_v13 }
 0x6af   :  { %v9461_v42 = vpop.eup %9460 }
 0x6b0   :  { %v9463_v34 = vpop.eup %9462  ;;  %v4272_v63 = vmul.f32 %v9461_v42, %v9453_v38 }
 0x6b1   :  { %v4273_v19 = vmul.f32 %v9463_v34, %v9455_v24 }
 0x6b2   :  { %v11230_v7 = vadd.f32 %v4272_v63, %v4270_v41  ;;  %v12818_v41 = vld [vmem:[#allocation99_spill] sm:$0xff]  ;;  %v12819_v63 = vld [vmem:[#allocation100_spill] sm:$0xff] }
 0x6b3   :  { %v11232_v49 = vadd.f32 %v4273_v19, %v4271_v48  ;;  %v12820_v48 = vld [vmem:[#allocation101_spill] sm:$0xff]  ;;  %v12821_v19 = vld [vmem:[#allocation102_spill] sm:$0xff] }
 0x6e2   :  { %v4219_v4 = vpop.f32.mrb[30].mxu0 }
 0x6e3   :  { %v9280_v18 = vadd.f32 %v9279_v12, %v4219_v4  ;;  %v4221_v44 = vpop.f32.mrb[31].mxu0  ;;  %v12822_v12 = vld [vmem:[#allocation103_spill] sm:$0xff] }
 0x6e4   :  { %v9283_v59 = vadd.f32 %v9282_v37, %v4221_v44  ;;  %v12823_v37 = vld [vmem:[#allocation104_spill] sm:$0xff]  ;;  %v12824_v4 = vld [vmem:[#allocation107_spill] sm:$0xff]  ;;  %v12826_v44 = vld [vmem:[#allocation109_spill] sm:$0xff] }
 0x6e5   :  { %v6661_v10 = vmul.f32 -1.442695, %v9280_v18  ;;  %v12825_v18 = vld [vmem:[#allocation108_spill] sm:$0xff] }
 0x6e6   :  { %v6662_v62 = vmul.f32 -1.442695, %v9283_v59  ;;  %v12827_v59 = vld [vmem:[#allocation110_spill] sm:$0xff] }
 0x6e7   :  { %9464 = vpow2.f32 %v6661_v10  ;;  %v12828_v10 = vld [vmem:[#allocation111_spill] sm:$0xff] }
 0x6e8   :  { %9466 = vpow2.f32 %v6662_v62  ;;  %v12829_v62 = vld [vmem:[#allocation112_spill] sm:$0xff] }
 0x6e9   :  { %9468 = vtanh.f32 %v11232_v49 }
 0x6f1   :  { %v9465_v40 = vpop.eup %9464 }
 0x6f2   :  { %v9467_v13 = vpop.eup %9466  ;;  %v4264_v38 = vadd.f32 1.0, %v9465_v40  ;;  %v12830_v40 = vld [vmem:[#allocation113_spill] sm:$0xff] }
 0x6f3   :  { %v4265_v24 = vadd.f32 1.0, %v9467_v13  ;;  %v9469_v22 = vpop.eup %9468  ;;  %v12831_v13 = vld [vmem:[#allocation114_spill] sm:$0xff] }
 0x6f4   :  { %9470 = vrcp.f32 %v4264_v38  ;;  %v12832_v38 = vld [vmem:[#allocation115_spill] sm:$0xff] }
 0x6f5   :  { %9472 = vrcp.f32 %v4265_v24  ;;  %v12833_v24 = vld [vmem:[#allocation116_spill] sm:$0xff] }
 0x6f6   :  { %9474 = vtanh.f32 %v11230_v7 }
 0x6fe   :  { %v9471_v27 = vpop.eup %9470 }
 0x6ff   :  { %v9473_v1 = vpop.eup %9472 }
 0x700   :  { %v9475_v32 = vpop.eup %9474  ;;  %v11240_v42 = vmul.f32 %v9473_v1, %v9469_v22  ;;  %v12834_v22 = vld [vmem:[#allocation117_spill] sm:$0xff]  ;;  %v12836_v1 = vld [vmem:[#allocation119_spill] sm:$0xff] }
 0x701   :  { %v11242_v34 = vmul.f32 %v9475_v32, %v9471_v27  ;;  %v12835_v27 = vld [vmem:[#allocation118_spill] sm:$0xff]  ;;  %v12837_v32 = vld [vmem:[#allocation120_spill] sm:$0xff] }
 0x702   :  { %12816 = vst [vmem:[#allocation95_spill] sm:$0xff] %v11240_v42  ;;  %4354 = vmatprep.mubr.f32.mxu0 %v11240_v42 }
 0x703   :  { %12817 = vst [vmem:[#allocation96_spill] sm:$0xff] %v11242_v34  ;;  %4355 = vmatmul.mubr.f32.vlgmr.msra.gmra.mrb[32].mxu0 %v11242_v34 }
 0x704   :  { %7639 = vmatpush1.bf16.msra.mxu0 %v10487_v0  ;;  %4425 = vmatprep.mubr.f32.mxu0 %v11240_v42  ;;  %v12870_v0 = vld [vmem:[#allocation155_spill] sm:$0xff] }
 0x705   :  { %7641 = vmatprep.subr.bf16.mxu0 %v10489_v60  ;;  %v12869_v60 = vld [vmem:[#allocation154_spill] sm:$0xff] }
 0x708   :  { %7643 = vmatpush1.bf16.msra.mxu0 %v10494_v3  ;;  %v12868_v3 = vld [vmem:[#allocation153_spill] sm:$0xff] }
 0x709   :  { %7645 = vmatprep.subr.bf16.mxu0 %v10498_v46  ;;  %v12867_v46 = vld [vmem:[#allocation152_spill] sm:$0xff] }
 0x70c   :  { %7647 = vmatpush1.bf16.msra.mxu0 %v10503_v9  ;;  %v12866_v9 = vld [vmem:[#allocation151_spill] sm:$0xff] }
 0x70d   :  { %7649 = vmatprep.subr.bf16.mxu0 %v10507_v2  ;;  %v12865_v2 = vld [vmem:[#allocation150_spill] sm:$0xff] }
 0x710   :  { %7651 = vmatpush1.bf16.msra.mxu0 %v10511_v53  ;;  %v12864_v53 = vld [vmem:[#allocation149_spill] sm:$0xff] }
 0x711   :  { %7653 = vmatprep.subr.bf16.mxu0 %v10515_v54  ;;  %v12863_v54 = vld [vmem:[#allocation148_spill] sm:$0xff] }
 0x714   :  { %7655 = vmatpush1.bf16.msra.mxu0 %v10519_v47  ;;  %v12862_v47 = vld [vmem:[#allocation147_spill] sm:$0xff] }
 0x715   :  { %7657 = vmatprep.subr.bf16.mxu0 %v10523_v36  ;;  %v12861_v36 = vld [vmem:[#allocation146_spill] sm:$0xff] }
 0x718   :  { %7659 = vmatpush1.bf16.msra.mxu0 %v10531_v56  ;;  %v12860_v56 = vld [vmem:[#allocation145_spill] sm:$0xff] }
 0x719   :  { %7661 = vmatprep.subr.bf16.mxu0 %v10535_v57  ;;  %v12859_v57 = vld [vmem:[#allocation144_spill] sm:$0xff] }
 0x71c   :  { %7663 = vmatpush1.bf16.msra.mxu0 %v10539_v15  ;;  %v12858_v15 = vld [vmem:[#allocation143_spill] sm:$0xff] }
 0x71d   :  { %7665 = vmatprep.subr.bf16.mxu0 %v10543_v39  ;;  %v12856_v39 = vld [vmem:[#allocation141_spill] sm:$0xff] }
 0x720   :  { %7667 = vmatpush1.bf16.msra.mxu0 %v10547_v26  ;;  %v12855_v26 = vld [vmem:[#allocation138_spill] sm:$0xff] }
 0x721   :  { %7669 = vmatprep.subr.bf16.mxu0 %v10551_v55  ;;  %v12854_v55 = vld [vmem:[#allocation137_spill] sm:$0xff] }
 0x724   :  { %7671 = vmatpush1.bf16.msra.mxu0 %v10555_v17  ;;  %v12853_v17 = vld [vmem:[#allocation136_spill] sm:$0xff] }
 0x725   :  { %7673 = vmatprep.subr.bf16.mxu0 %v10559_v21  ;;  %v12852_v21 = vld [vmem:[#allocation135_spill] sm:$0xff] }
 0x728   :  { %7675 = vmatpush1.bf16.msra.mxu0 %v10563_v23  ;;  %v12851_v23 = vld [vmem:[#allocation134_spill] sm:$0xff] }
 0x729   :  { %7677 = vmatprep.subr.bf16.mxu0 %v10567_v16  ;;  %v12850_v16 = vld [vmem:[#allocation133_spill] sm:$0xff] }
 0x72c   :  { %7679 = vmatpush1.bf16.msra.mxu0 %v10571_v14  ;;  %v12849_v14 = vld [vmem:[#allocation132_spill] sm:$0xff] }
 0x72d   :  { %7681 = vmatprep.subr.bf16.mxu0 %v10575_v43  ;;  %v12848_v43 = vld [vmem:[#allocation131_spill] sm:$0xff] }
 0x730   :  { %7683 = vmatpush1.bf16.msra.mxu0 %v10579_v31  ;;  %v12847_v31 = vld [vmem:[#allocation130_spill] sm:$0xff] }
 0x731   :  { %7685 = vmatprep.subr.bf16.mxu0 %v12653_v35  ;;  %v12846_v35 = vld [vmem:[#allocation129_spill] sm:$0xff] }
 0x734   :  { %7687 = vmatpush1.bf16.msra.mxu0 %v12657_v50  ;;  %v12845_v50 = vld [vmem:[#allocation128_spill] sm:$0xff] }
 0x735   :  { %7689 = vmatprep.subr.bf16.mxu0 %v12658_v5  ;;  %v12844_v5 = vld [vmem:[#allocation127_spill] sm:$0xff] }
 0x738   :  { %7691 = vmatpush1.bf16.msra.mxu0 %v12661_v8  ;;  %v12843_v8 = vld [vmem:[#allocation126_spill] sm:$0xff] }
 0x739   :  { %7693 = vmatprep.subr.bf16.mxu0 %v12662_v30  ;;  %v12842_v30 = vld [vmem:[#allocation125_spill] sm:$0xff] }
 0x73c   :  { %7695 = vmatpush1.bf16.msra.mxu0 %v12665_v45  ;;  %v12841_v45 = vld [vmem:[#allocation124_spill] sm:$0xff] }
 0x73d   :  { %7697 = vmatprep.subr.bf16.mxu0 %v12666_v29  ;;  %v12840_v29 = vld [vmem:[#allocation123_spill] sm:$0xff] }
 0x740   :  { %7699 = vmatpush1.bf16.msra.mxu0 %v12669_v58  ;;  %v12839_v58 = vld [vmem:[#allocation122_spill] sm:$0xff] }
 0x741   :  { %7701 = vmatprep.subr.bf16.mxu0 %v12670_v33  ;;  %v12838_v33 = vld [vmem:[#allocation121_spill] sm:$0xff] }
 0x743   :  { %4426 = vmatmul.mubr.f32.vlgmr.msra.gmra.mrb[34].mxu0 %v11242_v34 }
 0x744   :  { %7703 = vmatpush1.bf16.msra.mxu0 %v12718_v6  ;;  %4496 = vmatprep.mubr.f32.mxu0 %v11240_v42 }
 0x745   :  { %7705 = vmatprep.subr.bf16.mxu0 %v12719_v25 }
 0x748   :  { %7707 = vmatpush1.bf16.msra.mxu0 %v12720_v52 }
 0x749   :  { %7709 = vmatprep.subr.bf16.mxu0 %v12721_v28 }
 0x74c   :  { %7711 = vmatpush1.bf16.msra.mxu0 %v12818_v41 }
 0x74d   :  { %7713 = vmatprep.subr.bf16.mxu0 %v12819_v63 }
 0x750   :  { %7715 = vmatpush1.bf16.msra.mxu0 %v12820_v48 }
 0x751   :  { %7717 = vmatprep.subr.bf16.mxu0 %v12821_v19 }
 0x754   :  { %7719 = vmatpush1.bf16.msra.mxu0 %v12822_v12 }
 0x755   :  { %7721 = vmatprep.subr.bf16.mxu0 %v12823_v37 }
 0x758   :  { %7723 = vmatpush1.bf16.msra.mxu0 %v12824_v4 }
 0x759   :  { %7725 = vmatprep.subr.bf16.mxu0 %v12825_v18 }
 0x75c   :  { %7727 = vmatpush1.bf16.msra.mxu0 %v12826_v44 }
 0x75d   :  { %7729 = vmatprep.subr.bf16.mxu0 %v12827_v59 }
 0x760   :  { %7731 = vmatpush1.bf16.msra.mxu0 %v12828_v10 }
 0x761   :  { %7733 = vmatprep.subr.bf16.mxu0 %v12829_v62 }
 0x764   :  { %7735 = vmatpush1.bf16.msra.mxu0 %v12830_v40 }
 0x765   :  { %7737 = vmatprep.subr.bf16.mxu0 %v12831_v13 }
 0x768   :  { %7739 = vmatpush1.bf16.msra.mxu0 %v12832_v38 }
 0x769   :  { %7741 = vmatprep.subr.bf16.mxu0 %v12833_v24 }
 0x76c   :  { %7743 = vmatpush1.bf16.msra.mxu0 %v12834_v22 }
 0x76d   :  { %7745 = vmatprep.subr.bf16.mxu0 %v12835_v27 }
 0x770   :  { %7747 = vmatpush1.bf16.msra.mxu0 %v12836_v1 }
 0x771   :  { %7749 = vmatprep.subr.bf16.mxu0 %v12837_v32 }
 0x774   :  { %7751 = vmatpush1.bf16.msra.mxu0 %v12838_v33 }
 0x775   :  { %7753 = vmatprep.subr.bf16.mxu0 %v12839_v58 }
 0x778   :  { %7755 = vmatpush1.bf16.msra.mxu0 %v12840_v29 }
 0x779   :  { %7757 = vmatprep.subr.bf16.mxu0 %v12841_v45 }
 0x77c   :  { %7759 = vmatpush1.bf16.msra.mxu0 %v12842_v30 }
 0x77d   :  { %7761 = vmatprep.subr.bf16.mxu0 %v12843_v8 }
 0x780   :  { %7763 = vmatpush1.bf16.msra.mxu0 %v12844_v5 }
 0x781   :  { %7765 = vmatprep.subr.bf16.mxu0 %v12845_v50 }
 0x783   :  { %4497 = vmatmul.mubr.f32.vlgmr.msra.gmra.mrb[36].mxu0 %v11242_v34 }
 0x784   :  { %7767 = vmatpush1.bf16.msra.mxu0 %v12846_v35  ;;  %4567 = vmatprep.mubr.f32.mxu0 %v11240_v42  ;;  %v12857_v42 = vld [vmem:[#allocation142_spill] sm:$0xff] }
 0x785   :  { %7769 = vmatprep.subr.bf16.mxu0 %v12847_v31 }
 0x788   :  { %7771 = vmatpush1.bf16.msra.mxu0 %v12848_v43 }
 0x789   :  { %7773 = vmatprep.subr.bf16.mxu0 %v12849_v14 }
 0x78c   :  { %7775 = vmatpush1.bf16.msra.mxu0 %v12850_v16 }
 0x78d   :  { %7777 = vmatprep.subr.bf16.mxu0 %v12851_v23 }
 0x790   :  { %7779 = vmatpush1.bf16.msra.mxu0 %v12852_v21 }
 0x791   :  { %7781 = vmatprep.subr.bf16.mxu0 %v12853_v17 }
 0x794   :  { %7783 = vmatpush1.bf16.msra.mxu0 %v12854_v55 }
 0x795   :  { %7785 = vmatprep.subr.bf16.mxu0 %v12855_v26 }
 0x798   :  { %7787 = vmatpush1.bf16.msra.mxu0 %v12856_v39 }
 0x799   :  { %7789 = vmatprep.subr.bf16.mxu0 %v12857_v42  ;;  %v12914_v42 = vld [vmem:[#allocation169_spill] sm:$0xff] }
 0x79c   :  { %7791 = vmatpush1.bf16.msra.mxu0 %v12858_v15  ;;  %v12890_v15 = vld [vmem:[#allocation31_spill] sm:$0xff] }
 0x79d   :  { %7793 = vmatprep.subr.bf16.mxu0 %v12859_v57  ;;  %v12889_v57 = vld [vmem:[#allocation58_spill] sm:$0xff] }
 0x7a0   :  { %7795 = vmatpush1.bf16.msra.mxu0 %v12860_v56  ;;  %v12871_v56 = vld [vmem:[#allocation156_spill] sm:$0xff] }
 0x7a1   :  { %7797 = vmatprep.subr.bf16.mxu0 %v12861_v36  ;;  %v12872_v36 = vld [vmem:[#allocation157_spill] sm:$0xff] }
 0x7a4   :  { %7799 = vmatpush1.bf16.msra.mxu0 %v12862_v47  ;;  %v12873_v47 = vld [vmem:[#allocation158_spill] sm:$0xff] }
 0x7a5   :  { %7801 = vmatprep.subr.bf16.mxu0 %v12863_v54  ;;  %v12874_v54 = vld [vmem:[#allocation159_spill] sm:$0xff] }
 0x7a8   :  { %7803 = vmatpush1.bf16.msra.mxu0 %v12864_v53  ;;  %v12875_v53 = vld [vmem:[#allocation160_spill] sm:$0xff] }
 0x7a9   :  { %7805 = vmatprep.subr.bf16.mxu0 %v12865_v2  ;;  %v12876_v2 = vld [vmem:[#allocation161_spill] sm:$0xff] }
 0x7ac   :  { %7807 = vmatpush1.bf16.msra.mxu0 %v12866_v9  ;;  %v12877_v9 = vld [vmem:[#allocation20_spill] sm:$0xff] }
 0x7ad   :  { %7809 = vmatprep.subr.bf16.mxu0 %v12867_v46 }
 0x7b0   :  { %7811 = vmatpush1.bf16.msra.mxu0 %v12868_v3  ;;  %v12878_v3 = vld [vmem:[#allocation21_spill] sm:$0xff] }
 0x7b1   :  { %7813 = vmatprep.subr.bf16.mxu0 %v12869_v60  ;;  %v12879_v60 = vld [vmem:[#allocation22_spill] sm:$0xff] }
 0x7b4   :  { %7815 = vmatpush1.bf16.msra.mxu0 %v12870_v0  ;;  %v12880_v0 = vld [vmem:[#allocation23_spill] sm:$0xff] }
 0x7b5   :  { %7817 = vmatprep.subr.bf16.mxu0 %v12871_v56  ;;  %v12881_v56 = vld [vmem:[#allocation24_spill] sm:$0xff] }
 0x7b8   :  { %7819 = vmatpush1.bf16.msra.mxu0 %v12872_v36  ;;  %v12882_v36 = vld [vmem:[#allocation25_spill] sm:$0xff] }
 0x7b9   :  { %7821 = vmatprep.subr.bf16.mxu0 %v12873_v47  ;;  %v12883_v47 = vld [vmem:[#allocation26_spill] sm:$0xff] }
 0x7bc   :  { %7823 = vmatpush1.bf16.msra.mxu0 %v12874_v54  ;;  %v12884_v54 = vld [vmem:[#allocation27_spill] sm:$0xff] }
 0x7bd   :  { %7825 = vmatprep.subr.bf16.mxu0 %v12875_v53  ;;  %v12885_v53 = vld [vmem:[#allocation28_spill] sm:$0xff] }
 0x7c0   :  { %7827 = vmatpush1.bf16.msra.mxu0 %v12876_v2  ;;  %v12886_v2 = vld [vmem:[#allocation29_spill] sm:$0xff] }
 0x7c1   :  { %7829 = vmatprep.subr.bf16.mxu0 %v12877_v9  ;;  %v12887_v9 = vld [vmem:[#allocation30_spill] sm:$0xff] }
 0x7c3   :  { %4568 = vmatmul.mubr.f32.vlgmr.msra.gmra.mrb[38].mxu0 %v11242_v34 }
 0x7c4   :  { %7831 = vmatpush1.bf16.msra.mxu0 %v12878_v3  ;;  %v12888_v3 = vld [vmem:[#allocation57_spill] sm:$0xff] }
 0x7c5   :  { %7833 = vmatprep.subr.bf16.mxu0 %v12879_v60 }
 0x7c8   :  { %7835 = vmatpush1.bf16.msra.mxu0 %v12880_v0 }
 0x7c9   :  { %7837 = vmatprep.subr.bf16.mxu0 %v12881_v56  ;;  %v12891_v56 = vld [vmem:[#allocation32_spill] sm:$0xff] }
 0x7cc   :  { %7839 = vmatpush1.bf16.msra.mxu0 %v12882_v36  ;;  %v12892_v36 = vld [vmem:[#allocation33_spill] sm:$0xff] }
 0x7cd   :  { %7841 = vmatprep.subr.bf16.mxu0 %v12883_v47  ;;  %v12893_v47 = vld [vmem:[#allocation34_spill] sm:$0xff] }
 0x7d0   :  { %7843 = vmatpush1.bf16.msra.mxu0 %v12884_v54  ;;  %v12894_v54 = vld [vmem:[#allocation35_spill] sm:$0xff] }
 0x7d1   :  { %7845 = vmatprep.subr.bf16.mxu0 %v12885_v53  ;;  %v12895_v53 = vld [vmem:[#allocation36_spill] sm:$0xff] }
 0x7d4   :  { %7847 = vmatpush1.bf16.msra.mxu0 %v12886_v2  ;;  %v12896_v2 = vld [vmem:[#allocation37_spill] sm:$0xff] }
 0x7d5   :  { %7849 = vmatprep.subr.bf16.mxu0 %v12887_v9  ;;  %v12897_v9 = vld [vmem:[#allocation38_spill] sm:$0xff] }
 0x7d6   :  { %v4356_v34 = vpop.f32.mrb[32].mxu0 }
 0x7d7   :  { %v9159_v46 = vadd.f32 %v12888_v3, %v4356_v34  ;;  %v4358_v60 = vpop.f32.mrb[33].mxu0  ;;  %v12898_v3 = vld [vmem:[#allocation39_spill] sm:$0xff]  ;;  %v12899_v34 = vld [vmem:[#allocation40_spill] sm:$0xff] }
 0x7d8   :  { %v9163_v0 = vadd.f32 %v12889_v57, %v4358_v60  ;;  %7851 = vmatpush1.bf16.msra.mxu0 %v12890_v15  ;;  %v12900_v60 = vld [vmem:[#allocation41_spill] sm:$0xff]  ;;  %v12901_v57 = vld [vmem:[#allocation42_spill] sm:$0xff] }
 0x7d9   :  { %7853 = vmatprep.subr.bf16.mxu0 %v12891_v56  ;;  %v12902_v56 = vld [vmem:[#allocation43_spill] sm:$0xff]  ;;  %v6663_v55 = vmul.f32 -1.442695, %v9159_v46 }
 0x7da   :  { %v12916_v46 = vld [vmem:[#allocation171_spill] sm:$0xff] }
 0x7db   :  { %9476 = vpow2.f32 %v6663_v55 }
 0x7dc   :  { %7855 = vmatpush1.bf16.msra.mxu0 %v12892_v36  ;;  %v12903_v36 = vld [vmem:[#allocation44_spill] sm:$0xff] }
 0x7dd   :  { %7857 = vmatprep.subr.bf16.mxu0 %v12893_v47  ;;  %v12904_v47 = vld [vmem:[#allocation45_spill] sm:$0xff] }
 0x7e0   :  { %7859 = vmatpush1.bf16.msra.mxu0 %v12894_v54  ;;  %v12905_v54 = vld [vmem:[#allocation46_spill] sm:$0xff] }
 0x7e1   :  { %7861 = vmatprep.subr.bf16.mxu0 %v12895_v53  ;;  %v12906_v53 = vld [vmem:[#allocation47_spill] sm:$0xff] }
 0x7e4   :  { %7863 = vmatpush1.bf16.msra.mxu0 %v12896_v2  ;;  %v12907_v2 = vld [vmem:[#allocation48_spill] sm:$0xff] }
 0x7e5   :  { %7865 = vmatprep.subr.bf16.mxu0 %v12897_v9  ;;  %v12908_v9 = vld [vmem:[#allocation49_spill] sm:$0xff] }
 0x7e8   :  { %7867 = vmatpush1.bf16.msra.mxu0 %v12898_v3  ;;  %v12909_v3 = vld [vmem:[#allocation50_spill] sm:$0xff] }
 0x7e9   :  { %7869 = vmatprep.subr.bf16.mxu0 %v12899_v34  ;;  %v12910_v34 = vld [vmem:[#allocation51_spill] sm:$0xff] }
 0x7ec   :  { %7871 = vmatpush1.bf16.msra.mxu0 %v12900_v60  ;;  %v12911_v60 = vld [vmem:[#allocation53_spill] sm:$0xff] }
 0x7ed   :  { %7873 = vmatprep.subr.bf16.mxu0 %v12901_v57  ;;  %v12912_v57 = vld [vmem:[#allocation168_spill] sm:$0xff] }
 0x7ee   :  { %v9209_v15 = vadd.f32 %v12912_v57, %v12911_v60 }
 0x7f0   :  { %7875 = vmatpush1.bf16.msra.mxu0 %v12902_v56  ;;  %v12913_v56 = vld [vmem:[#allocation54_spill] sm:$0xff] }
 0x7f1   :  { %7877 = vmatprep.subr.bf16.mxu0 %v12903_v36  ;;  %v9212_v36 = vadd.f32 %v12914_v42, %v12913_v56  ;;  %v12915_v42 = vld [vmem:[#allocation170_spill] sm:$0xff] }
 0x7f4   :  { %7879 = vmatpush1.bf16.msra.mxu0 %v12904_v47 }
 0x7f5   :  { %7881 = vmatprep.subr.bf16.mxu0 %v12905_v54 }
 0x7f8   :  { %7883 = vmatpush1.bf16.msra.mxu0 %v12906_v53  ;;  %v6664_v53 = vmul.f32 -1.442695, %v9163_v0  ;;  %v9250_v0 = vadd.f32 %v11048_v61, %v12916_v46 }
 0x7f9   :  { %7885 = vmatprep.subr.bf16.mxu0 %v12907_v2 }
 0x7fa   :  { %9478 = vpow2.f32 %v6664_v53 }
 0x7fc   :  { %7887 = vmatpush1.bf16.msra.mxu0 %v12908_v9 }
 0x7fd   :  { %7889 = vmatprep.subr.bf16.mxu0 %v12909_v3  ;;  %v9477_v3 = vpop.eup %9476 }
 0x7fe   :  { %v4588_v60 = vadd.f32 1.0, %v9477_v3 }
 0x800   :  { %7891 = vmatpush1.bf16.msra.mxu0 %v12910_v34 }
 0x804   :  { %v9479_v34 = vpop.eup %9478 }
 0x805   :  { %v4589_v57 = vadd.f32 1.0, %v9479_v34 }
 0x816   :  { %v4427_v39 = vpop.f32.mrb[34].mxu0 }
 0x817   :  { %v9210_v47 = vadd.f32 %v9209_v15, %v4427_v39  ;;  %v4429_v26 = vpop.f32.mrb[35].mxu0  ;;  %v9247_v15 = vadd.f32 %v12814_v20, %v12915_v42 }
 0x818   :  { %v9213_v54 = vadd.f32 %v9212_v36, %v4429_v26 }
 0x819   :  { %v6665_v17 = vmul.f32 -1.442695, %v9210_v47 }
 0x81a   :  { %v6666_v2 = vmul.f32 -1.442695, %v9213_v54 }
 0x81b   :  { %9480 = vpow2.f32 %v6665_v17 }
 0x81c   :  { %9482 = vpow2.f32 %v6666_v2 }
 0x81d   :  { %9484 = vrcp.f32 %v4588_v60  ;;  %v12917_v60 = vld [vmem:[#allocation176_spill] sm:$0xff] }
 0x81e   :  { %9486 = vrcp.f32 %v4589_v57 }
 0x825   :  { %v9481_v9 = vpop.eup %9480 }
 0x826   :  { %v9483_v21 = vpop.eup %9482  ;;  %v4600_v23 = vadd.f32 1.0, %v9481_v9 }
 0x827   :  { %v4601_v56 = vadd.f32 1.0, %v9483_v21  ;;  %v9485_v36 = vpop.eup %9484 }
 0x828   :  { %9488 = vrcp.f32 %v4600_v23  ;;  %v9487_v39 = vpop.eup %9486 }
 0x829   :  { %9490 = vrcp.f32 %v4601_v56  ;;  %v9285_v56 = vadd.f32 %v11070_v11, %v12917_v60  ;;  %v12922_v60 = vld [vmem:[#allocation135_spill] sm:$0xff] }
 0x832   :  { %v9489_v9 = vpop.eup %9488 }
 0x833   :  { %v9491_v26 = vpop.eup %9490  ;;  %v4620_v21 = vmul.f32 %v9489_v9, %v11230_v7 }
 0x834   :  { %v4621_v3 = vmul.f32 %v9491_v26, %v11232_v49 }
 0x856   :  { %v4498_v54 = vpop.f32.mrb[36].mxu0 }
 0x857   :  { %v9248_v53 = vadd.f32 %v9247_v15, %v4498_v54  ;;  %v4500_v2 = vpop.f32.mrb[37].mxu0  ;;  %v12918_v15 = vld [vmem:[#allocation177_spill] sm:$0xff] }
 0x858   :  { %v9251_v47 = vadd.f32 %v9250_v0, %v4500_v2  ;;  %v9288_v46 = vadd.f32 %v11072_v51, %v12918_v15  ;;  %v12924_v15 = vld [vmem:[#allocation137_spill] sm:$0xff] }
 0x859   :  { %9492 = vtanh.f32 %v9248_v53 }
 0x85a   :  { %9494 = vtanh.f32 %v9251_v47 }
 0x863   :  { %v9493_v55 = vpop.eup %9492 }
 0x864   :  { %v9495_v17 = vpop.eup %9494  ;;  %v4622_v42 = vmul.f32 %v9493_v55, %v9485_v36 }
 0x865   :  { %v4623_v34 = vmul.f32 %v9495_v17, %v9487_v39 }
 0x866   :  { %v11391_v57 = vadd.f32 %v4622_v42, %v4620_v21 }
 0x867   :  { %v11393_v23 = vadd.f32 %v4623_v34, %v4621_v3  ;;  %v12921_v34 = vld [vmem:[#allocation134_spill] sm:$0xff] }
 0x896   :  { %v4569_v0 = vpop.f32.mrb[38].mxu0 }
 0x897   :  { %v9286_v54 = vadd.f32 %v9285_v56, %v4569_v0  ;;  %v4571_v53 = vpop.f32.mrb[39].mxu0  ;;  %v12923_v56 = vld [vmem:[#allocation136_spill] sm:$0xff]  ;;  %v12926_v0 = vld [vmem:[#allocation141_spill] sm:$0xff] }
 0x898   :  { %v9289_v2 = vadd.f32 %v9288_v46, %v4571_v53  ;;  %v12925_v46 = vld [vmem:[#allocation138_spill] sm:$0xff]  ;;  %v12928_v53 = vld [vmem:[#allocation143_spill] sm:$0xff] }
 0x899   :  { %v6667_v47 = vmul.f32 -1.442695, %v9286_v54  ;;  %v12927_v54 = vld [vmem:[#allocation142_spill] sm:$0xff] }
 0x89a   :  { %v6668_v7 = vmul.f32 -1.442695, %v9289_v2  ;;  %v12929_v2 = vld [vmem:[#allocation144_spill] sm:$0xff] }
 0x89b   :  { %9496 = vpow2.f32 %v6667_v47  ;;  %v12930_v47 = vld [vmem:[#allocation145_spill] sm:$0xff] }
 0x89c   :  { %9498 = vpow2.f32 %v6668_v7  ;;  %v12931_v7 = vld [vmem:[#allocation146_spill] sm:$0xff] }
 0x89d   :  { %9500 = vtanh.f32 %v11393_v23 }
 0x8a5   :  { %v9497_v49 = vpop.eup %9496 }
 0x8a6   :  { %v9499_v36 = vpop.eup %9498  ;;  %v4614_v39 = vadd.f32 1.0, %v9497_v49  ;;  %v12932_v49 = vld [vmem:[#allocation147_spill] sm:$0xff] }
 0x8a7   :  { %v4615_v9 = vadd.f32 1.0, %v9499_v36  ;;  %v9501_v26 = vpop.eup %9500  ;;  %v12933_v36 = vld [vmem:[#allocation148_spill] sm:$0xff] }
 0x8a8   :  { %9502 = vrcp.f32 %v4614_v39  ;;  %v12934_v39 = vld [vmem:[#allocation149_spill] sm:$0xff] }
 0x8a9   :  { %9504 = vrcp.f32 %v4615_v9  ;;  %v12935_v9 = vld [vmem:[#allocation150_spill] sm:$0xff] }
 0x8aa   :  { %9506 = vtanh.f32 %v11391_v57 }
 0x8b2   :  { %v9503_v55 = vpop.eup %9502 }
 0x8b3   :  { %v9505_v17 = vpop.eup %9504 }
 0x8b4   :  { %v9507_v21 = vpop.eup %9506  ;;  %v11401_v42 = vmul.f32 %v9505_v17, %v9501_v26  ;;  %v12936_v26 = vld [vmem:[#allocation151_spill] sm:$0xff]  ;;  %v12938_v17 = vld [vmem:[#allocation153_spill] sm:$0xff] }
 0x8b5   :  { %v11403_v3 = vmul.f32 %v9507_v21, %v9503_v55  ;;  %v12937_v55 = vld [vmem:[#allocation152_spill] sm:$0xff]  ;;  %v12939_v21 = vld [vmem:[#allocation154_spill] sm:$0xff] }
 0x8b6   :  { %12919 = vst [vmem:[#allocation97_spill] sm:$0xff] %v11401_v42  ;;  %4704 = vmatprep.mubr.f32.mxu0 %v11401_v42  ;;  %4775 = vmatprep.mubr.f32.mxu1 %v11401_v42 }
 0x8b7   :  { %12920 = vst [vmem:[#allocation98_spill] sm:$0xff] %v11403_v3  ;;  %4705 = vmatmul.mubr.f32.vlgmr.msra.gmra.mrb[40].mxu0 %v11403_v3  ;;  %4776 = vmatmul.mubr.f32.vlgmr.msra.gmra.mrb[6].mxu1 %v11403_v3 }
 0x8b8   :  { %7959 = vmatpush1.bf16.msra.mxu1 %v12718_v6  ;;  %4846 = vmatprep.mubr.f32.mxu1 %v11401_v42 }
 0x8b9   :  { %7961 = vmatprep.subr.bf16.mxu1 %v12719_v25 }
 0x8bc   :  { %7963 = vmatpush1.bf16.msra.mxu1 %v12720_v52 }
 0x8bd   :  { %7965 = vmatprep.subr.bf16.mxu1 %v12721_v28 }
 0x8c0   :  { %7967 = vmatpush1.bf16.msra.mxu1 %v12818_v41 }
 0x8c1   :  { %7969 = vmatprep.subr.bf16.mxu1 %v12819_v63 }
 0x8c4   :  { %7971 = vmatpush1.bf16.msra.mxu1 %v12820_v48 }
 0x8c5   :  { %7973 = vmatprep.subr.bf16.mxu1 %v12821_v19 }
 0x8c8   :  { %7975 = vmatpush1.bf16.msra.mxu1 %v12822_v12 }
 0x8c9   :  { %7977 = vmatprep.subr.bf16.mxu1 %v12823_v37 }
 0x8cc   :  { %7979 = vmatpush1.bf16.msra.mxu1 %v12824_v4 }
 0x8cd   :  { %7981 = vmatprep.subr.bf16.mxu1 %v12825_v18 }
 0x8d0   :  { %7983 = vmatpush1.bf16.msra.mxu1 %v12826_v44 }
 0x8d1   :  { %7985 = vmatprep.subr.bf16.mxu1 %v12827_v59 }
 0x8d4   :  { %7987 = vmatpush1.bf16.msra.mxu1 %v12828_v10 }
 0x8d5   :  { %7989 = vmatprep.subr.bf16.mxu1 %v12829_v62 }
 0x8d8   :  { %7991 = vmatpush1.bf16.msra.mxu1 %v12830_v40 }
 0x8d9   :  { %7993 = vmatprep.subr.bf16.mxu1 %v12831_v13 }
 0x8dc   :  { %7995 = vmatpush1.bf16.msra.mxu1 %v12832_v38 }
 0x8dd   :  { %7997 = vmatprep.subr.bf16.mxu1 %v12833_v24 }
 0x8e0   :  { %7999 = vmatpush1.bf16.msra.mxu1 %v12834_v22 }
 0x8e1   :  { %8001 = vmatprep.subr.bf16.mxu1 %v12835_v27 }
 0x8e4   :  { %8003 = vmatpush1.bf16.msra.mxu1 %v12836_v1 }
 0x8e5   :  { %8005 = vmatprep.subr.bf16.mxu1 %v12837_v32 }
 0x8e8   :  { %8007 = vmatpush1.bf16.msra.mxu1 %v12838_v33 }
 0x8e9   :  { %8009 = vmatprep.subr.bf16.mxu1 %v12839_v58 }
 0x8ec   :  { %8011 = vmatpush1.bf16.msra.mxu1 %v12840_v29 }
 0x8ed   :  { %8013 = vmatprep.subr.bf16.mxu1 %v12841_v45 }
 0x8f0   :  { %8015 = vmatpush1.bf16.msra.mxu1 %v12842_v30 }
 0x8f1   :  { %8017 = vmatprep.subr.bf16.mxu1 %v12843_v8 }
 0x8f4   :  { %8019 = vmatpush1.bf16.msra.mxu1 %v12844_v5 }
 0x8f5   :  { %8021 = vmatprep.subr.bf16.mxu1 %v12845_v50 }
 0x8f7   :  { %4847 = vmatmul.mubr.f32.vlgmr.msra.gmra.mrb[22].mxu1 %v11403_v3 }
 0x8f8   :  { %8023 = vmatpush1.bf16.msra.mxu1 %v12846_v35  ;;  %4917 = vmatprep.mubr.f32.mxu1 %v11401_v42  ;;  %v12940_v42 = vld [vmem:[#allocation155_spill] sm:$0xff] }
 0x8f9   :  { %8025 = vmatprep.subr.bf16.mxu1 %v12847_v31 }
 0x8fc   :  { %8027 = vmatpush1.bf16.msra.mxu1 %v12848_v43 }
 0x8fd   :  { %8029 = vmatprep.subr.bf16.mxu1 %v12849_v14 }
 0x900   :  { %8031 = vmatpush1.bf16.msra.mxu1 %v12850_v16 }
 0x901   :  { %8033 = vmatprep.subr.bf16.mxu1 %v12921_v34 }
 0x904   :  { %8035 = vmatpush1.bf16.msra.mxu1 %v12922_v60 }
 0x905   :  { %8037 = vmatprep.subr.bf16.mxu1 %v12923_v56 }
 0x908   :  { %8039 = vmatpush1.bf16.msra.mxu1 %v12924_v15 }
 0x909   :  { %8041 = vmatprep.subr.bf16.mxu1 %v12925_v46 }
 0x90c   :  { %8043 = vmatpush1.bf16.msra.mxu1 %v12926_v0  ;;  %v12983_v0 = vld [vmem:[#allocation169_spill] sm:$0xff] }
 0x90d   :  { %8045 = vmatprep.subr.bf16.mxu1 %v12927_v54  ;;  %v12982_v54 = vld [vmem:[#allocation168_spill] sm:$0xff] }
 0x910   :  { %8047 = vmatpush1.bf16.msra.mxu1 %v12928_v53  ;;  %v12981_v53 = vld [vmem:[#allocation60_spill] sm:$0xff] }
 0x911   :  { %8049 = vmatprep.subr.bf16.mxu1 %v12929_v2 }
 0x914   :  { %8051 = vmatpush1.bf16.msra.mxu1 %v12930_v47  ;;  %v12941_v47 = vld [vmem:[#allocation156_spill] sm:$0xff] }
 0x915   :  { %8053 = vmatprep.subr.bf16.mxu1 %v12931_v7  ;;  %v12942_v7 = vld [vmem:[#allocation157_spill] sm:$0xff] }
 0x918   :  { %8055 = vmatpush1.bf16.msra.mxu1 %v12932_v49  ;;  %v12943_v49 = vld [vmem:[#allocation158_spill] sm:$0xff] }
 0x919   :  { %8057 = vmatprep.subr.bf16.mxu1 %v12933_v36  ;;  %v12944_v36 = vld [vmem:[#allocation159_spill] sm:$0xff] }
 0x91c   :  { %8059 = vmatpush1.bf16.msra.mxu1 %v12934_v39  ;;  %v12945_v39 = vld [vmem:[#allocation160_spill] sm:$0xff] }
 0x91d   :  { %8061 = vmatprep.subr.bf16.mxu1 %v12935_v9  ;;  %v12946_v9 = vld [vmem:[#allocation161_spill] sm:$0xff] }
 0x920   :  { %8063 = vmatpush1.bf16.msra.mxu1 %v12936_v26  ;;  %v12947_v26 = vld [vmem:[#allocation20_spill] sm:$0xff] }
 0x921   :  { %8065 = vmatprep.subr.bf16.mxu1 %v12937_v55  ;;  %v12980_v55 = vld [vmem:[#allocation59_spill] sm:$0xff] }
 0x924   :  { %8067 = vmatpush1.bf16.msra.mxu1 %v12938_v17  ;;  %v12948_v17 = vld [vmem:[#allocation21_spill] sm:$0xff] }
 0x925   :  { %8069 = vmatprep.subr.bf16.mxu1 %v12939_v21  ;;  %v12949_v21 = vld [vmem:[#allocation22_spill] sm:$0xff] }
 0x928   :  { %8071 = vmatpush1.bf16.msra.mxu1 %v12940_v42  ;;  %v12950_v42 = vld [vmem:[#allocation23_spill] sm:$0xff] }
 0x929   :  { %8073 = vmatprep.subr.bf16.mxu1 %v12941_v47  ;;  %v12951_v47 = vld [vmem:[#allocation24_spill] sm:$0xff] }
 0x92c   :  { %8075 = vmatpush1.bf16.msra.mxu1 %v12942_v7  ;;  %v12952_v7 = vld [vmem:[#allocation25_spill] sm:$0xff] }
 0x92d   :  { %8077 = vmatprep.subr.bf16.mxu1 %v12943_v49  ;;  %v12953_v49 = vld [vmem:[#allocation26_spill] sm:$0xff] }
 0x930   :  { %8079 = vmatpush1.bf16.msra.mxu1 %v12944_v36  ;;  %v12954_v36 = vld [vmem:[#allocation27_spill] sm:$0xff] }
 0x931   :  { %8081 = vmatprep.subr.bf16.mxu1 %v12945_v39  ;;  %v12955_v39 = vld [vmem:[#allocation28_spill] sm:$0xff] }
 0x934   :  { %8083 = vmatpush1.bf16.msra.mxu1 %v12946_v9  ;;  %v12956_v9 = vld [vmem:[#allocation29_spill] sm:$0xff] }
 0x935   :  { %8085 = vmatprep.subr.bf16.mxu1 %v12947_v26  ;;  %v12957_v26 = vld [vmem:[#allocation30_spill] sm:$0xff] }
 0x937   :  { %4918 = vmatmul.mubr.f32.vlgmr.msra.gmra.mrb[38].mxu1 %v11403_v3  ;;  %v12958_v3 = vld [vmem:[#allocation31_spill] sm:$0xff] }
 0x938   :  { %8087 = vmatpush1.bf16.msra.mxu1 %v12948_v17  ;;  %v12959_v17 = vld [vmem:[#allocation32_spill] sm:$0xff] }
 0x939   :  { %8089 = vmatprep.subr.bf16.mxu1 %v12949_v21  ;;  %v12960_v21 = vld [vmem:[#allocation33_spill] sm:$0xff] }
 0x93c   :  { %8091 = vmatpush1.bf16.msra.mxu1 %v12950_v42  ;;  %v12961_v42 = vld [vmem:[#allocation34_spill] sm:$0xff] }
 0x93d   :  { %8093 = vmatprep.subr.bf16.mxu1 %v12951_v47  ;;  %v12962_v47 = vld [vmem:[#allocation35_spill] sm:$0xff] }
 0x940   :  { %8095 = vmatpush1.bf16.msra.mxu1 %v12952_v7  ;;  %v12963_v7 = vld [vmem:[#allocation36_spill] sm:$0xff] }
 0x941   :  { %8097 = vmatprep.subr.bf16.mxu1 %v12953_v49  ;;  %v12964_v49 = vld [vmem:[#allocation37_spill] sm:$0xff] }
 0x944   :  { %8099 = vmatpush1.bf16.msra.mxu1 %v12954_v36  ;;  %v12965_v36 = vld [vmem:[#allocation38_spill] sm:$0xff] }
 0x945   :  { %8101 = vmatprep.subr.bf16.mxu1 %v12955_v39  ;;  %v12966_v39 = vld [vmem:[#allocation39_spill] sm:$0xff] }
 0x948   :  { %8103 = vmatpush1.bf16.msra.mxu1 %v12956_v9  ;;  %v12967_v9 = vld [vmem:[#allocation40_spill] sm:$0xff] }
 0x949   :  { %8105 = vmatprep.subr.bf16.mxu1 %v12957_v26  ;;  %v12968_v26 = vld [vmem:[#allocation41_spill] sm:$0xff] }
 0x94c   :  { %8107 = vmatpush1.bf16.msra.mxu1 %v12958_v3  ;;  %v12969_v3 = vld [vmem:[#allocation42_spill] sm:$0xff] }
 0x94d   :  { %8109 = vmatprep.subr.bf16.mxu1 %v12959_v17  ;;  %v12970_v17 = vld [vmem:[#allocation43_spill] sm:$0xff] }
 0x950   :  { %8111 = vmatpush1.bf16.msra.mxu1 %v12960_v21  ;;  %v12971_v21 = vld [vmem:[#allocation44_spill] sm:$0xff] }
 0x951   :  { %8113 = vmatprep.subr.bf16.mxu1 %v12961_v42  ;;  %v12972_v42 = vld [vmem:[#allocation45_spill] sm:$0xff] }
 0x954   :  { %8115 = vmatpush1.bf16.msra.mxu1 %v12962_v47  ;;  %v12973_v47 = vld [vmem:[#allocation46_spill] sm:$0xff] }
 0x955   :  { %8117 = vmatprep.subr.bf16.mxu1 %v12963_v7  ;;  %v12974_v7 = vld [vmem:[#allocation47_spill] sm:$0xff] }
 0x958   :  { %8119 = vmatpush1.bf16.msra.mxu1 %v12964_v49  ;;  %v12975_v49 = vld [vmem:[#allocation48_spill] sm:$0xff] }
 0x959   :  { %8121 = vmatprep.subr.bf16.mxu1 %v12965_v36  ;;  %v12976_v36 = vld [vmem:[#allocation49_spill] sm:$0xff] }
 0x95c   :  { %8123 = vmatpush1.bf16.msra.mxu1 %v12966_v39  ;;  %v12977_v39 = vld [vmem:[#allocation50_spill] sm:$0xff] }
 0x95d   :  { %8125 = vmatprep.subr.bf16.mxu1 %v12967_v9  ;;  %v12978_v9 = vld [vmem:[#allocation51_spill] sm:$0xff] }
 0x960   :  { %8127 = vmatpush1.bf16.msra.mxu1 %v12968_v26  ;;  %v12979_v26 = vld [vmem:[#allocation52_spill] sm:$0xff] }
 0x961   :  { %8129 = vmatprep.subr.bf16.mxu1 %v12969_v3 }
 0x964   :  { %8131 = vmatpush1.bf16.msra.mxu1 %v12970_v17 }
 0x965   :  { %8133 = vmatprep.subr.bf16.mxu1 %v12971_v21 }
 0x968   :  { %8135 = vmatpush1.bf16.msra.mxu1 %v12972_v42 }
 0x969   :  { %8137 = vmatprep.subr.bf16.mxu1 %v12973_v47 }
 0x96c   :  { %8139 = vmatpush1.bf16.msra.mxu1 %v12974_v7 }
 0x96d   :  { %8141 = vmatprep.subr.bf16.mxu1 %v12975_v49 }
 0x970   :  { %8143 = vmatpush1.bf16.msra.mxu1 %v12976_v36 }
 0x971   :  { %8145 = vmatprep.subr.bf16.mxu1 %v12977_v39 }
 0x974   :  { %8147 = vmatpush1.bf16.msra.mxu1 %v12978_v9 }
 0x975   :  { %8149 = vmatprep.subr.bf16.mxu1 %v12979_v26 }
 0x98a   :  { %v4706_v3 = vpop.f32.mrb[40].mxu0  ;;  %v4777_v17 = vpop.f32.mrb[6].mxu1 }
 0x98b   :  { %v9167_v21 = vadd.f32 %v12980_v55, %v4706_v3  ;;  %v4708_v2 = vpop.f32.mrb[41].mxu0  ;;  %v4779_v42 = vpop.f32.mrb[7].mxu1  ;;  %v9215_v7 = vadd.f32 %v12982_v54, %v4777_v17 }
 0x98c   :  { %v9171_v47 = vadd.f32 %v12981_v53, %v4708_v2  ;;  %v9217_v49 = vadd.f32 %v12983_v0, %v4779_v42 }
 0x98d   :  { %v6669_v46 = vmul.f32 -1.442695, %v9167_v21  ;;  %v6671_v36 = vmul.f32 -1.442695, %v9215_v7 }
 0x98e   :  { %v6670_v15 = vmul.f32 -1.442695, %v9171_v47  ;;  %v6672_v39 = vmul.f32 -1.442695, %v9217_v49 }
 0x98f   :  { %9508 = vpow2.f32 %v6669_v46 }
 0x990   :  { %9510 = vpow2.f32 %v6671_v36 }
 0x991   :  { %9512 = vpow2.f32 %v6670_v15 }
 0x992   :  { %9514 = vpow2.f32 %v6672_v39 }
 0x999   :  { %v9509_v26 = vpop.eup %9508 }
 0x99a   :  { %v9511_v9 = vpop.eup %9510  ;;  %v4938_v55 = vadd.f32 1.0, %v9509_v26 }
 0x99b   :  { %v9513_v56 = vpop.eup %9512  ;;  %v4950_v60 = vadd.f32 1.0, %v9511_v9 }
 0x99c   :  { %v9515_v3 = vpop.eup %9514  ;;  %v4939_v34 = vadd.f32 1.0, %v9513_v56  ;;  %9516 = vrcp.f32 %v4938_v55 }
 0x99d   :  { %v4951_v53 = vadd.f32 1.0, %v9515_v3  ;;  %9518 = vrcp.f32 %v4950_v60 }
 0x99e   :  { %9520 = vrcp.f32 %v4939_v34 }
 0x99f   :  { %9522 = vrcp.f32 %v4951_v53 }
 0x9a6   :  { %v9517_v15 = vpop.eup %9516 }
 0x9a7   :  { %v9519_v7 = vpop.eup %9518 }
 0x9a8   :  { %v9521_v49 = vpop.eup %9520  ;;  %v4970_v56 = vmul.f32 %v9519_v7, %v11391_v57 }
 0x9a9   :  { %v9523_v36 = vpop.eup %9522 }
 0x9aa   :  { %v4971_v60 = vmul.f32 %v9523_v36, %v11393_v23 }
 0x9ca   :  { %v4848_v2 = vpop.f32.mrb[22].mxu1 }
 0x9cb   :  { %v9253_v42 = vadd.f32 %v12814_v20, %v4848_v2  ;;  %v4850_v47 = vpop.f32.mrb[23].mxu1 }
 0x9cc   :  { %v9255_v46 = vadd.f32 %v11048_v61, %v4850_v47 }
 0x9cd   :  { %9524 = vtanh.f32 %v9253_v42 }
 0x9ce   :  { %9526 = vtanh.f32 %v9255_v46 }
 0x9d7   :  { %v9525_v39 = vpop.eup %9524 }
 0x9d8   :  { %v9527_v9 = vpop.eup %9526  ;;  %v4972_v26 = vmul.f32 %v9525_v39, %v9517_v15 }
 0x9d9   :  { %v4973_v34 = vmul.f32 %v9527_v9, %v9521_v49 }
 0x9da   :  { %v11517_v17 = vadd.f32 %v4972_v26, %v4970_v56  ;;  %v12986_v26 = vld [vmem:[#allocation61_spill] sm:$0xff] }
 0x9db   :  { %v11519_v21 = vadd.f32 %v4973_v34, %v4971_v60  ;;  %v12987_v60 = vld [vmem:[#allocation62_spill] sm:$0xff]  ;;  %v12988_v34 = vld [vmem:[#allocation63_spill] sm:$0xff] }
 0xa0a   :  { %v4919_v3 = vpop.f32.mrb[38].mxu1 }
 0xa0b   :  { %v9291_v55 = vadd.f32 %v11070_v11, %v4919_v3  ;;  %v4921_v53 = vpop.f32.mrb[39].mxu1  ;;  %v12989_v3 = vld [vmem:[#allocation64_spill] sm:$0xff] }
 0xa0c   :  { %v9293_v2 = vadd.f32 %v11072_v51, %v4921_v53  ;;  %v12991_v53 = vld [vmem:[#allocation66_spill] sm:$0xff] }
 0xa0d   :  { %v6673_v42 = vmul.f32 -1.442695, %v9291_v55  ;;  %v12990_v55 = vld [vmem:[#allocation65_spill] sm:$0xff] }
 0xa0e   :  { %v6674_v47 = vmul.f32 -1.442695, %v9293_v2  ;;  %v12992_v2 = vld [vmem:[#allocation67_spill] sm:$0xff] }
 0xa0f   :  { %9528 = vpow2.f32 %v6673_v42  ;;  %v12993_v42 = vld [vmem:[#allocation68_spill] sm:$0xff] }
 0xa10   :  { %9530 = vpow2.f32 %v6674_v47  ;;  %v12994_v47 = vld [vmem:[#allocation69_spill] sm:$0xff] }
 0xa11   :  { %9532 = vtanh.f32 %v11519_v21 }
 0xa19   :  { %v9529_v46 = vpop.eup %9528 }
 0xa1a   :  { %v9531_v57 = vpop.eup %9530  ;;  %v4964_v15 = vadd.f32 1.0, %v9529_v46  ;;  %v12995_v46 = vld [vmem:[#allocation70_spill] sm:$0xff] }
 0xa1b   :  { %v4965_v23 = vadd.f32 1.0, %v9531_v57  ;;  %v9533_v7 = vpop.eup %9532  ;;  %v12996_v57 = vld [vmem:[#allocation73_spill] sm:$0xff] }
 0xa1c   :  { %9534 = vrcp.f32 %v4964_v15  ;;  %v12997_v15 = vld [vmem:[#allocation74_spill] sm:$0xff] }
 0xa1d   :  { %9536 = vrcp.f32 %v4965_v23  ;;  %v12998_v23 = vld [vmem:[#allocation75_spill] sm:$0xff] }
 0xa1e   :  { %9538 = vtanh.f32 %v11517_v17 }
 0xa26   :  { %v9535_v49 = vpop.eup %9534 }
 0xa27   :  { %v9537_v36 = vpop.eup %9536 }
 0xa28   :  { %v9539_v39 = vpop.eup %9538  ;;  %v11525_v9 = vmul.f32 %v9537_v36, %v9533_v7  ;;  %v12999_v7 = vld [vmem:[#allocation76_spill] sm:$0xff]  ;;  %v13001_v36 = vld [vmem:[#allocation78_spill] sm:$0xff] }
 0xa29   :  { %v11527_v56 = vmul.f32 %v9539_v39, %v9535_v49  ;;  %v13000_v49 = vld [vmem:[#allocation77_spill] sm:$0xff]  ;;  %v13002_v39 = vld [vmem:[#allocation79_spill] sm:$0xff] }
 0xa2a   :  { %12984 = vst [vmem:[#allocation55_spill] sm:$0xff] %v11525_v9  ;;  %5054 = vmatprep.mubr.f32.mxu1 %v11525_v9 }
 0xa2b   :  { %12985 = vst [vmem:[#allocation56_spill] sm:$0xff] %v11527_v56  ;;  %5055 = vmatmul.mubr.f32.vlgmr.msra.gmra.mrb[54].mxu1 %v11527_v56 }
 0xa2c   :  { %8151 = vmatpush1.bf16.msra.mxu1 %v12986_v26  ;;  %5125 = vmatprep.mubr.f32.mxu1 %v11525_v9 }
 0xa2d   :  { %8153 = vmatprep.subr.bf16.mxu1 %v12987_v60 }
 0xa30   :  { %8155 = vmatpush1.bf16.msra.mxu1 %v12988_v34 }
 0xa31   :  { %8157 = vmatprep.subr.bf16.mxu1 %v12989_v3 }
 0xa34   :  { %8159 = vmatpush1.bf16.msra.mxu1 %v12990_v55 }
 0xa35   :  { %8161 = vmatprep.subr.bf16.mxu1 %v12991_v53 }
 0xa38   :  { %8163 = vmatpush1.bf16.msra.mxu1 %v12992_v2  ;;  %v13003_v2 = vld [vmem:[#allocation80_spill] sm:$0xff] }
 0xa39   :  { %8165 = vmatprep.subr.bf16.mxu1 %v12993_v42  ;;  %v13004_v42 = vld [vmem:[#allocation81_spill] sm:$0xff] }
 0xa3c   :  { %8167 = vmatpush1.bf16.msra.mxu1 %v12994_v47  ;;  %v13005_v47 = vld [vmem:[#allocation82_spill] sm:$0xff] }
 0xa3d   :  { %8169 = vmatprep.subr.bf16.mxu1 %v12995_v46  ;;  %v13006_v46 = vld [vmem:[#allocation83_spill] sm:$0xff] }
 0xa40   :  { %8171 = vmatpush1.bf16.msra.mxu1 %v12996_v57  ;;  %v13007_v57 = vld [vmem:[#allocation84_spill] sm:$0xff] }
 0xa41   :  { %8173 = vmatprep.subr.bf16.mxu1 %v12997_v15  ;;  %v13008_v15 = vld [vmem:[#allocation85_spill] sm:$0xff] }
 0xa44   :  { %8175 = vmatpush1.bf16.msra.mxu1 %v12998_v23  ;;  %v13009_v23 = vld [vmem:[#allocation86_spill] sm:$0xff] }
 0xa45   :  { %8177 = vmatprep.subr.bf16.mxu1 %v12999_v7  ;;  %v13010_v7 = vld [vmem:[#allocation87_spill] sm:$0xff] }
 0xa48   :  { %8179 = vmatpush1.bf16.msra.mxu1 %v13000_v49  ;;  %v13011_v49 = vld [vmem:[#allocation88_spill] sm:$0xff] }
 0xa49   :  { %8181 = vmatprep.subr.bf16.mxu1 %v13001_v36  ;;  %v13012_v36 = vld [vmem:[#allocation89_spill] sm:$0xff] }
 0xa4c   :  { %8183 = vmatpush1.bf16.msra.mxu1 %v13002_v39  ;;  %v13013_v39 = vld [vmem:[#allocation90_spill] sm:$0xff] }
 0xa4d   :  { %8185 = vmatprep.subr.bf16.mxu1 %v13003_v2  ;;  %v13014_v2 = vld [vmem:[#allocation91_spill] sm:$0xff] }
 0xa50   :  { %8187 = vmatpush1.bf16.msra.mxu1 %v13004_v42  ;;  %v13015_v42 = vld [vmem:[#allocation92_spill] sm:$0xff] }
 0xa51   :  { %8189 = vmatprep.subr.bf16.mxu1 %v13005_v47  ;;  %v13016_v47 = vld [vmem:[#allocation93_spill] sm:$0xff] }
 0xa54   :  { %8191 = vmatpush1.bf16.msra.mxu1 %v13006_v46  ;;  %v13017_v46 = vld [vmem:[#allocation94_spill] sm:$0xff] }
 0xa55   :  { %8193 = vmatprep.subr.bf16.mxu1 %v13007_v57 }
 0xa58   :  { %8195 = vmatpush1.bf16.msra.mxu1 %v13008_v15 }
 0xa59   :  { %8197 = vmatprep.subr.bf16.mxu1 %v13009_v23 }
 0xa5c   :  { %8199 = vmatpush1.bf16.msra.mxu1 %v13010_v7 }
 0xa5d   :  { %8201 = vmatprep.subr.bf16.mxu1 %v13011_v49 }
 0xa60   :  { %8203 = vmatpush1.bf16.msra.mxu1 %v13012_v36 }
 0xa61   :  { %8205 = vmatprep.subr.bf16.mxu1 %v13013_v39 }
 0xa64   :  { %8207 = vmatpush1.bf16.msra.mxu1 %v13014_v2 }
 0xa65   :  { %8209 = vmatprep.subr.bf16.mxu1 %v13015_v42 }
 0xa68   :  { %8211 = vmatpush1.bf16.msra.mxu1 %v13016_v47 }
 0xa69   :  { %8213 = vmatprep.subr.bf16.mxu1 %v13017_v46 }
 0xa6b   :  { %5126 = vmatmul.mubr.f32.vlgmr.msra.gmra.mrb[8].mxu1 %v11527_v56 }
 0xa6c   :  { %8215 = vmatpush1.bf16.msra.mxu1 %v12718_v6  ;;  %5196 = vmatprep.mubr.f32.mxu1 %v11525_v9 }
 0xa6d   :  { %8217 = vmatprep.subr.bf16.mxu1 %v12719_v25 }
 0xa70   :  { %8219 = vmatpush1.bf16.msra.mxu1 %v12720_v52 }
 0xa71   :  { %8221 = vmatprep.subr.bf16.mxu1 %v12721_v28 }
 0xa74   :  { %8223 = vmatpush1.bf16.msra.mxu1 %v12818_v41 }
 0xa75   :  { %8225 = vmatprep.subr.bf16.mxu1 %v12819_v63 }
 0xa78   :  { %8227 = vmatpush1.bf16.msra.mxu1 %v12820_v48 }
 0xa79   :  { %8229 = vmatprep.subr.bf16.mxu1 %v12821_v19 }
 0xa7c   :  { %8231 = vmatpush1.bf16.msra.mxu1 %v12822_v12 }
 0xa7d   :  { %8233 = vmatprep.subr.bf16.mxu1 %v12823_v37 }
 0xa80   :  { %8235 = vmatpush1.bf16.msra.mxu1 %v12824_v4 }
 0xa81   :  { %8237 = vmatprep.subr.bf16.mxu1 %v12825_v18 }
 0xa84   :  { %8239 = vmatpush1.bf16.msra.mxu1 %v12826_v44 }
 0xa85   :  { %8241 = vmatprep.subr.bf16.mxu1 %v12827_v59 }
 0xa88   :  { %8243 = vmatpush1.bf16.msra.mxu1 %v12828_v10 }
 0xa89   :  { %8245 = vmatprep.subr.bf16.mxu1 %v12829_v62 }
 0xa8c   :  { %8247 = vmatpush1.bf16.msra.mxu1 %v12830_v40 }
 0xa8d   :  { %8249 = vmatprep.subr.bf16.mxu1 %v12831_v13 }
 0xa90   :  { %8251 = vmatpush1.bf16.msra.mxu1 %v12832_v38 }
 0xa91   :  { %8253 = vmatprep.subr.bf16.mxu1 %v12833_v24 }
 0xa94   :  { %8255 = vmatpush1.bf16.msra.mxu1 %v12834_v22 }
 0xa95   :  { %8257 = vmatprep.subr.bf16.mxu1 %v12835_v27 }
 0xa98   :  { %8259 = vmatpush1.bf16.msra.mxu1 %v12836_v1 }
 0xa99   :  { %8261 = vmatprep.subr.bf16.mxu1 %v12837_v32  ;;  %v13059_v32 = vld [vmem:[#allocation31_spill] sm:$0xff] }
 0xa9c   :  { %8263 = vmatpush1.bf16.msra.mxu1 %v12838_v33 }
 0xa9d   :  { %8265 = vmatprep.subr.bf16.mxu1 %v12839_v58 }
 0xaa0   :  { %8267 = vmatpush1.bf16.msra.mxu1 %v12840_v29  ;;  %v13058_v29 = vld [vmem:[#allocation165_spill] sm:$0xff] }
 0xaa1   :  { %8269 = vmatprep.subr.bf16.mxu1 %v12841_v45  ;;  %v13022_v45 = vld [vmem:[#allocation138_spill] sm:$0xff] }
 0xaa4   :  { %8271 = vmatpush1.bf16.msra.mxu1 %v12842_v30  ;;  %v13018_v30 = vld [vmem:[#allocation134_spill] sm:$0xff] }
 0xaa5   :  { %8273 = vmatprep.subr.bf16.mxu1 %v12843_v8  ;;  %v13019_v8 = vld [vmem:[#allocation135_spill] sm:$0xff] }
 0xaa8   :  { %8275 = vmatpush1.bf16.msra.mxu1 %v12844_v5  ;;  %v13020_v5 = vld [vmem:[#allocation136_spill] sm:$0xff] }
 0xaa9   :  { %8277 = vmatprep.subr.bf16.mxu1 %v12845_v50  ;;  %v13021_v50 = vld [vmem:[#allocation137_spill] sm:$0xff] }
 0xaab   :  { %5197 = vmatmul.mubr.f32.vlgmr.msra.gmra.mrb[24].mxu1 %v11527_v56 }
 0xaac   :  { %8279 = vmatpush1.bf16.msra.mxu1 %v12846_v35  ;;  %5267 = vmatprep.mubr.f32.mxu1 %v11525_v9  ;;  %v13023_v35 = vld [vmem:[#allocation141_spill] sm:$0xff]  ;;  %v13024_v9 = vld [vmem:[#allocation142_spill] sm:$0xff] }
 0xaad   :  { %8281 = vmatprep.subr.bf16.mxu1 %v12847_v31  ;;  %v13025_v31 = vld [vmem:[#allocation143_spill] sm:$0xff] }
 0xab0   :  { %8283 = vmatpush1.bf16.msra.mxu1 %v12848_v43  ;;  %v13026_v43 = vld [vmem:[#allocation144_spill] sm:$0xff] }
 0xab1   :  { %8285 = vmatprep.subr.bf16.mxu1 %v12849_v14  ;;  %v13027_v14 = vld [vmem:[#allocation145_spill] sm:$0xff] }
 0xab4   :  { %8287 = vmatpush1.bf16.msra.mxu1 %v12850_v16  ;;  %v13028_v16 = vld [vmem:[#allocation146_spill] sm:$0xff] }
 0xab5   :  { %8289 = vmatprep.subr.bf16.mxu1 %v13018_v30  ;;  %v13029_v30 = vld [vmem:[#allocation147_spill] sm:$0xff] }
 0xab8   :  { %8291 = vmatpush1.bf16.msra.mxu1 %v13019_v8  ;;  %v13030_v8 = vld [vmem:[#allocation148_spill] sm:$0xff] }
 0xab9   :  { %8293 = vmatprep.subr.bf16.mxu1 %v13020_v5  ;;  %v13031_v5 = vld [vmem:[#allocation149_spill] sm:$0xff] }
 0xabc   :  { %8295 = vmatpush1.bf16.msra.mxu1 %v13021_v50  ;;  %v13032_v50 = vld [vmem:[#allocation150_spill] sm:$0xff] }
 0xabd   :  { %8297 = vmatprep.subr.bf16.mxu1 %v13022_v45  ;;  %v13033_v45 = vld [vmem:[#allocation151_spill] sm:$0xff] }
 0xac0   :  { %8299 = vmatpush1.bf16.msra.mxu1 %v13023_v35  ;;  %v13034_v35 = vld [vmem:[#allocation152_spill] sm:$0xff] }
 0xac1   :  { %8301 = vmatprep.subr.bf16.mxu1 %v13024_v9  ;;  %v13035_v9 = vld [vmem:[#allocation153_spill] sm:$0xff] }
 0xac4   :  { %8303 = vmatpush1.bf16.msra.mxu1 %v13025_v31  ;;  %v13036_v31 = vld [vmem:[#allocation154_spill] sm:$0xff] }
 0xac5   :  { %8305 = vmatprep.subr.bf16.mxu1 %v13026_v43  ;;  %v13037_v43 = vld [vmem:[#allocation155_spill] sm:$0xff] }
 0xac8   :  { %8307 = vmatpush1.bf16.msra.mxu1 %v13027_v14  ;;  %v13038_v14 = vld [vmem:[#allocation156_spill] sm:$0xff] }
 0xac9   :  { %8309 = vmatprep.subr.bf16.mxu1 %v13028_v16  ;;  %v13039_v16 = vld [vmem:[#allocation157_spill] sm:$0xff] }
 0xacc   :  { %8311 = vmatpush1.bf16.msra.mxu1 %v13029_v30  ;;  %v13040_v30 = vld [vmem:[#allocation158_spill] sm:$0xff] }
 0xacd   :  { %8313 = vmatprep.subr.bf16.mxu1 %v13030_v8  ;;  %v13041_v8 = vld [vmem:[#allocation159_spill] sm:$0xff] }
 0xad0   :  { %8315 = vmatpush1.bf16.msra.mxu1 %v13031_v5  ;;  %v13042_v5 = vld [vmem:[#allocation160_spill] sm:$0xff] }
 0xad1   :  { %8317 = vmatprep.subr.bf16.mxu1 %v13032_v50  ;;  %v13043_v50 = vld [vmem:[#allocation161_spill] sm:$0xff] }
 0xad4   :  { %8319 = vmatpush1.bf16.msra.mxu1 %v13033_v45  ;;  %v13044_v45 = vld [vmem:[#allocation20_spill] sm:$0xff] }
 0xad5   :  { %8321 = vmatprep.subr.bf16.mxu1 %v13034_v35 }
 0xad8   :  { %8323 = vmatpush1.bf16.msra.mxu1 %v13035_v9  ;;  %v13045_v9 = vld [vmem:[#allocation21_spill] sm:$0xff] }
 0xad9   :  { %8325 = vmatprep.subr.bf16.mxu1 %v13036_v31  ;;  %v13046_v31 = vld [vmem:[#allocation22_spill] sm:$0xff] }
 0xadc   :  { %8327 = vmatpush1.bf16.msra.mxu1 %v13037_v43  ;;  %v13047_v43 = vld [vmem:[#allocation23_spill] sm:$0xff] }
 0xadd   :  { %8329 = vmatprep.subr.bf16.mxu1 %v13038_v14  ;;  %v13048_v14 = vld [vmem:[#allocation24_spill] sm:$0xff] }
 0xae0   :  { %8331 = vmatpush1.bf16.msra.mxu1 %v13039_v16  ;;  %v13049_v16 = vld [vmem:[#allocation25_spill] sm:$0xff] }
 0xae1   :  { %8333 = vmatprep.subr.bf16.mxu1 %v13040_v30  ;;  %v13050_v30 = vld [vmem:[#allocation26_spill] sm:$0xff] }
 0xae4   :  { %8335 = vmatpush1.bf16.msra.mxu1 %v13041_v8  ;;  %v13051_v8 = vld [vmem:[#allocation27_spill] sm:$0xff] }
 0xae5   :  { %8337 = vmatprep.subr.bf16.mxu1 %v13042_v5  ;;  %v13052_v5 = vld [vmem:[#allocation28_spill] sm:$0xff] }
 0xae8   :  { %8339 = vmatpush1.bf16.msra.mxu1 %v13043_v50  ;;  %v13053_v50 = vld [vmem:[#allocation29_spill] sm:$0xff] }
 0xae9   :  { %8341 = vmatprep.subr.bf16.mxu1 %v13044_v45  ;;  %v13054_v45 = vld [vmem:[#allocation71_spill] sm:$0xff] }
 0xaeb   :  { %5268 = vmatmul.mubr.f32.vlgmr.msra.gmra.mrb[40].mxu1 %v11527_v56  ;;  %v13055_v56 = vld [vmem:[#allocation164_spill] sm:$0xff] }
 0xaec   :  { %8343 = vmatpush1.bf16.msra.mxu1 %v13045_v9  ;;  %v9173_v35 = vadd.f32 %v13055_v56, %v13054_v45  ;;  %v13056_v9 = vld [vmem:[#allocation30_spill] sm:$0xff]  ;;  %v13064_v45 = vld [vmem:[#allocation36_spill] sm:$0xff] }
 0xaed   :  { %8345 = vmatprep.subr.bf16.mxu1 %v13046_v31  ;;  %v13057_v31 = vld [vmem:[#allocation72_spill] sm:$0xff]  ;;  %v13066_v56 = vld [vmem:[#allocation38_spill] sm:$0xff] }
 0xaf0   :  { %8347 = vmatpush1.bf16.msra.mxu1 %v13047_v43  ;;  %v9176_v43 = vadd.f32 %v13058_v29, %v13057_v31  ;;  %v13067_v31 = vld [vmem:[#allocation39_spill] sm:$0xff] }
 0xaf1   :  { %8349 = vmatprep.subr.bf16.mxu1 %v13048_v14 }
 0xaf4   :  { %8351 = vmatpush1.bf16.msra.mxu1 %v13049_v16 }
 0xaf5   :  { %8353 = vmatprep.subr.bf16.mxu1 %v13050_v30  ;;  %v13060_v30 = vld [vmem:[#allocation32_spill] sm:$0xff] }
 0xaf8   :  { %8355 = vmatpush1.bf16.msra.mxu1 %v13051_v8  ;;  %v13061_v8 = vld [vmem:[#allocation33_spill] sm:$0xff] }
 0xaf9   :  { %8357 = vmatprep.subr.bf16.mxu1 %v13052_v5  ;;  %v13062_v5 = vld [vmem:[#allocation34_spill] sm:$0xff] }
 0xafc   :  { %8359 = vmatpush1.bf16.msra.mxu1 %v13053_v50  ;;  %v13063_v50 = vld [vmem:[#allocation35_spill] sm:$0xff] }
 0xafd   :  { %8361 = vmatprep.subr.bf16.mxu1 %v13056_v9  ;;  %v13065_v9 = vld [vmem:[#allocation37_spill] sm:$0xff] }
 0xafe   :  { %v5056_v58 = vpop.f32.mrb[54].mxu1 }
 0xaff   :  { %v9174_v14 = vadd.f32 %v9173_v35, %v5056_v58  ;;  %v5058_v33 = vpop.f32.mrb[55].mxu1  ;;  %v13068_v58 = vld [vmem:[#allocation40_spill] sm:$0xff]  ;;  %v13070_v35 = vld [vmem:[#allocation42_spill] sm:$0xff] }
 0xb00   :  { %v9177_v16 = vadd.f32 %v9176_v43, %v5058_v33  ;;  %8363 = vmatpush1.bf16.msra.mxu1 %v13059_v32  ;;  %v13069_v43 = vld [vmem:[#allocation41_spill] sm:$0xff]  ;;  %v13071_v33 = vld [vmem:[#allocation43_spill] sm:$0xff] }
 0xb01   :  { %8365 = vmatprep.subr.bf16.mxu1 %v13060_v30  ;;  %v6675_v30 = vmul.f32 -1.442695, %v9174_v14 }
 0xb03   :  { %9540 = vpow2.f32 %v6675_v30 }
 0xb04   :  { %8367 = vmatpush1.bf16.msra.mxu1 %v13061_v8  ;;  %v13072_v8 = vld [vmem:[#allocation44_spill] sm:$0xff] }
 0xb05   :  { %8369 = vmatprep.subr.bf16.mxu1 %v13062_v5  ;;  %v13073_v5 = vld [vmem:[#allocation45_spill] sm:$0xff] }
 0xb08   :  { %8371 = vmatpush1.bf16.msra.mxu1 %v13063_v50  ;;  %v13074_v50 = vld [vmem:[#allocation46_spill] sm:$0xff] }
 0xb09   :  { %8373 = vmatprep.subr.bf16.mxu1 %v13064_v45  ;;  %v13075_v45 = vld [vmem:[#allocation47_spill] sm:$0xff] }
 0xb0c   :  { %8375 = vmatpush1.bf16.msra.mxu1 %v13065_v9  ;;  %v13076_v9 = vld [vmem:[#allocation48_spill] sm:$0xff] }
 0xb0d   :  { %8377 = vmatprep.subr.bf16.mxu1 %v13066_v56  ;;  %v13077_v56 = vld [vmem:[#allocation49_spill] sm:$0xff] }
 0xb10   :  { %8379 = vmatpush1.bf16.msra.mxu1 %v13067_v31  ;;  %v13078_v31 = vld [vmem:[#allocation50_spill] sm:$0xff] }
 0xb11   :  { %8381 = vmatprep.subr.bf16.mxu1 %v13068_v58  ;;  %v13079_v58 = vld [vmem:[#allocation51_spill] sm:$0xff] }
 0xb14   :  { %8383 = vmatpush1.bf16.msra.mxu1 %v13069_v43  ;;  %v13080_v43 = vld [vmem:[#allocation52_spill] sm:$0xff] }
 0xb15   :  { %8385 = vmatprep.subr.bf16.mxu1 %v13070_v35 }
 0xb18   :  { %8387 = vmatpush1.bf16.msra.mxu1 %v13071_v33 }
 0xb19   :  { %8389 = vmatprep.subr.bf16.mxu1 %v13072_v8 }
 0xb1c   :  { %8391 = vmatpush1.bf16.msra.mxu1 %v13073_v5 }
 0xb1d   :  { %8393 = vmatprep.subr.bf16.mxu1 %v13074_v50  ;;  %v6676_v50 = vmul.f32 -1.442695, %v9177_v16 }
 0xb1f   :  { %9542 = vpow2.f32 %v6676_v50 }
 0xb20   :  { %8395 = vmatpush1.bf16.msra.mxu1 %v13075_v45 }
 0xb21   :  { %8397 = vmatprep.subr.bf16.mxu1 %v13076_v9 }
 0xb24   :  { %8399 = vmatpush1.bf16.msra.mxu1 %v13077_v56  ;;  %v9541_v56 = vpop.eup %9540 }
 0xb25   :  { %8401 = vmatprep.subr.bf16.mxu1 %v13078_v31  ;;  %v5288_v29 = vadd.f32 1.0, %v9541_v56 }
 0xb28   :  { %8403 = vmatpush1.bf16.msra.mxu1 %v13079_v58 }
 0xb29   :  { %8405 = vmatprep.subr.bf16.mxu1 %v13080_v43  ;;  %v9543_v31 = vpop.eup %9542 }
 0xb2a   :  { %v5289_v43 = vadd.f32 1.0, %v9543_v31 }
 0xb3e   :  { %v5127_v35 = vpop.f32.mrb[8].mxu1 }
 0xb3f   :  { %v5129_v33 = vpop.f32.mrb[9].mxu1  ;;  %v9219_v8 = vadd.f32 %v12982_v54, %v5127_v35 }
 0xb40   :  { %v9221_v5 = vadd.f32 %v12983_v0, %v5129_v33 }
 0xb41   :  { %v6677_v32 = vmul.f32 -1.442695, %v9219_v8 }
 0xb42   :  { %v6678_v45 = vmul.f32 -1.442695, %v9221_v5 }
 0xb43   :  { %9544 = vpow2.f32 %v6677_v32 }
 0xb44   :  { %9546 = vpow2.f32 %v6678_v45 }
 0xb45   :  { %9548 = vrcp.f32 %v5288_v29 }
 0xb46   :  { %9550 = vrcp.f32 %v5289_v43 }
 0xb4d   :  { %v9545_v9 = vpop.eup %9544 }
 0xb4e   :  { %v9547_v58 = vpop.eup %9546  ;;  %v5300_v1 = vadd.f32 1.0, %v9545_v9 }
 0xb4f   :  { %v5301_v27 = vadd.f32 1.0, %v9547_v58  ;;  %v9549_v8 = vpop.eup %9548 }
 0xb50   :  { %9552 = vrcp.f32 %v5300_v1  ;;  %v9551_v50 = vpop.eup %9550 }
 0xb51   :  { %9554 = vrcp.f32 %v5301_v27 }
 0xb5a   :  { %v9553_v5 = vpop.eup %9552 }
 0xb5b   :  { %v9555_v32 = vpop.eup %9554  ;;  %v5320_v9 = vmul.f32 %v9553_v5, %v11517_v17 }
 0xb5c   :  { %v5321_v31 = vmul.f32 %v9555_v32, %v11519_v21 }
 0xb7e   :  { %v5198_v35 = vpop.f32.mrb[24].mxu1 }
 0xb7f   :  { %v9257_v16 = vadd.f32 %v12814_v20, %v5198_v35  ;;  %v5200_v14 = vpop.f32.mrb[25].mxu1 }
 0xb80   :  { %v9259_v30 = vadd.f32 %v11048_v61, %v5200_v14 }
 0xb81   :  { %9556 = vtanh.f32 %v9257_v16 }
 0xb82   :  { %9558 = vtanh.f32 %v9259_v30 }
 0xb8b   :  { %v9557_v56 = vpop.eup %9556 }
 0xb8c   :  { %v9559_v45 = vpop.eup %9558  ;;  %v5322_v29 = vmul.f32 %v9557_v56, %v9549_v8 }
 0xb8d   :  { %v5323_v1 = vmul.f32 %v9559_v45, %v9551_v50 }
 0xb8e   :  { %v11675_v58 = vadd.f32 %v5322_v29, %v5320_v9  ;;  %v13084_v29 = vld [vmem:[#allocation68_spill] sm:$0xff] }
 0xb8f   :  { %v11677_v43 = vadd.f32 %v5323_v1, %v5321_v31  ;;  %v13085_v31 = vld [vmem:[#allocation69_spill] sm:$0xff]  ;;  %v13086_v1 = vld [vmem:[#allocation70_spill] sm:$0xff] }
 0xbbe   :  { %v5269_v27 = vpop.f32.mrb[40].mxu1 }
 0xbbf   :  { %v9295_v33 = vadd.f32 %v11070_v11, %v5269_v27  ;;  %v5271_v35 = vpop.f32.mrb[41].mxu1  ;;  %v13087_v27 = vld [vmem:[#allocation73_spill] sm:$0xff] }
 0xbc0   :  { %v9297_v16 = vadd.f32 %v11072_v51, %v5271_v35  ;;  %v13089_v35 = vld [vmem:[#allocation75_spill] sm:$0xff] }
 0xbc1   :  { %v6679_v14 = vmul.f32 -1.442695, %v9295_v33  ;;  %v13088_v33 = vld [vmem:[#allocation74_spill] sm:$0xff] }
 0xbc2   :  { %v6680_v30 = vmul.f32 -1.442695, %v9297_v16  ;;  %v13090_v16 = vld [vmem:[#allocation76_spill] sm:$0xff] }
 0xbc3   :  { %9560 = vpow2.f32 %v6679_v14  ;;  %v13091_v14 = vld [vmem:[#allocation77_spill] sm:$0xff] }
 0xbc4   :  { %9562 = vpow2.f32 %v6680_v30  ;;  %v13092_v30 = vld [vmem:[#allocation78_spill] sm:$0xff] }
 0xbc5   :  { %9564 = vtanh.f32 %v11677_v43 }
 0xbcd   :  { %v9561_v61 = vpop.eup %9560 }
 0xbce   :  { %v9563_v17 = vpop.eup %9562  ;;  %v5314_v8 = vadd.f32 1.0, %v9561_v61  ;;  %v13083_v61 = vld [vmem:[#allocation67_spill] sm:$0xff] }
 0xbcf   :  { %v5315_v21 = vadd.f32 1.0, %v9563_v17  ;;  %v9565_v50 = vpop.eup %9564  ;;  %v13093_v17 = vld [vmem:[#allocation79_spill] sm:$0xff] }
 0xbd0   :  { %9566 = vrcp.f32 %v5314_v8  ;;  %v13094_v8 = vld [vmem:[#allocation80_spill] sm:$0xff] }
 0xbd1   :  { %9568 = vrcp.f32 %v5315_v21  ;;  %v13095_v21 = vld [vmem:[#allocation81_spill] sm:$0xff] }
 0xbd2   :  { %9570 = vtanh.f32 %v11675_v58 }
 0xbda   :  { %v9567_v5 = vpop.eup %9566 }
 0xbdb   :  { %v9569_v32 = vpop.eup %9568 }
 0xbdc   :  { %v9571_v56 = vpop.eup %9570  ;;  %v11683_v45 = vmul.f32 %v9569_v32, %v9565_v50  ;;  %v13096_v50 = vld [vmem:[#allocation82_spill] sm:$0xff] }
 0xbdd   :  { %v11685_v9 = vmul.f32 %v9571_v56, %v9567_v5  ;;  %v13097_v5 = vld [vmem:[#allocation83_spill] sm:$0xff]  ;;  %v13098_v32 = vld [vmem:[#allocation118_spill] sm:$0xff] }
 0xbde   :  { %13081 = vst [vmem:[#allocation166_spill] sm:$0xff] %v11683_v45  ;;  %5404 = vmatprep.mubr.f32.mxu1 %v11683_v45  ;;  %v13099_v56 = vld [vmem:[#allocation119_spill] sm:$0xff] }
 0xbdf   :  { %13082 = vst [vmem:[#allocation167_spill] sm:$0xff] %v11685_v9  ;;  %5405 = vmatmul.mubr.f32.vlgmr.msra.gmra.mrb[52].mxu1 %v11685_v9 }
 0xbe0   :  { %8407 = vmatpush1.bf16.msra.mxu1 %v12986_v26  ;;  %5475 = vmatprep.mubr.f32.mxu1 %v11683_v45 }
 0xbe1   :  { %8409 = vmatprep.subr.bf16.mxu1 %v12987_v60 }
 0xbe4   :  { %8411 = vmatpush1.bf16.msra.mxu1 %v12988_v34 }
 0xbe5   :  { %8413 = vmatprep.subr.bf16.mxu1 %v12989_v3 }
 0xbe8   :  { %8415 = vmatpush1.bf16.msra.mxu1 %v12990_v55 }
 0xbe9   :  { %8417 = vmatprep.subr.bf16.mxu1 %v12991_v53 }
 0xbec   :  { %8419 = vmatpush1.bf16.msra.mxu1 %v13083_v61 }
 0xbed   :  { %8421 = vmatprep.subr.bf16.mxu1 %v13084_v29 }
 0xbf0   :  { %8423 = vmatpush1.bf16.msra.mxu1 %v13085_v31 }
 0xbf1   :  { %8425 = vmatprep.subr.bf16.mxu1 %v13086_v1 }
 0xbf4   :  { %8427 = vmatpush1.bf16.msra.mxu1 %v13087_v27 }
 0xbf5   :  { %8429 = vmatprep.subr.bf16.mxu1 %v13088_v33 }
 0xbf8   :  { %8431 = vmatpush1.bf16.msra.mxu1 %v13089_v35 }
 0xbf9   :  { %8433 = vmatprep.subr.bf16.mxu1 %v13090_v16 }
 0xbfc   :  { %8435 = vmatpush1.bf16.msra.mxu1 %v13091_v14 }
 0xbfd   :  { %8437 = vmatprep.subr.bf16.mxu1 %v13092_v30 }
 0xc00   :  { %8439 = vmatpush1.bf16.msra.mxu1 %v13093_v17 }
 0xc01   :  { %8441 = vmatprep.subr.bf16.mxu1 %v13094_v8 }
 0xc04   :  { %8443 = vmatpush1.bf16.msra.mxu1 %v13095_v21 }
 0xc05   :  { %8445 = vmatprep.subr.bf16.mxu1 %v13096_v50 }
 0xc08   :  { %8447 = vmatpush1.bf16.msra.mxu1 %v13097_v5 }
 0xc09   :  { %8449 = vmatprep.subr.bf16.mxu1 %v13007_v57 }
 0xc0c   :  { %8451 = vmatpush1.bf16.msra.mxu1 %v13008_v15 }
 0xc0d   :  { %8453 = vmatprep.subr.bf16.mxu1 %v13009_v23 }
 0xc10   :  { %8455 = vmatpush1.bf16.msra.mxu1 %v13010_v7 }
 0xc11   :  { %8457 = vmatprep.subr.bf16.mxu1 %v13011_v49 }
 0xc14   :  { %8459 = vmatpush1.bf16.msra.mxu1 %v13012_v36 }
 0xc15   :  { %8461 = vmatprep.subr.bf16.mxu1 %v13013_v39 }
 0xc18   :  { %8463 = vmatpush1.bf16.msra.mxu1 %v13014_v2 }
 0xc19   :  { %8465 = vmatprep.subr.bf16.mxu1 %v13015_v42 }
 0xc1c   :  { %8467 = vmatpush1.bf16.msra.mxu1 %v13016_v47 }
 0xc1d   :  { %8469 = vmatprep.subr.bf16.mxu1 %v13017_v46 }
 0xc1f   :  { %5476 = vmatmul.mubr.f32.vlgmr.msra.gmra.mrb[10].mxu1 %v11685_v9 }
 0xc20   :  { %8471 = vmatpush1.bf16.msra.mxu1 %v12718_v6  ;;  %5546 = vmatprep.mubr.f32.mxu1 %v11683_v45 }
 0xc21   :  { %8473 = vmatprep.subr.bf16.mxu1 %v12719_v25 }
 0xc24   :  { %8475 = vmatpush1.bf16.msra.mxu1 %v12720_v52 }
 0xc25   :  { %8477 = vmatprep.subr.bf16.mxu1 %v12721_v28 }
 0xc28   :  { %8479 = vmatpush1.bf16.msra.mxu1 %v12818_v41 }
 0xc29   :  { %8481 = vmatprep.subr.bf16.mxu1 %v12819_v63 }
 0xc2c   :  { %8483 = vmatpush1.bf16.msra.mxu1 %v12820_v48 }
 0xc2d   :  { %8485 = vmatprep.subr.bf16.mxu1 %v12821_v19 }
 0xc30   :  { %8487 = vmatpush1.bf16.msra.mxu1 %v12822_v12 }
 0xc31   :  { %8489 = vmatprep.subr.bf16.mxu1 %v12823_v37  ;;  %v13155_v37 = vld [vmem:[#allocation31_spill] sm:$0xff] }
 0xc34   :  { %8491 = vmatpush1.bf16.msra.mxu1 %v12824_v4 }
 0xc35   :  { %8493 = vmatprep.subr.bf16.mxu1 %v12825_v18 }
 0xc38   :  { %8495 = vmatpush1.bf16.msra.mxu1 %v12826_v44  ;;  %v13100_v44 = vld [vmem:[#allocation120_spill] sm:$0xff] }
 0xc39   :  { %8497 = vmatprep.subr.bf16.mxu1 %v12827_v59  ;;  %v13101_v59 = vld [vmem:[#allocation121_spill] sm:$0xff] }
 0xc3c   :  { %8499 = vmatpush1.bf16.msra.mxu1 %v12828_v10  ;;  %v13102_v10 = vld [vmem:[#allocation122_spill] sm:$0xff] }
 0xc3d   :  { %8501 = vmatprep.subr.bf16.mxu1 %v12829_v62  ;;  %v13103_v62 = vld [vmem:[#allocation123_spill] sm:$0xff] }
 0xc40   :  { %8503 = vmatpush1.bf16.msra.mxu1 %v12830_v40  ;;  %v13104_v40 = vld [vmem:[#allocation124_spill] sm:$0xff] }
 0xc41   :  { %8505 = vmatprep.subr.bf16.mxu1 %v12831_v13  ;;  %v13105_v13 = vld [vmem:[#allocation125_spill] sm:$0xff] }
 0xc44   :  { %8507 = vmatpush1.bf16.msra.mxu1 %v12832_v38  ;;  %v13106_v38 = vld [vmem:[#allocation126_spill] sm:$0xff] }
 0xc45   :  { %8509 = vmatprep.subr.bf16.mxu1 %v12833_v24  ;;  %v13107_v24 = vld [vmem:[#allocation127_spill] sm:$0xff] }
 0xc48   :  { %8511 = vmatpush1.bf16.msra.mxu1 %v12834_v22  ;;  %v13108_v22 = vld [vmem:[#allocation128_spill] sm:$0xff] }
 0xc49   :  { %8513 = vmatprep.subr.bf16.mxu1 %v13098_v32  ;;  %v13154_v32 = vld [vmem:[#allocation165_spill] sm:$0xff] }
 0xc4c   :  { %8515 = vmatpush1.bf16.msra.mxu1 %v13099_v56  ;;  %v13109_v56 = vld [vmem:[#allocation129_spill] sm:$0xff] }
 0xc4d   :  { %8517 = vmatprep.subr.bf16.mxu1 %v13100_v44  ;;  %v13118_v44 = vld [vmem:[#allocation138_spill] sm:$0xff] }
 0xc50   :  { %8519 = vmatpush1.bf16.msra.mxu1 %v13101_v59  ;;  %v13110_v59 = vld [vmem:[#allocation130_spill] sm:$0xff] }
 0xc51   :  { %8521 = vmatprep.subr.bf16.mxu1 %v13102_v10  ;;  %v13111_v10 = vld [vmem:[#allocation131_spill] sm:$0xff] }
 0xc54   :  { %8523 = vmatpush1.bf16.msra.mxu1 %v13103_v62  ;;  %v13112_v62 = vld [vmem:[#allocation132_spill] sm:$0xff] }
 0xc55   :  { %8525 = vmatprep.subr.bf16.mxu1 %v13104_v40  ;;  %v13113_v40 = vld [vmem:[#allocation133_spill] sm:$0xff] }
 0xc58   :  { %8527 = vmatpush1.bf16.msra.mxu1 %v13105_v13  ;;  %v13114_v13 = vld [vmem:[#allocation134_spill] sm:$0xff] }
 0xc59   :  { %8529 = vmatprep.subr.bf16.mxu1 %v13106_v38  ;;  %v13115_v38 = vld [vmem:[#allocation135_spill] sm:$0xff] }
 0xc5c   :  { %8531 = vmatpush1.bf16.msra.mxu1 %v13107_v24  ;;  %v13116_v24 = vld [vmem:[#allocation136_spill] sm:$0xff] }
 0xc5d   :  { %8533 = vmatprep.subr.bf16.mxu1 %v13108_v22  ;;  %v13117_v22 = vld [vmem:[#allocation137_spill] sm:$0xff] }
 0xc5f   :  { %5547 = vmatmul.mubr.f32.vlgmr.msra.gmra.mrb[26].mxu1 %v11685_v9 }
 0xc60   :  { %8535 = vmatpush1.bf16.msra.mxu1 %v13109_v56  ;;  %5617 = vmatprep.mubr.f32.mxu1 %v11683_v45  ;;  %v13119_v56 = vld [vmem:[#allocation141_spill] sm:$0xff]  ;;  %v13120_v45 = vld [vmem:[#allocation142_spill] sm:$0xff] }
 0xc61   :  { %8537 = vmatprep.subr.bf16.mxu1 %v13110_v59  ;;  %v13121_v59 = vld [vmem:[#allocation143_spill] sm:$0xff] }
 0xc64   :  { %8539 = vmatpush1.bf16.msra.mxu1 %v13111_v10  ;;  %v13122_v10 = vld [vmem:[#allocation144_spill] sm:$0xff] }
 0xc65   :  { %8541 = vmatprep.subr.bf16.mxu1 %v13112_v62  ;;  %v13123_v62 = vld [vmem:[#allocation145_spill] sm:$0xff] }
 0xc68   :  { %8543 = vmatpush1.bf16.msra.mxu1 %v13113_v40  ;;  %v13124_v40 = vld [vmem:[#allocation146_spill] sm:$0xff] }
 0xc69   :  { %8545 = vmatprep.subr.bf16.mxu1 %v13114_v13  ;;  %v13125_v13 = vld [vmem:[#allocation147_spill] sm:$0xff] }
 0xc6c   :  { %8547 = vmatpush1.bf16.msra.mxu1 %v13115_v38  ;;  %v13126_v38 = vld [vmem:[#allocation148_spill] sm:$0xff] }
 0xc6d   :  { %8549 = vmatprep.subr.bf16.mxu1 %v13116_v24  ;;  %v13127_v24 = vld [vmem:[#allocation149_spill] sm:$0xff] }
 0xc70   :  { %8551 = vmatpush1.bf16.msra.mxu1 %v13117_v22  ;;  %v13128_v22 = vld [vmem:[#allocation150_spill] sm:$0xff] }
 0xc71   :  { %8553 = vmatprep.subr.bf16.mxu1 %v13118_v44  ;;  %v13129_v44 = vld [vmem:[#allocation151_spill] sm:$0xff] }
 0xc74   :  { %8555 = vmatpush1.bf16.msra.mxu1 %v13119_v56  ;;  %v13130_v56 = vld [vmem:[#allocation152_spill] sm:$0xff] }
 0xc75   :  { %8557 = vmatprep.subr.bf16.mxu1 %v13120_v45  ;;  %v13131_v45 = vld [vmem:[#allocation153_spill] sm:$0xff] }
 0xc78   :  { %8559 = vmatpush1.bf16.msra.mxu1 %v13121_v59  ;;  %v13132_v59 = vld [vmem:[#allocation154_spill] sm:$0xff] }
 0xc79   :  { %8561 = vmatprep.subr.bf16.mxu1 %v13122_v10  ;;  %v13133_v10 = vld [vmem:[#allocation155_spill] sm:$0xff] }
 0xc7c   :  { %8563 = vmatpush1.bf16.msra.mxu1 %v13123_v62  ;;  %v13134_v62 = vld [vmem:[#allocation156_spill] sm:$0xff] }
 0xc7d   :  { %8565 = vmatprep.subr.bf16.mxu1 %v13124_v40  ;;  %v13135_v40 = vld [vmem:[#allocation157_spill] sm:$0xff] }
 0xc80   :  { %8567 = vmatpush1.bf16.msra.mxu1 %v13125_v13  ;;  %v13136_v13 = vld [vmem:[#allocation158_spill] sm:$0xff] }
 0xc81   :  { %8569 = vmatprep.subr.bf16.mxu1 %v13126_v38  ;;  %v13137_v38 = vld [vmem:[#allocation159_spill] sm:$0xff] }
 0xc84   :  { %8571 = vmatpush1.bf16.msra.mxu1 %v13127_v24  ;;  %v13138_v24 = vld [vmem:[#allocation160_spill] sm:$0xff] }
 0xc85   :  { %8573 = vmatprep.subr.bf16.mxu1 %v13128_v22  ;;  %v13139_v22 = vld [vmem:[#allocation161_spill] sm:$0xff] }
 0xc88   :  { %8575 = vmatpush1.bf16.msra.mxu1 %v13129_v44  ;;  %v13140_v44 = vld [vmem:[#allocation20_spill] sm:$0xff] }
 0xc89   :  { %8577 = vmatprep.subr.bf16.mxu1 %v13130_v56 }
 0xc8c   :  { %8579 = vmatpush1.bf16.msra.mxu1 %v13131_v45  ;;  %v13141_v45 = vld [vmem:[#allocation21_spill] sm:$0xff] }
 0xc8d   :  { %8581 = vmatprep.subr.bf16.mxu1 %v13132_v59  ;;  %v13142_v59 = vld [vmem:[#allocation22_spill] sm:$0xff] }
 0xc90   :  { %8583 = vmatpush1.bf16.msra.mxu1 %v13133_v10  ;;  %v13143_v10 = vld [vmem:[#allocation23_spill] sm:$0xff] }
 0xc91   :  { %8585 = vmatprep.subr.bf16.mxu1 %v13134_v62  ;;  %v13144_v62 = vld [vmem:[#allocation24_spill] sm:$0xff] }
 0xc94   :  { %8587 = vmatpush1.bf16.msra.mxu1 %v13135_v40  ;;  %v13145_v40 = vld [vmem:[#allocation25_spill] sm:$0xff] }
 0xc95   :  { %8589 = vmatprep.subr.bf16.mxu1 %v13136_v13  ;;  %v13146_v13 = vld [vmem:[#allocation26_spill] sm:$0xff] }
 0xc98   :  { %8591 = vmatpush1.bf16.msra.mxu1 %v13137_v38  ;;  %v13147_v38 = vld [vmem:[#allocation27_spill] sm:$0xff] }
 0xc99   :  { %8593 = vmatprep.subr.bf16.mxu1 %v13138_v24  ;;  %v13148_v24 = vld [vmem:[#allocation28_spill] sm:$0xff] }
 0xc9c   :  { %8595 = vmatpush1.bf16.msra.mxu1 %v13139_v22  ;;  %v13149_v22 = vld [vmem:[#allocation29_spill] sm:$0xff] }
 0xc9d   :  { %8597 = vmatprep.subr.bf16.mxu1 %v13140_v44  ;;  %v13150_v44 = vld [vmem:[#allocation105_spill] sm:$0xff] }
 0xc9f   :  { %5618 = vmatmul.mubr.f32.vlgmr.msra.gmra.mrb[42].mxu1 %v11685_v9  ;;  %v13151_v9 = vld [vmem:[#allocation164_spill] sm:$0xff] }
 0xca0   :  { %8599 = vmatpush1.bf16.msra.mxu1 %v13141_v45  ;;  %v9179_v56 = vadd.f32 %v13151_v9, %v13150_v44  ;;  %v13152_v45 = vld [vmem:[#allocation30_spill] sm:$0xff]  ;;  %v13160_v44 = vld [vmem:[#allocation36_spill] sm:$0xff] }
 0xca1   :  { %8601 = vmatprep.subr.bf16.mxu1 %v13142_v59  ;;  %v13153_v59 = vld [vmem:[#allocation106_spill] sm:$0xff] }
 0xca2   :  { %v13162_v9 = vld [vmem:[#allocation38_spill] sm:$0xff] }
 0xca4   :  { %8603 = vmatpush1.bf16.msra.mxu1 %v13143_v10  ;;  %v9182_v10 = vadd.f32 %v13154_v32, %v13153_v59  ;;  %v13163_v59 = vld [vmem:[#allocation39_spill] sm:$0xff] }
 0xca5   :  { %8605 = vmatprep.subr.bf16.mxu1 %v13144_v62 }
 0xca8   :  { %8607 = vmatpush1.bf16.msra.mxu1 %v13145_v40 }
 0xca9   :  { %8609 = vmatprep.subr.bf16.mxu1 %v13146_v13  ;;  %v13156_v13 = vld [vmem:[#allocation32_spill] sm:$0xff] }
 0xcac   :  { %8611 = vmatpush1.bf16.msra.mxu1 %v13147_v38  ;;  %v13157_v38 = vld [vmem:[#allocation33_spill] sm:$0xff] }
 0xcad   :  { %8613 = vmatprep.subr.bf16.mxu1 %v13148_v24  ;;  %v13158_v24 = vld [vmem:[#allocation34_spill] sm:$0xff] }
 0xcb0   :  { %8615 = vmatpush1.bf16.msra.mxu1 %v13149_v22  ;;  %v13159_v22 = vld [vmem:[#allocation35_spill] sm:$0xff] }
 0xcb1   :  { %8617 = vmatprep.subr.bf16.mxu1 %v13152_v45  ;;  %v13161_v45 = vld [vmem:[#allocation37_spill] sm:$0xff] }
 0xcb2   :  { %v5406_v18 = vpop.f32.mrb[52].mxu1 }
 0xcb3   :  { %v9180_v62 = vadd.f32 %v9179_v56, %v5406_v18  ;;  %v5408_v4 = vpop.f32.mrb[53].mxu1  ;;  %v13164_v18 = vld [vmem:[#allocation40_spill] sm:$0xff]  ;;  %v13167_v56 = vld [vmem:[#allocation43_spill] sm:$0xff] }
 0xcb4   :  { %v9183_v40 = vadd.f32 %v9182_v10, %v5408_v4  ;;  %8619 = vmatpush1.bf16.msra.mxu1 %v13155_v37  ;;  %v13165_v4 = vld [vmem:[#allocation41_spill] sm:$0xff]  ;;  %v13166_v10 = vld [vmem:[#allocation42_spill] sm:$0xff] }
 0xcb5   :  { %8621 = vmatprep.subr.bf16.mxu1 %v13156_v13  ;;  %v6681_v13 = vmul.f32 -1.442695, %v9180_v62 }
 0xcb7   :  { %9572 = vpow2.f32 %v6681_v13  ;;  %v13177_v13 = vld [vmem:[#allocation175_spill] sm:$0xff] }
 0xcb8   :  { %8623 = vmatpush1.bf16.msra.mxu1 %v13157_v38  ;;  %v13168_v38 = vld [vmem:[#allocation44_spill] sm:$0xff] }
 0xcb9   :  { %8625 = vmatprep.subr.bf16.mxu1 %v13158_v24  ;;  %v13169_v24 = vld [vmem:[#allocation45_spill] sm:$0xff] }
 0xcbc   :  { %8627 = vmatpush1.bf16.msra.mxu1 %v13159_v22  ;;  %v13170_v22 = vld [vmem:[#allocation46_spill] sm:$0xff] }
 0xcbd   :  { %8629 = vmatprep.subr.bf16.mxu1 %v13160_v44  ;;  %v13171_v44 = vld [vmem:[#allocation47_spill] sm:$0xff] }
 0xcc0   :  { %8631 = vmatpush1.bf16.msra.mxu1 %v13161_v45  ;;  %v13172_v45 = vld [vmem:[#allocation48_spill] sm:$0xff] }
 0xcc1   :  { %8633 = vmatprep.subr.bf16.mxu1 %v13162_v9  ;;  %v13173_v9 = vld [vmem:[#allocation49_spill] sm:$0xff] }
 0xcc4   :  { %8635 = vmatpush1.bf16.msra.mxu1 %v13163_v59  ;;  %v13174_v59 = vld [vmem:[#allocation50_spill] sm:$0xff] }
 0xcc5   :  { %8637 = vmatprep.subr.bf16.mxu1 %v13164_v18  ;;  %v13175_v18 = vld [vmem:[#allocation51_spill] sm:$0xff] }
 0xcc8   :  { %8639 = vmatpush1.bf16.msra.mxu1 %v13165_v4  ;;  %v13176_v4 = vld [vmem:[#allocation52_spill] sm:$0xff] }
 0xcc9   :  { %8641 = vmatprep.subr.bf16.mxu1 %v13166_v10 }
 0xccc   :  { %8643 = vmatpush1.bf16.msra.mxu1 %v13167_v56 }
 0xccd   :  { %8645 = vmatprep.subr.bf16.mxu1 %v13168_v38 }
 0xcd0   :  { %8647 = vmatpush1.bf16.msra.mxu1 %v13169_v24 }
 0xcd1   :  { %8649 = vmatprep.subr.bf16.mxu1 %v13170_v22  ;;  %v6682_v22 = vmul.f32 -1.442695, %v9183_v40 }
 0xcd3   :  { %9574 = vpow2.f32 %v6682_v22 }
 0xcd4   :  { %8651 = vmatpush1.bf16.msra.mxu1 %v13171_v44 }
 0xcd5   :  { %8653 = vmatprep.subr.bf16.mxu1 %v13172_v45 }
 0xcd8   :  { %8655 = vmatpush1.bf16.msra.mxu1 %v13173_v9  ;;  %v9573_v9 = vpop.eup %9572 }
 0xcd9   :  { %8657 = vmatprep.subr.bf16.mxu1 %v13174_v59  ;;  %v5638_v32 = vadd.f32 1.0, %v9573_v9 }
 0xcdc   :  { %8659 = vmatpush1.bf16.msra.mxu1 %v13175_v18 }
 0xcdd   :  { %8661 = vmatprep.subr.bf16.mxu1 %v13176_v4  ;;  %v9575_v59 = vpop.eup %9574 }
 0xcde   :  { %v5639_v4 = vadd.f32 1.0, %v9575_v59 }
 0xcf2   :  { %v5477_v10 = vpop.f32.mrb[10].mxu1 }
 0xcf3   :  { %v5479_v56 = vpop.f32.mrb[11].mxu1  ;;  %v9223_v38 = vadd.f32 %v12982_v54, %v5477_v10 }
 0xcf4   :  { %v9225_v24 = vadd.f32 %v12983_v0, %v5479_v56 }
 0xcf5   :  { %v6683_v37 = vmul.f32 -1.442695, %v9223_v38 }
 0xcf6   :  { %v6684_v44 = vmul.f32 -1.442695, %v9225_v24 }
 0xcf7   :  { %9576 = vpow2.f32 %v6683_v37 }
 0xcf8   :  { %9578 = vpow2.f32 %v6684_v44 }
 0xcf9   :  { %9580 = vrcp.f32 %v5638_v32 }
 0xcfa   :  { %9582 = vrcp.f32 %v5639_v4 }
 0xd01   :  { %v9577_v45 = vpop.eup %9576 }
 0xd02   :  { %v9579_v18 = vpop.eup %9578  ;;  %v5650_v12 = vadd.f32 1.0, %v9577_v45 }
 0xd03   :  { %v5651_v19 = vadd.f32 1.0, %v9579_v18  ;;  %v9581_v37 = vpop.eup %9580 }
 0xd04   :  { %9584 = vrcp.f32 %v5650_v12  ;;  %v9583_v24 = vpop.eup %9582 }
 0xd05   :  { %9586 = vrcp.f32 %v5651_v19 }
 0xd0e   :  { %v9585_v22 = vpop.eup %9584 }
 0xd0f   :  { %v9587_v44 = vpop.eup %9586  ;;  %v5670_v45 = vmul.f32 %v9585_v22, %v11675_v58 }
 0xd10   :  { %v5671_v18 = vmul.f32 %v9587_v44, %v11677_v43 }
 0xd32   :  { %v5548_v10 = vpop.f32.mrb[26].mxu1 }
 0xd33   :  { %v9261_v62 = vadd.f32 %v12814_v20, %v5548_v10  ;;  %v5550_v40 = vpop.f32.mrb[27].mxu1 }
 0xd34   :  { %v9263_v38 = vadd.f32 %v13177_v13, %v5550_v40 }
 0xd35   :  { %9588 = vtanh.f32 %v9261_v62 }
 0xd36   :  { %9590 = vtanh.f32 %v9263_v38 }
 0xd3f   :  { %v9589_v9 = vpop.eup %9588 }
 0xd40   :  { %v9591_v59 = vpop.eup %9590  ;;  %v5672_v32 = vmul.f32 %v9589_v9, %v9581_v37 }
 0xd41   :  { %v5673_v12 = vmul.f32 %v9591_v59, %v9583_v24 }
 0xd42   :  { %v11833_v4 = vadd.f32 %v5672_v32, %v5670_v45  ;;  %v13182_v32 = vld [vmem:[#allocation104_spill] sm:$0xff] }
 0xd43   :  { %v11835_v56 = vadd.f32 %v5673_v12, %v5671_v18  ;;  %v13183_v18 = vld [vmem:[#allocation107_spill] sm:$0xff]  ;;  %v13184_v12 = vld [vmem:[#allocation108_spill] sm:$0xff] }
 0xd72   :  { %v5619_v19 = vpop.f32.mrb[42].mxu1 }
 0xd73   :  { %v9299_v10 = vadd.f32 %v11070_v11, %v5619_v19  ;;  %v5621_v62 = vpop.f32.mrb[43].mxu1  ;;  %v13185_v19 = vld [vmem:[#allocation109_spill] sm:$0xff] }
 0xd74   :  { %v9301_v40 = vadd.f32 %v11072_v51, %v5621_v62  ;;  %v13187_v62 = vld [vmem:[#allocation111_spill] sm:$0xff] }
 0xd75   :  { %v6685_v38 = vmul.f32 -1.442695, %v9299_v10  ;;  %v13186_v10 = vld [vmem:[#allocation110_spill] sm:$0xff] }
 0xd76   :  { %v6686_v13 = vmul.f32 -1.442695, %v9301_v40  ;;  %v13188_v40 = vld [vmem:[#allocation112_spill] sm:$0xff] }
 0xd77   :  { %9592 = vpow2.f32 %v6685_v38  ;;  %v13189_v38 = vld [vmem:[#allocation113_spill] sm:$0xff] }
 0xd78   :  { %9594 = vpow2.f32 %v6686_v13  ;;  %v13181_v13 = vld [vmem:[#allocation103_spill] sm:$0xff] }
 0xd79   :  { %9596 = vtanh.f32 %v11835_v56 }
 0xd81   :  { %v9593_v20 = vpop.eup %9592 }
 0xd82   :  { %v9595_v58 = vpop.eup %9594  ;;  %v5664_v37 = vadd.f32 1.0, %v9593_v20  ;;  %v13180_v20 = vld [vmem:[#allocation102_spill] sm:$0xff] }
 0xd83   :  { %v5665_v43 = vadd.f32 1.0, %v9595_v58  ;;  %v9597_v24 = vpop.eup %9596  ;;  %v13190_v58 = vld [vmem:[#allocation114_spill] sm:$0xff] }
 0xd84   :  { %9598 = vrcp.f32 %v5664_v37  ;;  %v13191_v37 = vld [vmem:[#allocation115_spill] sm:$0xff] }
 0xd85   :  { %9600 = vrcp.f32 %v5665_v43  ;;  %v13192_v43 = vld [vmem:[#allocation116_spill] sm:$0xff] }
 0xd86   :  { %9602 = vtanh.f32 %v11833_v4 }
 0xd8e   :  { %v9599_v22 = vpop.eup %9598 }
 0xd8f   :  { %v9601_v44 = vpop.eup %9600 }
 0xd90   :  { %v9603_v9 = vpop.eup %9602  ;;  %v11841_v59 = vmul.f32 %v9601_v44, %v9597_v24  ;;  %v13193_v24 = vld [vmem:[#allocation117_spill] sm:$0xff]  ;;  %v13195_v44 = vld [vmem:[#allocation119_spill] sm:$0xff] }
 0xd91   :  { %v11843_v45 = vmul.f32 %v9603_v9, %v9599_v22  ;;  %v13194_v22 = vld [vmem:[#allocation118_spill] sm:$0xff]  ;;  %v13196_v9 = vld [vmem:[#allocation120_spill] sm:$0xff] }
 0xd92   :  { %13178 = vst [vmem:[#allocation172_spill] sm:$0xff] %v11841_v59  ;;  %5754 = vmatprep.mubr.f32.mxu1 %v11841_v59 }
 0xd93   :  { %13179 = vst [vmem:[#allocation173_spill] sm:$0xff] %v11843_v45  ;;  %5755 = vmatmul.mubr.f32.vlgmr.msra.gmra.mrb[50].mxu1 %v11843_v45 }
 0xd94   :  { %8663 = vmatpush1.bf16.msra.mxu1 %v12986_v26  ;;  %5825 = vmatprep.mubr.f32.mxu1 %v11841_v59 }
 0xd95   :  { %8665 = vmatprep.subr.bf16.mxu1 %v12987_v60 }
 0xd98   :  { %8667 = vmatpush1.bf16.msra.mxu1 %v12988_v34 }
 0xd99   :  { %8669 = vmatprep.subr.bf16.mxu1 %v12989_v3 }
 0xd9c   :  { %8671 = vmatpush1.bf16.msra.mxu1 %v12990_v55 }
 0xd9d   :  { %8673 = vmatprep.subr.bf16.mxu1 %v12991_v53 }
 0xda0   :  { %8675 = vmatpush1.bf16.msra.mxu1 %v13083_v61 }
 0xda1   :  { %8677 = vmatprep.subr.bf16.mxu1 %v13084_v29 }
 0xda4   :  { %8679 = vmatpush1.bf16.msra.mxu1 %v13085_v31 }
 0xda5   :  { %8681 = vmatprep.subr.bf16.mxu1 %v13086_v1 }
 0xda8   :  { %8683 = vmatpush1.bf16.msra.mxu1 %v13087_v27 }
 0xda9   :  { %8685 = vmatprep.subr.bf16.mxu1 %v13088_v33 }
 0xdac   :  { %8687 = vmatpush1.bf16.msra.mxu1 %v13089_v35 }
 0xdad   :  { %8689 = vmatprep.subr.bf16.mxu1 %v13090_v16 }
 0xdb0   :  { %8691 = vmatpush1.bf16.msra.mxu1 %v13091_v14 }
 0xdb1   :  { %8693 = vmatprep.subr.bf16.mxu1 %v13092_v30 }
 0xdb4   :  { %8695 = vmatpush1.bf16.msra.mxu1 %v13093_v17 }
 0xdb5   :  { %8697 = vmatprep.subr.bf16.mxu1 %v13094_v8 }
 0xdb8   :  { %8699 = vmatpush1.bf16.msra.mxu1 %v13095_v21 }
 0xdb9   :  { %8701 = vmatprep.subr.bf16.mxu1 %v13096_v50 }
 0xdbc   :  { %8703 = vmatpush1.bf16.msra.mxu1 %v13097_v5 }
 0xdbd   :  { %8705 = vmatprep.subr.bf16.mxu1 %v13007_v57 }
 0xdc0   :  { %8707 = vmatpush1.bf16.msra.mxu1 %v13008_v15 }
 0xdc1   :  { %8709 = vmatprep.subr.bf16.mxu1 %v13009_v23 }
 0xdc4   :  { %8711 = vmatpush1.bf16.msra.mxu1 %v13010_v7 }
 0xdc5   :  { %8713 = vmatprep.subr.bf16.mxu1 %v13011_v49 }
 0xdc8   :  { %8715 = vmatpush1.bf16.msra.mxu1 %v13012_v36 }
 0xdc9   :  { %8717 = vmatprep.subr.bf16.mxu1 %v13013_v39 }
 0xdcc   :  { %8719 = vmatpush1.bf16.msra.mxu1 %v13014_v2 }
 0xdcd   :  { %8721 = vmatprep.subr.bf16.mxu1 %v13015_v42 }
 0xdd0   :  { %8723 = vmatpush1.bf16.msra.mxu1 %v13016_v47 }
 0xdd1   :  { %8725 = vmatprep.subr.bf16.mxu1 %v13017_v46 }
 0xdd3   :  { %5826 = vmatmul.mubr.f32.vlgmr.msra.gmra.mrb[12].mxu1 %v11843_v45 }
 0xdd4   :  { %8727 = vmatpush1.bf16.msra.mxu1 %v12718_v6  ;;  %5896 = vmatprep.mubr.f32.mxu1 %v11841_v59 }
 0xdd5   :  { %8729 = vmatprep.subr.bf16.mxu1 %v12719_v25 }
 0xdd8   :  { %8731 = vmatpush1.bf16.msra.mxu1 %v12720_v52 }
 0xdd9   :  { %8733 = vmatprep.subr.bf16.mxu1 %v12721_v28 }
 0xddc   :  { %8735 = vmatpush1.bf16.msra.mxu1 %v12818_v41 }
 0xddd   :  { %8737 = vmatprep.subr.bf16.mxu1 %v12819_v63 }
 0xde0   :  { %8739 = vmatpush1.bf16.msra.mxu1 %v12820_v48 }
 0xde1   :  { %8741 = vmatprep.subr.bf16.mxu1 %v13180_v20 }
 0xde4   :  { %8743 = vmatpush1.bf16.msra.mxu1 %v13181_v13 }
 0xde5   :  { %8745 = vmatprep.subr.bf16.mxu1 %v13182_v32 }
 0xde8   :  { %8747 = vmatpush1.bf16.msra.mxu1 %v13183_v18  ;;  %v13251_v18 = vld [vmem:[#allocation31_spill] sm:$0xff] }
 0xde9   :  { %8749 = vmatprep.subr.bf16.mxu1 %v13184_v12 }
 0xdec   :  { %8751 = vmatpush1.bf16.msra.mxu1 %v13185_v19 }
 0xded   :  { %8753 = vmatprep.subr.bf16.mxu1 %v13186_v10  ;;  %v13197_v10 = vld [vmem:[#allocation121_spill] sm:$0xff] }
 0xdf0   :  { %8755 = vmatpush1.bf16.msra.mxu1 %v13187_v62  ;;  %v13198_v62 = vld [vmem:[#allocation122_spill] sm:$0xff] }
 0xdf1   :  { %8757 = vmatprep.subr.bf16.mxu1 %v13188_v40  ;;  %v13199_v40 = vld [vmem:[#allocation123_spill] sm:$0xff] }
 0xdf4   :  { %8759 = vmatpush1.bf16.msra.mxu1 %v13189_v38  ;;  %v13200_v38 = vld [vmem:[#allocation124_spill] sm:$0xff] }
 0xdf5   :  { %8761 = vmatprep.subr.bf16.mxu1 %v13190_v58  ;;  %v13201_v58 = vld [vmem:[#allocation125_spill] sm:$0xff] }
 0xdf8   :  { %8763 = vmatpush1.bf16.msra.mxu1 %v13191_v37  ;;  %v13202_v37 = vld [vmem:[#allocation126_spill] sm:$0xff] }
 0xdf9   :  { %8765 = vmatprep.subr.bf16.mxu1 %v13192_v43  ;;  %v13203_v43 = vld [vmem:[#allocation127_spill] sm:$0xff] }
 0xdfc   :  { %8767 = vmatpush1.bf16.msra.mxu1 %v13193_v24  ;;  %v13204_v24 = vld [vmem:[#allocation128_spill] sm:$0xff] }
 0xdfd   :  { %8769 = vmatprep.subr.bf16.mxu1 %v13194_v22  ;;  %v13250_v22 = vld [vmem:[#allocation165_spill] sm:$0xff] }
 0xe00   :  { %8771 = vmatpush1.bf16.msra.mxu1 %v13195_v44  ;;  %v13205_v44 = vld [vmem:[#allocation129_spill] sm:$0xff] }
 0xe01   :  { %8773 = vmatprep.subr.bf16.mxu1 %v13196_v9  ;;  %v13214_v9 = vld [vmem:[#allocation138_spill] sm:$0xff] }
 0xe04   :  { %8775 = vmatpush1.bf16.msra.mxu1 %v13197_v10  ;;  %v13206_v10 = vld [vmem:[#allocation130_spill] sm:$0xff] }
 0xe05   :  { %8777 = vmatprep.subr.bf16.mxu1 %v13198_v62  ;;  %v13207_v62 = vld [vmem:[#allocation131_spill] sm:$0xff] }
 0xe08   :  { %8779 = vmatpush1.bf16.msra.mxu1 %v13199_v40  ;;  %v13208_v40 = vld [vmem:[#allocation132_spill] sm:$0xff] }
 0xe09   :  { %8781 = vmatprep.subr.bf16.mxu1 %v13200_v38  ;;  %v13209_v38 = vld [vmem:[#allocation133_spill] sm:$0xff] }
 0xe0c   :  { %8783 = vmatpush1.bf16.msra.mxu1 %v13201_v58  ;;  %v13210_v58 = vld [vmem:[#allocation134_spill] sm:$0xff] }
 0xe0d   :  { %8785 = vmatprep.subr.bf16.mxu1 %v13202_v37  ;;  %v13211_v37 = vld [vmem:[#allocation135_spill] sm:$0xff] }
 0xe10   :  { %8787 = vmatpush1.bf16.msra.mxu1 %v13203_v43  ;;  %v13212_v43 = vld [vmem:[#allocation136_spill] sm:$0xff] }
 0xe11   :  { %8789 = vmatprep.subr.bf16.mxu1 %v13204_v24  ;;  %v13213_v24 = vld [vmem:[#allocation137_spill] sm:$0xff] }
 0xe13   :  { %5897 = vmatmul.mubr.f32.vlgmr.msra.gmra.mrb[28].mxu1 %v11843_v45 }
 0xe14   :  { %8791 = vmatpush1.bf16.msra.mxu1 %v13205_v44  ;;  %5967 = vmatprep.mubr.f32.mxu1 %v11841_v59  ;;  %v13215_v44 = vld [vmem:[#allocation141_spill] sm:$0xff]  ;;  %v13216_v59 = vld [vmem:[#allocation142_spill] sm:$0xff] }
 0xe15   :  { %8793 = vmatprep.subr.bf16.mxu1 %v13206_v10  ;;  %v13217_v10 = vld [vmem:[#allocation143_spill] sm:$0xff] }
 0xe18   :  { %8795 = vmatpush1.bf16.msra.mxu1 %v13207_v62  ;;  %v13218_v62 = vld [vmem:[#allocation144_spill] sm:$0xff] }
 0xe19   :  { %8797 = vmatprep.subr.bf16.mxu1 %v13208_v40  ;;  %v13219_v40 = vld [vmem:[#allocation145_spill] sm:$0xff] }
 0xe1c   :  { %8799 = vmatpush1.bf16.msra.mxu1 %v13209_v38  ;;  %v13220_v38 = vld [vmem:[#allocation146_spill] sm:$0xff] }
 0xe1d   :  { %8801 = vmatprep.subr.bf16.mxu1 %v13210_v58  ;;  %v13221_v58 = vld [vmem:[#allocation147_spill] sm:$0xff] }
 0xe20   :  { %8803 = vmatpush1.bf16.msra.mxu1 %v13211_v37  ;;  %v13222_v37 = vld [vmem:[#allocation148_spill] sm:$0xff] }
 0xe21   :  { %8805 = vmatprep.subr.bf16.mxu1 %v13212_v43  ;;  %v13223_v43 = vld [vmem:[#allocation149_spill] sm:$0xff] }
 0xe24   :  { %8807 = vmatpush1.bf16.msra.mxu1 %v13213_v24  ;;  %v13224_v24 = vld [vmem:[#allocation150_spill] sm:$0xff] }
 0xe25   :  { %8809 = vmatprep.subr.bf16.mxu1 %v13214_v9  ;;  %v13225_v9 = vld [vmem:[#allocation151_spill] sm:$0xff] }
 0xe28   :  { %8811 = vmatpush1.bf16.msra.mxu1 %v13215_v44  ;;  %v13226_v44 = vld [vmem:[#allocation152_spill] sm:$0xff] }
 0xe29   :  { %8813 = vmatprep.subr.bf16.mxu1 %v13216_v59  ;;  %v13227_v59 = vld [vmem:[#allocation153_spill] sm:$0xff] }
 0xe2c   :  { %8815 = vmatpush1.bf16.msra.mxu1 %v13217_v10  ;;  %v13228_v10 = vld [vmem:[#allocation154_spill] sm:$0xff] }
 0xe2d   :  { %8817 = vmatprep.subr.bf16.mxu1 %v13218_v62  ;;  %v13229_v62 = vld [vmem:[#allocation155_spill] sm:$0xff] }
 0xe30   :  { %8819 = vmatpush1.bf16.msra.mxu1 %v13219_v40  ;;  %v13230_v40 = vld [vmem:[#allocation156_spill] sm:$0xff] }
 0xe31   :  { %8821 = vmatprep.subr.bf16.mxu1 %v13220_v38  ;;  %v13231_v38 = vld [vmem:[#allocation157_spill] sm:$0xff] }
 0xe34   :  { %8823 = vmatpush1.bf16.msra.mxu1 %v13221_v58  ;;  %v13232_v58 = vld [vmem:[#allocation158_spill] sm:$0xff] }
 0xe35   :  { %8825 = vmatprep.subr.bf16.mxu1 %v13222_v37  ;;  %v13233_v37 = vld [vmem:[#allocation159_spill] sm:$0xff] }
 0xe38   :  { %8827 = vmatpush1.bf16.msra.mxu1 %v13223_v43  ;;  %v13234_v43 = vld [vmem:[#allocation160_spill] sm:$0xff] }
 0xe39   :  { %8829 = vmatprep.subr.bf16.mxu1 %v13224_v24  ;;  %v13235_v24 = vld [vmem:[#allocation161_spill] sm:$0xff] }
 0xe3c   :  { %8831 = vmatpush1.bf16.msra.mxu1 %v13225_v9  ;;  %v13236_v9 = vld [vmem:[#allocation20_spill] sm:$0xff] }
 0xe3d   :  { %8833 = vmatprep.subr.bf16.mxu1 %v13226_v44 }
 0xe40   :  { %8835 = vmatpush1.bf16.msra.mxu1 %v13227_v59  ;;  %v13237_v59 = vld [vmem:[#allocation21_spill] sm:$0xff] }
 0xe41   :  { %8837 = vmatprep.subr.bf16.mxu1 %v13228_v10  ;;  %v13238_v10 = vld [vmem:[#allocation22_spill] sm:$0xff] }
 0xe44   :  { %8839 = vmatpush1.bf16.msra.mxu1 %v13229_v62  ;;  %v13239_v62 = vld [vmem:[#allocation23_spill] sm:$0xff] }
 0xe45   :  { %8841 = vmatprep.subr.bf16.mxu1 %v13230_v40  ;;  %v13240_v40 = vld [vmem:[#allocation24_spill] sm:$0xff] }
 0xe48   :  { %8843 = vmatpush1.bf16.msra.mxu1 %v13231_v38  ;;  %v13241_v38 = vld [vmem:[#allocation25_spill] sm:$0xff] }
 0xe49   :  { %8845 = vmatprep.subr.bf16.mxu1 %v13232_v58  ;;  %v13242_v58 = vld [vmem:[#allocation26_spill] sm:$0xff] }
 0xe4c   :  { %8847 = vmatpush1.bf16.msra.mxu1 %v13233_v37  ;;  %v13243_v37 = vld [vmem:[#allocation27_spill] sm:$0xff] }
 0xe4d   :  { %8849 = vmatprep.subr.bf16.mxu1 %v13234_v43  ;;  %v13244_v43 = vld [vmem:[#allocation28_spill] sm:$0xff] }
 0xe50   :  { %8851 = vmatpush1.bf16.msra.mxu1 %v13235_v24  ;;  %v13245_v24 = vld [vmem:[#allocation29_spill] sm:$0xff] }
 0xe51   :  { %8853 = vmatprep.subr.bf16.mxu1 %v13236_v9  ;;  %v13246_v9 = vld [vmem:[#allocation139_spill] sm:$0xff] }
 0xe53   :  { %5968 = vmatmul.mubr.f32.vlgmr.msra.gmra.mrb[44].mxu1 %v11843_v45  ;;  %v13247_v45 = vld [vmem:[#allocation164_spill] sm:$0xff] }
 0xe54   :  { %8855 = vmatpush1.bf16.msra.mxu1 %v13237_v59  ;;  %v9185_v44 = vadd.f32 %v13247_v45, %v13246_v9  ;;  %v13248_v59 = vld [vmem:[#allocation30_spill] sm:$0xff]  ;;  %v13256_v9 = vld [vmem:[#allocation36_spill] sm:$0xff] }
 0xe55   :  { %8857 = vmatprep.subr.bf16.mxu1 %v13238_v10  ;;  %v13249_v10 = vld [vmem:[#allocation140_spill] sm:$0xff]  ;;  %v13258_v45 = vld [vmem:[#allocation38_spill] sm:$0xff] }
 0xe58   :  { %8859 = vmatpush1.bf16.msra.mxu1 %v13239_v62  ;;  %v9188_v62 = vadd.f32 %v13250_v22, %v13249_v10  ;;  %v13259_v10 = vld [vmem:[#allocation39_spill] sm:$0xff] }
 0xe59   :  { %8861 = vmatprep.subr.bf16.mxu1 %v13240_v40 }
 0xe5c   :  { %8863 = vmatpush1.bf16.msra.mxu1 %v13241_v38 }
 0xe5d   :  { %8865 = vmatprep.subr.bf16.mxu1 %v13242_v58  ;;  %v13252_v58 = vld [vmem:[#allocation32_spill] sm:$0xff] }
 0xe60   :  { %8867 = vmatpush1.bf16.msra.mxu1 %v13243_v37  ;;  %v13253_v37 = vld [vmem:[#allocation33_spill] sm:$0xff] }
 0xe61   :  { %8869 = vmatprep.subr.bf16.mxu1 %v13244_v43  ;;  %v13254_v43 = vld [vmem:[#allocation34_spill] sm:$0xff] }
 0xe64   :  { %8871 = vmatpush1.bf16.msra.mxu1 %v13245_v24  ;;  %v13255_v24 = vld [vmem:[#allocation35_spill] sm:$0xff] }
 0xe65   :  { %8873 = vmatprep.subr.bf16.mxu1 %v13248_v59  ;;  %v13257_v59 = vld [vmem:[#allocation37_spill] sm:$0xff] }
 0xe66   :  { %v5756_v19 = vpop.f32.mrb[50].mxu1 }
 0xe67   :  { %v9186_v40 = vadd.f32 %v9185_v44, %v5756_v19  ;;  %v5758_v12 = vpop.f32.mrb[51].mxu1  ;;  %v13260_v19 = vld [vmem:[#allocation40_spill] sm:$0xff]  ;;  %v13263_v44 = vld [vmem:[#allocation43_spill] sm:$0xff] }
 0xe68   :  { %v9189_v38 = vadd.f32 %v9188_v62, %v5758_v12  ;;  %8875 = vmatpush1.bf16.msra.mxu1 %v13251_v18  ;;  %v13261_v12 = vld [vmem:[#allocation41_spill] sm:$0xff]  ;;  %v13262_v18 = vld [vmem:[#allocation42_spill] sm:$0xff]  ;;  %v13264_v62 = vld [vmem:[#allocation44_spill] sm:$0xff] }
 0xe69   :  { %8877 = vmatprep.subr.bf16.mxu1 %v13252_v58  ;;  %v13265_v58 = vld [vmem:[#allocation45_spill] sm:$0xff] }
 0xe6c   :  { %8879 = vmatpush1.bf16.msra.mxu1 %v13253_v37  ;;  %v13266_v37 = vld [vmem:[#allocation46_spill] sm:$0xff] }
 0xe6d   :  { %8881 = vmatprep.subr.bf16.mxu1 %v13254_v43  ;;  %v13267_v43 = vld [vmem:[#allocation47_spill] sm:$0xff] }
 0xe70   :  { %8883 = vmatpush1.bf16.msra.mxu1 %v13255_v24  ;;  %v13268_v24 = vld [vmem:[#allocation48_spill] sm:$0xff] }
 0xe71   :  { %8885 = vmatprep.subr.bf16.mxu1 %v13256_v9  ;;  %v13270_v9 = vld [vmem:[#allocation50_spill] sm:$0xff] }
 0xe74   :  { %8887 = vmatpush1.bf16.msra.mxu1 %v13257_v59  ;;  %v13271_v59 = vld [vmem:[#allocation51_spill] sm:$0xff] }
 0xe75   :  { %8889 = vmatprep.subr.bf16.mxu1 %v13258_v45  ;;  %v13269_v45 = vld [vmem:[#allocation49_spill] sm:$0xff] }
 0xe78   :  { %8891 = vmatpush1.bf16.msra.mxu1 %v13259_v10  ;;  %v13272_v10 = vld [vmem:[#allocation52_spill] sm:$0xff] }
 0xe79   :  { %8893 = vmatprep.subr.bf16.mxu1 %v13260_v19 }
 0xe7c   :  { %8895 = vmatpush1.bf16.msra.mxu1 %v13261_v12 }
 0xe7d   :  { %8897 = vmatprep.subr.bf16.mxu1 %v13262_v18 }
 0xe80   :  { %8899 = vmatpush1.bf16.msra.mxu1 %v13263_v44 }
 0xe81   :  { %8901 = vmatprep.subr.bf16.mxu1 %v13264_v62  ;;  %v6687_v62 = vmul.f32 -1.442695, %v9186_v40  ;;  %v13273_v40 = vld [vmem:[#allocation174_spill] sm:$0xff] }
 0xe83   :  { %9604 = vpow2.f32 %v6687_v62 }
 0xe84   :  { %8903 = vmatpush1.bf16.msra.mxu1 %v13265_v58  ;;  %v6688_v58 = vmul.f32 -1.442695, %v9189_v38 }
 0xe85   :  { %8905 = vmatprep.subr.bf16.mxu1 %v13266_v37 }
 0xe86   :  { %9606 = vpow2.f32 %v6688_v58 }
 0xe88   :  { %8907 = vmatpush1.bf16.msra.mxu1 %v13267_v43 }
 0xe89   :  { %8909 = vmatprep.subr.bf16.mxu1 %v13268_v24 }
 0xe8c   :  { %8911 = vmatpush1.bf16.msra.mxu1 %v13269_v45 }
 0xe8d   :  { %8913 = vmatprep.subr.bf16.mxu1 %v13270_v9  ;;  %v9605_v24 = vpop.eup %9604 }
 0xe8e   :  { %v5988_v22 = vadd.f32 1.0, %v9605_v24 }
 0xe90   :  { %8915 = vmatpush1.bf16.msra.mxu1 %v13271_v59  ;;  %v9607_v45 = vpop.eup %9606 }
 0xe91   :  { %8917 = vmatprep.subr.bf16.mxu1 %v13272_v10  ;;  %v5989_v10 = vadd.f32 1.0, %v9607_v45 }
 0xea6   :  { %v5827_v19 = vpop.f32.mrb[12].mxu1 }
 0xea7   :  { %v5829_v12 = vpop.f32.mrb[13].mxu1  ;;  %v9227_v18 = vadd.f32 %v12982_v54, %v5827_v19 }
 0xea8   :  { %v9229_v44 = vadd.f32 %v12983_v0, %v5829_v12 }
 0xea9   :  { %v6689_v37 = vmul.f32 -1.442695, %v9227_v18  ;;  %v13274_v18 = vld [vmem:[#allocation175_spill] sm:$0xff] }
 0xeaa   :  { %v6690_v43 = vmul.f32 -1.442695, %v9229_v44 }
 0xeab   :  { %9608 = vpow2.f32 %v6689_v37 }
 0xeac   :  { %9610 = vpow2.f32 %v6690_v43 }
 0xead   :  { %9612 = vrcp.f32 %v5988_v22 }
 0xeae   :  { %9614 = vrcp.f32 %v5989_v10 }
 0xeb5   :  { %v9609_v9 = vpop.eup %9608 }
 0xeb6   :  { %v9611_v59 = vpop.eup %9610  ;;  %v6000_v32 = vadd.f32 1.0, %v9609_v9 }
 0xeb7   :  { %v6001_v13 = vadd.f32 1.0, %v9611_v59  ;;  %v9613_v62 = vpop.eup %9612 }
 0xeb8   :  { %9616 = vrcp.f32 %v6000_v32  ;;  %v9615_v58 = vpop.eup %9614 }
 0xeb9   :  { %9618 = vrcp.f32 %v6001_v13 }
 0xec2   :  { %v9617_v37 = vpop.eup %9616 }
 0xec3   :  { %v9619_v43 = vpop.eup %9618  ;;  %v6020_v9 = vmul.f32 %v9617_v37, %v11833_v4 }
 0xec4   :  { %v6021_v59 = vmul.f32 %v9619_v43, %v11835_v56 }
 0xee6   :  { %v5898_v19 = vpop.f32.mrb[28].mxu1 }
 0xee7   :  { %v9265_v38 = vadd.f32 %v13273_v40, %v5898_v19  ;;  %v5900_v12 = vpop.f32.mrb[29].mxu1 }
 0xee8   :  { %v9267_v44 = vadd.f32 %v13274_v18, %v5900_v12 }
 0xee9   :  { %9620 = vtanh.f32 %v9265_v38 }
 0xeea   :  { %9622 = vtanh.f32 %v9267_v44 }
 0xef3   :  { %v9621_v24 = vpop.eup %9620 }
 0xef4   :  { %v9623_v45 = vpop.eup %9622  ;;  %v6022_v22 = vmul.f32 %v9621_v24, %v9613_v62 }
 0xef5   :  { %v6023_v32 = vmul.f32 %v9623_v45, %v9615_v58 }
 0xef6   :  { %v11991_v10 = vadd.f32 %v6022_v22, %v6020_v9  ;;  %v13318_v22 = vld [vmem:[#allocation150_spill] sm:$0xff] }
 0xef7   :  { %v11993_v19 = vadd.f32 %v6023_v32, %v6021_v59  ;;  %v13319_v59 = vld [vmem:[#allocation151_spill] sm:$0xff]  ;;  %v13320_v32 = vld [vmem:[#allocation152_spill] sm:$0xff] }
 0xf26   :  { %v5969_v13 = vpop.f32.mrb[44].mxu1 }
 0xf27   :  { %v9303_v38 = vadd.f32 %v11070_v11, %v5969_v13  ;;  %v5971_v12 = vpop.f32.mrb[45].mxu1  ;;  %v13321_v13 = vld [vmem:[#allocation153_spill] sm:$0xff] }
 0xf28   :  { %v9305_v44 = vadd.f32 %v11072_v51, %v5971_v12  ;;  %v13323_v12 = vld [vmem:[#allocation155_spill] sm:$0xff] }
 0xf29   :  { %v6691_v18 = vmul.f32 -1.442695, %v9303_v38  ;;  %v13322_v38 = vld [vmem:[#allocation154_spill] sm:$0xff] }
 0xf2a   :  { %v6692_v40 = vmul.f32 -1.442695, %v9305_v44  ;;  %v13324_v44 = vld [vmem:[#allocation156_spill] sm:$0xff] }
 0xf2b   :  { %9624 = vpow2.f32 %v6691_v18  ;;  %v13317_v18 = vld [vmem:[#allocation149_spill] sm:$0xff] }
 0xf2c   :  { %9626 = vpow2.f32 %v6692_v40  ;;  %v13316_v40 = vld [vmem:[#allocation148_spill] sm:$0xff] }
 0xf2d   :  { %9628 = vtanh.f32 %v11993_v19 }
 0xf35   :  { %v9625_v0 = vpop.eup %9624 }
 0xf36   :  { %v9627_v4 = vpop.eup %9626  ;;  %v6014_v62 = vadd.f32 1.0, %v9625_v0  ;;  %v13275_v0 = vld [vmem:[#allocation103_spill] sm:$0xff] }
 0xf37   :  { %v6015_v56 = vadd.f32 1.0, %v9627_v4  ;;  %v9629_v58 = vpop.eup %9628  ;;  %v13325_v4 = vld [vmem:[#allocation157_spill] sm:$0xff] }
 0xf38   :  { %9630 = vrcp.f32 %v6014_v62  ;;  %v13326_v62 = vld [vmem:[#allocation158_spill] sm:$0xff] }
 0xf39   :  { %9632 = vrcp.f32 %v6015_v56  ;;  %v13327_v56 = vld [vmem:[#allocation159_spill] sm:$0xff] }
 0xf3a   :  { %9634 = vtanh.f32 %v11991_v10 }
 0xf42   :  { %v9631_v37 = vpop.eup %9630 }
 0xf43   :  { %v9633_v43 = vpop.eup %9632 }
 0xf44   :  { %v9635_v24 = vpop.eup %9634  ;;  %v11999_v45 = vmul.f32 %v9633_v43, %v9629_v58  ;;  %v13328_v58 = vld [vmem:[#allocation160_spill] sm:$0xff]  ;;  %v13330_v43 = vld [vmem:[#allocation162_spill] sm:$0xff] }
 0xf45   :  { %v12001_v9 = vmul.f32 %v9635_v24, %v9631_v37  ;;  %v13329_v37 = vld [vmem:[#allocation161_spill] sm:$0xff]  ;;  %v13331_v24 = vld [vmem:[#allocation164_spill] sm:$0xff] }
 0xf46   :  { %6104 = vmatprep.mubr.f32.mxu1 %v11999_v45 }
 0xf47   :  { %6105 = vmatmul.mubr.f32.vlgmr.msra.gmra.mrb[48].mxu1 %v12001_v9 }
 0xf48   :  { %8919 = vmatpush1.bf16.msra.mxu1 %v12986_v26  ;;  %6175 = vmatprep.mubr.f32.mxu1 %v11999_v45  ;;  %v13276_v26 = vld [vmem:[#allocation104_spill] sm:$0xff] }
 0xf49   :  { %8921 = vmatprep.subr.bf16.mxu1 %v12987_v60  ;;  %v13278_v60 = vld [vmem:[#allocation108_spill] sm:$0xff] }
 0xf4c   :  { %8923 = vmatpush1.bf16.msra.mxu1 %v12988_v34  ;;  %v13285_v34 = vld [vmem:[#allocation115_spill] sm:$0xff] }
 0xf4d   :  { %8925 = vmatprep.subr.bf16.mxu1 %v12989_v3  ;;  %v13286_v3 = vld [vmem:[#allocation116_spill] sm:$0xff] }
 0xf50   :  { %8927 = vmatpush1.bf16.msra.mxu1 %v12990_v55  ;;  %v13287_v55 = vld [vmem:[#allocation117_spill] sm:$0xff] }
 0xf51   :  { %8929 = vmatprep.subr.bf16.mxu1 %v12991_v53  ;;  %v13288_v53 = vld [vmem:[#allocation118_spill] sm:$0xff] }
 0xf54   :  { %8931 = vmatpush1.bf16.msra.mxu1 %v13083_v61  ;;  %v13300_v61 = vld [vmem:[#allocation130_spill] sm:$0xff] }
 0xf55   :  { %8933 = vmatprep.subr.bf16.mxu1 %v13084_v29  ;;  %v13301_v29 = vld [vmem:[#allocation131_spill] sm:$0xff] }
 0xf58   :  { %8935 = vmatpush1.bf16.msra.mxu1 %v13085_v31  ;;  %v13302_v31 = vld [vmem:[#allocation132_spill] sm:$0xff] }
 0xf59   :  { %8937 = vmatprep.subr.bf16.mxu1 %v13086_v1  ;;  %v13303_v1 = vld [vmem:[#allocation133_spill] sm:$0xff] }
 0xf5c   :  { %8939 = vmatpush1.bf16.msra.mxu1 %v13087_v27  ;;  %v13304_v27 = vld [vmem:[#allocation134_spill] sm:$0xff] }
 0xf5d   :  { %8941 = vmatprep.subr.bf16.mxu1 %v13088_v33  ;;  %v13305_v33 = vld [vmem:[#allocation135_spill] sm:$0xff] }
 0xf60   :  { %8943 = vmatpush1.bf16.msra.mxu1 %v13089_v35  ;;  %v13306_v35 = vld [vmem:[#allocation136_spill] sm:$0xff] }
 0xf61   :  { %8945 = vmatprep.subr.bf16.mxu1 %v13090_v16  ;;  %v13307_v16 = vld [vmem:[#allocation137_spill] sm:$0xff] }
 0xf64   :  { %8947 = vmatpush1.bf16.msra.mxu1 %v13091_v14  ;;  %v13308_v14 = vld [vmem:[#allocation138_spill] sm:$0xff] }
 0xf65   :  { %8949 = vmatprep.subr.bf16.mxu1 %v13092_v30  ;;  %v13309_v30 = vld [vmem:[#allocation141_spill] sm:$0xff] }
 0xf68   :  { %8951 = vmatpush1.bf16.msra.mxu1 %v13093_v17  ;;  %v13310_v17 = vld [vmem:[#allocation142_spill] sm:$0xff] }
 0xf69   :  { %8953 = vmatprep.subr.bf16.mxu1 %v13094_v8  ;;  %v13311_v8 = vld [vmem:[#allocation143_spill] sm:$0xff] }
 0xf6c   :  { %8955 = vmatpush1.bf16.msra.mxu1 %v13095_v21  ;;  %v13312_v21 = vld [vmem:[#allocation144_spill] sm:$0xff] }
 0xf6d   :  { %8957 = vmatprep.subr.bf16.mxu1 %v13096_v50  ;;  %v13313_v50 = vld [vmem:[#allocation145_spill] sm:$0xff] }
 0xf70   :  { %8959 = vmatpush1.bf16.msra.mxu1 %v13097_v5  ;;  %v13314_v5 = vld [vmem:[#allocation146_spill] sm:$0xff] }
 0xf71   :  { %8961 = vmatprep.subr.bf16.mxu1 %v13007_v57  ;;  %v13293_v57 = vld [vmem:[#allocation123_spill] sm:$0xff] }
 0xf74   :  { %8963 = vmatpush1.bf16.msra.mxu1 %v13008_v15  ;;  %v13294_v15 = vld [vmem:[#allocation124_spill] sm:$0xff] }
 0xf75   :  { %8965 = vmatprep.subr.bf16.mxu1 %v13009_v23  ;;  %v13295_v23 = vld [vmem:[#allocation125_spill] sm:$0xff] }
 0xf78   :  { %8967 = vmatpush1.bf16.msra.mxu1 %v13010_v7  ;;  %v13296_v7 = vld [vmem:[#allocation126_spill] sm:$0xff] }
 0xf79   :  { %8969 = vmatprep.subr.bf16.mxu1 %v13011_v49  ;;  %v13297_v49 = vld [vmem:[#allocation127_spill] sm:$0xff] }
 0xf7c   :  { %8971 = vmatpush1.bf16.msra.mxu1 %v13012_v36  ;;  %v13298_v36 = vld [vmem:[#allocation128_spill] sm:$0xff] }
 0xf7d   :  { %8973 = vmatprep.subr.bf16.mxu1 %v13013_v39  ;;  %v13299_v39 = vld [vmem:[#allocation129_spill] sm:$0xff] }
 0xf80   :  { %8975 = vmatpush1.bf16.msra.mxu1 %v13014_v2  ;;  %v13289_v2 = vld [vmem:[#allocation119_spill] sm:$0xff] }
 0xf81   :  { %8977 = vmatprep.subr.bf16.mxu1 %v13015_v42  ;;  %v13290_v42 = vld [vmem:[#allocation120_spill] sm:$0xff] }
 0xf84   :  { %8979 = vmatpush1.bf16.msra.mxu1 %v13016_v47  ;;  %v13291_v47 = vld [vmem:[#allocation121_spill] sm:$0xff] }
 0xf85   :  { %8981 = vmatprep.subr.bf16.mxu1 %v13017_v46  ;;  %v13292_v46 = vld [vmem:[#allocation122_spill] sm:$0xff] }
 0xf87   :  { %6176 = vmatmul.mubr.f32.vlgmr.msra.gmra.mrb[14].mxu1 %v12001_v9 }
 0xf88   :  { %8983 = vmatpush1.bf16.msra.mxu1 %v12718_v6  ;;  %6246 = vmatprep.mubr.f32.mxu1 %v11999_v45  ;;  %v13277_v6 = vld [vmem:[#allocation107_spill] sm:$0xff] }
 0xf89   :  { %8985 = vmatprep.subr.bf16.mxu1 %v12719_v25  ;;  %v13279_v25 = vld [vmem:[#allocation109_spill] sm:$0xff] }
 0xf8c   :  { %8987 = vmatpush1.bf16.msra.mxu1 %v12720_v52  ;;  %v13280_v52 = vld [vmem:[#allocation110_spill] sm:$0xff] }
 0xf8d   :  { %8989 = vmatprep.subr.bf16.mxu1 %v12721_v28  ;;  %v13281_v28 = vld [vmem:[#allocation111_spill] sm:$0xff] }
 0xf90   :  { %8991 = vmatpush1.bf16.msra.mxu1 %v12818_v41  ;;  %v13282_v41 = vld [vmem:[#allocation112_spill] sm:$0xff] }
 0xf91   :  { %8993 = vmatprep.subr.bf16.mxu1 %v12819_v63  ;;  %v13283_v63 = vld [vmem:[#allocation113_spill] sm:$0xff] }
 0xf94   :  { %8995 = vmatpush1.bf16.msra.mxu1 %v12820_v48  ;;  %v13284_v48 = vld [vmem:[#allocation114_spill] sm:$0xff] }
 0xf95   :  { %8997 = vmatprep.subr.bf16.mxu1 %v13180_v20  ;;  %v13315_v20 = vld [vmem:[#allocation147_spill] sm:$0xff] }
 0xf98   :  { %8999 = vmatpush1.bf16.msra.mxu1 %v13275_v0  ;;  %v9191_v0 = vadd.f32 %v13331_v24, %v13330_v43  ;;  %v6412_v43 = vld [vmem:[#allocation12 + $0x70] sm:$0xff]  ;;  %v6413_v24 = vld [vmem:[#allocation12 + $0x78] sm:$0xff] }
 0xf99   :  { %9001 = vmatprep.subr.bf16.mxu1 %v13276_v26  ;;  %v13332_v26 = vld [vmem:[#allocation163_spill] sm:$0xff] }
 0xf9c   :  { %9003 = vmatpush1.bf16.msra.mxu1 %v13277_v6  ;;  %v13333_v6 = vld [vmem:[#allocation165_spill] sm:$0xff] }
 0xf9d   :  { %9005 = vmatprep.subr.bf16.mxu1 %v13278_v60  ;;  %v9194_v60 = vadd.f32 %v13333_v6, %v13332_v26  ;;  %v13334_v6 = vld [vmem:[#allocation169_spill] sm:$0xff] }
 0xfa0   :  { %9007 = vmatpush1.bf16.msra.mxu1 %v13279_v25 }
 0xfa1   :  { %9009 = vmatprep.subr.bf16.mxu1 %v13280_v52 }
 0xfa4   :  { %9011 = vmatpush1.bf16.msra.mxu1 %v13281_v28 }
 0xfa5   :  { %9013 = vmatprep.subr.bf16.mxu1 %v13282_v41 }
 0xfa8   :  { %9015 = vmatpush1.bf16.msra.mxu1 %v13283_v63  ;;  %v6414_v63 = vld [vmem:[#allocation12 + $0x80] sm:$0xff] }
 0xfa9   :  { %9017 = vmatprep.subr.bf16.mxu1 %v13284_v48  ;;  %v6415_v48 = vld [vmem:[#allocation12 + $0x88] sm:$0xff] }
 0xfac   :  { %9019 = vmatpush1.bf16.msra.mxu1 %v13285_v34  ;;  %v9108_v34 = vpack.c.bf16 %v6415_v48, %v6414_v63 }
 0xfad   :  { %9021 = vmatprep.subr.bf16.mxu1 %v13286_v3  ;;  %v6398_v3 = vld [vmem:[#allocation12] sm:$0xff] }
 0xfae   :  { %9109 = vmatprep.subr.bf16.mxu0 %v9108_v34 }
 0xfb0   :  { %9023 = vmatpush1.bf16.msra.mxu1 %v13287_v55  ;;  %v6399_v55 = vld [vmem:[#allocation12 + $0x8] sm:$0xff] }
 0xfb1   :  { %9025 = vmatprep.subr.bf16.mxu1 %v13288_v53 }
 0xfb4   :  { %9027 = vmatpush1.bf16.msra.mxu1 %v13289_v2  ;;  %v9110_v2 = vpack.c.bf16 %v6399_v55, %v6398_v3 }
 0xfb5   :  { %9029 = vmatprep.subr.bf16.mxu1 %v13290_v42 }
 0xfb6   :  { %9111 = vmatpush3.bf16.msra.mxu0 %v9110_v2 }
 0xfb8   :  { %9031 = vmatpush1.bf16.msra.mxu1 %v13291_v47  ;;  %v6416_v47 = vld [vmem:[#allocation12 + $0x90] sm:$0xff] }
 0xfb9   :  { %9033 = vmatprep.subr.bf16.mxu1 %v13292_v46  ;;  %v6417_v46 = vld [vmem:[#allocation12 + $0x98] sm:$0xff] }
 0xfbc   :  { %9035 = vmatpush1.bf16.msra.mxu1 %v13293_v57  ;;  %v9112_v57 = vpack.c.bf16 %v6417_v46, %v6416_v47 }
 0xfbd   :  { %9037 = vmatprep.subr.bf16.mxu1 %v13294_v15  ;;  %v6400_v15 = vld [vmem:[#allocation12 + $0x10] sm:$0xff] }
 0xfbe   :  { %9113 = vmatprep.subr.bf16.mxu0 %v9112_v57 }
 0xfc0   :  { %9039 = vmatpush1.bf16.msra.mxu1 %v13295_v23  ;;  %v6401_v23 = vld [vmem:[#allocation12 + $0x18] sm:$0xff] }
 0xfc1   :  { %9041 = vmatprep.subr.bf16.mxu1 %v13296_v7  ;;  %v9114_v7 = vpack.c.bf16 %v6401_v23, %v6400_v15  ;;  %v13336_v15 = vld [vmem:[#allocation175_spill] sm:$0xff] }
 0xfc3   :  { %9115 = vmatpush3.bf16.msra.mxu0 %v9114_v7 }
 0xfc4   :  { %9043 = vmatpush1.bf16.msra.mxu1 %v13297_v49  ;;  %v6418_v49 = vld [vmem:[#allocation12 + $0xa0] sm:$0xff] }
 0xfc5   :  { %9045 = vmatprep.subr.bf16.mxu1 %v13298_v36  ;;  %v6419_v36 = vld [vmem:[#allocation12 + $0xa8] sm:$0xff] }
 0xfc7   :  { %6247 = vmatmul.mubr.f32.vlgmr.msra.gmra.mrb[30].mxu1 %v12001_v9 }
 0xfc8   :  { %9047 = vmatpush1.bf16.msra.mxu1 %v13299_v39  ;;  %6317 = vmatprep.mubr.f32.mxu1 %v11999_v45  ;;  %v9116_v39 = vpack.c.bf16 %v6419_v36, %v6418_v49 }
 0xfc9   :  { %9049 = vmatprep.subr.bf16.mxu1 %v13300_v61  ;;  %v6402_v61 = vld [vmem:[#allocation12 + $0x20] sm:$0xff] }
 0xfca   :  { %9117 = vmatprep.subr.bf16.mxu0 %v9116_v39 }
 0xfcc   :  { %9051 = vmatpush1.bf16.msra.mxu1 %v13301_v29  ;;  %v6403_v29 = vld [vmem:[#allocation12 + $0x28] sm:$0xff] }
 0xfcd   :  { %9053 = vmatprep.subr.bf16.mxu1 %v13302_v31  ;;  %v9118_v31 = vpack.c.bf16 %v6403_v29, %v6402_v61 }
 0xfcf   :  { %9119 = vmatpush3.bf16.msra.mxu0 %v9118_v31 }
 0xfd0   :  { %9055 = vmatpush1.bf16.msra.mxu1 %v13303_v1  ;;  %v6420_v1 = vld [vmem:[#allocation12 + $0xb0] sm:$0xff] }
 0xfd1   :  { %9057 = vmatprep.subr.bf16.mxu1 %v13304_v27  ;;  %v6421_v27 = vld [vmem:[#allocation12 + $0xb8] sm:$0xff] }
 0xfd4   :  { %9059 = vmatpush1.bf16.msra.mxu1 %v13305_v33  ;;  %v9120_v33 = vpack.c.bf16 %v6421_v27, %v6420_v1 }
 0xfd5   :  { %9061 = vmatprep.subr.bf16.mxu1 %v13306_v35  ;;  %v6404_v35 = vld [vmem:[#allocation12 + $0x30] sm:$0xff] }
 0xfd6   :  { %9121 = vmatprep.subr.bf16.mxu0 %v9120_v33 }
 0xfd8   :  { %9063 = vmatpush1.bf16.msra.mxu1 %v13307_v16  ;;  %v6405_v16 = vld [vmem:[#allocation12 + $0x38] sm:$0xff] }
 0xfd9   :  { %9065 = vmatprep.subr.bf16.mxu1 %v13308_v14  ;;  %v9122_v14 = vpack.c.bf16 %v6405_v16, %v6404_v35 }
 0xfdb   :  { %9123 = vmatpush3.bf16.msra.mxu0 %v9122_v14 }
 0xfdc   :  { %9067 = vmatpush1.bf16.msra.mxu1 %v13309_v30  ;;  %v6422_v30 = vld [vmem:[#allocation12 + $0xc0] sm:$0xff] }
 0xfdd   :  { %9069 = vmatprep.subr.bf16.mxu1 %v13310_v17  ;;  %v6423_v17 = vld [vmem:[#allocation12 + $0xc8] sm:$0xff] }
 0xfe0   :  { %9071 = vmatpush1.bf16.msra.mxu1 %v13311_v8  ;;  %v9124_v8 = vpack.c.bf16 %v6423_v17, %v6422_v30 }
 0xfe1   :  { %9073 = vmatprep.subr.bf16.mxu1 %v13312_v21  ;;  %v6406_v21 = vld [vmem:[#allocation12 + $0x40] sm:$0xff] }
 0xfe2   :  { %9125 = vmatprep.subr.bf16.mxu0 %v9124_v8 }
 0xfe4   :  { %9075 = vmatpush1.bf16.msra.mxu1 %v13313_v50  ;;  %v6407_v50 = vld [vmem:[#allocation12 + $0x48] sm:$0xff] }
 0xfe5   :  { %9077 = vmatprep.subr.bf16.mxu1 %v13314_v5  ;;  %v9126_v5 = vpack.c.bf16 %v6407_v50, %v6406_v21 }
 0xfe7   :  { %9127 = vmatpush3.bf16.msra.mxu0 %v9126_v5 }
 0xfe8   :  { %9079 = vmatpush1.bf16.msra.mxu1 %v13315_v20  ;;  %v6424_v20 = vld [vmem:[#allocation12 + $0xd0] sm:$0xff] }
 0xfe9   :  { %9081 = vmatprep.subr.bf16.mxu1 %v13316_v40  ;;  %v6425_v40 = vld [vmem:[#allocation12 + $0xd8] sm:$0xff] }
 0xfec   :  { %9083 = vmatpush1.bf16.msra.mxu1 %v13317_v18  ;;  %v9128_v18 = vpack.c.bf16 %v6425_v40, %v6424_v20 }
 0xfed   :  { %9085 = vmatprep.subr.bf16.mxu1 %v13318_v22  ;;  %v6408_v22 = vld [vmem:[#allocation12 + $0x50] sm:$0xff] }
 0xfee   :  { %9129 = vmatprep.subr.bf16.mxu0 %v9128_v18 }
 0xff0   :  { %9087 = vmatpush1.bf16.msra.mxu1 %v13319_v59  ;;  %v6409_v59 = vld [vmem:[#allocation12 + $0x58] sm:$0xff] }
 0xff1   :  { %9089 = vmatprep.subr.bf16.mxu1 %v13320_v32  ;;  %v6426_v32 = vld [vmem:[#allocation12 + $0xe0] sm:$0xff] }
 0xff4   :  { %9091 = vmatpush1.bf16.msra.mxu1 %v13321_v13  ;;  %v9130_v13 = vpack.c.bf16 %v6409_v59, %v6408_v22 }
 0xff5   :  { %9093 = vmatprep.subr.bf16.mxu1 %v13322_v38  ;;  %v6427_v38 = vld [vmem:[#allocation12 + $0xe8] sm:$0xff] }
 0xff6   :  { %9131 = vmatpush3.bf16.msra.mxu0 %v9130_v13  ;;  %v13338_v13 = vld [vmem:[#allocation96_spill] sm:$0xff] }
 0xff8   :  { %9095 = vmatpush1.bf16.msra.mxu1 %v13323_v12  ;;  %v6410_v12 = vld [vmem:[#allocation12 + $0x60] sm:$0xff] }
 0xff9   :  { %9097 = vmatprep.subr.bf16.mxu1 %v13324_v44  ;;  %v6411_v44 = vld [vmem:[#allocation12 + $0x68] sm:$0xff] }
 0xffc   :  { %9099 = vmatpush1.bf16.msra.mxu1 %v13325_v4  ;;  %v9132_v4 = vpack.c.bf16 %v6427_v38, %v6426_v32  ;;  %v13339_v38 = vld [vmem:[#allocation172_spill] sm:$0xff] }
 0xffd   :  { %9101 = vmatprep.subr.bf16.mxu1 %v13326_v62  ;;  %v6428_v62 = vld [vmem:[#allocation12 + $0xf0] sm:$0xff] }
 0xffe   :  { %9133 = vmatprep.subr.bf16.mxu0 %v9132_v4  ;;  %v13342_v4 = vld [vmem:[#allocation56_spill] sm:$0xff] }
0x1000   :  { %9103 = vmatpush1.bf16.msra.mxu1 %v13327_v56  ;;  %v6429_v56 = vld [vmem:[#allocation12 + $0xf8] sm:$0xff] }
0x1001   :  { %9105 = vmatprep.subr.bf16.mxu1 %v13328_v58  ;;  %v9134_v58 = vpack.c.bf16 %v6411_v44, %v6410_v12  ;;  %v13340_v12 = vld [vmem:[#allocation98_spill] sm:$0xff] }
0x1002   :  { %v13341_v44 = vld [vmem:[#allocation166_spill] sm:$0xff] }
0x1003   :  { %9135 = vmatpush3.bf16.msra.mxu0 %v9134_v58  ;;  %v13345_v58 = vld [vmem:[#allocation97_spill] sm:$0xff] }
0x1004   :  { %9107 = vmatpush1.bf16.msra.mxu1 %v13329_v37  ;;  %v9136_v37 = vpack.c.bf16 %v6429_v56, %v6428_v62  ;;  %v13343_v62 = vld [vmem:[#allocation55_spill] sm:$0xff] }
0x1005   :  { %v13344_v56 = vld [vmem:[#allocation167_spill] sm:$0xff] }
0x1006   :  { %9137 = vmatprep.subr.bf16.mxu0 %v9136_v37  ;;  %v13346_v37 = vld [vmem:[#allocation173_spill] sm:$0xff] }
0x1007   :  { %6318 = vmatmul.mubr.f32.vlgmr.msra.gmra.mrb[46].mxu1 %v12001_v9 }
0x101a   :  { %v6106_v25 = vpop.f32.mrb[48].mxu1 }
0x101b   :  { %v12110_v52 = vadd.f32 %v9191_v0, %v6106_v25  ;;  %v6108_v28 = vpop.f32.mrb[49].mxu1  ;;  %v9138_v0 = vpack.c.bf16 %v6413_v24, %v6412_v43  ;;  %v13347_v43 = vld [vmem:[#allocation95_spill] sm:$0xff] }
0x101c   :  { %v12112_v41 = vadd.f32 %v9194_v60, %v6108_v28 }
0x101d   :  { %9139 = vmatpush3.bf16.msra.mxu0 %v9138_v0  ;;  %v6693_v25 = vmul.f32 -1.442695, %v12110_v52  ;;  %v13335_v52 = vld [vmem:[#allocation174_spill] sm:$0xff] }
0x101e   :  { %v6694_v28 = vmul.f32 -1.442695, %v12112_v41 }
0x101f   :  { %9636 = vpow2.f32 %v6693_v25 }
0x1020   :  { %9638 = vpow2.f32 %v6694_v28 }
0x1029   :  { %v9637_v34 = vpop.eup %9636 }
0x102a   :  { %v9639_v3 = vpop.eup %9638  ;;  %v6338_v47 = vadd.f32 1.0, %v9637_v34 }
0x102b   :  { %v6339_v46 = vadd.f32 1.0, %v9639_v3 }
0x105a   :  { %v6177_v53 = vpop.f32.mrb[14].mxu1 }
0x105b   :  { %v6179_v42 = vpop.f32.mrb[15].mxu1  ;;  %v9231_v26 = vadd.f32 %v12982_v54, %v6177_v53 }
0x105c   :  { %v9233_v60 = vadd.f32 %v13334_v6, %v6179_v42 }
0x105d   :  { %v6695_v63 = vmul.f32 -1.442695, %v9231_v26  ;;  %v6699_v26 = vld [vmem:[%s12184_s8] ss:$0 sm:$0xff]  ;;  %s9882_s8 = smov [#allocation14]  }
0x105e   :  { %v6696_v48 = vmul.f32 -1.442695, %v9233_v60  ;;  %s6635_s11 = sshll.u32 %s9882_s8, 4  ;;  %s6636_s11 = int_to_ptr.vmem [resolvable:$true] %s6635_s11 }
0x105f   :  { %9640 = vpow2.f32 %v6695_v63  ;;  %s9835_s1 = scalar_lea.vmem %s6636_s11, 1024  ;;  %p9840_p7 = scmp.lt.s32.totalorder %s6636_s11, %s6636_s11 }
0x1060   :  { %9642 = vpow2.f32 %v6696_v48  ;;  %p9836_p6 = scmp.ne.s32.totalorder %s6636_s11, %s9835_s1  ;;  %p9841_p8 = scmp.lt.s32.totalorder %s9835_s1, %s9835_s1 }
0x1061   :  { %9644 = vrcp.f32 %v6338_v47 }
0x1062   :  { %9646 = vrcp.f32 %v6339_v46  ;;  %p9842_p9 = por %p9841_p8, %p9840_p7 }
0x1064   :  { %p9843_p10 = pnand %p9842_p9, %p9836_p6 }
0x1069   :  { %v9641_v55 = vpop.eup %9640 }
0x106a   :  { %v9643_v2 = vpop.eup %9642  ;;  %v6350_v57 = vadd.f32 1.0, %v9641_v55 }
0x106b   :  { %v6351_v54 = vadd.f32 1.0, %v9643_v2  ;;  %v9645_v7 = vpop.eup %9644 }
0x106c   :  { %9648 = vrcp.f32 %v6350_v57  ;;  %v9647_v49 = vpop.eup %9646 }
0x106d   :  { %9650 = vrcp.f32 %v6351_v54 }
0x1076   :  { %v9649_v36 = vpop.eup %9648 }
0x1077   :  { %v9651_v39 = vpop.eup %9650  ;;  %v6370_v31 = vmul.f32 %v9649_v36, %v11991_v10 }
0x1078   :  { %v6371_v27 = vmul.f32 %v9651_v39, %v11993_v19 }
0x109a   :  { %v6248_v53 = vpop.f32.mrb[30].mxu1 }
0x109b   :  { %v9269_v41 = vadd.f32 %v13335_v52, %v6248_v53  ;;  %v6250_v42 = vpop.f32.mrb[31].mxu1 }
0x109c   :  { %v9271_v23 = vadd.f32 %v13336_v15, %v6250_v42 }
0x109d   :  { %9652 = vtanh.f32 %v9269_v41 }
0x109e   :  { %9654 = vtanh.f32 %v9271_v23 }
0x10a7   :  { %v9653_v61 = vpop.eup %9652 }
0x10a8   :  { %v9655_v29 = vpop.eup %9654  ;;  %v6372_v1 = vmul.f32 %v9653_v61, %v9645_v7 }
0x10a9   :  { %v6373_v33 = vmul.f32 %v9655_v29, %v9647_v49 }
0x10aa   :  { %v6374_v35 = vadd.f32 %v6372_v1, %v6370_v31 }
0x10ab   :  { %v6375_v16 = vadd.f32 %v6373_v33, %v6371_v27 }
0x10da   :  { %v6319_v14 = vpop.f32.mrb[46].mxu1 }
0x10db   :  { %v9307_v30 = vadd.f32 %v11070_v11, %v6319_v14  ;;  %v6321_v17 = vpop.f32.mrb[47].mxu1 }
0x10dc   :  { %v9309_v8 = vadd.f32 %v11072_v51, %v6321_v17  ;;  %v13337_v51 = vld [vmem:[#allocation179_spill] sm:$0xff] }
0x10dd   :  { %v6697_v21 = vmul.f32 -1.442695, %v9307_v30 }
0x10de   :  { %v6698_v50 = vmul.f32 -1.442695, %v9309_v8 }
0x10df   :  { %9656 = vpow2.f32 %v6697_v21 }
0x10e0   :  { %9658 = vpow2.f32 %v6698_v50 }
0x10e1   :  { %9660 = vtanh.f32 %v6374_v35 }
0x10e2   :  { %9662 = vtanh.f32 %v6375_v16 }
0x10e9   :  { %v9657_v5 = vpop.eup %9656 }
0x10ea   :  { %v9659_v20 = vpop.eup %9658  ;;  %v6364_v10 = vadd.f32 1.0, %v9657_v5 }
0x10eb   :  { %v6365_v40 = vadd.f32 1.0, %v9659_v20  ;;  %v9661_v19 = vpop.eup %9660 }
0x10ec   :  { %9664 = vrcp.f32 %v6364_v10  ;;  %v9663_v18 = vpop.eup %9662 }
0x10ed   :  { %9666 = vrcp.f32 %v6365_v40 }
0x10f6   :  { %v9665_v22 = vpop.eup %9664 }
0x10f7   :  { %v9667_v59 = vpop.eup %9666  ;;  %v6378_v11 = vmul.f32 %v9665_v22, %v9661_v19 }
0x10f8   :  { %v6379_v32 = vmul.f32 %v9667_v59, %v9663_v18 }
0x10fa   :  { %6501 = vmatprep.mubr.f32.mxu0 %v6379_v32 }
0x10fb   :  { %6502 = vmatmul.mubr.f32.vlgmr.msra.gmra.mrb[42].mxu0 %v13337_v51 }
0x10fc   :  { %6506 = vmatprep.mubr.f32.mxu0 %v11999_v45  ;;  %v13348_v45 = vld [vmem:[#allocation178_spill] sm:$0xff] }
0x10ff   :  { %6507 = vmatmul.mubr.f32.gmra.mrb[44].mxu0 %v13338_v13 }
0x1100   :  { %6511 = vmatprep.mubr.f32.mxu0 %v13339_v38 }
0x1103   :  { %6512 = vmatmul.mubr.f32.gmra.mrb[46].mxu0 %v13340_v12 }
0x1104   :  { %6516 = vmatprep.mubr.f32.mxu0 %v13341_v44 }
0x1107   :  { %6517 = vmatmul.mubr.f32.gmra.mrb[48].mxu0 %v13342_v4 }
0x1108   :  { %6521 = vmatprep.mubr.f32.mxu0 %v13343_v62 }
0x110b   :  { %6522 = vmatmul.mubr.f32.gmra.mrb[50].mxu0 %v13344_v56 }
0x110c   :  { %6526 = vmatprep.mubr.f32.mxu0 %v13345_v58 }
0x110f   :  { %6527 = vmatmul.mubr.f32.gmra.mrb[52].mxu0 %v13346_v37 }
0x1110   :  { %6531 = vmatprep.mubr.f32.mxu0 %v13347_v43 }
0x1113   :  { %6532 = vmatmul.mubr.f32.gmra.mrb[54].mxu0 %v12001_v9 }
0x1114   :  { %6536 = vmatprep.mubr.f32.mxu0 %v13348_v45 }
0x1117   :  { %6537 = vmatmul.mubr.f32.gmra.mrb[56].mxu0 %v6378_v11 }
0x11ce   :  { %v6732_v24 = vpop.f32.mrb[42].mxu0 }
0x11cf   :  { %v6733_v0 = vpop.f32.mrb[43].mxu0 }
0x11d0   :  { %v6734_v6 = vadd.f32 %v6733_v0, %v6732_v24 }
0x11d2   :  { %v6735_v60 = vpop.f32.mrb[44].mxu0  ;;  %v6504_v25 = vadd.f32 %v6734_v6, %v6699_v26 }
0x11d3   :  { %v6736_v28 = vpop.f32.mrb[45].mxu0 }
0x11d4   :  { %v6737_v63 = vadd.f32 %v6736_v28, %v6735_v60  ;;  %6542 = vmax.xlane.f32.xlu0 %v6504_v25 }
0x11d6   :  { %v6738_v48 = vpop.f32.mrb[46].mxu0  ;;  %v6509_v34 = vadd.f32 %v6737_v63, %v6699_v26 }
0x11d7   :  { %v6739_v3 = vpop.f32.mrb[47].mxu0 }
0x11d8   :  { %v6740_v55 = vadd.f32 %v6739_v3, %v6738_v48  ;;  %6544 = vmax.xlane.f32.xlu0 %v6509_v34 }
0x11da   :  { %v6741_v9 = vpop.f32.mrb[48].mxu0  ;;  %v6514_v2 = vadd.f32 %v6740_v55, %v6699_v26 }
0x11db   :  { %v6742_v47 = vpop.f32.mrb[49].mxu0 }
0x11dc   :  { %v6743_v46 = vadd.f32 %v6742_v47, %v6741_v9  ;;  %6546 = vmax.xlane.f32.xlu1 %v6514_v2 }
0x11de   :  { %v6744_v57 = vpop.f32.mrb[50].mxu0  ;;  %v6519_v54 = vadd.f32 %v6743_v46, %v6699_v26 }
0x11df   :  { %v6745_v53 = vpop.f32.mrb[51].mxu0 }
0x11e0   :  { %v6746_v52 = vadd.f32 %v6745_v53, %v6744_v57  ;;  %6548 = vmax.xlane.f32.xlu1 %v6519_v54 }
0x11e2   :  { %v6747_v41 = vpop.f32.mrb[52].mxu0  ;;  %v6524_v42 = vadd.f32 %v6746_v52, %v6699_v26 }
0x11e3   :  { %v6748_v15 = vpop.f32.mrb[53].mxu0 }
0x11e4   :  { %v6749_v23 = vadd.f32 %v6748_v15, %v6747_v41  ;;  %6550 = vmax.xlane.f32.xlu0 %v6524_v42 }
0x11e6   :  { %v6750_v7 = vpop.f32.mrb[54].mxu0  ;;  %v6529_v49 = vadd.f32 %v6749_v23, %v6699_v26 }
0x11e7   :  { %v6751_v36 = vpop.f32.mrb[55].mxu0 }
0x11e8   :  { %v6752_v39 = vadd.f32 %v6751_v36, %v6750_v7  ;;  %6552 = vmax.xlane.f32.xlu1 %v6529_v49 }
0x11ea   :  { %v6753_v61 = vpop.f32.mrb[56].mxu0  ;;  %v6534_v29 = vadd.f32 %v6752_v39, %v6699_v26 }
0x11eb   :  { %v6754_v31 = vpop.f32.mrb[57].mxu0 }
0x11ec   :  { %v6755_v1 = vadd.f32 %v6754_v31, %v6753_v61  ;;  %6554 = vmax.xlane.f32.xlu0 %v6534_v29 }
0x11ee   :  { %v6539_v27 = vadd.f32 %v6755_v1, %v6699_v26 }
0x11f0   :  { %6556 = vmax.xlane.f32.xlu1 %v6539_v27 }
0x1261   :  { %v6543_v33 = vpop.xlane.xlu0 %6542 }
0x1262   :  { %v6558_v35 = vsub.f32 %v6504_v25, %v6543_v33 }
0x1264   :  { %v6566_v16 = vmul.f32 1.442695, %v6558_v35 }
0x1265   :  { %v6545_v14 = vpop.xlane.xlu0 %6544 }
0x1266   :  { %9668 = vpow2.f32 %v6566_v16  ;;  %v6559_v30 = vsub.f32 %v6509_v34, %v6545_v14 }
0x1268   :  { %v6568_v17 = vmul.f32 1.442695, %v6559_v30 }
0x1269   :  { %v6547_v8 = vpop.xlane.xlu1 %6546 }
0x126a   :  { %9670 = vpow2.f32 %v6568_v17  ;;  %v12141_v21 = vsub.f32 %v6514_v2, %v6547_v8 }
0x126c   :  { %v6570_v50 = vmul.f32 1.442695, %v12141_v21 }
0x126d   :  { %v6549_v5 = vpop.xlane.xlu1 %6548 }
0x126e   :  { %9672 = vpow2.f32 %v6570_v50  ;;  %v12144_v20 = vsub.f32 %v6519_v54, %v6549_v5 }
0x1270   :  { %v9669_v10 = vpop.eup %9668  ;;  %v6572_v40 = vmul.f32 1.442695, %v12144_v20 }
0x1271   :  { %6582 = vadd.xlane.f32.xlu0 %v9669_v10  ;;  %v6551_v19 = vpop.xlane.xlu0 %6550 }
0x1272   :  { %9674 = vpow2.f32 %v6572_v40  ;;  %v12147_v18 = vsub.f32 %v6524_v42, %v6551_v19 }
0x1274   :  { %v9671_v22 = vpop.eup %9670  ;;  %v6574_v59 = vmul.f32 1.442695, %v12147_v18 }
0x1275   :  { %v6553_v11 = vpop.xlane.xlu1 %6552  ;;  %6584 = vadd.xlane.f32.xlu1 %v9671_v22 }
0x1276   :  { %9676 = vpow2.f32 %v6574_v59  ;;  %v12150_v32 = vsub.f32 %v6529_v49, %v6553_v11 }
0x1278   :  { %v9673_v51 = vpop.eup %9672  ;;  %v6576_v13 = vmul.f32 1.442695, %v12150_v32 }
0x1279   :  { %6586 = vadd.xlane.f32.xlu0 %v9673_v51  ;;  %v6555_v38 = vpop.xlane.xlu0 %6554 }
0x127a   :  { %9678 = vpow2.f32 %v6576_v13  ;;  %v12153_v12 = vsub.f32 %v6534_v29, %v6555_v38 }
0x127c   :  { %v9675_v44 = vpop.eup %9674  ;;  %v6578_v4 = vmul.f32 1.442695, %v12153_v12 }
0x127d   :  { %v6557_v62 = vpop.xlane.xlu1 %6556  ;;  %6588 = vadd.xlane.f32.xlu1 %v9675_v44 }
0x127e   :  { %9680 = vpow2.f32 %v6578_v4  ;;  %v6565_v56 = vsub.f32 %v6539_v27, %v6557_v62 }
0x1280   :  { %v9677_v58 = vpop.eup %9676  ;;  %v6580_v37 = vmul.f32 1.442695, %v6565_v56 }
0x1281   :  { %6590 = vadd.xlane.f32.xlu0 %v9677_v58 }
0x1282   :  { %9682 = vpow2.f32 %v6580_v37 }
0x1284   :  { %v9679_v43 = vpop.eup %9678 }
0x1285   :  { %6592 = vadd.xlane.f32.xlu1 %v9679_v43 }
0x1288   :  { %v9681_v45 = vpop.eup %9680 }
0x1289   :  { %6594 = vadd.xlane.f32.xlu0 %v9681_v45 }
0x128c   :  { %v9683_v24 = vpop.eup %9682 }
0x128d   :  { %6596 = vadd.xlane.f32.xlu1 %v9683_v24 }
0x12fe   :  { %v6583_v0 = vpop.xlane.xlu0 %6582 }
0x12ff   :  { %9684 = vlog2.f32 %v6583_v0 }
0x1302   :  { %v6585_v26 = vpop.xlane.xlu1 %6584 }
0x1303   :  { %9686 = vlog2.f32 %v6585_v26 }
0x1306   :  { %v6587_v6 = vpop.xlane.xlu0 %6586 }
0x1307   :  { %9688 = vlog2.f32 %v6587_v6 }
0x1309   :  { %v9685_v60 = vpop.eup %9684 }
0x130a   :  { %v6599_v25 = vmul.f32 0.6931472, %v9685_v60  ;;  %v6589_v28 = vpop.xlane.xlu1 %6588 }
0x130b   :  { %9690 = vlog2.f32 %v6589_v28 }
0x130c   :  { %v6614_v63 = vsub.f32 %v6558_v35, %v6599_v25 }
0x130d   :  { %v9687_v48 = vpop.eup %9686 }
0x130e   :  { %6622 = vst [vmem:[#allocation14] sm:$0xff] %v6614_v63  ;;  %v6601_v34 = vmul.f32 0.6931472, %v9687_v48  ;;  %v6591_v3 = vpop.xlane.xlu0 %6590 }
0x130f   :  { %9692 = vlog2.f32 %v6591_v3 }
0x1310   :  { %v6615_v55 = vsub.f32 %v6559_v30, %v6601_v34 }
0x1311   :  { %v9689_v9 = vpop.eup %9688 }
0x1312   :  { %6623 = vst [vmem:[#allocation14 + $0x8] sm:$0xff] %v6615_v55  ;;  %v6603_v2 = vmul.f32 0.6931472, %v9689_v9  ;;  %v6593_v47 = vpop.xlane.xlu1 %6592 }
0x1313   :  { %9694 = vlog2.f32 %v6593_v47 }
0x1314   :  { %v6616_v46 = vsub.f32 %v12141_v21, %v6603_v2 }
0x1315   :  { %v9691_v57 = vpop.eup %9690 }
0x1316   :  { %6624 = vst [vmem:[#allocation14 + $0x10] sm:$0xff] %v6616_v46  ;;  %v6605_v54 = vmul.f32 0.6931472, %v9691_v57  ;;  %v6595_v53 = vpop.xlane.xlu0 %6594 }
0x1317   :  { %9696 = vlog2.f32 %v6595_v53 }
0x1318   :  { %v6617_v52 = vsub.f32 %v12144_v20, %v6605_v54 }
0x1319   :  { %v9693_v41 = vpop.eup %9692 }
0x131a   :  { %6625 = vst [vmem:[#allocation14 + $0x18] sm:$0xff] %v6617_v52  ;;  %v6607_v42 = vmul.f32 0.6931472, %v9693_v41  ;;  %v6597_v15 = vpop.xlane.xlu1 %6596 }
0x131b   :  { %9698 = vlog2.f32 %v6597_v15 }
0x131c   :  { %v6618_v23 = vsub.f32 %v12147_v18, %v6607_v42 }
0x131d   :  { %v9695_v7 = vpop.eup %9694 }
0x131e   :  { %6626 = vst [vmem:[#allocation14 + $0x20] sm:$0xff] %v6618_v23  ;;  %v6609_v49 = vmul.f32 0.6931472, %v9695_v7 }
0x1320   :  { %v6619_v36 = vsub.f32 %v12150_v32, %v6609_v49 }
0x1321   :  { %v9697_v39 = vpop.eup %9696 }
0x1322   :  { %6627 = vst [vmem:[#allocation14 + $0x28] sm:$0xff] %v6619_v36  ;;  %v6611_v61 = vmul.f32 0.6931472, %v9697_v39 }
0x1324   :  { %v6620_v29 = vsub.f32 %v12153_v12, %v6611_v61 }
0x1325   :  { %v9699_v31 = vpop.eup %9698 }
0x1326   :  { %6628 = vst [vmem:[#allocation14 + $0x30] sm:$0xff] %v6620_v29  ;;  %v6613_v1 = vmul.f32 0.6931472, %v9699_v31 }
0x1328   :  { %v6621_v27 = vsub.f32 %v6565_v56, %v6613_v1 }
0x132a   :  { %6629 = vst [vmem:[#allocation14 + $0x38] sm:$0xff] %v6621_v27 }
0x132b   :  { %9846 = shalt.err (!%p9843_p10)
}
0x132c   :  { %s9847_s14 = scalar_lea.hbm %s12185_s9, 1024 }
0x132d   :  { %p9848_p11 = scmp.ne.s32.totalorder %s12185_s9, %s9847_s14  ;;  %p9851_p12 = scmp.lt.u32.totalorder %s9847_s14, %s12185_s9 }
0x132f   :  { %p9853_p13 = pnand %p9851_p12, %p9848_p11 }
0x1331   :  { %9856 = shalt.err (!%p9853_p13)
}
0x1332   :  { %6641 = dma.vmem_to_hbm [thread:$0]  %s6636_s11, 1024, %s12185_s9, [#allocation5], %s9868_s19, %s9868_s19, %s9869_s20  }
0x1333   :  { %9865 = dma.done.wait [#allocation5], 1024  }
0x1334   :  { %9866 = vsyncadd [#allocation5], 4294966272 }
0x1335   :  { %6645 = vsyncpa [#allocation4], 1 }
0x1336   :  { %6646 = vsyncpa [#allocation7], 1 }
0x1337   :  { %6647 = vsyncpa [#allocation10], 1 }
0x1338   :  { %6648 = vsyncpa [#allocation13], 1 }
0x1339   :  { %6649 = vsyncpa [#allocation5], 1 }

</bundles_post_ra>
